<compile_context>
chip_gen: v7x
topology: tpu7x:2x2x1
jax: 0.10.0
libtpu: 0.0.40
codegen_flags: <defaults>
</compile_context>

<pallas_src>
import functools

import jax
import jax.numpy as jnp
from jax.experimental import pallas as pl
from jax.experimental.pallas import tpu as pltpu


def _round_up(x, m):
    return ((x + m - 1) // m) * m


# ---------------------------------------------------------------------------
# Fused kernel: all GRU layers + classifier in one invocation.
# ---------------------------------------------------------------------------
def gru_stack_kernel(x_ref, wih_ref, whh_ref, bih_ref, bhn_ref, wc_ref, bc_ref,
                     out_ref, xp_a_ref, xp_b_ref,
                     *, n_layers, n_steps, b_pad, hidden):
    """Shapes (D = padded contraction dim, G = 2*D packed gates, BP, T, H):

    x_ref   : (T*BP, D)  bf16  time-major, batch/feature-padded input
    wih_ref : (L, D, G)  bf16  packed+transposed W_ih (cols: r@0, z@H, n@D)
    whh_ref : (L, D, G)  bf16  packed+transposed W_hh (same column layout)
    bih_ref : (L, 1, G)  f32   b_ih with b_hr/b_hz folded (n slot = b_in only)
    bhn_ref : (L, 1, D)  f32   b_hn (must stay inside r*(...))
    wc_ref  : (D, Cp)    bf16  classifier weight (pre-transposed, padded)
    bc_ref  : (1, Cp)    f32   classifier bias (padded)
    out_ref : (BP, Cp)   f32   logits (lane-dense full-vreg store)
    xp_a/b  : (T*BP, G)  f32   double-buffered input-projection scratch
    """
    BP = b_pad
    T = n_steps
    H = hidden
    D = bhn_ref.shape[2]            # padded contraction / h width
    G = wih_ref.shape[2]            # 2*D: [r|z] tile then [n] tile

    # Layer 0 hoisted input projection: one MXU pass over the whole sequence.
    xp_a_ref[...] = (jnp.dot(x_ref[...], wih_ref[0],
                             preferred_element_type=jnp.float32)
                     + bih_ref[0])

    xp_refs = (xp_a_ref, xp_b_ref)
    h16 = None
    for l in range(n_layers):                       # static, unrolled (L small)
        cur = xp_refs[l % 2]
        last = (l + 1 == n_layers)

        # Hoisted per-layer broadcasts (not CSE'd if left inside the t-loop).
        bhn_b = jnp.broadcast_to(bhn_ref[l], (BP, D))
        if not last:
            nxt = xp_refs[(l + 1) % 2]
            bih_n = jnp.broadcast_to(bih_ref[l + 1], (BP, G))

        h = None
        for t in range(T):                          # static, unrolled (T small)
            xp_t = cur[t * BP:(t + 1) * BP, :]      # (BP, G): 2 vregs, static slice
            if t == 0:
                # h_0 == 0: skip h @ W_hh on the serial chain.
                rz_pre = xp_t[:, 0:D]
                n_hh = bhn_b
            else:
                hp = jnp.dot(h16, whh_ref[l],
                             preferred_element_type=jnp.float32)   # (BP, G)
                rz_pre = xp_t[:, 0:D] + hp[:, 0:D]
                n_hh = hp[:, D:2 * D] + bhn_b
            rz = jax.nn.sigmoid(rz_pre)             # r in lanes [0:H], z in [H:2H]
            z = pltpu.roll(rz, D - H, axis=1)       # z -> lanes [0:H] (XLU rotate)
            n = jnp.tanh(xp_t[:, D:2 * D] + rz * n_hh)
            if t == 0:
                h = (1.0 - z) * n
            else:
                h = (1.0 - z) * n + z * h
            h16 = h.astype(jnp.bfloat16)
            if not last:
                # Interleaved next-layer projection: hides behind this layer's
                # recurrence instead of a big serial matmul between layers.
                nxt[t * BP:(t + 1) * BP, :] = (
                    jnp.dot(h16, wih_ref[l + 1],
                            preferred_element_type=jnp.float32) + bih_n)

    # Classifier on the last layer's final hidden state (== hidden[-1]).
    out_ref[...] = (jnp.dot(h16, wc_ref[...], preferred_element_type=jnp.float32)
                    + bc_ref[...]).astype(out_ref.dtype)


# ---------------------------------------------------------------------------
# Wrapper
# ---------------------------------------------------------------------------
@functools.partial(jax.jit, static_argnames=("n_classes", "n_hidden"))
def gru_model_forward(x, packed, *, n_classes, n_hidden):
    """x: (B, T, F) batch-first.  Returns (B, n_classes) logits."""
    B, T, F = x.shape
    L, D, G = packed["wih"].shape
    Cp = packed["wc"].shape[1]
    Bp = _round_up(B, 8)

    # batch-first -> time-major, zero-pad batch (to 8) and features (to D), flatten.
    xt = jnp.transpose(x, (1, 0, 2))                       # (T, B, F)
    xt = jnp.pad(xt, ((0, 0), (0, Bp - B), (0, D - F)))    # (T, Bp, D)
    x2d = xt.reshape(T * Bp, D).astype(jnp.bfloat16)

    kernel = functools.partial(gru_stack_kernel, n_layers=L, n_steps=T,
                               b_pad=Bp, hidden=n_hidden)
    out = pl.pallas_call(
        kernel,
        out_shape=jax.ShapeDtypeStruct((Bp, Cp), jnp.float32),
        grid=(),
        in_specs=[
            pl.BlockSpec((T * Bp, D), lambda: (0, 0)),
            pl.BlockSpec((L, D, G), lambda: (0, 0, 0)),
            pl.BlockSpec((L, D, G), lambda: (0, 0, 0)),
            pl.BlockSpec((L, 1, G), lambda: (0, 0, 0)),
            pl.BlockSpec((L, 1, D), lambda: (0, 0, 0)),
            pl.BlockSpec((D, Cp), lambda: (0, 0)),
            pl.BlockSpec((1, Cp), lambda: (0, 0)),
        ],
        out_specs=pl.BlockSpec((Bp, Cp), lambda: (0, 0)),
        scratch_shapes=[pltpu.VMEM((T * Bp, G), jnp.float32),
                        pltpu.VMEM((T * Bp, G), jnp.float32)],
    )(x2d, packed["wih"], packed["whh"], packed["bih"], packed["bhn"],
      packed["wc"], packed["bc"])
    return out[:B, :n_classes]


# ---------------------------------------------------------------------------
# Parameters: PyTorch-layout init + packing into the kernel layout.
# ---------------------------------------------------------------------------
def init_params(key, n_features, n_classes, n_hidden, n_layers):
    """nn.GRU / nn.Linear layouts: w_ih (3H,in), w_hh (3H,H), biases (3H,)."""
    scale = 1.0 / float(n_hidden) ** 0.5

    def u(k, shape):
        return jax.random.uniform(k, shape, jnp.float32, -scale, scale)

    layers = []
    for layer in range(n_layers):
        in_dim = n_features if layer == 0 else n_hidden
        key, k1, k2, k3, k4 = jax.random.split(key, 5)
        layers.append({
            "w_ih": u(k1, (3 * n_hidden, in_dim)),
            "w_hh": u(k2, (3 * n_hidden, n_hidden)),
            "b_ih": u(k3, (3 * n_hidden,)),
            "b_hh": u(k4, (3 * n_hidden,)),
        })
    key, k5, k6 = jax.random.split(key, 3)
    return {
        "layers": layers,
        "cls_w": u(k5, (n_classes, n_hidden)),
        "cls_b": u(k6, (n_classes,)),
    }


def pack_params(params, n_features, n_hidden, n_classes):
    """Pad to lane/sublane-friendly sizes, transpose, pack gates (r|z in one
    128-lane tile, n in a second), fold b_hr/b_hz into the projection bias, and
    cast matmul weights to bf16 (accumulation stays f32 in-kernel)."""
    H = n_hidden
    assert 2 * H <= 128, "packed r|z gate tile requires 2*n_hidden <= 128"
    D = _round_up(max(n_features, n_hidden), 128)
    G = 2 * D
    Cp = _round_up(n_classes, 128)
    L = len(params["layers"])

    wih = jnp.zeros((L, D, G), jnp.float32)
    whh = jnp.zeros((L, D, G), jnp.float32)
    bih = jnp.zeros((L, 1, G), jnp.float32)
    bhn = jnp.zeros((L, 1, D), jnp.float32)

    col = (0, H, D)   # packed gate-column offsets: r -> 0, z -> H, n -> D

    for l, p in enumerate(params["layers"]):
        in_dim = p["w_ih"].shape[1]
        for g in range(3):  # PyTorch gate order: r, z, n
            c = col[g]
            wih = wih.at[l, :in_dim, c:c + H].set(p["w_ih"][g * H:(g + 1) * H, :].T)
            whh = whh.at[l, :H, c:c + H].set(p["w_hh"][g * H:(g + 1) * H, :].T)
            bg = p["b_ih"][g * H:(g + 1) * H]
            if g < 2:  # fold b_hr / b_hz into the hoisted projection bias
                bg = bg + p["b_hh"][g * H:(g + 1) * H]
            bih = bih.at[l, 0, c:c + H].set(bg)
        bhn = bhn.at[l, 0, :H].set(p["b_hh"][2 * H:3 * H])

    wc = jnp.zeros((D, Cp), jnp.float32).at[:H, :n_classes].set(params["cls_w"].T)
    bc = jnp.zeros((1, Cp), jnp.float32).at[0, :n_classes].set(params["cls_b"])

    return {
        "wih": wih.astype(jnp.bfloat16),
        "whh": whh.astype(jnp.bfloat16),
        "bih": bih,
        "bhn": bhn,
        "wc": wc.astype(jnp.bfloat16),
        "bc": bc,
    }


# ---------------------------------------------------------------------------
# Pure-JAX reference (f32) for a sanity check of the packing / gate math.
# ---------------------------------------------------------------------------
def gru_reference(x, params):
    B = x.shape[0]
    h_in = x
    h = None
    for p in params["layers"]:
        H = p["w_hh"].shape[1]
        h = jnp.zeros((B, H), jnp.float32)
        outs = []
        for t in range(h_in.shape[1]):
            xt = h_in[:, t, :]
            gi = xt @ p["w_ih"].T + p["b_ih"]
            gh = h @ p["w_hh"].T + p["b_hh"]
            r = jax.nn.sigmoid(gi[:, :H] + gh[:, :H])
            z = jax.nn.sigmoid(gi[:, H:2 * H] + gh[:, H:2 * H])
            n = jnp.tanh(gi[:, 2 * H:] + r * gh[:, 2 * H:])
            h = (1.0 - z) * n + z * h
            outs.append(h)
        h_in = jnp.stack(outs, axis=1)
    return h @ params["cls_w"].T + params["cls_b"]


# ---------------------------------------------------------------------------
if __name__ == "__main__":
    B, T, F = 2, 8, 4          # batch, seq len, n_features
    H, C, L = 32, 3, 5         # n_hidden, n_classes, n_layers

    key = jax.random.PRNGKey(0)
    key, xk = jax.random.split(key)
    x = jax.random.normal(xk, (B, T, F), jnp.float32)

    params = init_params(key, n_features=F, n_classes=C, n_hidden=H, n_layers=L)
    packed = pack_params(params, n_features=F, n_hidden=H, n_classes=C)

    logits = gru_model_forward(x, packed, n_classes=C, n_hidden=H)
    jax.block_until_ready(logits)
    assert logits.shape == (B, C), logits.shape

    # Loose tolerance: kernel uses bf16 MXU weights, reference is pure f32.
    ref = gru_reference(x, params)
    assert jnp.allclose(logits, ref, atol=1e-1, rtol=1e-1), (logits, ref)

    print("KERNEL_OK")
</pallas_src>

<mosaic_0001>
module attributes {stable_mosaic.version = 11 : i64} {
  func.func @gru_stack_kernel(%arg0: memref<64x128xbf16, #tpu.memory_space<vmem>>, %arg1: memref<5x128x256xbf16, #tpu.memory_space<vmem>>, %arg2: memref<5x128x256xbf16, #tpu.memory_space<vmem>>, %arg3: memref<5x1x256xf32, #tpu.memory_space<vmem>>, %arg4: memref<5x1x128xf32, #tpu.memory_space<vmem>>, %arg5: memref<128x128xbf16, #tpu.memory_space<vmem>>, %arg6: memref<1x128xf32, #tpu.memory_space<vmem>>, %arg7: memref<8x128xf32, #tpu.memory_space<vmem>>, %arg8: memref<64x256xf32, #tpu.memory_space<vmem>>, %arg9: memref<64x256xf32, #tpu.memory_space<vmem>>) attributes {dimension_semantics = [], scalar_prefetch = 0 : i64, scratch_operands = 2 : i64, tpu.core_type = #tpu.core_type<tc>} {
    %c0 = arith.constant 0 : index
    %c0_0 = arith.constant 0 : index
    %0 = vector.load %arg0[%c0, %c0_0] : memref<64x128xbf16, #tpu.memory_space<vmem>>, vector<64x128xbf16>
    %c0_1 = arith.constant 0 : index
    %c0_2 = arith.constant 0 : index
    %c0_3 = arith.constant 0 : index
    %1 = vector.load %arg1[%c0_1, %c0_2, %c0_3] : memref<5x128x256xbf16, #tpu.memory_space<vmem>>, vector<1x128x256xbf16>
    %2 = vector.shape_cast %1 : vector<1x128x256xbf16> to vector<128x256xbf16>
    %cst = arith.constant dense<0.000000e+00> : vector<64x256xf32>
    %3 = tpu.matmul %0, %2, %cst {dimension_numbers = #tpu.dot_dimension_numbers<[1], [0], [0], [1], [0, 0, 1, 1], [], []>} : vector<64x128xbf16>, vector<128x256xbf16>, vector<64x256xf32> -> vector<64x256xf32>
    %c0_4 = arith.constant 0 : index
    %c0_5 = arith.constant 0 : index
    %c0_6 = arith.constant 0 : index
    %4 = vector.load %arg3[%c0_4, %c0_5, %c0_6] : memref<5x1x256xf32, #tpu.memory_space<vmem>>, vector<1x1x256xf32>
    %5 = vector.shape_cast %4 : vector<1x1x256xf32> to vector<1x256xf32>
    %6 = vector.broadcast %5 : vector<1x256xf32> to vector<64x256xf32>
    %7 = arith.addf %3, %6 : vector<64x256xf32>
    %c0_7 = arith.constant 0 : index
    %c0_8 = arith.constant 0 : index
    %8 = vector.load %arg8[%c0_7, %c0_8] : memref<64x256xf32, #tpu.memory_space<vmem>>, vector<64x256xf32>
    tpu.vector_store %arg8[%c0_7, %c0_8], %7 {strides = array<i32>} : memref<64x256xf32, #tpu.memory_space<vmem>>, vector<64x256xf32>,
    %c0_9 = arith.constant 0 : index
    %c0_10 = arith.constant 0 : index
    %c0_11 = arith.constant 0 : index
    %9 = vector.load %arg4[%c0_9, %c0_10, %c0_11] : memref<5x1x128xf32, #tpu.memory_space<vmem>>, vector<1x1x128xf32>
    %10 = vector.shape_cast %9 : vector<1x1x128xf32> to vector<1x128xf32>
    %11 = vector.shape_cast %10 : vector<1x128xf32> to vector<1x128xf32>
    %12 = vector.broadcast %11 : vector<1x128xf32> to vector<8x128xf32>
    %c1 = arith.constant 1 : index
    %c0_12 = arith.constant 0 : index
    %c0_13 = arith.constant 0 : index
    %13 = vector.load %arg3[%c1, %c0_12, %c0_13] : memref<5x1x256xf32, #tpu.memory_space<vmem>>, vector<1x1x256xf32>
    %14 = vector.shape_cast %13 : vector<1x1x256xf32> to vector<1x256xf32>
    %15 = vector.shape_cast %14 : vector<1x256xf32> to vector<1x256xf32>
    %16 = vector.broadcast %15 : vector<1x256xf32> to vector<8x256xf32>
    %c0_14 = arith.constant 0 : index
    %c0_15 = arith.constant 0 : index
    %17 = vector.load %arg8[%c0_14, %c0_15] : memref<64x256xf32, #tpu.memory_space<vmem>>, vector<8x256xf32>
    %18 = vector.extract_strided_slice %17 {offsets = [0, 0], sizes = [8, 128], strides = [1, 1]} : vector<8x256xf32> to vector<8x128xf32>
    %19 = arith.negf %18 : vector<8x128xf32>
    %20 = math.exp %19 : vector<8x128xf32>
    %cst_16 = arith.constant 1.000000e+00 : f32
    %21 = vector.broadcast %cst_16 : f32 to vector<8x128xf32>
    %22 = arith.addf %21, %20 : vector<8x128xf32>
    %23 = arith.divf %21, %22 : vector<8x128xf32>
    %c96_i32 = arith.constant 96 : i32
    %24 = tpu.dynamic_rotate %23 by %c96_i32 dim 1 : vector<8x128xf32>, i32 -> vector<8x128xf32>
    %25 = vector.extract_strided_slice %17 {offsets = [0, 128], sizes = [8, 128], strides = [1, 1]} : vector<8x256xf32> to vector<8x128xf32>
    %26 = arith.mulf %23, %12 : vector<8x128xf32>
    %27 = arith.addf %25, %26 : vector<8x128xf32>
    %28 = math.tanh %27 : vector<8x128xf32>
    %cst_17 = arith.constant 1.000000e+00 : f32
    %29 = vector.broadcast %cst_17 : f32 to vector<8x128xf32>
    %30 = arith.subf %29, %24 : vector<8x128xf32>
    %31 = arith.mulf %30, %28 : vector<8x128xf32>
    %32 = arith.truncf %31 : vector<8x128xf32> to vector<8x128xbf16>
    %c1_18 = arith.constant 1 : index
    %c0_19 = arith.constant 0 : index
    %c0_20 = arith.constant 0 : index
    %33 = vector.load %arg1[%c1_18, %c0_19, %c0_20] : memref<5x128x256xbf16, #tpu.memory_space<vmem>>, vector<1x128x256xbf16>
    %34 = vector.shape_cast %33 : vector<1x128x256xbf16> to vector<128x256xbf16>
    %cst_21 = arith.constant dense<0.000000e+00> : vector<8x256xf32>
    %35 = tpu.matmul %32, %34, %cst_21 {dimension_numbers = #tpu.dot_dimension_numbers<[1], [0], [0], [1], [0, 0, 1, 1], [], []>} : vector<8x128xbf16>, vector<128x256xbf16>, vector<8x256xf32> -> vector<8x256xf32>
    %36 = arith.addf %35, %16 : vector<8x256xf32>
    %c0_22 = arith.constant 0 : index
    %c0_23 = arith.constant 0 : index
    %37 = vector.load %arg9[%c0_22, %c0_23] : memref<64x256xf32, #tpu.memory_space<vmem>>, vector<8x256xf32>
    tpu.vector_store %arg9[%c0_22, %c0_23], %36 {strides = array<i32>} : memref<64x256xf32, #tpu.memory_space<vmem>>, vector<8x256xf32>,
    %c8 = arith.constant 8 : index
    %c0_24 = arith.constant 0 : index
    %38 = vector.load %arg8[%c8, %c0_24] : memref<64x256xf32, #tpu.memory_space<vmem>>, vector<8x256xf32>
    %c0_25 = arith.constant 0 : index
    %c0_26 = arith.constant 0 : index
    %c0_27 = arith.constant 0 : index
    %39 = vector.load %arg2[%c0_25, %c0_26, %c0_27] : memref<5x128x256xbf16, #tpu.memory_space<vmem>>, vector<1x128x256xbf16>
    %40 = vector.shape_cast %39 : vector<1x128x256xbf16> to vector<128x256xbf16>
    %cst_28 = arith.constant dense<0.000000e+00> : vector<8x256xf32>
    %41 = tpu.matmul %32, %40, %cst_28 {dimension_numbers = #tpu.dot_dimension_numbers<[1], [0], [0], [1], [0, 0, 1, 1], [], []>} : vector<8x128xbf16>, vector<128x256xbf16>, vector<8x256xf32> -> vector<8x256xf32>
    %42 = vector.extract_strided_slice %38 {offsets = [0, 0], sizes = [8, 128], strides = [1, 1]} : vector<8x256xf32> to vector<8x128xf32>
    %43 = vector.extract_strided_slice %41 {offsets = [0, 0], sizes = [8, 128], strides = [1, 1]} : vector<8x256xf32> to vector<8x128xf32>
    %44 = arith.addf %42, %43 : vector<8x128xf32>
    %45 = vector.extract_strided_slice %41 {offsets = [0, 128], sizes = [8, 128], strides = [1, 1]} : vector<8x256xf32> to vector<8x128xf32>
    %46 = arith.addf %45, %12 : vector<8x128xf32>
    %47 = arith.negf %44 : vector<8x128xf32>
    %48 = math.exp %47 : vector<8x128xf32>
    %cst_29 = arith.constant 1.000000e+00 : f32
    %49 = vector.broadcast %cst_29 : f32 to vector<8x128xf32>
    %50 = arith.addf %49, %48 : vector<8x128xf32>
    %51 = arith.divf %49, %50 : vector<8x128xf32>
    %c96_i32_30 = arith.constant 96 : i32
    %52 = tpu.dynamic_rotate %51 by %c96_i32_30 dim 1 : vector<8x128xf32>, i32 -> vector<8x128xf32>
    %53 = vector.extract_strided_slice %38 {offsets = [0, 128], sizes = [8, 128], strides = [1, 1]} : vector<8x256xf32> to vector<8x128xf32>
    %54 = arith.mulf %51, %46 : vector<8x128xf32>
    %55 = arith.addf %53, %54 : vector<8x128xf32>
    %56 = math.tanh %55 : vector<8x128xf32>
    %cst_31 = arith.constant 1.000000e+00 : f32
    %57 = vector.broadcast %cst_31 : f32 to vector<8x128xf32>
    %58 = arith.subf %57, %52 : vector<8x128xf32>
    %59 = arith.mulf %58, %56 : vector<8x128xf32>
    %60 = arith.mulf %52, %31 : vector<8x128xf32>
    %61 = arith.addf %59, %60 : vector<8x128xf32>
    %62 = arith.truncf %61 : vector<8x128xf32> to vector<8x128xbf16>
    %c1_32 = arith.constant 1 : index
    %c0_33 = arith.constant 0 : index
    %c0_34 = arith.constant 0 : index
    %63 = vector.load %arg1[%c1_32, %c0_33, %c0_34] : memref<5x128x256xbf16, #tpu.memory_space<vmem>>, vector<1x128x256xbf16>
    %64 = vector.shape_cast %63 : vector<1x128x256xbf16> to vector<128x256xbf16>
    %cst_35 = arith.constant dense<0.000000e+00> : vector<8x256xf32>
    %65 = tpu.matmul %62, %64, %cst_35 {dimension_numbers = #tpu.dot_dimension_numbers<[1], [0], [0], [1], [0, 0, 1, 1], [], []>} : vector<8x128xbf16>, vector<128x256xbf16>, vector<8x256xf32> -> vector<8x256xf32>
    %66 = arith.addf %65, %16 : vector<8x256xf32>
    %c8_36 = arith.constant 8 : index
    %c0_37 = arith.constant 0 : index
    %67 = vector.load %arg9[%c8_36, %c0_37] : memref<64x256xf32, #tpu.memory_space<vmem>>, vector<8x256xf32>
    tpu.vector_store %arg9[%c8_36, %c0_37], %66 {strides = array<i32>} : memref<64x256xf32, #tpu.memory_space<vmem>>, vector<8x256xf32>,
    %c16 = arith.constant 16 : index
    %c0_38 = arith.constant 0 : index
    %68 = vector.load %arg8[%c16, %c0_38] : memref<64x256xf32, #tpu.memory_space<vmem>>, vector<8x256xf32>
    %c0_39 = arith.constant 0 : index
    %c0_40 = arith.constant 0 : index
    %c0_41 = arith.constant 0 : index
    %69 = vector.load %arg2[%c0_39, %c0_40, %c0_41] : memref<5x128x256xbf16, #tpu.memory_space<vmem>>, vector<1x128x256xbf16>
    %70 = vector.shape_cast %69 : vector<1x128x256xbf16> to vector<128x256xbf16>
    %cst_42 = arith.constant dense<0.000000e+00> : vector<8x256xf32>
    %71 = tpu.matmul %62, %70, %cst_42 {dimension_numbers = #tpu.dot_dimension_numbers<[1], [0], [0], [1], [0, 0, 1, 1], [], []>} : vector<8x128xbf16>, vector<128x256xbf16>, vector<8x256xf32> -> vector<8x256xf32>
    %72 = vector.extract_strided_slice %68 {offsets = [0, 0], sizes = [8, 128], strides = [1, 1]} : vector<8x256xf32> to vector<8x128xf32>
    %73 = vector.extract_strided_slice %71 {offsets = [0, 0], sizes = [8, 128], strides = [1, 1]} : vector<8x256xf32> to vector<8x128xf32>
    %74 = arith.addf %72, %73 : vector<8x128xf32>
    %75 = vector.extract_strided_slice %71 {offsets = [0, 128], sizes = [8, 128], strides = [1, 1]} : vector<8x256xf32> to vector<8x128xf32>
    %76 = arith.addf %75, %12 : vector<8x128xf32>
    %77 = arith.negf %74 : vector<8x128xf32>
    %78 = math.exp %77 : vector<8x128xf32>
    %cst_43 = arith.constant 1.000000e+00 : f32
    %79 = vector.broadcast %cst_43 : f32 to vector<8x128xf32>
    %80 = arith.addf %79, %78 : vector<8x128xf32>
    %81 = arith.divf %79, %80 : vector<8x128xf32>
    %c96_i32_44 = arith.constant 96 : i32
    %82 = tpu.dynamic_rotate %81 by %c96_i32_44 dim 1 : vector<8x128xf32>, i32 -> vector<8x128xf32>
    %83 = vector.extract_strided_slice %68 {offsets = [0, 128], sizes = [8, 128], strides = [1, 1]} : vector<8x256xf32> to vector<8x128xf32>
    %84 = arith.mulf %81, %76 : vector<8x128xf32>
    %85 = arith.addf %83, %84 : vector<8x128xf32>
    %86 = math.tanh %85 : vector<8x128xf32>
    %cst_45 = arith.constant 1.000000e+00 : f32
    %87 = vector.broadcast %cst_45 : f32 to vector<8x128xf32>
    %88 = arith.subf %87, %82 : vector<8x128xf32>
    %89 = arith.mulf %88, %86 : vector<8x128xf32>
    %90 = arith.mulf %82, %61 : vector<8x128xf32>
    %91 = arith.addf %89, %90 : vector<8x128xf32>
    %92 = arith.truncf %91 : vector<8x128xf32> to vector<8x128xbf16>
    %c1_46 = arith.constant 1 : index
    %c0_47 = arith.constant 0 : index
    %c0_48 = arith.constant 0 : index
    %93 = vector.load %arg1[%c1_46, %c0_47, %c0_48] : memref<5x128x256xbf16, #tpu.memory_space<vmem>>, vector<1x128x256xbf16>
    %94 = vector.shape_cast %93 : vector<1x128x256xbf16> to vector<128x256xbf16>
    %cst_49 = arith.constant dense<0.000000e+00> : vector<8x256xf32>
    %95 = tpu.matmul %92, %94, %cst_49 {dimension_numbers = #tpu.dot_dimension_numbers<[1], [0], [0], [1], [0, 0, 1, 1], [], []>} : vector<8x128xbf16>, vector<128x256xbf16>, vector<8x256xf32> -> vector<8x256xf32>
    %96 = arith.addf %95, %16 : vector<8x256xf32>
    %c16_50 = arith.constant 16 : index
    %c0_51 = arith.constant 0 : index
    %97 = vector.load %arg9[%c16_50, %c0_51] : memref<64x256xf32, #tpu.memory_space<vmem>>, vector<8x256xf32>
    tpu.vector_store %arg9[%c16_50, %c0_51], %96 {strides = array<i32>} : memref<64x256xf32, #tpu.memory_space<vmem>>, vector<8x256xf32>,
    %c24 = arith.constant 24 : index
    %c0_52 = arith.constant 0 : index
    %98 = vector.load %arg8[%c24, %c0_52] : memref<64x256xf32, #tpu.memory_space<vmem>>, vector<8x256xf32>
    %c0_53 = arith.constant 0 : index
    %c0_54 = arith.constant 0 : index
    %c0_55 = arith.constant 0 : index
    %99 = vector.load %arg2[%c0_53, %c0_54, %c0_55] : memref<5x128x256xbf16, #tpu.memory_space<vmem>>, vector<1x128x256xbf16>
    %100 = vector.shape_cast %99 : vector<1x128x256xbf16> to vector<128x256xbf16>
    %cst_56 = arith.constant dense<0.000000e+00> : vector<8x256xf32>
    %101 = tpu.matmul %92, %100, %cst_56 {dimension_numbers = #tpu.dot_dimension_numbers<[1], [0], [0], [1], [0, 0, 1, 1], [], []>} : vector<8x128xbf16>, vector<128x256xbf16>, vector<8x256xf32> -> vector<8x256xf32>
    %102 = vector.extract_strided_slice %98 {offsets = [0, 0], sizes = [8, 128], strides = [1, 1]} : vector<8x256xf32> to vector<8x128xf32>
    %103 = vector.extract_strided_slice %101 {offsets = [0, 0], sizes = [8, 128], strides = [1, 1]} : vector<8x256xf32> to vector<8x128xf32>
    %104 = arith.addf %102, %103 : vector<8x128xf32>
    %105 = vector.extract_strided_slice %101 {offsets = [0, 128], sizes = [8, 128], strides = [1, 1]} : vector<8x256xf32> to vector<8x128xf32>
    %106 = arith.addf %105, %12 : vector<8x128xf32>
    %107 = arith.negf %104 : vector<8x128xf32>
    %108 = math.exp %107 : vector<8x128xf32>
    %cst_57 = arith.constant 1.000000e+00 : f32
    %109 = vector.broadcast %cst_57 : f32 to vector<8x128xf32>
    %110 = arith.addf %109, %108 : vector<8x128xf32>
    %111 = arith.divf %109, %110 : vector<8x128xf32>
    %c96_i32_58 = arith.constant 96 : i32
    %112 = tpu.dynamic_rotate %111 by %c96_i32_58 dim 1 : vector<8x128xf32>, i32 -> vector<8x128xf32>
    %113 = vector.extract_strided_slice %98 {offsets = [0, 128], sizes = [8, 128], strides = [1, 1]} : vector<8x256xf32> to vector<8x128xf32>
    %114 = arith.mulf %111, %106 : vector<8x128xf32>
    %115 = arith.addf %113, %114 : vector<8x128xf32>
    %116 = math.tanh %115 : vector<8x128xf32>
    %cst_59 = arith.constant 1.000000e+00 : f32
    %117 = vector.broadcast %cst_59 : f32 to vector<8x128xf32>
    %118 = arith.subf %117, %112 : vector<8x128xf32>
    %119 = arith.mulf %118, %116 : vector<8x128xf32>
    %120 = arith.mulf %112, %91 : vector<8x128xf32>
    %121 = arith.addf %119, %120 : vector<8x128xf32>
    %122 = arith.truncf %121 : vector<8x128xf32> to vector<8x128xbf16>
    %c1_60 = arith.constant 1 : index
    %c0_61 = arith.constant 0 : index
    %c0_62 = arith.constant 0 : index
    %123 = vector.load %arg1[%c1_60, %c0_61, %c0_62] : memref<5x128x256xbf16, #tpu.memory_space<vmem>>, vector<1x128x256xbf16>
    %124 = vector.shape_cast %123 : vector<1x128x256xbf16> to vector<128x256xbf16>
    %cst_63 = arith.constant dense<0.000000e+00> : vector<8x256xf32>
    %125 = tpu.matmul %122, %124, %cst_63 {dimension_numbers = #tpu.dot_dimension_numbers<[1], [0], [0], [1], [0, 0, 1, 1], [], []>} : vector<8x128xbf16>, vector<128x256xbf16>, vector<8x256xf32> -> vector<8x256xf32>
    %126 = arith.addf %125, %16 : vector<8x256xf32>
    %c24_64 = arith.constant 24 : index
    %c0_65 = arith.constant 0 : index
    %127 = vector.load %arg9[%c24_64, %c0_65] : memref<64x256xf32, #tpu.memory_space<vmem>>, vector<8x256xf32>
    tpu.vector_store %arg9[%c24_64, %c0_65], %126 {strides = array<i32>} : memref<64x256xf32, #tpu.memory_space<vmem>>, vector<8x256xf32>,
    %c32 = arith.constant 32 : index
    %c0_66 = arith.constant 0 : index
    %128 = vector.load %arg8[%c32, %c0_66] : memref<64x256xf32, #tpu.memory_space<vmem>>, vector<8x256xf32>
    %c0_67 = arith.constant 0 : index
    %c0_68 = arith.constant 0 : index
    %c0_69 = arith.constant 0 : index
    %129 = vector.load %arg2[%c0_67, %c0_68, %c0_69] : memref<5x128x256xbf16, #tpu.memory_space<vmem>>, vector<1x128x256xbf16>
    %130 = vector.shape_cast %129 : vector<1x128x256xbf16> to vector<128x256xbf16>
    %cst_70 = arith.constant dense<0.000000e+00> : vector<8x256xf32>
    %131 = tpu.matmul %122, %130, %cst_70 {dimension_numbers = #tpu.dot_dimension_numbers<[1], [0], [0], [1], [0, 0, 1, 1], [], []>} : vector<8x128xbf16>, vector<128x256xbf16>, vector<8x256xf32> -> vector<8x256xf32>
    %132 = vector.extract_strided_slice %128 {offsets = [0, 0], sizes = [8, 128], strides = [1, 1]} : vector<8x256xf32> to vector<8x128xf32>
    %133 = vector.extract_strided_slice %131 {offsets = [0, 0], sizes = [8, 128], strides = [1, 1]} : vector<8x256xf32> to vector<8x128xf32>
    %134 = arith.addf %132, %133 : vector<8x128xf32>
    %135 = vector.extract_strided_slice %131 {offsets = [0, 128], sizes = [8, 128], strides = [1, 1]} : vector<8x256xf32> to vector<8x128xf32>
    %136 = arith.addf %135, %12 : vector<8x128xf32>
    %137 = arith.negf %134 : vector<8x128xf32>
    %138 = math.exp %137 : vector<8x128xf32>
    %cst_71 = arith.constant 1.000000e+00 : f32
    %139 = vector.broadcast %cst_71 : f32 to vector<8x128xf32>
    %140 = arith.addf %139, %138 : vector<8x128xf32>
    %141 = arith.divf %139, %140 : vector<8x128xf32>
    %c96_i32_72 = arith.constant 96 : i32
    %142 = tpu.dynamic_rotate %141 by %c96_i32_72 dim 1 : vector<8x128xf32>, i32 -> vector<8x128xf32>
    %143 = vector.extract_strided_slice %128 {offsets = [0, 128], sizes = [8, 128], strides = [1, 1]} : vector<8x256xf32> to vector<8x128xf32>
    %144 = arith.mulf %141, %136 : vector<8x128xf32>
    %145 = arith.addf %143, %144 : vector<8x128xf32>
    %146 = math.tanh %145 : vector<8x128xf32>
    %cst_73 = arith.constant 1.000000e+00 : f32
    %147 = vector.broadcast %cst_73 : f32 to vector<8x128xf32>
    %148 = arith.subf %147, %142 : vector<8x128xf32>
    %149 = arith.mulf %148, %146 : vector<8x128xf32>
    %150 = arith.mulf %142, %121 : vector<8x128xf32>
    %151 = arith.addf %149, %150 : vector<8x128xf32>
    %152 = arith.truncf %151 : vector<8x128xf32> to vector<8x128xbf16>
    %c1_74 = arith.constant 1 : index
    %c0_75 = arith.constant 0 : index
    %c0_76 = arith.constant 0 : index
    %153 = vector.load %arg1[%c1_74, %c0_75, %c0_76] : memref<5x128x256xbf16, #tpu.memory_space<vmem>>, vector<1x128x256xbf16>
    %154 = vector.shape_cast %153 : vector<1x128x256xbf16> to vector<128x256xbf16>
    %cst_77 = arith.constant dense<0.000000e+00> : vector<8x256xf32>
    %155 = tpu.matmul %152, %154, %cst_77 {dimension_numbers = #tpu.dot_dimension_numbers<[1], [0], [0], [1], [0, 0, 1, 1], [], []>} : vector<8x128xbf16>, vector<128x256xbf16>, vector<8x256xf32> -> vector<8x256xf32>
    %156 = arith.addf %155, %16 : vector<8x256xf32>
    %c32_78 = arith.constant 32 : index
    %c0_79 = arith.constant 0 : index
    %157 = vector.load %arg9[%c32_78, %c0_79] : memref<64x256xf32, #tpu.memory_space<vmem>>, vector<8x256xf32>
    tpu.vector_store %arg9[%c32_78, %c0_79], %156 {strides = array<i32>} : memref<64x256xf32, #tpu.memory_space<vmem>>, vector<8x256xf32>,
    %c40 = arith.constant 40 : index
    %c0_80 = arith.constant 0 : index
    %158 = vector.load %arg8[%c40, %c0_80] : memref<64x256xf32, #tpu.memory_space<vmem>>, vector<8x256xf32>
    %c0_81 = arith.constant 0 : index
    %c0_82 = arith.constant 0 : index
    %c0_83 = arith.constant 0 : index
    %159 = vector.load %arg2[%c0_81, %c0_82, %c0_83] : memref<5x128x256xbf16, #tpu.memory_space<vmem>>, vector<1x128x256xbf16>
    %160 = vector.shape_cast %159 : vector<1x128x256xbf16> to vector<128x256xbf16>
    %cst_84 = arith.constant dense<0.000000e+00> : vector<8x256xf32>
    %161 = tpu.matmul %152, %160, %cst_84 {dimension_numbers = #tpu.dot_dimension_numbers<[1], [0], [0], [1], [0, 0, 1, 1], [], []>} : vector<8x128xbf16>, vector<128x256xbf16>, vector<8x256xf32> -> vector<8x256xf32>
    %162 = vector.extract_strided_slice %158 {offsets = [0, 0], sizes = [8, 128], strides = [1, 1]} : vector<8x256xf32> to vector<8x128xf32>
    %163 = vector.extract_strided_slice %161 {offsets = [0, 0], sizes = [8, 128], strides = [1, 1]} : vector<8x256xf32> to vector<8x128xf32>
    %164 = arith.addf %162, %163 : vector<8x128xf32>
    %165 = vector.extract_strided_slice %161 {offsets = [0, 128], sizes = [8, 128], strides = [1, 1]} : vector<8x256xf32> to vector<8x128xf32>
    %166 = arith.addf %165, %12 : vector<8x128xf32>
    %167 = arith.negf %164 : vector<8x128xf32>
    %168 = math.exp %167 : vector<8x128xf32>
    %cst_85 = arith.constant 1.000000e+00 : f32
    %169 = vector.broadcast %cst_85 : f32 to vector<8x128xf32>
    %170 = arith.addf %169, %168 : vector<8x128xf32>
    %171 = arith.divf %169, %170 : vector<8x128xf32>
    %c96_i32_86 = arith.constant 96 : i32
    %172 = tpu.dynamic_rotate %171 by %c96_i32_86 dim 1 : vector<8x128xf32>, i32 -> vector<8x128xf32>
    %173 = vector.extract_strided_slice %158 {offsets = [0, 128], sizes = [8, 128], strides = [1, 1]} : vector<8x256xf32> to vector<8x128xf32>
    %174 = arith.mulf %171, %166 : vector<8x128xf32>
    %175 = arith.addf %173, %174 : vector<8x128xf32>
    %176 = math.tanh %175 : vector<8x128xf32>
    %cst_87 = arith.constant 1.000000e+00 : f32
    %177 = vector.broadcast %cst_87 : f32 to vector<8x128xf32>
    %178 = arith.subf %177, %172 : vector<8x128xf32>
    %179 = arith.mulf %178, %176 : vector<8x128xf32>
    %180 = arith.mulf %172, %151 : vector<8x128xf32>
    %181 = arith.addf %179, %180 : vector<8x128xf32>
    %182 = arith.truncf %181 : vector<8x128xf32> to vector<8x128xbf16>
    %c1_88 = arith.constant 1 : index
    %c0_89 = arith.constant 0 : index
    %c0_90 = arith.constant 0 : index
    %183 = vector.load %arg1[%c1_88, %c0_89, %c0_90] : memref<5x128x256xbf16, #tpu.memory_space<vmem>>, vector<1x128x256xbf16>
    %184 = vector.shape_cast %183 : vector<1x128x256xbf16> to vector<128x256xbf16>
    %cst_91 = arith.constant dense<0.000000e+00> : vector<8x256xf32>
    %185 = tpu.matmul %182, %184, %cst_91 {dimension_numbers = #tpu.dot_dimension_numbers<[1], [0], [0], [1], [0, 0, 1, 1], [], []>} : vector<8x128xbf16>, vector<128x256xbf16>, vector<8x256xf32> -> vector<8x256xf32>
    %186 = arith.addf %185, %16 : vector<8x256xf32>
    %c40_92 = arith.constant 40 : index
    %c0_93 = arith.constant 0 : index
    %187 = vector.load %arg9[%c40_92, %c0_93] : memref<64x256xf32, #tpu.memory_space<vmem>>, vector<8x256xf32>
    tpu.vector_store %arg9[%c40_92, %c0_93], %186 {strides = array<i32>} : memref<64x256xf32, #tpu.memory_space<vmem>>, vector<8x256xf32>,
    %c48 = arith.constant 48 : index
    %c0_94 = arith.constant 0 : index
    %188 = vector.load %arg8[%c48, %c0_94] : memref<64x256xf32, #tpu.memory_space<vmem>>, vector<8x256xf32>
    %c0_95 = arith.constant 0 : index
    %c0_96 = arith.constant 0 : index
    %c0_97 = arith.constant 0 : index
    %189 = vector.load %arg2[%c0_95, %c0_96, %c0_97] : memref<5x128x256xbf16, #tpu.memory_space<vmem>>, vector<1x128x256xbf16>
    %190 = vector.shape_cast %189 : vector<1x128x256xbf16> to vector<128x256xbf16>
    %cst_98 = arith.constant dense<0.000000e+00> : vector<8x256xf32>
    %191 = tpu.matmul %182, %190, %cst_98 {dimension_numbers = #tpu.dot_dimension_numbers<[1], [0], [0], [1], [0, 0, 1, 1], [], []>} : vector<8x128xbf16>, vector<128x256xbf16>, vector<8x256xf32> -> vector<8x256xf32>
    %192 = vector.extract_strided_slice %188 {offsets = [0, 0], sizes = [8, 128], strides = [1, 1]} : vector<8x256xf32> to vector<8x128xf32>
    %193 = vector.extract_strided_slice %191 {offsets = [0, 0], sizes = [8, 128], strides = [1, 1]} : vector<8x256xf32> to vector<8x128xf32>
    %194 = arith.addf %192, %193 : vector<8x128xf32>
    %195 = vector.extract_strided_slice %191 {offsets = [0, 128], sizes = [8, 128], strides = [1, 1]} : vector<8x256xf32> to vector<8x128xf32>
    %196 = arith.addf %195, %12 : vector<8x128xf32>
    %197 = arith.negf %194 : vector<8x128xf32>
    %198 = math.exp %197 : vector<8x128xf32>
    %cst_99 = arith.constant 1.000000e+00 : f32
    %199 = vector.broadcast %cst_99 : f32 to vector<8x128xf32>
    %200 = arith.addf %199, %198 : vector<8x128xf32>
    %201 = arith.divf %199, %200 : vector<8x128xf32>
    %c96_i32_100 = arith.constant 96 : i32
    %202 = tpu.dynamic_rotate %201 by %c96_i32_100 dim 1 : vector<8x128xf32>, i32 -> vector<8x128xf32>
    %203 = vector.extract_strided_slice %188 {offsets = [0, 128], sizes = [8, 128], strides = [1, 1]} : vector<8x256xf32> to vector<8x128xf32>
    %204 = arith.mulf %201, %196 : vector<8x128xf32>
    %205 = arith.addf %203, %204 : vector<8x128xf32>
    %206 = math.tanh %205 : vector<8x128xf32>
    %cst_101 = arith.constant 1.000000e+00 : f32
    %207 = vector.broadcast %cst_101 : f32 to vector<8x128xf32>
    %208 = arith.subf %207, %202 : vector<8x128xf32>
    %209 = arith.mulf %208, %206 : vector<8x128xf32>
    %210 = arith.mulf %202, %181 : vector<8x128xf32>
    %211 = arith.addf %209, %210 : vector<8x128xf32>
    %212 = arith.truncf %211 : vector<8x128xf32> to vector<8x128xbf16>
    %c1_102 = arith.constant 1 : index
    %c0_103 = arith.constant 0 : index
    %c0_104 = arith.constant 0 : index
    %213 = vector.load %arg1[%c1_102, %c0_103, %c0_104] : memref<5x128x256xbf16, #tpu.memory_space<vmem>>, vector<1x128x256xbf16>
    %214 = vector.shape_cast %213 : vector<1x128x256xbf16> to vector<128x256xbf16>
    %cst_105 = arith.constant dense<0.000000e+00> : vector<8x256xf32>
    %215 = tpu.matmul %212, %214, %cst_105 {dimension_numbers = #tpu.dot_dimension_numbers<[1], [0], [0], [1], [0, 0, 1, 1], [], []>} : vector<8x128xbf16>, vector<128x256xbf16>, vector<8x256xf32> -> vector<8x256xf32>
    %216 = arith.addf %215, %16 : vector<8x256xf32>
    %c48_106 = arith.constant 48 : index
    %c0_107 = arith.constant 0 : index
    %217 = vector.load %arg9[%c48_106, %c0_107] : memref<64x256xf32, #tpu.memory_space<vmem>>, vector<8x256xf32>
    tpu.vector_store %arg9[%c48_106, %c0_107], %216 {strides = array<i32>} : memref<64x256xf32, #tpu.memory_space<vmem>>, vector<8x256xf32>,
    %c56 = arith.constant 56 : index
    %c0_108 = arith.constant 0 : index
    %218 = vector.load %arg8[%c56, %c0_108] : memref<64x256xf32, #tpu.memory_space<vmem>>, vector<8x256xf32>
    %c0_109 = arith.constant 0 : index
    %c0_110 = arith.constant 0 : index
    %c0_111 = arith.constant 0 : index
    %219 = vector.load %arg2[%c0_109, %c0_110, %c0_111] : memref<5x128x256xbf16, #tpu.memory_space<vmem>>, vector<1x128x256xbf16>
    %220 = vector.shape_cast %219 : vector<1x128x256xbf16> to vector<128x256xbf16>
    %cst_112 = arith.constant dense<0.000000e+00> : vector<8x256xf32>
    %221 = tpu.matmul %212, %220, %cst_112 {dimension_numbers = #tpu.dot_dimension_numbers<[1], [0], [0], [1], [0, 0, 1, 1], [], []>} : vector<8x128xbf16>, vector<128x256xbf16>, vector<8x256xf32> -> vector<8x256xf32>
    %222 = vector.extract_strided_slice %218 {offsets = [0, 0], sizes = [8, 128], strides = [1, 1]} : vector<8x256xf32> to vector<8x128xf32>
    %223 = vector.extract_strided_slice %221 {offsets = [0, 0], sizes = [8, 128], strides = [1, 1]} : vector<8x256xf32> to vector<8x128xf32>
    %224 = arith.addf %222, %223 : vector<8x128xf32>
    %225 = vector.extract_strided_slice %221 {offsets = [0, 128], sizes = [8, 128], strides = [1, 1]} : vector<8x256xf32> to vector<8x128xf32>
    %226 = arith.addf %225, %12 : vector<8x128xf32>
    %227 = arith.negf %224 : vector<8x128xf32>
    %228 = math.exp %227 : vector<8x128xf32>
    %cst_113 = arith.constant 1.000000e+00 : f32
    %229 = vector.broadcast %cst_113 : f32 to vector<8x128xf32>
    %230 = arith.addf %229, %228 : vector<8x128xf32>
    %231 = arith.divf %229, %230 : vector<8x128xf32>
    %c96_i32_114 = arith.constant 96 : i32
    %232 = tpu.dynamic_rotate %231 by %c96_i32_114 dim 1 : vector<8x128xf32>, i32 -> vector<8x128xf32>
    %233 = vector.extract_strided_slice %218 {offsets = [0, 128], sizes = [8, 128], strides = [1, 1]} : vector<8x256xf32> to vector<8x128xf32>
    %234 = arith.mulf %231, %226 : vector<8x128xf32>
    %235 = arith.addf %233, %234 : vector<8x128xf32>
    %236 = math.tanh %235 : vector<8x128xf32>
    %cst_115 = arith.constant 1.000000e+00 : f32
    %237 = vector.broadcast %cst_115 : f32 to vector<8x128xf32>
    %238 = arith.subf %237, %232 : vector<8x128xf32>
    %239 = arith.mulf %238, %236 : vector<8x128xf32>
    %240 = arith.mulf %232, %211 : vector<8x128xf32>
    %241 = arith.addf %239, %240 : vector<8x128xf32>
    %242 = arith.truncf %241 : vector<8x128xf32> to vector<8x128xbf16>
    %c1_116 = arith.constant 1 : index
    %c0_117 = arith.constant 0 : index
    %c0_118 = arith.constant 0 : index
    %243 = vector.load %arg1[%c1_116, %c0_117, %c0_118] : memref<5x128x256xbf16, #tpu.memory_space<vmem>>, vector<1x128x256xbf16>
    %244 = vector.shape_cast %243 : vector<1x128x256xbf16> to vector<128x256xbf16>
    %cst_119 = arith.constant dense<0.000000e+00> : vector<8x256xf32>
    %245 = tpu.matmul %242, %244, %cst_119 {dimension_numbers = #tpu.dot_dimension_numbers<[1], [0], [0], [1], [0, 0, 1, 1], [], []>} : vector<8x128xbf16>, vector<128x256xbf16>, vector<8x256xf32> -> vector<8x256xf32>
    %246 = arith.addf %245, %16 : vector<8x256xf32>
    %c56_120 = arith.constant 56 : index
    %c0_121 = arith.constant 0 : index
    %247 = vector.load %arg9[%c56_120, %c0_121] : memref<64x256xf32, #tpu.memory_space<vmem>>, vector<8x256xf32>
    tpu.vector_store %arg9[%c56_120, %c0_121], %246 {strides = array<i32>} : memref<64x256xf32, #tpu.memory_space<vmem>>, vector<8x256xf32>,
    %c1_122 = arith.constant 1 : index
    %c0_123 = arith.constant 0 : index
    %c0_124 = arith.constant 0 : index
    %248 = vector.load %arg4[%c1_122, %c0_123, %c0_124] : memref<5x1x128xf32, #tpu.memory_space<vmem>>, vector<1x1x128xf32>
    %249 = vector.shape_cast %248 : vector<1x1x128xf32> to vector<1x128xf32>
    %250 = vector.shape_cast %249 : vector<1x128xf32> to vector<1x128xf32>
    %251 = vector.broadcast %250 : vector<1x128xf32> to vector<8x128xf32>
    %c2 = arith.constant 2 : index
    %c0_125 = arith.constant 0 : index
    %c0_126 = arith.constant 0 : index
    %252 = vector.load %arg3[%c2, %c0_125, %c0_126] : memref<5x1x256xf32, #tpu.memory_space<vmem>>, vector<1x1x256xf32>
    %253 = vector.shape_cast %252 : vector<1x1x256xf32> to vector<1x256xf32>
    %254 = vector.shape_cast %253 : vector<1x256xf32> to vector<1x256xf32>
    %255 = vector.broadcast %254 : vector<1x256xf32> to vector<8x256xf32>
    %c0_127 = arith.constant 0 : index
    %c0_128 = arith.constant 0 : index
    %256 = vector.load %arg9[%c0_127, %c0_128] : memref<64x256xf32, #tpu.memory_space<vmem>>, vector<8x256xf32>
    %257 = vector.extract_strided_slice %256 {offsets = [0, 0], sizes = [8, 128], strides = [1, 1]} : vector<8x256xf32> to vector<8x128xf32>
    %258 = arith.negf %257 : vector<8x128xf32>
    %259 = math.exp %258 : vector<8x128xf32>
    %cst_129 = arith.constant 1.000000e+00 : f32
    %260 = vector.broadcast %cst_129 : f32 to vector<8x128xf32>
    %261 = arith.addf %260, %259 : vector<8x128xf32>
    %262 = arith.divf %260, %261 : vector<8x128xf32>
    %c96_i32_130 = arith.constant 96 : i32
    %263 = tpu.dynamic_rotate %262 by %c96_i32_130 dim 1 : vector<8x128xf32>, i32 -> vector<8x128xf32>
    %264 = vector.extract_strided_slice %256 {offsets = [0, 128], sizes = [8, 128], strides = [1, 1]} : vector<8x256xf32> to vector<8x128xf32>
    %265 = arith.mulf %262, %251 : vector<8x128xf32>
    %266 = arith.addf %264, %265 : vector<8x128xf32>
    %267 = math.tanh %266 : vector<8x128xf32>
    %cst_131 = arith.constant 1.000000e+00 : f32
    %268 = vector.broadcast %cst_131 : f32 to vector<8x128xf32>
    %269 = arith.subf %268, %263 : vector<8x128xf32>
    %270 = arith.mulf %269, %267 : vector<8x128xf32>
    %271 = arith.truncf %270 : vector<8x128xf32> to vector<8x128xbf16>
    %c2_132 = arith.constant 2 : index
    %c0_133 = arith.constant 0 : index
    %c0_134 = arith.constant 0 : index
    %272 = vector.load %arg1[%c2_132, %c0_133, %c0_134] : memref<5x128x256xbf16, #tpu.memory_space<vmem>>, vector<1x128x256xbf16>
    %273 = vector.shape_cast %272 : vector<1x128x256xbf16> to vector<128x256xbf16>
    %cst_135 = arith.constant dense<0.000000e+00> : vector<8x256xf32>
    %274 = tpu.matmul %271, %273, %cst_135 {dimension_numbers = #tpu.dot_dimension_numbers<[1], [0], [0], [1], [0, 0, 1, 1], [], []>} : vector<8x128xbf16>, vector<128x256xbf16>, vector<8x256xf32> -> vector<8x256xf32>
    %275 = arith.addf %274, %255 : vector<8x256xf32>
    %c0_136 = arith.constant 0 : index
    %c0_137 = arith.constant 0 : index
    %276 = vector.load %arg8[%c0_136, %c0_137] : memref<64x256xf32, #tpu.memory_space<vmem>>, vector<8x256xf32>
    tpu.vector_store %arg8[%c0_136, %c0_137], %275 {strides = array<i32>} : memref<64x256xf32, #tpu.memory_space<vmem>>, vector<8x256xf32>,
    %c8_138 = arith.constant 8 : index
    %c0_139 = arith.constant 0 : index
    %277 = vector.load %arg9[%c8_138, %c0_139] : memref<64x256xf32, #tpu.memory_space<vmem>>, vector<8x256xf32>
    %c1_140 = arith.constant 1 : index
    %c0_141 = arith.constant 0 : index
    %c0_142 = arith.constant 0 : index
    %278 = vector.load %arg2[%c1_140, %c0_141, %c0_142] : memref<5x128x256xbf16, #tpu.memory_space<vmem>>, vector<1x128x256xbf16>
    %279 = vector.shape_cast %278 : vector<1x128x256xbf16> to vector<128x256xbf16>
    %cst_143 = arith.constant dense<0.000000e+00> : vector<8x256xf32>
    %280 = tpu.matmul %271, %279, %cst_143 {dimension_numbers = #tpu.dot_dimension_numbers<[1], [0], [0], [1], [0, 0, 1, 1], [], []>} : vector<8x128xbf16>, vector<128x256xbf16>, vector<8x256xf32> -> vector<8x256xf32>
    %281 = vector.extract_strided_slice %277 {offsets = [0, 0], sizes = [8, 128], strides = [1, 1]} : vector<8x256xf32> to vector<8x128xf32>
    %282 = vector.extract_strided_slice %280 {offsets = [0, 0], sizes = [8, 128], strides = [1, 1]} : vector<8x256xf32> to vector<8x128xf32>
    %283 = arith.addf %281, %282 : vector<8x128xf32>
    %284 = vector.extract_strided_slice %280 {offsets = [0, 128], sizes = [8, 128], strides = [1, 1]} : vector<8x256xf32> to vector<8x128xf32>
    %285 = arith.addf %284, %251 : vector<8x128xf32>
    %286 = arith.negf %283 : vector<8x128xf32>
    %287 = math.exp %286 : vector<8x128xf32>
    %cst_144 = arith.constant 1.000000e+00 : f32
    %288 = vector.broadcast %cst_144 : f32 to vector<8x128xf32>
    %289 = arith.addf %288, %287 : vector<8x128xf32>
    %290 = arith.divf %288, %289 : vector<8x128xf32>
    %c96_i32_145 = arith.constant 96 : i32
    %291 = tpu.dynamic_rotate %290 by %c96_i32_145 dim 1 : vector<8x128xf32>, i32 -> vector<8x128xf32>
    %292 = vector.extract_strided_slice %277 {offsets = [0, 128], sizes = [8, 128], strides = [1, 1]} : vector<8x256xf32> to vector<8x128xf32>
    %293 = arith.mulf %290, %285 : vector<8x128xf32>
    %294 = arith.addf %292, %293 : vector<8x128xf32>
    %295 = math.tanh %294 : vector<8x128xf32>
    %cst_146 = arith.constant 1.000000e+00 : f32
    %296 = vector.broadcast %cst_146 : f32 to vector<8x128xf32>
    %297 = arith.subf %296, %291 : vector<8x128xf32>
    %298 = arith.mulf %297, %295 : vector<8x128xf32>
    %299 = arith.mulf %291, %270 : vector<8x128xf32>
    %300 = arith.addf %298, %299 : vector<8x128xf32>
    %301 = arith.truncf %300 : vector<8x128xf32> to vector<8x128xbf16>
    %c2_147 = arith.constant 2 : index
    %c0_148 = arith.constant 0 : index
    %c0_149 = arith.constant 0 : index
    %302 = vector.load %arg1[%c2_147, %c0_148, %c0_149] : memref<5x128x256xbf16, #tpu.memory_space<vmem>>, vector<1x128x256xbf16>
    %303 = vector.shape_cast %302 : vector<1x128x256xbf16> to vector<128x256xbf16>
    %cst_150 = arith.constant dense<0.000000e+00> : vector<8x256xf32>
    %304 = tpu.matmul %301, %303, %cst_150 {dimension_numbers = #tpu.dot_dimension_numbers<[1], [0], [0], [1], [0, 0, 1, 1], [], []>} : vector<8x128xbf16>, vector<128x256xbf16>, vector<8x256xf32> -> vector<8x256xf32>
    %305 = arith.addf %304, %255 : vector<8x256xf32>
    %c8_151 = arith.constant 8 : index
    %c0_152 = arith.constant 0 : index
    %306 = vector.load %arg8[%c8_151, %c0_152] : memref<64x256xf32, #tpu.memory_space<vmem>>, vector<8x256xf32>
    tpu.vector_store %arg8[%c8_151, %c0_152], %305 {strides = array<i32>} : memref<64x256xf32, #tpu.memory_space<vmem>>, vector<8x256xf32>,
    %c16_153 = arith.constant 16 : index
    %c0_154 = arith.constant 0 : index
    %307 = vector.load %arg9[%c16_153, %c0_154] : memref<64x256xf32, #tpu.memory_space<vmem>>, vector<8x256xf32>
    %c1_155 = arith.constant 1 : index
    %c0_156 = arith.constant 0 : index
    %c0_157 = arith.constant 0 : index
    %308 = vector.load %arg2[%c1_155, %c0_156, %c0_157] : memref<5x128x256xbf16, #tpu.memory_space<vmem>>, vector<1x128x256xbf16>
    %309 = vector.shape_cast %308 : vector<1x128x256xbf16> to vector<128x256xbf16>
    %cst_158 = arith.constant dense<0.000000e+00> : vector<8x256xf32>
    %310 = tpu.matmul %301, %309, %cst_158 {dimension_numbers = #tpu.dot_dimension_numbers<[1], [0], [0], [1], [0, 0, 1, 1], [], []>} : vector<8x128xbf16>, vector<128x256xbf16>, vector<8x256xf32> -> vector<8x256xf32>
    %311 = vector.extract_strided_slice %307 {offsets = [0, 0], sizes = [8, 128], strides = [1, 1]} : vector<8x256xf32> to vector<8x128xf32>
    %312 = vector.extract_strided_slice %310 {offsets = [0, 0], sizes = [8, 128], strides = [1, 1]} : vector<8x256xf32> to vector<8x128xf32>
    %313 = arith.addf %311, %312 : vector<8x128xf32>
    %314 = vector.extract_strided_slice %310 {offsets = [0, 128], sizes = [8, 128], strides = [1, 1]} : vector<8x256xf32> to vector<8x128xf32>
    %315 = arith.addf %314, %251 : vector<8x128xf32>
    %316 = arith.negf %313 : vector<8x128xf32>
    %317 = math.exp %316 : vector<8x128xf32>
    %cst_159 = arith.constant 1.000000e+00 : f32
    %318 = vector.broadcast %cst_159 : f32 to vector<8x128xf32>
    %319 = arith.addf %318, %317 : vector<8x128xf32>
    %320 = arith.divf %318, %319 : vector<8x128xf32>
    %c96_i32_160 = arith.constant 96 : i32
    %321 = tpu.dynamic_rotate %320 by %c96_i32_160 dim 1 : vector<8x128xf32>, i32 -> vector<8x128xf32>
    %322 = vector.extract_strided_slice %307 {offsets = [0, 128], sizes = [8, 128], strides = [1, 1]} : vector<8x256xf32> to vector<8x128xf32>
    %323 = arith.mulf %320, %315 : vector<8x128xf32>
    %324 = arith.addf %322, %323 : vector<8x128xf32>
    %325 = math.tanh %324 : vector<8x128xf32>
    %cst_161 = arith.constant 1.000000e+00 : f32
    %326 = vector.broadcast %cst_161 : f32 to vector<8x128xf32>
    %327 = arith.subf %326, %321 : vector<8x128xf32>
    %328 = arith.mulf %327, %325 : vector<8x128xf32>
    %329 = arith.mulf %321, %300 : vector<8x128xf32>
    %330 = arith.addf %328, %329 : vector<8x128xf32>
    %331 = arith.truncf %330 : vector<8x128xf32> to vector<8x128xbf16>
    %c2_162 = arith.constant 2 : index
    %c0_163 = arith.constant 0 : index
    %c0_164 = arith.constant 0 : index
    %332 = vector.load %arg1[%c2_162, %c0_163, %c0_164] : memref<5x128x256xbf16, #tpu.memory_space<vmem>>, vector<1x128x256xbf16>
    %333 = vector.shape_cast %332 : vector<1x128x256xbf16> to vector<128x256xbf16>
    %cst_165 = arith.constant dense<0.000000e+00> : vector<8x256xf32>
    %334 = tpu.matmul %331, %333, %cst_165 {dimension_numbers = #tpu.dot_dimension_numbers<[1], [0], [0], [1], [0, 0, 1, 1], [], []>} : vector<8x128xbf16>, vector<128x256xbf16>, vector<8x256xf32> -> vector<8x256xf32>
    %335 = arith.addf %334, %255 : vector<8x256xf32>
    %c16_166 = arith.constant 16 : index
    %c0_167 = arith.constant 0 : index
    %336 = vector.load %arg8[%c16_166, %c0_167] : memref<64x256xf32, #tpu.memory_space<vmem>>, vector<8x256xf32>
    tpu.vector_store %arg8[%c16_166, %c0_167], %335 {strides = array<i32>} : memref<64x256xf32, #tpu.memory_space<vmem>>, vector<8x256xf32>,
    %c24_168 = arith.constant 24 : index
    %c0_169 = arith.constant 0 : index
    %337 = vector.load %arg9[%c24_168, %c0_169] : memref<64x256xf32, #tpu.memory_space<vmem>>, vector<8x256xf32>
    %c1_170 = arith.constant 1 : index
    %c0_171 = arith.constant 0 : index
    %c0_172 = arith.constant 0 : index
    %338 = vector.load %arg2[%c1_170, %c0_171, %c0_172] : memref<5x128x256xbf16, #tpu.memory_space<vmem>>, vector<1x128x256xbf16>
    %339 = vector.shape_cast %338 : vector<1x128x256xbf16> to vector<128x256xbf16>
    %cst_173 = arith.constant dense<0.000000e+00> : vector<8x256xf32>
    %340 = tpu.matmul %331, %339, %cst_173 {dimension_numbers = #tpu.dot_dimension_numbers<[1], [0], [0], [1], [0, 0, 1, 1], [], []>} : vector<8x128xbf16>, vector<128x256xbf16>, vector<8x256xf32> -> vector<8x256xf32>
    %341 = vector.extract_strided_slice %337 {offsets = [0, 0], sizes = [8, 128], strides = [1, 1]} : vector<8x256xf32> to vector<8x128xf32>
    %342 = vector.extract_strided_slice %340 {offsets = [0, 0], sizes = [8, 128], strides = [1, 1]} : vector<8x256xf32> to vector<8x128xf32>
    %343 = arith.addf %341, %342 : vector<8x128xf32>
    %344 = vector.extract_strided_slice %340 {offsets = [0, 128], sizes = [8, 128], strides = [1, 1]} : vector<8x256xf32> to vector<8x128xf32>
    %345 = arith.addf %344, %251 : vector<8x128xf32>
    %346 = arith.negf %343 : vector<8x128xf32>
    %347 = math.exp %346 : vector<8x128xf32>
    %cst_174 = arith.constant 1.000000e+00 : f32
    %348 = vector.broadcast %cst_174 : f32 to vector<8x128xf32>
    %349 = arith.addf %348, %347 : vector<8x128xf32>
    %350 = arith.divf %348, %349 : vector<8x128xf32>
    %c96_i32_175 = arith.constant 96 : i32
    %351 = tpu.dynamic_rotate %350 by %c96_i32_175 dim 1 : vector<8x128xf32>, i32 -> vector<8x128xf32>
    %352 = vector.extract_strided_slice %337 {offsets = [0, 128], sizes = [8, 128], strides = [1, 1]} : vector<8x256xf32> to vector<8x128xf32>
    %353 = arith.mulf %350, %345 : vector<8x128xf32>
    %354 = arith.addf %352, %353 : vector<8x128xf32>
    %355 = math.tanh %354 : vector<8x128xf32>
    %cst_176 = arith.constant 1.000000e+00 : f32
    %356 = vector.broadcast %cst_176 : f32 to vector<8x128xf32>
    %357 = arith.subf %356, %351 : vector<8x128xf32>
    %358 = arith.mulf %357, %355 : vector<8x128xf32>
    %359 = arith.mulf %351, %330 : vector<8x128xf32>
    %360 = arith.addf %358, %359 : vector<8x128xf32>
    %361 = arith.truncf %360 : vector<8x128xf32> to vector<8x128xbf16>
    %c2_177 = arith.constant 2 : index
    %c0_178 = arith.constant 0 : index
    %c0_179 = arith.constant 0 : index
    %362 = vector.load %arg1[%c2_177, %c0_178, %c0_179] : memref<5x128x256xbf16, #tpu.memory_space<vmem>>, vector<1x128x256xbf16>
    %363 = vector.shape_cast %362 : vector<1x128x256xbf16> to vector<128x256xbf16>
    %cst_180 = arith.constant dense<0.000000e+00> : vector<8x256xf32>
    %364 = tpu.matmul %361, %363, %cst_180 {dimension_numbers = #tpu.dot_dimension_numbers<[1], [0], [0], [1], [0, 0, 1, 1], [], []>} : vector<8x128xbf16>, vector<128x256xbf16>, vector<8x256xf32> -> vector<8x256xf32>
    %365 = arith.addf %364, %255 : vector<8x256xf32>
    %c24_181 = arith.constant 24 : index
    %c0_182 = arith.constant 0 : index
    %366 = vector.load %arg8[%c24_181, %c0_182] : memref<64x256xf32, #tpu.memory_space<vmem>>, vector<8x256xf32>
    tpu.vector_store %arg8[%c24_181, %c0_182], %365 {strides = array<i32>} : memref<64x256xf32, #tpu.memory_space<vmem>>, vector<8x256xf32>,
    %c32_183 = arith.constant 32 : index
    %c0_184 = arith.constant 0 : index
    %367 = vector.load %arg9[%c32_183, %c0_184] : memref<64x256xf32, #tpu.memory_space<vmem>>, vector<8x256xf32>
    %c1_185 = arith.constant 1 : index
    %c0_186 = arith.constant 0 : index
    %c0_187 = arith.constant 0 : index
    %368 = vector.load %arg2[%c1_185, %c0_186, %c0_187] : memref<5x128x256xbf16, #tpu.memory_space<vmem>>, vector<1x128x256xbf16>
    %369 = vector.shape_cast %368 : vector<1x128x256xbf16> to vector<128x256xbf16>
    %cst_188 = arith.constant dense<0.000000e+00> : vector<8x256xf32>
    %370 = tpu.matmul %361, %369, %cst_188 {dimension_numbers = #tpu.dot_dimension_numbers<[1], [0], [0], [1], [0, 0, 1, 1], [], []>} : vector<8x128xbf16>, vector<128x256xbf16>, vector<8x256xf32> -> vector<8x256xf32>
    %371 = vector.extract_strided_slice %367 {offsets = [0, 0], sizes = [8, 128], strides = [1, 1]} : vector<8x256xf32> to vector<8x128xf32>
    %372 = vector.extract_strided_slice %370 {offsets = [0, 0], sizes = [8, 128], strides = [1, 1]} : vector<8x256xf32> to vector<8x128xf32>
    %373 = arith.addf %371, %372 : vector<8x128xf32>
    %374 = vector.extract_strided_slice %370 {offsets = [0, 128], sizes = [8, 128], strides = [1, 1]} : vector<8x256xf32> to vector<8x128xf32>
    %375 = arith.addf %374, %251 : vector<8x128xf32>
    %376 = arith.negf %373 : vector<8x128xf32>
    %377 = math.exp %376 : vector<8x128xf32>
    %cst_189 = arith.constant 1.000000e+00 : f32
    %378 = vector.broadcast %cst_189 : f32 to vector<8x128xf32>
    %379 = arith.addf %378, %377 : vector<8x128xf32>
    %380 = arith.divf %378, %379 : vector<8x128xf32>
    %c96_i32_190 = arith.constant 96 : i32
    %381 = tpu.dynamic_rotate %380 by %c96_i32_190 dim 1 : vector<8x128xf32>, i32 -> vector<8x128xf32>
    %382 = vector.extract_strided_slice %367 {offsets = [0, 128], sizes = [8, 128], strides = [1, 1]} : vector<8x256xf32> to vector<8x128xf32>
    %383 = arith.mulf %380, %375 : vector<8x128xf32>
    %384 = arith.addf %382, %383 : vector<8x128xf32>
    %385 = math.tanh %384 : vector<8x128xf32>
    %cst_191 = arith.constant 1.000000e+00 : f32
    %386 = vector.broadcast %cst_191 : f32 to vector<8x128xf32>
    %387 = arith.subf %386, %381 : vector<8x128xf32>
    %388 = arith.mulf %387, %385 : vector<8x128xf32>
    %389 = arith.mulf %381, %360 : vector<8x128xf32>
    %390 = arith.addf %388, %389 : vector<8x128xf32>
    %391 = arith.truncf %390 : vector<8x128xf32> to vector<8x128xbf16>
    %c2_192 = arith.constant 2 : index
    %c0_193 = arith.constant 0 : index
    %c0_194 = arith.constant 0 : index
    %392 = vector.load %arg1[%c2_192, %c0_193, %c0_194] : memref<5x128x256xbf16, #tpu.memory_space<vmem>>, vector<1x128x256xbf16>
    %393 = vector.shape_cast %392 : vector<1x128x256xbf16> to vector<128x256xbf16>
    %cst_195 = arith.constant dense<0.000000e+00> : vector<8x256xf32>
    %394 = tpu.matmul %391, %393, %cst_195 {dimension_numbers = #tpu.dot_dimension_numbers<[1], [0], [0], [1], [0, 0, 1, 1], [], []>} : vector<8x128xbf16>, vector<128x256xbf16>, vector<8x256xf32> -> vector<8x256xf32>
    %395 = arith.addf %394, %255 : vector<8x256xf32>
    %c32_196 = arith.constant 32 : index
    %c0_197 = arith.constant 0 : index
    %396 = vector.load %arg8[%c32_196, %c0_197] : memref<64x256xf32, #tpu.memory_space<vmem>>, vector<8x256xf32>
    tpu.vector_store %arg8[%c32_196, %c0_197], %395 {strides = array<i32>} : memref<64x256xf32, #tpu.memory_space<vmem>>, vector<8x256xf32>,
    %c40_198 = arith.constant 40 : index
    %c0_199 = arith.constant 0 : index
    %397 = vector.load %arg9[%c40_198, %c0_199] : memref<64x256xf32, #tpu.memory_space<vmem>>, vector<8x256xf32>
    %c1_200 = arith.constant 1 : index
    %c0_201 = arith.constant 0 : index
    %c0_202 = arith.constant 0 : index
    %398 = vector.load %arg2[%c1_200, %c0_201, %c0_202] : memref<5x128x256xbf16, #tpu.memory_space<vmem>>, vector<1x128x256xbf16>
    %399 = vector.shape_cast %398 : vector<1x128x256xbf16> to vector<128x256xbf16>
    %cst_203 = arith.constant dense<0.000000e+00> : vector<8x256xf32>
    %400 = tpu.matmul %391, %399, %cst_203 {dimension_numbers = #tpu.dot_dimension_numbers<[1], [0], [0], [1], [0, 0, 1, 1], [], []>} : vector<8x128xbf16>, vector<128x256xbf16>, vector<8x256xf32> -> vector<8x256xf32>
    %401 = vector.extract_strided_slice %397 {offsets = [0, 0], sizes = [8, 128], strides = [1, 1]} : vector<8x256xf32> to vector<8x128xf32>
    %402 = vector.extract_strided_slice %400 {offsets = [0, 0], sizes = [8, 128], strides = [1, 1]} : vector<8x256xf32> to vector<8x128xf32>
    %403 = arith.addf %401, %402 : vector<8x128xf32>
    %404 = vector.extract_strided_slice %400 {offsets = [0, 128], sizes = [8, 128], strides = [1, 1]} : vector<8x256xf32> to vector<8x128xf32>
    %405 = arith.addf %404, %251 : vector<8x128xf32>
    %406 = arith.negf %403 : vector<8x128xf32>
    %407 = math.exp %406 : vector<8x128xf32>
    %cst_204 = arith.constant 1.000000e+00 : f32
    %408 = vector.broadcast %cst_204 : f32 to vector<8x128xf32>
    %409 = arith.addf %408, %407 : vector<8x128xf32>
    %410 = arith.divf %408, %409 : vector<8x128xf32>
    %c96_i32_205 = arith.constant 96 : i32
    %411 = tpu.dynamic_rotate %410 by %c96_i32_205 dim 1 : vector<8x128xf32>, i32 -> vector<8x128xf32>
    %412 = vector.extract_strided_slice %397 {offsets = [0, 128], sizes = [8, 128], strides = [1, 1]} : vector<8x256xf32> to vector<8x128xf32>
    %413 = arith.mulf %410, %405 : vector<8x128xf32>
    %414 = arith.addf %412, %413 : vector<8x128xf32>
    %415 = math.tanh %414 : vector<8x128xf32>
    %cst_206 = arith.constant 1.000000e+00 : f32
    %416 = vector.broadcast %cst_206 : f32 to vector<8x128xf32>
    %417 = arith.subf %416, %411 : vector<8x128xf32>
    %418 = arith.mulf %417, %415 : vector<8x128xf32>
    %419 = arith.mulf %411, %390 : vector<8x128xf32>
    %420 = arith.addf %418, %419 : vector<8x128xf32>
    %421 = arith.truncf %420 : vector<8x128xf32> to vector<8x128xbf16>
    %c2_207 = arith.constant 2 : index
    %c0_208 = arith.constant 0 : index
    %c0_209 = arith.constant 0 : index
    %422 = vector.load %arg1[%c2_207, %c0_208, %c0_209] : memref<5x128x256xbf16, #tpu.memory_space<vmem>>, vector<1x128x256xbf16>
    %423 = vector.shape_cast %422 : vector<1x128x256xbf16> to vector<128x256xbf16>
    %cst_210 = arith.constant dense<0.000000e+00> : vector<8x256xf32>
    %424 = tpu.matmul %421, %423, %cst_210 {dimension_numbers = #tpu.dot_dimension_numbers<[1], [0], [0], [1], [0, 0, 1, 1], [], []>} : vector<8x128xbf16>, vector<128x256xbf16>, vector<8x256xf32> -> vector<8x256xf32>
    %425 = arith.addf %424, %255 : vector<8x256xf32>
    %c40_211 = arith.constant 40 : index
    %c0_212 = arith.constant 0 : index
    %426 = vector.load %arg8[%c40_211, %c0_212] : memref<64x256xf32, #tpu.memory_space<vmem>>, vector<8x256xf32>
    tpu.vector_store %arg8[%c40_211, %c0_212], %425 {strides = array<i32>} : memref<64x256xf32, #tpu.memory_space<vmem>>, vector<8x256xf32>,
    %c48_213 = arith.constant 48 : index
    %c0_214 = arith.constant 0 : index
    %427 = vector.load %arg9[%c48_213, %c0_214] : memref<64x256xf32, #tpu.memory_space<vmem>>, vector<8x256xf32>
    %c1_215 = arith.constant 1 : index
    %c0_216 = arith.constant 0 : index
    %c0_217 = arith.constant 0 : index
    %428 = vector.load %arg2[%c1_215, %c0_216, %c0_217] : memref<5x128x256xbf16, #tpu.memory_space<vmem>>, vector<1x128x256xbf16>
    %429 = vector.shape_cast %428 : vector<1x128x256xbf16> to vector<128x256xbf16>
    %cst_218 = arith.constant dense<0.000000e+00> : vector<8x256xf32>
    %430 = tpu.matmul %421, %429, %cst_218 {dimension_numbers = #tpu.dot_dimension_numbers<[1], [0], [0], [1], [0, 0, 1, 1], [], []>} : vector<8x128xbf16>, vector<128x256xbf16>, vector<8x256xf32> -> vector<8x256xf32>
    %431 = vector.extract_strided_slice %427 {offsets = [0, 0], sizes = [8, 128], strides = [1, 1]} : vector<8x256xf32> to vector<8x128xf32>
    %432 = vector.extract_strided_slice %430 {offsets = [0, 0], sizes = [8, 128], strides = [1, 1]} : vector<8x256xf32> to vector<8x128xf32>
    %433 = arith.addf %431, %432 : vector<8x128xf32>
    %434 = vector.extract_strided_slice %430 {offsets = [0, 128], sizes = [8, 128], strides = [1, 1]} : vector<8x256xf32> to vector<8x128xf32>
    %435 = arith.addf %434, %251 : vector<8x128xf32>
    %436 = arith.negf %433 : vector<8x128xf32>
    %437 = math.exp %436 : vector<8x128xf32>
    %cst_219 = arith.constant 1.000000e+00 : f32
    %438 = vector.broadcast %cst_219 : f32 to vector<8x128xf32>
    %439 = arith.addf %438, %437 : vector<8x128xf32>
    %440 = arith.divf %438, %439 : vector<8x128xf32>
    %c96_i32_220 = arith.constant 96 : i32
    %441 = tpu.dynamic_rotate %440 by %c96_i32_220 dim 1 : vector<8x128xf32>, i32 -> vector<8x128xf32>
    %442 = vector.extract_strided_slice %427 {offsets = [0, 128], sizes = [8, 128], strides = [1, 1]} : vector<8x256xf32> to vector<8x128xf32>
    %443 = arith.mulf %440, %435 : vector<8x128xf32>
    %444 = arith.addf %442, %443 : vector<8x128xf32>
    %445 = math.tanh %444 : vector<8x128xf32>
    %cst_221 = arith.constant 1.000000e+00 : f32
    %446 = vector.broadcast %cst_221 : f32 to vector<8x128xf32>
    %447 = arith.subf %446, %441 : vector<8x128xf32>
    %448 = arith.mulf %447, %445 : vector<8x128xf32>
    %449 = arith.mulf %441, %420 : vector<8x128xf32>
    %450 = arith.addf %448, %449 : vector<8x128xf32>
    %451 = arith.truncf %450 : vector<8x128xf32> to vector<8x128xbf16>
    %c2_222 = arith.constant 2 : index
    %c0_223 = arith.constant 0 : index
    %c0_224 = arith.constant 0 : index
    %452 = vector.load %arg1[%c2_222, %c0_223, %c0_224] : memref<5x128x256xbf16, #tpu.memory_space<vmem>>, vector<1x128x256xbf16>
    %453 = vector.shape_cast %452 : vector<1x128x256xbf16> to vector<128x256xbf16>
    %cst_225 = arith.constant dense<0.000000e+00> : vector<8x256xf32>
    %454 = tpu.matmul %451, %453, %cst_225 {dimension_numbers = #tpu.dot_dimension_numbers<[1], [0], [0], [1], [0, 0, 1, 1], [], []>} : vector<8x128xbf16>, vector<128x256xbf16>, vector<8x256xf32> -> vector<8x256xf32>
    %455 = arith.addf %454, %255 : vector<8x256xf32>
    %c48_226 = arith.constant 48 : index
    %c0_227 = arith.constant 0 : index
    %456 = vector.load %arg8[%c48_226, %c0_227] : memref<64x256xf32, #tpu.memory_space<vmem>>, vector<8x256xf32>
    tpu.vector_store %arg8[%c48_226, %c0_227], %455 {strides = array<i32>} : memref<64x256xf32, #tpu.memory_space<vmem>>, vector<8x256xf32>,
    %c56_228 = arith.constant 56 : index
    %c0_229 = arith.constant 0 : index
    %457 = vector.load %arg9[%c56_228, %c0_229] : memref<64x256xf32, #tpu.memory_space<vmem>>, vector<8x256xf32>
    %c1_230 = arith.constant 1 : index
    %c0_231 = arith.constant 0 : index
    %c0_232 = arith.constant 0 : index
    %458 = vector.load %arg2[%c1_230, %c0_231, %c0_232] : memref<5x128x256xbf16, #tpu.memory_space<vmem>>, vector<1x128x256xbf16>
    %459 = vector.shape_cast %458 : vector<1x128x256xbf16> to vector<128x256xbf16>
    %cst_233 = arith.constant dense<0.000000e+00> : vector<8x256xf32>
    %460 = tpu.matmul %451, %459, %cst_233 {dimension_numbers = #tpu.dot_dimension_numbers<[1], [0], [0], [1], [0, 0, 1, 1], [], []>} : vector<8x128xbf16>, vector<128x256xbf16>, vector<8x256xf32> -> vector<8x256xf32>
    %461 = vector.extract_strided_slice %457 {offsets = [0, 0], sizes = [8, 128], strides = [1, 1]} : vector<8x256xf32> to vector<8x128xf32>
    %462 = vector.extract_strided_slice %460 {offsets = [0, 0], sizes = [8, 128], strides = [1, 1]} : vector<8x256xf32> to vector<8x128xf32>
    %463 = arith.addf %461, %462 : vector<8x128xf32>
    %464 = vector.extract_strided_slice %460 {offsets = [0, 128], sizes = [8, 128], strides = [1, 1]} : vector<8x256xf32> to vector<8x128xf32>
    %465 = arith.addf %464, %251 : vector<8x128xf32>
    %466 = arith.negf %463 : vector<8x128xf32>
    %467 = math.exp %466 : vector<8x128xf32>
    %cst_234 = arith.constant 1.000000e+00 : f32
    %468 = vector.broadcast %cst_234 : f32 to vector<8x128xf32>
    %469 = arith.addf %468, %467 : vector<8x128xf32>
    %470 = arith.divf %468, %469 : vector<8x128xf32>
    %c96_i32_235 = arith.constant 96 : i32
    %471 = tpu.dynamic_rotate %470 by %c96_i32_235 dim 1 : vector<8x128xf32>, i32 -> vector<8x128xf32>
    %472 = vector.extract_strided_slice %457 {offsets = [0, 128], sizes = [8, 128], strides = [1, 1]} : vector<8x256xf32> to vector<8x128xf32>
    %473 = arith.mulf %470, %465 : vector<8x128xf32>
    %474 = arith.addf %472, %473 : vector<8x128xf32>
    %475 = math.tanh %474 : vector<8x128xf32>
    %cst_236 = arith.constant 1.000000e+00 : f32
    %476 = vector.broadcast %cst_236 : f32 to vector<8x128xf32>
    %477 = arith.subf %476, %471 : vector<8x128xf32>
    %478 = arith.mulf %477, %475 : vector<8x128xf32>
    %479 = arith.mulf %471, %450 : vector<8x128xf32>
    %480 = arith.addf %478, %479 : vector<8x128xf32>
    %481 = arith.truncf %480 : vector<8x128xf32> to vector<8x128xbf16>
    %c2_237 = arith.constant 2 : index
    %c0_238 = arith.constant 0 : index
    %c0_239 = arith.constant 0 : index
    %482 = vector.load %arg1[%c2_237, %c0_238, %c0_239] : memref<5x128x256xbf16, #tpu.memory_space<vmem>>, vector<1x128x256xbf16>
    %483 = vector.shape_cast %482 : vector<1x128x256xbf16> to vector<128x256xbf16>
    %cst_240 = arith.constant dense<0.000000e+00> : vector<8x256xf32>
    %484 = tpu.matmul %481, %483, %cst_240 {dimension_numbers = #tpu.dot_dimension_numbers<[1], [0], [0], [1], [0, 0, 1, 1], [], []>} : vector<8x128xbf16>, vector<128x256xbf16>, vector<8x256xf32> -> vector<8x256xf32>
    %485 = arith.addf %484, %255 : vector<8x256xf32>
    %c56_241 = arith.constant 56 : index
    %c0_242 = arith.constant 0 : index
    %486 = vector.load %arg8[%c56_241, %c0_242] : memref<64x256xf32, #tpu.memory_space<vmem>>, vector<8x256xf32>
    tpu.vector_store %arg8[%c56_241, %c0_242], %485 {strides = array<i32>} : memref<64x256xf32, #tpu.memory_space<vmem>>, vector<8x256xf32>,
    %c2_243 = arith.constant 2 : index
    %c0_244 = arith.constant 0 : index
    %c0_245 = arith.constant 0 : index
    %487 = vector.load %arg4[%c2_243, %c0_244, %c0_245] : memref<5x1x128xf32, #tpu.memory_space<vmem>>, vector<1x1x128xf32>
    %488 = vector.shape_cast %487 : vector<1x1x128xf32> to vector<1x128xf32>
    %489 = vector.shape_cast %488 : vector<1x128xf32> to vector<1x128xf32>
    %490 = vector.broadcast %489 : vector<1x128xf32> to vector<8x128xf32>
    %c3 = arith.constant 3 : index
    %c0_246 = arith.constant 0 : index
    %c0_247 = arith.constant 0 : index
    %491 = vector.load %arg3[%c3, %c0_246, %c0_247] : memref<5x1x256xf32, #tpu.memory_space<vmem>>, vector<1x1x256xf32>
    %492 = vector.shape_cast %491 : vector<1x1x256xf32> to vector<1x256xf32>
    %493 = vector.shape_cast %492 : vector<1x256xf32> to vector<1x256xf32>
    %494 = vector.broadcast %493 : vector<1x256xf32> to vector<8x256xf32>
    %c0_248 = arith.constant 0 : index
    %c0_249 = arith.constant 0 : index
    %495 = vector.load %arg8[%c0_248, %c0_249] : memref<64x256xf32, #tpu.memory_space<vmem>>, vector<8x256xf32>
    %496 = vector.extract_strided_slice %495 {offsets = [0, 0], sizes = [8, 128], strides = [1, 1]} : vector<8x256xf32> to vector<8x128xf32>
    %497 = arith.negf %496 : vector<8x128xf32>
    %498 = math.exp %497 : vector<8x128xf32>
    %cst_250 = arith.constant 1.000000e+00 : f32
    %499 = vector.broadcast %cst_250 : f32 to vector<8x128xf32>
    %500 = arith.addf %499, %498 : vector<8x128xf32>
    %501 = arith.divf %499, %500 : vector<8x128xf32>
    %c96_i32_251 = arith.constant 96 : i32
    %502 = tpu.dynamic_rotate %501 by %c96_i32_251 dim 1 : vector<8x128xf32>, i32 -> vector<8x128xf32>
    %503 = vector.extract_strided_slice %495 {offsets = [0, 128], sizes = [8, 128], strides = [1, 1]} : vector<8x256xf32> to vector<8x128xf32>
    %504 = arith.mulf %501, %490 : vector<8x128xf32>
    %505 = arith.addf %503, %504 : vector<8x128xf32>
    %506 = math.tanh %505 : vector<8x128xf32>
    %cst_252 = arith.constant 1.000000e+00 : f32
    %507 = vector.broadcast %cst_252 : f32 to vector<8x128xf32>
    %508 = arith.subf %507, %502 : vector<8x128xf32>
    %509 = arith.mulf %508, %506 : vector<8x128xf32>
    %510 = arith.truncf %509 : vector<8x128xf32> to vector<8x128xbf16>
    %c3_253 = arith.constant 3 : index
    %c0_254 = arith.constant 0 : index
    %c0_255 = arith.constant 0 : index
    %511 = vector.load %arg1[%c3_253, %c0_254, %c0_255] : memref<5x128x256xbf16, #tpu.memory_space<vmem>>, vector<1x128x256xbf16>
    %512 = vector.shape_cast %511 : vector<1x128x256xbf16> to vector<128x256xbf16>
    %cst_256 = arith.constant dense<0.000000e+00> : vector<8x256xf32>
    %513 = tpu.matmul %510, %512, %cst_256 {dimension_numbers = #tpu.dot_dimension_numbers<[1], [0], [0], [1], [0, 0, 1, 1], [], []>} : vector<8x128xbf16>, vector<128x256xbf16>, vector<8x256xf32> -> vector<8x256xf32>
    %514 = arith.addf %513, %494 : vector<8x256xf32>
    %c0_257 = arith.constant 0 : index
    %c0_258 = arith.constant 0 : index
    %515 = vector.load %arg9[%c0_257, %c0_258] : memref<64x256xf32, #tpu.memory_space<vmem>>, vector<8x256xf32>
    tpu.vector_store %arg9[%c0_257, %c0_258], %514 {strides = array<i32>} : memref<64x256xf32, #tpu.memory_space<vmem>>, vector<8x256xf32>,
    %c8_259 = arith.constant 8 : index
    %c0_260 = arith.constant 0 : index
    %516 = vector.load %arg8[%c8_259, %c0_260] : memref<64x256xf32, #tpu.memory_space<vmem>>, vector<8x256xf32>
    %c2_261 = arith.constant 2 : index
    %c0_262 = arith.constant 0 : index
    %c0_263 = arith.constant 0 : index
    %517 = vector.load %arg2[%c2_261, %c0_262, %c0_263] : memref<5x128x256xbf16, #tpu.memory_space<vmem>>, vector<1x128x256xbf16>
    %518 = vector.shape_cast %517 : vector<1x128x256xbf16> to vector<128x256xbf16>
    %cst_264 = arith.constant dense<0.000000e+00> : vector<8x256xf32>
    %519 = tpu.matmul %510, %518, %cst_264 {dimension_numbers = #tpu.dot_dimension_numbers<[1], [0], [0], [1], [0, 0, 1, 1], [], []>} : vector<8x128xbf16>, vector<128x256xbf16>, vector<8x256xf32> -> vector<8x256xf32>
    %520 = vector.extract_strided_slice %516 {offsets = [0, 0], sizes = [8, 128], strides = [1, 1]} : vector<8x256xf32> to vector<8x128xf32>
    %521 = vector.extract_strided_slice %519 {offsets = [0, 0], sizes = [8, 128], strides = [1, 1]} : vector<8x256xf32> to vector<8x128xf32>
    %522 = arith.addf %520, %521 : vector<8x128xf32>
    %523 = vector.extract_strided_slice %519 {offsets = [0, 128], sizes = [8, 128], strides = [1, 1]} : vector<8x256xf32> to vector<8x128xf32>
    %524 = arith.addf %523, %490 : vector<8x128xf32>
    %525 = arith.negf %522 : vector<8x128xf32>
    %526 = math.exp %525 : vector<8x128xf32>
    %cst_265 = arith.constant 1.000000e+00 : f32
    %527 = vector.broadcast %cst_265 : f32 to vector<8x128xf32>
    %528 = arith.addf %527, %526 : vector<8x128xf32>
    %529 = arith.divf %527, %528 : vector<8x128xf32>
    %c96_i32_266 = arith.constant 96 : i32
    %530 = tpu.dynamic_rotate %529 by %c96_i32_266 dim 1 : vector<8x128xf32>, i32 -> vector<8x128xf32>
    %531 = vector.extract_strided_slice %516 {offsets = [0, 128], sizes = [8, 128], strides = [1, 1]} : vector<8x256xf32> to vector<8x128xf32>
    %532 = arith.mulf %529, %524 : vector<8x128xf32>
    %533 = arith.addf %531, %532 : vector<8x128xf32>
    %534 = math.tanh %533 : vector<8x128xf32>
    %cst_267 = arith.constant 1.000000e+00 : f32
    %535 = vector.broadcast %cst_267 : f32 to vector<8x128xf32>
    %536 = arith.subf %535, %530 : vector<8x128xf32>
    %537 = arith.mulf %536, %534 : vector<8x128xf32>
    %538 = arith.mulf %530, %509 : vector<8x128xf32>
    %539 = arith.addf %537, %538 : vector<8x128xf32>
    %540 = arith.truncf %539 : vector<8x128xf32> to vector<8x128xbf16>
    %c3_268 = arith.constant 3 : index
    %c0_269 = arith.constant 0 : index
    %c0_270 = arith.constant 0 : index
    %541 = vector.load %arg1[%c3_268, %c0_269, %c0_270] : memref<5x128x256xbf16, #tpu.memory_space<vmem>>, vector<1x128x256xbf16>
    %542 = vector.shape_cast %541 : vector<1x128x256xbf16> to vector<128x256xbf16>
    %cst_271 = arith.constant dense<0.000000e+00> : vector<8x256xf32>
    %543 = tpu.matmul %540, %542, %cst_271 {dimension_numbers = #tpu.dot_dimension_numbers<[1], [0], [0], [1], [0, 0, 1, 1], [], []>} : vector<8x128xbf16>, vector<128x256xbf16>, vector<8x256xf32> -> vector<8x256xf32>
    %544 = arith.addf %543, %494 : vector<8x256xf32>
    %c8_272 = arith.constant 8 : index
    %c0_273 = arith.constant 0 : index
    %545 = vector.load %arg9[%c8_272, %c0_273] : memref<64x256xf32, #tpu.memory_space<vmem>>, vector<8x256xf32>
    tpu.vector_store %arg9[%c8_272, %c0_273], %544 {strides = array<i32>} : memref<64x256xf32, #tpu.memory_space<vmem>>, vector<8x256xf32>,
    %c16_274 = arith.constant 16 : index
    %c0_275 = arith.constant 0 : index
    %546 = vector.load %arg8[%c16_274, %c0_275] : memref<64x256xf32, #tpu.memory_space<vmem>>, vector<8x256xf32>
    %c2_276 = arith.constant 2 : index
    %c0_277 = arith.constant 0 : index
    %c0_278 = arith.constant 0 : index
    %547 = vector.load %arg2[%c2_276, %c0_277, %c0_278] : memref<5x128x256xbf16, #tpu.memory_space<vmem>>, vector<1x128x256xbf16>
    %548 = vector.shape_cast %547 : vector<1x128x256xbf16> to vector<128x256xbf16>
    %cst_279 = arith.constant dense<0.000000e+00> : vector<8x256xf32>
    %549 = tpu.matmul %540, %548, %cst_279 {dimension_numbers = #tpu.dot_dimension_numbers<[1], [0], [0], [1], [0, 0, 1, 1], [], []>} : vector<8x128xbf16>, vector<128x256xbf16>, vector<8x256xf32> -> vector<8x256xf32>
    %550 = vector.extract_strided_slice %546 {offsets = [0, 0], sizes = [8, 128], strides = [1, 1]} : vector<8x256xf32> to vector<8x128xf32>
    %551 = vector.extract_strided_slice %549 {offsets = [0, 0], sizes = [8, 128], strides = [1, 1]} : vector<8x256xf32> to vector<8x128xf32>
    %552 = arith.addf %550, %551 : vector<8x128xf32>
    %553 = vector.extract_strided_slice %549 {offsets = [0, 128], sizes = [8, 128], strides = [1, 1]} : vector<8x256xf32> to vector<8x128xf32>
    %554 = arith.addf %553, %490 : vector<8x128xf32>
    %555 = arith.negf %552 : vector<8x128xf32>
    %556 = math.exp %555 : vector<8x128xf32>
    %cst_280 = arith.constant 1.000000e+00 : f32
    %557 = vector.broadcast %cst_280 : f32 to vector<8x128xf32>
    %558 = arith.addf %557, %556 : vector<8x128xf32>
    %559 = arith.divf %557, %558 : vector<8x128xf32>
    %c96_i32_281 = arith.constant 96 : i32
    %560 = tpu.dynamic_rotate %559 by %c96_i32_281 dim 1 : vector<8x128xf32>, i32 -> vector<8x128xf32>
    %561 = vector.extract_strided_slice %546 {offsets = [0, 128], sizes = [8, 128], strides = [1, 1]} : vector<8x256xf32> to vector<8x128xf32>
    %562 = arith.mulf %559, %554 : vector<8x128xf32>
    %563 = arith.addf %561, %562 : vector<8x128xf32>
    %564 = math.tanh %563 : vector<8x128xf32>
    %cst_282 = arith.constant 1.000000e+00 : f32
    %565 = vector.broadcast %cst_282 : f32 to vector<8x128xf32>
    %566 = arith.subf %565, %560 : vector<8x128xf32>
    %567 = arith.mulf %566, %564 : vector<8x128xf32>
    %568 = arith.mulf %560, %539 : vector<8x128xf32>
    %569 = arith.addf %567, %568 : vector<8x128xf32>
    %570 = arith.truncf %569 : vector<8x128xf32> to vector<8x128xbf16>
    %c3_283 = arith.constant 3 : index
    %c0_284 = arith.constant 0 : index
    %c0_285 = arith.constant 0 : index
    %571 = vector.load %arg1[%c3_283, %c0_284, %c0_285] : memref<5x128x256xbf16, #tpu.memory_space<vmem>>, vector<1x128x256xbf16>
    %572 = vector.shape_cast %571 : vector<1x128x256xbf16> to vector<128x256xbf16>
    %cst_286 = arith.constant dense<0.000000e+00> : vector<8x256xf32>
    %573 = tpu.matmul %570, %572, %cst_286 {dimension_numbers = #tpu.dot_dimension_numbers<[1], [0], [0], [1], [0, 0, 1, 1], [], []>} : vector<8x128xbf16>, vector<128x256xbf16>, vector<8x256xf32> -> vector<8x256xf32>
    %574 = arith.addf %573, %494 : vector<8x256xf32>
    %c16_287 = arith.constant 16 : index
    %c0_288 = arith.constant 0 : index
    %575 = vector.load %arg9[%c16_287, %c0_288] : memref<64x256xf32, #tpu.memory_space<vmem>>, vector<8x256xf32>
    tpu.vector_store %arg9[%c16_287, %c0_288], %574 {strides = array<i32>} : memref<64x256xf32, #tpu.memory_space<vmem>>, vector<8x256xf32>,
    %c24_289 = arith.constant 24 : index
    %c0_290 = arith.constant 0 : index
    %576 = vector.load %arg8[%c24_289, %c0_290] : memref<64x256xf32, #tpu.memory_space<vmem>>, vector<8x256xf32>
    %c2_291 = arith.constant 2 : index
    %c0_292 = arith.constant 0 : index
    %c0_293 = arith.constant 0 : index
    %577 = vector.load %arg2[%c2_291, %c0_292, %c0_293] : memref<5x128x256xbf16, #tpu.memory_space<vmem>>, vector<1x128x256xbf16>
    %578 = vector.shape_cast %577 : vector<1x128x256xbf16> to vector<128x256xbf16>
    %cst_294 = arith.constant dense<0.000000e+00> : vector<8x256xf32>
    %579 = tpu.matmul %570, %578, %cst_294 {dimension_numbers = #tpu.dot_dimension_numbers<[1], [0], [0], [1], [0, 0, 1, 1], [], []>} : vector<8x128xbf16>, vector<128x256xbf16>, vector<8x256xf32> -> vector<8x256xf32>
    %580 = vector.extract_strided_slice %576 {offsets = [0, 0], sizes = [8, 128], strides = [1, 1]} : vector<8x256xf32> to vector<8x128xf32>
    %581 = vector.extract_strided_slice %579 {offsets = [0, 0], sizes = [8, 128], strides = [1, 1]} : vector<8x256xf32> to vector<8x128xf32>
    %582 = arith.addf %580, %581 : vector<8x128xf32>
    %583 = vector.extract_strided_slice %579 {offsets = [0, 128], sizes = [8, 128], strides = [1, 1]} : vector<8x256xf32> to vector<8x128xf32>
    %584 = arith.addf %583, %490 : vector<8x128xf32>
    %585 = arith.negf %582 : vector<8x128xf32>
    %586 = math.exp %585 : vector<8x128xf32>
    %cst_295 = arith.constant 1.000000e+00 : f32
    %587 = vector.broadcast %cst_295 : f32 to vector<8x128xf32>
    %588 = arith.addf %587, %586 : vector<8x128xf32>
    %589 = arith.divf %587, %588 : vector<8x128xf32>
    %c96_i32_296 = arith.constant 96 : i32
    %590 = tpu.dynamic_rotate %589 by %c96_i32_296 dim 1 : vector<8x128xf32>, i32 -> vector<8x128xf32>
    %591 = vector.extract_strided_slice %576 {offsets = [0, 128], sizes = [8, 128], strides = [1, 1]} : vector<8x256xf32> to vector<8x128xf32>
    %592 = arith.mulf %589, %584 : vector<8x128xf32>
    %593 = arith.addf %591, %592 : vector<8x128xf32>
    %594 = math.tanh %593 : vector<8x128xf32>
    %cst_297 = arith.constant 1.000000e+00 : f32
    %595 = vector.broadcast %cst_297 : f32 to vector<8x128xf32>
    %596 = arith.subf %595, %590 : vector<8x128xf32>
    %597 = arith.mulf %596, %594 : vector<8x128xf32>
    %598 = arith.mulf %590, %569 : vector<8x128xf32>
    %599 = arith.addf %597, %598 : vector<8x128xf32>
    %600 = arith.truncf %599 : vector<8x128xf32> to vector<8x128xbf16>
    %c3_298 = arith.constant 3 : index
    %c0_299 = arith.constant 0 : index
    %c0_300 = arith.constant 0 : index
    %601 = vector.load %arg1[%c3_298, %c0_299, %c0_300] : memref<5x128x256xbf16, #tpu.memory_space<vmem>>, vector<1x128x256xbf16>
    %602 = vector.shape_cast %601 : vector<1x128x256xbf16> to vector<128x256xbf16>
    %cst_301 = arith.constant dense<0.000000e+00> : vector<8x256xf32>
    %603 = tpu.matmul %600, %602, %cst_301 {dimension_numbers = #tpu.dot_dimension_numbers<[1], [0], [0], [1], [0, 0, 1, 1], [], []>} : vector<8x128xbf16>, vector<128x256xbf16>, vector<8x256xf32> -> vector<8x256xf32>
    %604 = arith.addf %603, %494 : vector<8x256xf32>
    %c24_302 = arith.constant 24 : index
    %c0_303 = arith.constant 0 : index
    %605 = vector.load %arg9[%c24_302, %c0_303] : memref<64x256xf32, #tpu.memory_space<vmem>>, vector<8x256xf32>
    tpu.vector_store %arg9[%c24_302, %c0_303], %604 {strides = array<i32>} : memref<64x256xf32, #tpu.memory_space<vmem>>, vector<8x256xf32>,
    %c32_304 = arith.constant 32 : index
    %c0_305 = arith.constant 0 : index
    %606 = vector.load %arg8[%c32_304, %c0_305] : memref<64x256xf32, #tpu.memory_space<vmem>>, vector<8x256xf32>
    %c2_306 = arith.constant 2 : index
    %c0_307 = arith.constant 0 : index
    %c0_308 = arith.constant 0 : index
    %607 = vector.load %arg2[%c2_306, %c0_307, %c0_308] : memref<5x128x256xbf16, #tpu.memory_space<vmem>>, vector<1x128x256xbf16>
    %608 = vector.shape_cast %607 : vector<1x128x256xbf16> to vector<128x256xbf16>
    %cst_309 = arith.constant dense<0.000000e+00> : vector<8x256xf32>
    %609 = tpu.matmul %600, %608, %cst_309 {dimension_numbers = #tpu.dot_dimension_numbers<[1], [0], [0], [1], [0, 0, 1, 1], [], []>} : vector<8x128xbf16>, vector<128x256xbf16>, vector<8x256xf32> -> vector<8x256xf32>
    %610 = vector.extract_strided_slice %606 {offsets = [0, 0], sizes = [8, 128], strides = [1, 1]} : vector<8x256xf32> to vector<8x128xf32>
    %611 = vector.extract_strided_slice %609 {offsets = [0, 0], sizes = [8, 128], strides = [1, 1]} : vector<8x256xf32> to vector<8x128xf32>
    %612 = arith.addf %610, %611 : vector<8x128xf32>
    %613 = vector.extract_strided_slice %609 {offsets = [0, 128], sizes = [8, 128], strides = [1, 1]} : vector<8x256xf32> to vector<8x128xf32>
    %614 = arith.addf %613, %490 : vector<8x128xf32>
    %615 = arith.negf %612 : vector<8x128xf32>
    %616 = math.exp %615 : vector<8x128xf32>
    %cst_310 = arith.constant 1.000000e+00 : f32
    %617 = vector.broadcast %cst_310 : f32 to vector<8x128xf32>
    %618 = arith.addf %617, %616 : vector<8x128xf32>
    %619 = arith.divf %617, %618 : vector<8x128xf32>
    %c96_i32_311 = arith.constant 96 : i32
    %620 = tpu.dynamic_rotate %619 by %c96_i32_311 dim 1 : vector<8x128xf32>, i32 -> vector<8x128xf32>
    %621 = vector.extract_strided_slice %606 {offsets = [0, 128], sizes = [8, 128], strides = [1, 1]} : vector<8x256xf32> to vector<8x128xf32>
    %622 = arith.mulf %619, %614 : vector<8x128xf32>
    %623 = arith.addf %621, %622 : vector<8x128xf32>
    %624 = math.tanh %623 : vector<8x128xf32>
    %cst_312 = arith.constant 1.000000e+00 : f32
    %625 = vector.broadcast %cst_312 : f32 to vector<8x128xf32>
    %626 = arith.subf %625, %620 : vector<8x128xf32>
    %627 = arith.mulf %626, %624 : vector<8x128xf32>
    %628 = arith.mulf %620, %599 : vector<8x128xf32>
    %629 = arith.addf %627, %628 : vector<8x128xf32>
    %630 = arith.truncf %629 : vector<8x128xf32> to vector<8x128xbf16>
    %c3_313 = arith.constant 3 : index
    %c0_314 = arith.constant 0 : index
    %c0_315 = arith.constant 0 : index
    %631 = vector.load %arg1[%c3_313, %c0_314, %c0_315] : memref<5x128x256xbf16, #tpu.memory_space<vmem>>, vector<1x128x256xbf16>
    %632 = vector.shape_cast %631 : vector<1x128x256xbf16> to vector<128x256xbf16>
    %cst_316 = arith.constant dense<0.000000e+00> : vector<8x256xf32>
    %633 = tpu.matmul %630, %632, %cst_316 {dimension_numbers = #tpu.dot_dimension_numbers<[1], [0], [0], [1], [0, 0, 1, 1], [], []>} : vector<8x128xbf16>, vector<128x256xbf16>, vector<8x256xf32> -> vector<8x256xf32>
    %634 = arith.addf %633, %494 : vector<8x256xf32>
    %c32_317 = arith.constant 32 : index
    %c0_318 = arith.constant 0 : index
    %635 = vector.load %arg9[%c32_317, %c0_318] : memref<64x256xf32, #tpu.memory_space<vmem>>, vector<8x256xf32>
    tpu.vector_store %arg9[%c32_317, %c0_318], %634 {strides = array<i32>} : memref<64x256xf32, #tpu.memory_space<vmem>>, vector<8x256xf32>,
    %c40_319 = arith.constant 40 : index
    %c0_320 = arith.constant 0 : index
    %636 = vector.load %arg8[%c40_319, %c0_320] : memref<64x256xf32, #tpu.memory_space<vmem>>, vector<8x256xf32>
    %c2_321 = arith.constant 2 : index
    %c0_322 = arith.constant 0 : index
    %c0_323 = arith.constant 0 : index
    %637 = vector.load %arg2[%c2_321, %c0_322, %c0_323] : memref<5x128x256xbf16, #tpu.memory_space<vmem>>, vector<1x128x256xbf16>
    %638 = vector.shape_cast %637 : vector<1x128x256xbf16> to vector<128x256xbf16>
    %cst_324 = arith.constant dense<0.000000e+00> : vector<8x256xf32>
    %639 = tpu.matmul %630, %638, %cst_324 {dimension_numbers = #tpu.dot_dimension_numbers<[1], [0], [0], [1], [0, 0, 1, 1], [], []>} : vector<8x128xbf16>, vector<128x256xbf16>, vector<8x256xf32> -> vector<8x256xf32>
    %640 = vector.extract_strided_slice %636 {offsets = [0, 0], sizes = [8, 128], strides = [1, 1]} : vector<8x256xf32> to vector<8x128xf32>
    %641 = vector.extract_strided_slice %639 {offsets = [0, 0], sizes = [8, 128], strides = [1, 1]} : vector<8x256xf32> to vector<8x128xf32>
    %642 = arith.addf %640, %641 : vector<8x128xf32>
    %643 = vector.extract_strided_slice %639 {offsets = [0, 128], sizes = [8, 128], strides = [1, 1]} : vector<8x256xf32> to vector<8x128xf32>
    %644 = arith.addf %643, %490 : vector<8x128xf32>
    %645 = arith.negf %642 : vector<8x128xf32>
    %646 = math.exp %645 : vector<8x128xf32>
    %cst_325 = arith.constant 1.000000e+00 : f32
    %647 = vector.broadcast %cst_325 : f32 to vector<8x128xf32>
    %648 = arith.addf %647, %646 : vector<8x128xf32>
    %649 = arith.divf %647, %648 : vector<8x128xf32>
    %c96_i32_326 = arith.constant 96 : i32
    %650 = tpu.dynamic_rotate %649 by %c96_i32_326 dim 1 : vector<8x128xf32>, i32 -> vector<8x128xf32>
    %651 = vector.extract_strided_slice %636 {offsets = [0, 128], sizes = [8, 128], strides = [1, 1]} : vector<8x256xf32> to vector<8x128xf32>
    %652 = arith.mulf %649, %644 : vector<8x128xf32>
    %653 = arith.addf %651, %652 : vector<8x128xf32>
    %654 = math.tanh %653 : vector<8x128xf32>
    %cst_327 = arith.constant 1.000000e+00 : f32
    %655 = vector.broadcast %cst_327 : f32 to vector<8x128xf32>
    %656 = arith.subf %655, %650 : vector<8x128xf32>
    %657 = arith.mulf %656, %654 : vector<8x128xf32>
    %658 = arith.mulf %650, %629 : vector<8x128xf32>
    %659 = arith.addf %657, %658 : vector<8x128xf32>
    %660 = arith.truncf %659 : vector<8x128xf32> to vector<8x128xbf16>
    %c3_328 = arith.constant 3 : index
    %c0_329 = arith.constant 0 : index
    %c0_330 = arith.constant 0 : index
    %661 = vector.load %arg1[%c3_328, %c0_329, %c0_330] : memref<5x128x256xbf16, #tpu.memory_space<vmem>>, vector<1x128x256xbf16>
    %662 = vector.shape_cast %661 : vector<1x128x256xbf16> to vector<128x256xbf16>
    %cst_331 = arith.constant dense<0.000000e+00> : vector<8x256xf32>
    %663 = tpu.matmul %660, %662, %cst_331 {dimension_numbers = #tpu.dot_dimension_numbers<[1], [0], [0], [1], [0, 0, 1, 1], [], []>} : vector<8x128xbf16>, vector<128x256xbf16>, vector<8x256xf32> -> vector<8x256xf32>
    %664 = arith.addf %663, %494 : vector<8x256xf32>
    %c40_332 = arith.constant 40 : index
    %c0_333 = arith.constant 0 : index
    %665 = vector.load %arg9[%c40_332, %c0_333] : memref<64x256xf32, #tpu.memory_space<vmem>>, vector<8x256xf32>
    tpu.vector_store %arg9[%c40_332, %c0_333], %664 {strides = array<i32>} : memref<64x256xf32, #tpu.memory_space<vmem>>, vector<8x256xf32>,
    %c48_334 = arith.constant 48 : index
    %c0_335 = arith.constant 0 : index
    %666 = vector.load %arg8[%c48_334, %c0_335] : memref<64x256xf32, #tpu.memory_space<vmem>>, vector<8x256xf32>
    %c2_336 = arith.constant 2 : index
    %c0_337 = arith.constant 0 : index
    %c0_338 = arith.constant 0 : index
    %667 = vector.load %arg2[%c2_336, %c0_337, %c0_338] : memref<5x128x256xbf16, #tpu.memory_space<vmem>>, vector<1x128x256xbf16>
    %668 = vector.shape_cast %667 : vector<1x128x256xbf16> to vector<128x256xbf16>
    %cst_339 = arith.constant dense<0.000000e+00> : vector<8x256xf32>
    %669 = tpu.matmul %660, %668, %cst_339 {dimension_numbers = #tpu.dot_dimension_numbers<[1], [0], [0], [1], [0, 0, 1, 1], [], []>} : vector<8x128xbf16>, vector<128x256xbf16>, vector<8x256xf32> -> vector<8x256xf32>
    %670 = vector.extract_strided_slice %666 {offsets = [0, 0], sizes = [8, 128], strides = [1, 1]} : vector<8x256xf32> to vector<8x128xf32>
    %671 = vector.extract_strided_slice %669 {offsets = [0, 0], sizes = [8, 128], strides = [1, 1]} : vector<8x256xf32> to vector<8x128xf32>
    %672 = arith.addf %670, %671 : vector<8x128xf32>
    %673 = vector.extract_strided_slice %669 {offsets = [0, 128], sizes = [8, 128], strides = [1, 1]} : vector<8x256xf32> to vector<8x128xf32>
    %674 = arith.addf %673, %490 : vector<8x128xf32>
    %675 = arith.negf %672 : vector<8x128xf32>
    %676 = math.exp %675 : vector<8x128xf32>
    %cst_340 = arith.constant 1.000000e+00 : f32
    %677 = vector.broadcast %cst_340 : f32 to vector<8x128xf32>
    %678 = arith.addf %677, %676 : vector<8x128xf32>
    %679 = arith.divf %677, %678 : vector<8x128xf32>
    %c96_i32_341 = arith.constant 96 : i32
    %680 = tpu.dynamic_rotate %679 by %c96_i32_341 dim 1 : vector<8x128xf32>, i32 -> vector<8x128xf32>
    %681 = vector.extract_strided_slice %666 {offsets = [0, 128], sizes = [8, 128], strides = [1, 1]} : vector<8x256xf32> to vector<8x128xf32>
    %682 = arith.mulf %679, %674 : vector<8x128xf32>
    %683 = arith.addf %681, %682 : vector<8x128xf32>
    %684 = math.tanh %683 : vector<8x128xf32>
    %cst_342 = arith.constant 1.000000e+00 : f32
    %685 = vector.broadcast %cst_342 : f32 to vector<8x128xf32>
    %686 = arith.subf %685, %680 : vector<8x128xf32>
    %687 = arith.mulf %686, %684 : vector<8x128xf32>
    %688 = arith.mulf %680, %659 : vector<8x128xf32>
    %689 = arith.addf %687, %688 : vector<8x128xf32>
    %690 = arith.truncf %689 : vector<8x128xf32> to vector<8x128xbf16>
    %c3_343 = arith.constant 3 : index
    %c0_344 = arith.constant 0 : index
    %c0_345 = arith.constant 0 : index
    %691 = vector.load %arg1[%c3_343, %c0_344, %c0_345] : memref<5x128x256xbf16, #tpu.memory_space<vmem>>, vector<1x128x256xbf16>
    %692 = vector.shape_cast %691 : vector<1x128x256xbf16> to vector<128x256xbf16>
    %cst_346 = arith.constant dense<0.000000e+00> : vector<8x256xf32>
    %693 = tpu.matmul %690, %692, %cst_346 {dimension_numbers = #tpu.dot_dimension_numbers<[1], [0], [0], [1], [0, 0, 1, 1], [], []>} : vector<8x128xbf16>, vector<128x256xbf16>, vector<8x256xf32> -> vector<8x256xf32>
    %694 = arith.addf %693, %494 : vector<8x256xf32>
    %c48_347 = arith.constant 48 : index
    %c0_348 = arith.constant 0 : index
    %695 = vector.load %arg9[%c48_347, %c0_348] : memref<64x256xf32, #tpu.memory_space<vmem>>, vector<8x256xf32>
    tpu.vector_store %arg9[%c48_347, %c0_348], %694 {strides = array<i32>} : memref<64x256xf32, #tpu.memory_space<vmem>>, vector<8x256xf32>,
    %c56_349 = arith.constant 56 : index
    %c0_350 = arith.constant 0 : index
    %696 = vector.load %arg8[%c56_349, %c0_350] : memref<64x256xf32, #tpu.memory_space<vmem>>, vector<8x256xf32>
    %c2_351 = arith.constant 2 : index
    %c0_352 = arith.constant 0 : index
    %c0_353 = arith.constant 0 : index
    %697 = vector.load %arg2[%c2_351, %c0_352, %c0_353] : memref<5x128x256xbf16, #tpu.memory_space<vmem>>, vector<1x128x256xbf16>
    %698 = vector.shape_cast %697 : vector<1x128x256xbf16> to vector<128x256xbf16>
    %cst_354 = arith.constant dense<0.000000e+00> : vector<8x256xf32>
    %699 = tpu.matmul %690, %698, %cst_354 {dimension_numbers = #tpu.dot_dimension_numbers<[1], [0], [0], [1], [0, 0, 1, 1], [], []>} : vector<8x128xbf16>, vector<128x256xbf16>, vector<8x256xf32> -> vector<8x256xf32>
    %700 = vector.extract_strided_slice %696 {offsets = [0, 0], sizes = [8, 128], strides = [1, 1]} : vector<8x256xf32> to vector<8x128xf32>
    %701 = vector.extract_strided_slice %699 {offsets = [0, 0], sizes = [8, 128], strides = [1, 1]} : vector<8x256xf32> to vector<8x128xf32>
    %702 = arith.addf %700, %701 : vector<8x128xf32>
    %703 = vector.extract_strided_slice %699 {offsets = [0, 128], sizes = [8, 128], strides = [1, 1]} : vector<8x256xf32> to vector<8x128xf32>
    %704 = arith.addf %703, %490 : vector<8x128xf32>
    %705 = arith.negf %702 : vector<8x128xf32>
    %706 = math.exp %705 : vector<8x128xf32>
    %cst_355 = arith.constant 1.000000e+00 : f32
    %707 = vector.broadcast %cst_355 : f32 to vector<8x128xf32>
    %708 = arith.addf %707, %706 : vector<8x128xf32>
    %709 = arith.divf %707, %708 : vector<8x128xf32>
    %c96_i32_356 = arith.constant 96 : i32
    %710 = tpu.dynamic_rotate %709 by %c96_i32_356 dim 1 : vector<8x128xf32>, i32 -> vector<8x128xf32>
    %711 = vector.extract_strided_slice %696 {offsets = [0, 128], sizes = [8, 128], strides = [1, 1]} : vector<8x256xf32> to vector<8x128xf32>
    %712 = arith.mulf %709, %704 : vector<8x128xf32>
    %713 = arith.addf %711, %712 : vector<8x128xf32>
    %714 = math.tanh %713 : vector<8x128xf32>
    %cst_357 = arith.constant 1.000000e+00 : f32
    %715 = vector.broadcast %cst_357 : f32 to vector<8x128xf32>
    %716 = arith.subf %715, %710 : vector<8x128xf32>
    %717 = arith.mulf %716, %714 : vector<8x128xf32>
    %718 = arith.mulf %710, %689 : vector<8x128xf32>
    %719 = arith.addf %717, %718 : vector<8x128xf32>
    %720 = arith.truncf %719 : vector<8x128xf32> to vector<8x128xbf16>
    %c3_358 = arith.constant 3 : index
    %c0_359 = arith.constant 0 : index
    %c0_360 = arith.constant 0 : index
    %721 = vector.load %arg1[%c3_358, %c0_359, %c0_360] : memref<5x128x256xbf16, #tpu.memory_space<vmem>>, vector<1x128x256xbf16>
    %722 = vector.shape_cast %721 : vector<1x128x256xbf16> to vector<128x256xbf16>
    %cst_361 = arith.constant dense<0.000000e+00> : vector<8x256xf32>
    %723 = tpu.matmul %720, %722, %cst_361 {dimension_numbers = #tpu.dot_dimension_numbers<[1], [0], [0], [1], [0, 0, 1, 1], [], []>} : vector<8x128xbf16>, vector<128x256xbf16>, vector<8x256xf32> -> vector<8x256xf32>
    %724 = arith.addf %723, %494 : vector<8x256xf32>
    %c56_362 = arith.constant 56 : index
    %c0_363 = arith.constant 0 : index
    %725 = vector.load %arg9[%c56_362, %c0_363] : memref<64x256xf32, #tpu.memory_space<vmem>>, vector<8x256xf32>
    tpu.vector_store %arg9[%c56_362, %c0_363], %724 {strides = array<i32>} : memref<64x256xf32, #tpu.memory_space<vmem>>, vector<8x256xf32>,
    %c3_364 = arith.constant 3 : index
    %c0_365 = arith.constant 0 : index
    %c0_366 = arith.constant 0 : index
    %726 = vector.load %arg4[%c3_364, %c0_365, %c0_366] : memref<5x1x128xf32, #tpu.memory_space<vmem>>, vector<1x1x128xf32>
    %727 = vector.shape_cast %726 : vector<1x1x128xf32> to vector<1x128xf32>
    %728 = vector.shape_cast %727 : vector<1x128xf32> to vector<1x128xf32>
    %729 = vector.broadcast %728 : vector<1x128xf32> to vector<8x128xf32>
    %c4 = arith.constant 4 : index
    %c0_367 = arith.constant 0 : index
    %c0_368 = arith.constant 0 : index
    %730 = vector.load %arg3[%c4, %c0_367, %c0_368] : memref<5x1x256xf32, #tpu.memory_space<vmem>>, vector<1x1x256xf32>
    %731 = vector.shape_cast %730 : vector<1x1x256xf32> to vector<1x256xf32>
    %732 = vector.shape_cast %731 : vector<1x256xf32> to vector<1x256xf32>
    %733 = vector.broadcast %732 : vector<1x256xf32> to vector<8x256xf32>
    %c0_369 = arith.constant 0 : index
    %c0_370 = arith.constant 0 : index
    %734 = vector.load %arg9[%c0_369, %c0_370] : memref<64x256xf32, #tpu.memory_space<vmem>>, vector<8x256xf32>
    %735 = vector.extract_strided_slice %734 {offsets = [0, 0], sizes = [8, 128], strides = [1, 1]} : vector<8x256xf32> to vector<8x128xf32>
    %736 = arith.negf %735 : vector<8x128xf32>
    %737 = math.exp %736 : vector<8x128xf32>
    %cst_371 = arith.constant 1.000000e+00 : f32
    %738 = vector.broadcast %cst_371 : f32 to vector<8x128xf32>
    %739 = arith.addf %738, %737 : vector<8x128xf32>
    %740 = arith.divf %738, %739 : vector<8x128xf32>
    %c96_i32_372 = arith.constant 96 : i32
    %741 = tpu.dynamic_rotate %740 by %c96_i32_372 dim 1 : vector<8x128xf32>, i32 -> vector<8x128xf32>
    %742 = vector.extract_strided_slice %734 {offsets = [0, 128], sizes = [8, 128], strides = [1, 1]} : vector<8x256xf32> to vector<8x128xf32>
    %743 = arith.mulf %740, %729 : vector<8x128xf32>
    %744 = arith.addf %742, %743 : vector<8x128xf32>
    %745 = math.tanh %744 : vector<8x128xf32>
    %cst_373 = arith.constant 1.000000e+00 : f32
    %746 = vector.broadcast %cst_373 : f32 to vector<8x128xf32>
    %747 = arith.subf %746, %741 : vector<8x128xf32>
    %748 = arith.mulf %747, %745 : vector<8x128xf32>
    %749 = arith.truncf %748 : vector<8x128xf32> to vector<8x128xbf16>
    %c4_374 = arith.constant 4 : index
    %c0_375 = arith.constant 0 : index
    %c0_376 = arith.constant 0 : index
    %750 = vector.load %arg1[%c4_374, %c0_375, %c0_376] : memref<5x128x256xbf16, #tpu.memory_space<vmem>>, vector<1x128x256xbf16>
    %751 = vector.shape_cast %750 : vector<1x128x256xbf16> to vector<128x256xbf16>
    %cst_377 = arith.constant dense<0.000000e+00> : vector<8x256xf32>
    %752 = tpu.matmul %749, %751, %cst_377 {dimension_numbers = #tpu.dot_dimension_numbers<[1], [0], [0], [1], [0, 0, 1, 1], [], []>} : vector<8x128xbf16>, vector<128x256xbf16>, vector<8x256xf32> -> vector<8x256xf32>
    %753 = arith.addf %752, %733 : vector<8x256xf32>
    %c0_378 = arith.constant 0 : index
    %c0_379 = arith.constant 0 : index
    %754 = vector.load %arg8[%c0_378, %c0_379] : memref<64x256xf32, #tpu.memory_space<vmem>>, vector<8x256xf32>
    tpu.vector_store %arg8[%c0_378, %c0_379], %753 {strides = array<i32>} : memref<64x256xf32, #tpu.memory_space<vmem>>, vector<8x256xf32>,
    %c8_380 = arith.constant 8 : index
    %c0_381 = arith.constant 0 : index
    %755 = vector.load %arg9[%c8_380, %c0_381] : memref<64x256xf32, #tpu.memory_space<vmem>>, vector<8x256xf32>
    %c3_382 = arith.constant 3 : index
    %c0_383 = arith.constant 0 : index
    %c0_384 = arith.constant 0 : index
    %756 = vector.load %arg2[%c3_382, %c0_383, %c0_384] : memref<5x128x256xbf16, #tpu.memory_space<vmem>>, vector<1x128x256xbf16>
    %757 = vector.shape_cast %756 : vector<1x128x256xbf16> to vector<128x256xbf16>
    %cst_385 = arith.constant dense<0.000000e+00> : vector<8x256xf32>
    %758 = tpu.matmul %749, %757, %cst_385 {dimension_numbers = #tpu.dot_dimension_numbers<[1], [0], [0], [1], [0, 0, 1, 1], [], []>} : vector<8x128xbf16>, vector<128x256xbf16>, vector<8x256xf32> -> vector<8x256xf32>
    %759 = vector.extract_strided_slice %755 {offsets = [0, 0], sizes = [8, 128], strides = [1, 1]} : vector<8x256xf32> to vector<8x128xf32>
    %760 = vector.extract_strided_slice %758 {offsets = [0, 0], sizes = [8, 128], strides = [1, 1]} : vector<8x256xf32> to vector<8x128xf32>
    %761 = arith.addf %759, %760 : vector<8x128xf32>
    %762 = vector.extract_strided_slice %758 {offsets = [0, 128], sizes = [8, 128], strides = [1, 1]} : vector<8x256xf32> to vector<8x128xf32>
    %763 = arith.addf %762, %729 : vector<8x128xf32>
    %764 = arith.negf %761 : vector<8x128xf32>
    %765 = math.exp %764 : vector<8x128xf32>
    %cst_386 = arith.constant 1.000000e+00 : f32
    %766 = vector.broadcast %cst_386 : f32 to vector<8x128xf32>
    %767 = arith.addf %766, %765 : vector<8x128xf32>
    %768 = arith.divf %766, %767 : vector<8x128xf32>
    %c96_i32_387 = arith.constant 96 : i32
    %769 = tpu.dynamic_rotate %768 by %c96_i32_387 dim 1 : vector<8x128xf32>, i32 -> vector<8x128xf32>
    %770 = vector.extract_strided_slice %755 {offsets = [0, 128], sizes = [8, 128], strides = [1, 1]} : vector<8x256xf32> to vector<8x128xf32>
    %771 = arith.mulf %768, %763 : vector<8x128xf32>
    %772 = arith.addf %770, %771 : vector<8x128xf32>
    %773 = math.tanh %772 : vector<8x128xf32>
    %cst_388 = arith.constant 1.000000e+00 : f32
    %774 = vector.broadcast %cst_388 : f32 to vector<8x128xf32>
    %775 = arith.subf %774, %769 : vector<8x128xf32>
    %776 = arith.mulf %775, %773 : vector<8x128xf32>
    %777 = arith.mulf %769, %748 : vector<8x128xf32>
    %778 = arith.addf %776, %777 : vector<8x128xf32>
    %779 = arith.truncf %778 : vector<8x128xf32> to vector<8x128xbf16>
    %c4_389 = arith.constant 4 : index
    %c0_390 = arith.constant 0 : index
    %c0_391 = arith.constant 0 : index
    %780 = vector.load %arg1[%c4_389, %c0_390, %c0_391] : memref<5x128x256xbf16, #tpu.memory_space<vmem>>, vector<1x128x256xbf16>
    %781 = vector.shape_cast %780 : vector<1x128x256xbf16> to vector<128x256xbf16>
    %cst_392 = arith.constant dense<0.000000e+00> : vector<8x256xf32>
    %782 = tpu.matmul %779, %781, %cst_392 {dimension_numbers = #tpu.dot_dimension_numbers<[1], [0], [0], [1], [0, 0, 1, 1], [], []>} : vector<8x128xbf16>, vector<128x256xbf16>, vector<8x256xf32> -> vector<8x256xf32>
    %783 = arith.addf %782, %733 : vector<8x256xf32>
    %c8_393 = arith.constant 8 : index
    %c0_394 = arith.constant 0 : index
    %784 = vector.load %arg8[%c8_393, %c0_394] : memref<64x256xf32, #tpu.memory_space<vmem>>, vector<8x256xf32>
    tpu.vector_store %arg8[%c8_393, %c0_394], %783 {strides = array<i32>} : memref<64x256xf32, #tpu.memory_space<vmem>>, vector<8x256xf32>,
    %c16_395 = arith.constant 16 : index
    %c0_396 = arith.constant 0 : index
    %785 = vector.load %arg9[%c16_395, %c0_396] : memref<64x256xf32, #tpu.memory_space<vmem>>, vector<8x256xf32>
    %c3_397 = arith.constant 3 : index
    %c0_398 = arith.constant 0 : index
    %c0_399 = arith.constant 0 : index
    %786 = vector.load %arg2[%c3_397, %c0_398, %c0_399] : memref<5x128x256xbf16, #tpu.memory_space<vmem>>, vector<1x128x256xbf16>
    %787 = vector.shape_cast %786 : vector<1x128x256xbf16> to vector<128x256xbf16>
    %cst_400 = arith.constant dense<0.000000e+00> : vector<8x256xf32>
    %788 = tpu.matmul %779, %787, %cst_400 {dimension_numbers = #tpu.dot_dimension_numbers<[1], [0], [0], [1], [0, 0, 1, 1], [], []>} : vector<8x128xbf16>, vector<128x256xbf16>, vector<8x256xf32> -> vector<8x256xf32>
    %789 = vector.extract_strided_slice %785 {offsets = [0, 0], sizes = [8, 128], strides = [1, 1]} : vector<8x256xf32> to vector<8x128xf32>
    %790 = vector.extract_strided_slice %788 {offsets = [0, 0], sizes = [8, 128], strides = [1, 1]} : vector<8x256xf32> to vector<8x128xf32>
    %791 = arith.addf %789, %790 : vector<8x128xf32>
    %792 = vector.extract_strided_slice %788 {offsets = [0, 128], sizes = [8, 128], strides = [1, 1]} : vector<8x256xf32> to vector<8x128xf32>
    %793 = arith.addf %792, %729 : vector<8x128xf32>
    %794 = arith.negf %791 : vector<8x128xf32>
    %795 = math.exp %794 : vector<8x128xf32>
    %cst_401 = arith.constant 1.000000e+00 : f32
    %796 = vector.broadcast %cst_401 : f32 to vector<8x128xf32>
    %797 = arith.addf %796, %795 : vector<8x128xf32>
    %798 = arith.divf %796, %797 : vector<8x128xf32>
    %c96_i32_402 = arith.constant 96 : i32
    %799 = tpu.dynamic_rotate %798 by %c96_i32_402 dim 1 : vector<8x128xf32>, i32 -> vector<8x128xf32>
    %800 = vector.extract_strided_slice %785 {offsets = [0, 128], sizes = [8, 128], strides = [1, 1]} : vector<8x256xf32> to vector<8x128xf32>
    %801 = arith.mulf %798, %793 : vector<8x128xf32>
    %802 = arith.addf %800, %801 : vector<8x128xf32>
    %803 = math.tanh %802 : vector<8x128xf32>
    %cst_403 = arith.constant 1.000000e+00 : f32
    %804 = vector.broadcast %cst_403 : f32 to vector<8x128xf32>
    %805 = arith.subf %804, %799 : vector<8x128xf32>
    %806 = arith.mulf %805, %803 : vector<8x128xf32>
    %807 = arith.mulf %799, %778 : vector<8x128xf32>
    %808 = arith.addf %806, %807 : vector<8x128xf32>
    %809 = arith.truncf %808 : vector<8x128xf32> to vector<8x128xbf16>
    %c4_404 = arith.constant 4 : index
    %c0_405 = arith.constant 0 : index
    %c0_406 = arith.constant 0 : index
    %810 = vector.load %arg1[%c4_404, %c0_405, %c0_406] : memref<5x128x256xbf16, #tpu.memory_space<vmem>>, vector<1x128x256xbf16>
    %811 = vector.shape_cast %810 : vector<1x128x256xbf16> to vector<128x256xbf16>
    %cst_407 = arith.constant dense<0.000000e+00> : vector<8x256xf32>
    %812 = tpu.matmul %809, %811, %cst_407 {dimension_numbers = #tpu.dot_dimension_numbers<[1], [0], [0], [1], [0, 0, 1, 1], [], []>} : vector<8x128xbf16>, vector<128x256xbf16>, vector<8x256xf32> -> vector<8x256xf32>
    %813 = arith.addf %812, %733 : vector<8x256xf32>
    %c16_408 = arith.constant 16 : index
    %c0_409 = arith.constant 0 : index
    %814 = vector.load %arg8[%c16_408, %c0_409] : memref<64x256xf32, #tpu.memory_space<vmem>>, vector<8x256xf32>
    tpu.vector_store %arg8[%c16_408, %c0_409], %813 {strides = array<i32>} : memref<64x256xf32, #tpu.memory_space<vmem>>, vector<8x256xf32>,
    %c24_410 = arith.constant 24 : index
    %c0_411 = arith.constant 0 : index
    %815 = vector.load %arg9[%c24_410, %c0_411] : memref<64x256xf32, #tpu.memory_space<vmem>>, vector<8x256xf32>
    %c3_412 = arith.constant 3 : index
    %c0_413 = arith.constant 0 : index
    %c0_414 = arith.constant 0 : index
    %816 = vector.load %arg2[%c3_412, %c0_413, %c0_414] : memref<5x128x256xbf16, #tpu.memory_space<vmem>>, vector<1x128x256xbf16>
    %817 = vector.shape_cast %816 : vector<1x128x256xbf16> to vector<128x256xbf16>
    %cst_415 = arith.constant dense<0.000000e+00> : vector<8x256xf32>
    %818 = tpu.matmul %809, %817, %cst_415 {dimension_numbers = #tpu.dot_dimension_numbers<[1], [0], [0], [1], [0, 0, 1, 1], [], []>} : vector<8x128xbf16>, vector<128x256xbf16>, vector<8x256xf32> -> vector<8x256xf32>
    %819 = vector.extract_strided_slice %815 {offsets = [0, 0], sizes = [8, 128], strides = [1, 1]} : vector<8x256xf32> to vector<8x128xf32>
    %820 = vector.extract_strided_slice %818 {offsets = [0, 0], sizes = [8, 128], strides = [1, 1]} : vector<8x256xf32> to vector<8x128xf32>
    %821 = arith.addf %819, %820 : vector<8x128xf32>
    %822 = vector.extract_strided_slice %818 {offsets = [0, 128], sizes = [8, 128], strides = [1, 1]} : vector<8x256xf32> to vector<8x128xf32>
    %823 = arith.addf %822, %729 : vector<8x128xf32>
    %824 = arith.negf %821 : vector<8x128xf32>
    %825 = math.exp %824 : vector<8x128xf32>
    %cst_416 = arith.constant 1.000000e+00 : f32
    %826 = vector.broadcast %cst_416 : f32 to vector<8x128xf32>
    %827 = arith.addf %826, %825 : vector<8x128xf32>
    %828 = arith.divf %826, %827 : vector<8x128xf32>
    %c96_i32_417 = arith.constant 96 : i32
    %829 = tpu.dynamic_rotate %828 by %c96_i32_417 dim 1 : vector<8x128xf32>, i32 -> vector<8x128xf32>
    %830 = vector.extract_strided_slice %815 {offsets = [0, 128], sizes = [8, 128], strides = [1, 1]} : vector<8x256xf32> to vector<8x128xf32>
    %831 = arith.mulf %828, %823 : vector<8x128xf32>
    %832 = arith.addf %830, %831 : vector<8x128xf32>
    %833 = math.tanh %832 : vector<8x128xf32>
    %cst_418 = arith.constant 1.000000e+00 : f32
    %834 = vector.broadcast %cst_418 : f32 to vector<8x128xf32>
    %835 = arith.subf %834, %829 : vector<8x128xf32>
    %836 = arith.mulf %835, %833 : vector<8x128xf32>
    %837 = arith.mulf %829, %808 : vector<8x128xf32>
    %838 = arith.addf %836, %837 : vector<8x128xf32>
    %839 = arith.truncf %838 : vector<8x128xf32> to vector<8x128xbf16>
    %c4_419 = arith.constant 4 : index
    %c0_420 = arith.constant 0 : index
    %c0_421 = arith.constant 0 : index
    %840 = vector.load %arg1[%c4_419, %c0_420, %c0_421] : memref<5x128x256xbf16, #tpu.memory_space<vmem>>, vector<1x128x256xbf16>
    %841 = vector.shape_cast %840 : vector<1x128x256xbf16> to vector<128x256xbf16>
    %cst_422 = arith.constant dense<0.000000e+00> : vector<8x256xf32>
    %842 = tpu.matmul %839, %841, %cst_422 {dimension_numbers = #tpu.dot_dimension_numbers<[1], [0], [0], [1], [0, 0, 1, 1], [], []>} : vector<8x128xbf16>, vector<128x256xbf16>, vector<8x256xf32> -> vector<8x256xf32>
    %843 = arith.addf %842, %733 : vector<8x256xf32>
    %c24_423 = arith.constant 24 : index
    %c0_424 = arith.constant 0 : index
    %844 = vector.load %arg8[%c24_423, %c0_424] : memref<64x256xf32, #tpu.memory_space<vmem>>, vector<8x256xf32>
    tpu.vector_store %arg8[%c24_423, %c0_424], %843 {strides = array<i32>} : memref<64x256xf32, #tpu.memory_space<vmem>>, vector<8x256xf32>,
    %c32_425 = arith.constant 32 : index
    %c0_426 = arith.constant 0 : index
    %845 = vector.load %arg9[%c32_425, %c0_426] : memref<64x256xf32, #tpu.memory_space<vmem>>, vector<8x256xf32>
    %c3_427 = arith.constant 3 : index
    %c0_428 = arith.constant 0 : index
    %c0_429 = arith.constant 0 : index
    %846 = vector.load %arg2[%c3_427, %c0_428, %c0_429] : memref<5x128x256xbf16, #tpu.memory_space<vmem>>, vector<1x128x256xbf16>
    %847 = vector.shape_cast %846 : vector<1x128x256xbf16> to vector<128x256xbf16>
    %cst_430 = arith.constant dense<0.000000e+00> : vector<8x256xf32>
    %848 = tpu.matmul %839, %847, %cst_430 {dimension_numbers = #tpu.dot_dimension_numbers<[1], [0], [0], [1], [0, 0, 1, 1], [], []>} : vector<8x128xbf16>, vector<128x256xbf16>, vector<8x256xf32> -> vector<8x256xf32>
    %849 = vector.extract_strided_slice %845 {offsets = [0, 0], sizes = [8, 128], strides = [1, 1]} : vector<8x256xf32> to vector<8x128xf32>
    %850 = vector.extract_strided_slice %848 {offsets = [0, 0], sizes = [8, 128], strides = [1, 1]} : vector<8x256xf32> to vector<8x128xf32>
    %851 = arith.addf %849, %850 : vector<8x128xf32>
    %852 = vector.extract_strided_slice %848 {offsets = [0, 128], sizes = [8, 128], strides = [1, 1]} : vector<8x256xf32> to vector<8x128xf32>
    %853 = arith.addf %852, %729 : vector<8x128xf32>
    %854 = arith.negf %851 : vector<8x128xf32>
    %855 = math.exp %854 : vector<8x128xf32>
    %cst_431 = arith.constant 1.000000e+00 : f32
    %856 = vector.broadcast %cst_431 : f32 to vector<8x128xf32>
    %857 = arith.addf %856, %855 : vector<8x128xf32>
    %858 = arith.divf %856, %857 : vector<8x128xf32>
    %c96_i32_432 = arith.constant 96 : i32
    %859 = tpu.dynamic_rotate %858 by %c96_i32_432 dim 1 : vector<8x128xf32>, i32 -> vector<8x128xf32>
    %860 = vector.extract_strided_slice %845 {offsets = [0, 128], sizes = [8, 128], strides = [1, 1]} : vector<8x256xf32> to vector<8x128xf32>
    %861 = arith.mulf %858, %853 : vector<8x128xf32>
    %862 = arith.addf %860, %861 : vector<8x128xf32>
    %863 = math.tanh %862 : vector<8x128xf32>
    %cst_433 = arith.constant 1.000000e+00 : f32
    %864 = vector.broadcast %cst_433 : f32 to vector<8x128xf32>
    %865 = arith.subf %864, %859 : vector<8x128xf32>
    %866 = arith.mulf %865, %863 : vector<8x128xf32>
    %867 = arith.mulf %859, %838 : vector<8x128xf32>
    %868 = arith.addf %866, %867 : vector<8x128xf32>
    %869 = arith.truncf %868 : vector<8x128xf32> to vector<8x128xbf16>
    %c4_434 = arith.constant 4 : index
    %c0_435 = arith.constant 0 : index
    %c0_436 = arith.constant 0 : index
    %870 = vector.load %arg1[%c4_434, %c0_435, %c0_436] : memref<5x128x256xbf16, #tpu.memory_space<vmem>>, vector<1x128x256xbf16>
    %871 = vector.shape_cast %870 : vector<1x128x256xbf16> to vector<128x256xbf16>
    %cst_437 = arith.constant dense<0.000000e+00> : vector<8x256xf32>
    %872 = tpu.matmul %869, %871, %cst_437 {dimension_numbers = #tpu.dot_dimension_numbers<[1], [0], [0], [1], [0, 0, 1, 1], [], []>} : vector<8x128xbf16>, vector<128x256xbf16>, vector<8x256xf32> -> vector<8x256xf32>
    %873 = arith.addf %872, %733 : vector<8x256xf32>
    %c32_438 = arith.constant 32 : index
    %c0_439 = arith.constant 0 : index
    %874 = vector.load %arg8[%c32_438, %c0_439] : memref<64x256xf32, #tpu.memory_space<vmem>>, vector<8x256xf32>
    tpu.vector_store %arg8[%c32_438, %c0_439], %873 {strides = array<i32>} : memref<64x256xf32, #tpu.memory_space<vmem>>, vector<8x256xf32>,
    %c40_440 = arith.constant 40 : index
    %c0_441 = arith.constant 0 : index
    %875 = vector.load %arg9[%c40_440, %c0_441] : memref<64x256xf32, #tpu.memory_space<vmem>>, vector<8x256xf32>
    %c3_442 = arith.constant 3 : index
    %c0_443 = arith.constant 0 : index
    %c0_444 = arith.constant 0 : index
    %876 = vector.load %arg2[%c3_442, %c0_443, %c0_444] : memref<5x128x256xbf16, #tpu.memory_space<vmem>>, vector<1x128x256xbf16>
    %877 = vector.shape_cast %876 : vector<1x128x256xbf16> to vector<128x256xbf16>
    %cst_445 = arith.constant dense<0.000000e+00> : vector<8x256xf32>
    %878 = tpu.matmul %869, %877, %cst_445 {dimension_numbers = #tpu.dot_dimension_numbers<[1], [0], [0], [1], [0, 0, 1, 1], [], []>} : vector<8x128xbf16>, vector<128x256xbf16>, vector<8x256xf32> -> vector<8x256xf32>
    %879 = vector.extract_strided_slice %875 {offsets = [0, 0], sizes = [8, 128], strides = [1, 1]} : vector<8x256xf32> to vector<8x128xf32>
    %880 = vector.extract_strided_slice %878 {offsets = [0, 0], sizes = [8, 128], strides = [1, 1]} : vector<8x256xf32> to vector<8x128xf32>
    %881 = arith.addf %879, %880 : vector<8x128xf32>
    %882 = vector.extract_strided_slice %878 {offsets = [0, 128], sizes = [8, 128], strides = [1, 1]} : vector<8x256xf32> to vector<8x128xf32>
    %883 = arith.addf %882, %729 : vector<8x128xf32>
    %884 = arith.negf %881 : vector<8x128xf32>
    %885 = math.exp %884 : vector<8x128xf32>
    %cst_446 = arith.constant 1.000000e+00 : f32
    %886 = vector.broadcast %cst_446 : f32 to vector<8x128xf32>
    %887 = arith.addf %886, %885 : vector<8x128xf32>
    %888 = arith.divf %886, %887 : vector<8x128xf32>
    %c96_i32_447 = arith.constant 96 : i32
    %889 = tpu.dynamic_rotate %888 by %c96_i32_447 dim 1 : vector<8x128xf32>, i32 -> vector<8x128xf32>
    %890 = vector.extract_strided_slice %875 {offsets = [0, 128], sizes = [8, 128], strides = [1, 1]} : vector<8x256xf32> to vector<8x128xf32>
    %891 = arith.mulf %888, %883 : vector<8x128xf32>
    %892 = arith.addf %890, %891 : vector<8x128xf32>
    %893 = math.tanh %892 : vector<8x128xf32>
    %cst_448 = arith.constant 1.000000e+00 : f32
    %894 = vector.broadcast %cst_448 : f32 to vector<8x128xf32>
    %895 = arith.subf %894, %889 : vector<8x128xf32>
    %896 = arith.mulf %895, %893 : vector<8x128xf32>
    %897 = arith.mulf %889, %868 : vector<8x128xf32>
    %898 = arith.addf %896, %897 : vector<8x128xf32>
    %899 = arith.truncf %898 : vector<8x128xf32> to vector<8x128xbf16>
    %c4_449 = arith.constant 4 : index
    %c0_450 = arith.constant 0 : index
    %c0_451 = arith.constant 0 : index
    %900 = vector.load %arg1[%c4_449, %c0_450, %c0_451] : memref<5x128x256xbf16, #tpu.memory_space<vmem>>, vector<1x128x256xbf16>
    %901 = vector.shape_cast %900 : vector<1x128x256xbf16> to vector<128x256xbf16>
    %cst_452 = arith.constant dense<0.000000e+00> : vector<8x256xf32>
    %902 = tpu.matmul %899, %901, %cst_452 {dimension_numbers = #tpu.dot_dimension_numbers<[1], [0], [0], [1], [0, 0, 1, 1], [], []>} : vector<8x128xbf16>, vector<128x256xbf16>, vector<8x256xf32> -> vector<8x256xf32>
    %903 = arith.addf %902, %733 : vector<8x256xf32>
    %c40_453 = arith.constant 40 : index
    %c0_454 = arith.constant 0 : index
    %904 = vector.load %arg8[%c40_453, %c0_454] : memref<64x256xf32, #tpu.memory_space<vmem>>, vector<8x256xf32>
    tpu.vector_store %arg8[%c40_453, %c0_454], %903 {strides = array<i32>} : memref<64x256xf32, #tpu.memory_space<vmem>>, vector<8x256xf32>,
    %c48_455 = arith.constant 48 : index
    %c0_456 = arith.constant 0 : index
    %905 = vector.load %arg9[%c48_455, %c0_456] : memref<64x256xf32, #tpu.memory_space<vmem>>, vector<8x256xf32>
    %c3_457 = arith.constant 3 : index
    %c0_458 = arith.constant 0 : index
    %c0_459 = arith.constant 0 : index
    %906 = vector.load %arg2[%c3_457, %c0_458, %c0_459] : memref<5x128x256xbf16, #tpu.memory_space<vmem>>, vector<1x128x256xbf16>
    %907 = vector.shape_cast %906 : vector<1x128x256xbf16> to vector<128x256xbf16>
    %cst_460 = arith.constant dense<0.000000e+00> : vector<8x256xf32>
    %908 = tpu.matmul %899, %907, %cst_460 {dimension_numbers = #tpu.dot_dimension_numbers<[1], [0], [0], [1], [0, 0, 1, 1], [], []>} : vector<8x128xbf16>, vector<128x256xbf16>, vector<8x256xf32> -> vector<8x256xf32>
    %909 = vector.extract_strided_slice %905 {offsets = [0, 0], sizes = [8, 128], strides = [1, 1]} : vector<8x256xf32> to vector<8x128xf32>
    %910 = vector.extract_strided_slice %908 {offsets = [0, 0], sizes = [8, 128], strides = [1, 1]} : vector<8x256xf32> to vector<8x128xf32>
    %911 = arith.addf %909, %910 : vector<8x128xf32>
    %912 = vector.extract_strided_slice %908 {offsets = [0, 128], sizes = [8, 128], strides = [1, 1]} : vector<8x256xf32> to vector<8x128xf32>
    %913 = arith.addf %912, %729 : vector<8x128xf32>
    %914 = arith.negf %911 : vector<8x128xf32>
    %915 = math.exp %914 : vector<8x128xf32>
    %cst_461 = arith.constant 1.000000e+00 : f32
    %916 = vector.broadcast %cst_461 : f32 to vector<8x128xf32>
    %917 = arith.addf %916, %915 : vector<8x128xf32>
    %918 = arith.divf %916, %917 : vector<8x128xf32>
    %c96_i32_462 = arith.constant 96 : i32
    %919 = tpu.dynamic_rotate %918 by %c96_i32_462 dim 1 : vector<8x128xf32>, i32 -> vector<8x128xf32>
    %920 = vector.extract_strided_slice %905 {offsets = [0, 128], sizes = [8, 128], strides = [1, 1]} : vector<8x256xf32> to vector<8x128xf32>
    %921 = arith.mulf %918, %913 : vector<8x128xf32>
    %922 = arith.addf %920, %921 : vector<8x128xf32>
    %923 = math.tanh %922 : vector<8x128xf32>
    %cst_463 = arith.constant 1.000000e+00 : f32
    %924 = vector.broadcast %cst_463 : f32 to vector<8x128xf32>
    %925 = arith.subf %924, %919 : vector<8x128xf32>
    %926 = arith.mulf %925, %923 : vector<8x128xf32>
    %927 = arith.mulf %919, %898 : vector<8x128xf32>
    %928 = arith.addf %926, %927 : vector<8x128xf32>
    %929 = arith.truncf %928 : vector<8x128xf32> to vector<8x128xbf16>
    %c4_464 = arith.constant 4 : index
    %c0_465 = arith.constant 0 : index
    %c0_466 = arith.constant 0 : index
    %930 = vector.load %arg1[%c4_464, %c0_465, %c0_466] : memref<5x128x256xbf16, #tpu.memory_space<vmem>>, vector<1x128x256xbf16>
    %931 = vector.shape_cast %930 : vector<1x128x256xbf16> to vector<128x256xbf16>
    %cst_467 = arith.constant dense<0.000000e+00> : vector<8x256xf32>
    %932 = tpu.matmul %929, %931, %cst_467 {dimension_numbers = #tpu.dot_dimension_numbers<[1], [0], [0], [1], [0, 0, 1, 1], [], []>} : vector<8x128xbf16>, vector<128x256xbf16>, vector<8x256xf32> -> vector<8x256xf32>
    %933 = arith.addf %932, %733 : vector<8x256xf32>
    %c48_468 = arith.constant 48 : index
    %c0_469 = arith.constant 0 : index
    %934 = vector.load %arg8[%c48_468, %c0_469] : memref<64x256xf32, #tpu.memory_space<vmem>>, vector<8x256xf32>
    tpu.vector_store %arg8[%c48_468, %c0_469], %933 {strides = array<i32>} : memref<64x256xf32, #tpu.memory_space<vmem>>, vector<8x256xf32>,
    %c56_470 = arith.constant 56 : index
    %c0_471 = arith.constant 0 : index
    %935 = vector.load %arg9[%c56_470, %c0_471] : memref<64x256xf32, #tpu.memory_space<vmem>>, vector<8x256xf32>
    %c3_472 = arith.constant 3 : index
    %c0_473 = arith.constant 0 : index
    %c0_474 = arith.constant 0 : index
    %936 = vector.load %arg2[%c3_472, %c0_473, %c0_474] : memref<5x128x256xbf16, #tpu.memory_space<vmem>>, vector<1x128x256xbf16>
    %937 = vector.shape_cast %936 : vector<1x128x256xbf16> to vector<128x256xbf16>
    %cst_475 = arith.constant dense<0.000000e+00> : vector<8x256xf32>
    %938 = tpu.matmul %929, %937, %cst_475 {dimension_numbers = #tpu.dot_dimension_numbers<[1], [0], [0], [1], [0, 0, 1, 1], [], []>} : vector<8x128xbf16>, vector<128x256xbf16>, vector<8x256xf32> -> vector<8x256xf32>
    %939 = vector.extract_strided_slice %935 {offsets = [0, 0], sizes = [8, 128], strides = [1, 1]} : vector<8x256xf32> to vector<8x128xf32>
    %940 = vector.extract_strided_slice %938 {offsets = [0, 0], sizes = [8, 128], strides = [1, 1]} : vector<8x256xf32> to vector<8x128xf32>
    %941 = arith.addf %939, %940 : vector<8x128xf32>
    %942 = vector.extract_strided_slice %938 {offsets = [0, 128], sizes = [8, 128], strides = [1, 1]} : vector<8x256xf32> to vector<8x128xf32>
    %943 = arith.addf %942, %729 : vector<8x128xf32>
    %944 = arith.negf %941 : vector<8x128xf32>
    %945 = math.exp %944 : vector<8x128xf32>
    %cst_476 = arith.constant 1.000000e+00 : f32
    %946 = vector.broadcast %cst_476 : f32 to vector<8x128xf32>
    %947 = arith.addf %946, %945 : vector<8x128xf32>
    %948 = arith.divf %946, %947 : vector<8x128xf32>
    %c96_i32_477 = arith.constant 96 : i32
    %949 = tpu.dynamic_rotate %948 by %c96_i32_477 dim 1 : vector<8x128xf32>, i32 -> vector<8x128xf32>
    %950 = vector.extract_strided_slice %935 {offsets = [0, 128], sizes = [8, 128], strides = [1, 1]} : vector<8x256xf32> to vector<8x128xf32>
    %951 = arith.mulf %948, %943 : vector<8x128xf32>
    %952 = arith.addf %950, %951 : vector<8x128xf32>
    %953 = math.tanh %952 : vector<8x128xf32>
    %cst_478 = arith.constant 1.000000e+00 : f32
    %954 = vector.broadcast %cst_478 : f32 to vector<8x128xf32>
    %955 = arith.subf %954, %949 : vector<8x128xf32>
    %956 = arith.mulf %955, %953 : vector<8x128xf32>
    %957 = arith.mulf %949, %928 : vector<8x128xf32>
    %958 = arith.addf %956, %957 : vector<8x128xf32>
    %959 = arith.truncf %958 : vector<8x128xf32> to vector<8x128xbf16>
    %c4_479 = arith.constant 4 : index
    %c0_480 = arith.constant 0 : index
    %c0_481 = arith.constant 0 : index
    %960 = vector.load %arg1[%c4_479, %c0_480, %c0_481] : memref<5x128x256xbf16, #tpu.memory_space<vmem>>, vector<1x128x256xbf16>
    %961 = vector.shape_cast %960 : vector<1x128x256xbf16> to vector<128x256xbf16>
    %cst_482 = arith.constant dense<0.000000e+00> : vector<8x256xf32>
    %962 = tpu.matmul %959, %961, %cst_482 {dimension_numbers = #tpu.dot_dimension_numbers<[1], [0], [0], [1], [0, 0, 1, 1], [], []>} : vector<8x128xbf16>, vector<128x256xbf16>, vector<8x256xf32> -> vector<8x256xf32>
    %963 = arith.addf %962, %733 : vector<8x256xf32>
    %c56_483 = arith.constant 56 : index
    %c0_484 = arith.constant 0 : index
    %964 = vector.load %arg8[%c56_483, %c0_484] : memref<64x256xf32, #tpu.memory_space<vmem>>, vector<8x256xf32>
    tpu.vector_store %arg8[%c56_483, %c0_484], %963 {strides = array<i32>} : memref<64x256xf32, #tpu.memory_space<vmem>>, vector<8x256xf32>,
    %c4_485 = arith.constant 4 : index
    %c0_486 = arith.constant 0 : index
    %c0_487 = arith.constant 0 : index
    %965 = vector.load %arg4[%c4_485, %c0_486, %c0_487] : memref<5x1x128xf32, #tpu.memory_space<vmem>>, vector<1x1x128xf32>
    %966 = vector.shape_cast %965 : vector<1x1x128xf32> to vector<1x128xf32>
    %967 = vector.shape_cast %966 : vector<1x128xf32> to vector<1x128xf32>
    %968 = vector.broadcast %967 : vector<1x128xf32> to vector<8x128xf32>
    %c0_488 = arith.constant 0 : index
    %c0_489 = arith.constant 0 : index
    %969 = vector.load %arg8[%c0_488, %c0_489] : memref<64x256xf32, #tpu.memory_space<vmem>>, vector<8x256xf32>
    %970 = vector.extract_strided_slice %969 {offsets = [0, 0], sizes = [8, 128], strides = [1, 1]} : vector<8x256xf32> to vector<8x128xf32>
    %971 = arith.negf %970 : vector<8x128xf32>
    %972 = math.exp %971 : vector<8x128xf32>
    %cst_490 = arith.constant 1.000000e+00 : f32
    %973 = vector.broadcast %cst_490 : f32 to vector<8x128xf32>
    %974 = arith.addf %973, %972 : vector<8x128xf32>
    %975 = arith.divf %973, %974 : vector<8x128xf32>
    %c96_i32_491 = arith.constant 96 : i32
    %976 = tpu.dynamic_rotate %975 by %c96_i32_491 dim 1 : vector<8x128xf32>, i32 -> vector<8x128xf32>
    %977 = vector.extract_strided_slice %969 {offsets = [0, 128], sizes = [8, 128], strides = [1, 1]} : vector<8x256xf32> to vector<8x128xf32>
    %978 = arith.mulf %975, %968 : vector<8x128xf32>
    %979 = arith.addf %977, %978 : vector<8x128xf32>
    %980 = math.tanh %979 : vector<8x128xf32>
    %cst_492 = arith.constant 1.000000e+00 : f32
    %981 = vector.broadcast %cst_492 : f32 to vector<8x128xf32>
    %982 = arith.subf %981, %976 : vector<8x128xf32>
    %983 = arith.mulf %982, %980 : vector<8x128xf32>
    %984 = arith.truncf %983 : vector<8x128xf32> to vector<8x128xbf16>
    %c8_493 = arith.constant 8 : index
    %c0_494 = arith.constant 0 : index
    %985 = vector.load %arg8[%c8_493, %c0_494] : memref<64x256xf32, #tpu.memory_space<vmem>>, vector<8x256xf32>
    %c4_495 = arith.constant 4 : index
    %c0_496 = arith.constant 0 : index
    %c0_497 = arith.constant 0 : index
    %986 = vector.load %arg2[%c4_495, %c0_496, %c0_497] : memref<5x128x256xbf16, #tpu.memory_space<vmem>>, vector<1x128x256xbf16>
    %987 = vector.shape_cast %986 : vector<1x128x256xbf16> to vector<128x256xbf16>
    %cst_498 = arith.constant dense<0.000000e+00> : vector<8x256xf32>
    %988 = tpu.matmul %984, %987, %cst_498 {dimension_numbers = #tpu.dot_dimension_numbers<[1], [0], [0], [1], [0, 0, 1, 1], [], []>} : vector<8x128xbf16>, vector<128x256xbf16>, vector<8x256xf32> -> vector<8x256xf32>
    %989 = vector.extract_strided_slice %985 {offsets = [0, 0], sizes = [8, 128], strides = [1, 1]} : vector<8x256xf32> to vector<8x128xf32>
    %990 = vector.extract_strided_slice %988 {offsets = [0, 0], sizes = [8, 128], strides = [1, 1]} : vector<8x256xf32> to vector<8x128xf32>
    %991 = arith.addf %989, %990 : vector<8x128xf32>
    %992 = vector.extract_strided_slice %988 {offsets = [0, 128], sizes = [8, 128], strides = [1, 1]} : vector<8x256xf32> to vector<8x128xf32>
    %993 = arith.addf %992, %968 : vector<8x128xf32>
    %994 = arith.negf %991 : vector<8x128xf32>
    %995 = math.exp %994 : vector<8x128xf32>
    %cst_499 = arith.constant 1.000000e+00 : f32
    %996 = vector.broadcast %cst_499 : f32 to vector<8x128xf32>
    %997 = arith.addf %996, %995 : vector<8x128xf32>
    %998 = arith.divf %996, %997 : vector<8x128xf32>
    %c96_i32_500 = arith.constant 96 : i32
    %999 = tpu.dynamic_rotate %998 by %c96_i32_500 dim 1 : vector<8x128xf32>, i32 -> vector<8x128xf32>
    %1000 = vector.extract_strided_slice %985 {offsets = [0, 128], sizes = [8, 128], strides = [1, 1]} : vector<8x256xf32> to vector<8x128xf32>
    %1001 = arith.mulf %998, %993 : vector<8x128xf32>
    %1002 = arith.addf %1000, %1001 : vector<8x128xf32>
    %1003 = math.tanh %1002 : vector<8x128xf32>
    %cst_501 = arith.constant 1.000000e+00 : f32
    %1004 = vector.broadcast %cst_501 : f32 to vector<8x128xf32>
    %1005 = arith.subf %1004, %999 : vector<8x128xf32>
    %1006 = arith.mulf %1005, %1003 : vector<8x128xf32>
    %1007 = arith.mulf %999, %983 : vector<8x128xf32>
    %1008 = arith.addf %1006, %1007 : vector<8x128xf32>
    %1009 = arith.truncf %1008 : vector<8x128xf32> to vector<8x128xbf16>
    %c16_502 = arith.constant 16 : index
    %c0_503 = arith.constant 0 : index
    %1010 = vector.load %arg8[%c16_502, %c0_503] : memref<64x256xf32, #tpu.memory_space<vmem>>, vector<8x256xf32>
    %c4_504 = arith.constant 4 : index
    %c0_505 = arith.constant 0 : index
    %c0_506 = arith.constant 0 : index
    %1011 = vector.load %arg2[%c4_504, %c0_505, %c0_506] : memref<5x128x256xbf16, #tpu.memory_space<vmem>>, vector<1x128x256xbf16>
    %1012 = vector.shape_cast %1011 : vector<1x128x256xbf16> to vector<128x256xbf16>
    %cst_507 = arith.constant dense<0.000000e+00> : vector<8x256xf32>
    %1013 = tpu.matmul %1009, %1012, %cst_507 {dimension_numbers = #tpu.dot_dimension_numbers<[1], [0], [0], [1], [0, 0, 1, 1], [], []>} : vector<8x128xbf16>, vector<128x256xbf16>, vector<8x256xf32> -> vector<8x256xf32>
    %1014 = vector.extract_strided_slice %1010 {offsets = [0, 0], sizes = [8, 128], strides = [1, 1]} : vector<8x256xf32> to vector<8x128xf32>
    %1015 = vector.extract_strided_slice %1013 {offsets = [0, 0], sizes = [8, 128], strides = [1, 1]} : vector<8x256xf32> to vector<8x128xf32>
    %1016 = arith.addf %1014, %1015 : vector<8x128xf32>
    %1017 = vector.extract_strided_slice %1013 {offsets = [0, 128], sizes = [8, 128], strides = [1, 1]} : vector<8x256xf32> to vector<8x128xf32>
    %1018 = arith.addf %1017, %968 : vector<8x128xf32>
    %1019 = arith.negf %1016 : vector<8x128xf32>
    %1020 = math.exp %1019 : vector<8x128xf32>
    %cst_508 = arith.constant 1.000000e+00 : f32
    %1021 = vector.broadcast %cst_508 : f32 to vector<8x128xf32>
    %1022 = arith.addf %1021, %1020 : vector<8x128xf32>
    %1023 = arith.divf %1021, %1022 : vector<8x128xf32>
    %c96_i32_509 = arith.constant 96 : i32
    %1024 = tpu.dynamic_rotate %1023 by %c96_i32_509 dim 1 : vector<8x128xf32>, i32 -> vector<8x128xf32>
    %1025 = vector.extract_strided_slice %1010 {offsets = [0, 128], sizes = [8, 128], strides = [1, 1]} : vector<8x256xf32> to vector<8x128xf32>
    %1026 = arith.mulf %1023, %1018 : vector<8x128xf32>
    %1027 = arith.addf %1025, %1026 : vector<8x128xf32>
    %1028 = math.tanh %1027 : vector<8x128xf32>
    %cst_510 = arith.constant 1.000000e+00 : f32
    %1029 = vector.broadcast %cst_510 : f32 to vector<8x128xf32>
    %1030 = arith.subf %1029, %1024 : vector<8x128xf32>
    %1031 = arith.mulf %1030, %1028 : vector<8x128xf32>
    %1032 = arith.mulf %1024, %1008 : vector<8x128xf32>
    %1033 = arith.addf %1031, %1032 : vector<8x128xf32>
    %1034 = arith.truncf %1033 : vector<8x128xf32> to vector<8x128xbf16>
    %c24_511 = arith.constant 24 : index
    %c0_512 = arith.constant 0 : index
    %1035 = vector.load %arg8[%c24_511, %c0_512] : memref<64x256xf32, #tpu.memory_space<vmem>>, vector<8x256xf32>
    %c4_513 = arith.constant 4 : index
    %c0_514 = arith.constant 0 : index
    %c0_515 = arith.constant 0 : index
    %1036 = vector.load %arg2[%c4_513, %c0_514, %c0_515] : memref<5x128x256xbf16, #tpu.memory_space<vmem>>, vector<1x128x256xbf16>
    %1037 = vector.shape_cast %1036 : vector<1x128x256xbf16> to vector<128x256xbf16>
    %cst_516 = arith.constant dense<0.000000e+00> : vector<8x256xf32>
    %1038 = tpu.matmul %1034, %1037, %cst_516 {dimension_numbers = #tpu.dot_dimension_numbers<[1], [0], [0], [1], [0, 0, 1, 1], [], []>} : vector<8x128xbf16>, vector<128x256xbf16>, vector<8x256xf32> -> vector<8x256xf32>
    %1039 = vector.extract_strided_slice %1035 {offsets = [0, 0], sizes = [8, 128], strides = [1, 1]} : vector<8x256xf32> to vector<8x128xf32>
    %1040 = vector.extract_strided_slice %1038 {offsets = [0, 0], sizes = [8, 128], strides = [1, 1]} : vector<8x256xf32> to vector<8x128xf32>
    %1041 = arith.addf %1039, %1040 : vector<8x128xf32>
    %1042 = vector.extract_strided_slice %1038 {offsets = [0, 128], sizes = [8, 128], strides = [1, 1]} : vector<8x256xf32> to vector<8x128xf32>
    %1043 = arith.addf %1042, %968 : vector<8x128xf32>
    %1044 = arith.negf %1041 : vector<8x128xf32>
    %1045 = math.exp %1044 : vector<8x128xf32>
    %cst_517 = arith.constant 1.000000e+00 : f32
    %1046 = vector.broadcast %cst_517 : f32 to vector<8x128xf32>
    %1047 = arith.addf %1046, %1045 : vector<8x128xf32>
    %1048 = arith.divf %1046, %1047 : vector<8x128xf32>
    %c96_i32_518 = arith.constant 96 : i32
    %1049 = tpu.dynamic_rotate %1048 by %c96_i32_518 dim 1 : vector<8x128xf32>, i32 -> vector<8x128xf32>
    %1050 = vector.extract_strided_slice %1035 {offsets = [0, 128], sizes = [8, 128], strides = [1, 1]} : vector<8x256xf32> to vector<8x128xf32>
    %1051 = arith.mulf %1048, %1043 : vector<8x128xf32>
    %1052 = arith.addf %1050, %1051 : vector<8x128xf32>
    %1053 = math.tanh %1052 : vector<8x128xf32>
    %cst_519 = arith.constant 1.000000e+00 : f32
    %1054 = vector.broadcast %cst_519 : f32 to vector<8x128xf32>
    %1055 = arith.subf %1054, %1049 : vector<8x128xf32>
    %1056 = arith.mulf %1055, %1053 : vector<8x128xf32>
    %1057 = arith.mulf %1049, %1033 : vector<8x128xf32>
    %1058 = arith.addf %1056, %1057 : vector<8x128xf32>
    %1059 = arith.truncf %1058 : vector<8x128xf32> to vector<8x128xbf16>
    %c32_520 = arith.constant 32 : index
    %c0_521 = arith.constant 0 : index
    %1060 = vector.load %arg8[%c32_520, %c0_521] : memref<64x256xf32, #tpu.memory_space<vmem>>, vector<8x256xf32>
    %c4_522 = arith.constant 4 : index
    %c0_523 = arith.constant 0 : index
    %c0_524 = arith.constant 0 : index
    %1061 = vector.load %arg2[%c4_522, %c0_523, %c0_524] : memref<5x128x256xbf16, #tpu.memory_space<vmem>>, vector<1x128x256xbf16>
    %1062 = vector.shape_cast %1061 : vector<1x128x256xbf16> to vector<128x256xbf16>
    %cst_525 = arith.constant dense<0.000000e+00> : vector<8x256xf32>
    %1063 = tpu.matmul %1059, %1062, %cst_525 {dimension_numbers = #tpu.dot_dimension_numbers<[1], [0], [0], [1], [0, 0, 1, 1], [], []>} : vector<8x128xbf16>, vector<128x256xbf16>, vector<8x256xf32> -> vector<8x256xf32>
    %1064 = vector.extract_strided_slice %1060 {offsets = [0, 0], sizes = [8, 128], strides = [1, 1]} : vector<8x256xf32> to vector<8x128xf32>
    %1065 = vector.extract_strided_slice %1063 {offsets = [0, 0], sizes = [8, 128], strides = [1, 1]} : vector<8x256xf32> to vector<8x128xf32>
    %1066 = arith.addf %1064, %1065 : vector<8x128xf32>
    %1067 = vector.extract_strided_slice %1063 {offsets = [0, 128], sizes = [8, 128], strides = [1, 1]} : vector<8x256xf32> to vector<8x128xf32>
    %1068 = arith.addf %1067, %968 : vector<8x128xf32>
    %1069 = arith.negf %1066 : vector<8x128xf32>
    %1070 = math.exp %1069 : vector<8x128xf32>
    %cst_526 = arith.constant 1.000000e+00 : f32
    %1071 = vector.broadcast %cst_526 : f32 to vector<8x128xf32>
    %1072 = arith.addf %1071, %1070 : vector<8x128xf32>
    %1073 = arith.divf %1071, %1072 : vector<8x128xf32>
    %c96_i32_527 = arith.constant 96 : i32
    %1074 = tpu.dynamic_rotate %1073 by %c96_i32_527 dim 1 : vector<8x128xf32>, i32 -> vector<8x128xf32>
    %1075 = vector.extract_strided_slice %1060 {offsets = [0, 128], sizes = [8, 128], strides = [1, 1]} : vector<8x256xf32> to vector<8x128xf32>
    %1076 = arith.mulf %1073, %1068 : vector<8x128xf32>
    %1077 = arith.addf %1075, %1076 : vector<8x128xf32>
    %1078 = math.tanh %1077 : vector<8x128xf32>
    %cst_528 = arith.constant 1.000000e+00 : f32
    %1079 = vector.broadcast %cst_528 : f32 to vector<8x128xf32>
    %1080 = arith.subf %1079, %1074 : vector<8x128xf32>
    %1081 = arith.mulf %1080, %1078 : vector<8x128xf32>
    %1082 = arith.mulf %1074, %1058 : vector<8x128xf32>
    %1083 = arith.addf %1081, %1082 : vector<8x128xf32>
    %1084 = arith.truncf %1083 : vector<8x128xf32> to vector<8x128xbf16>
    %c40_529 = arith.constant 40 : index
    %c0_530 = arith.constant 0 : index
    %1085 = vector.load %arg8[%c40_529, %c0_530] : memref<64x256xf32, #tpu.memory_space<vmem>>, vector<8x256xf32>
    %c4_531 = arith.constant 4 : index
    %c0_532 = arith.constant 0 : index
    %c0_533 = arith.constant 0 : index
    %1086 = vector.load %arg2[%c4_531, %c0_532, %c0_533] : memref<5x128x256xbf16, #tpu.memory_space<vmem>>, vector<1x128x256xbf16>
    %1087 = vector.shape_cast %1086 : vector<1x128x256xbf16> to vector<128x256xbf16>
    %cst_534 = arith.constant dense<0.000000e+00> : vector<8x256xf32>
    %1088 = tpu.matmul %1084, %1087, %cst_534 {dimension_numbers = #tpu.dot_dimension_numbers<[1], [0], [0], [1], [0, 0, 1, 1], [], []>} : vector<8x128xbf16>, vector<128x256xbf16>, vector<8x256xf32> -> vector<8x256xf32>
    %1089 = vector.extract_strided_slice %1085 {offsets = [0, 0], sizes = [8, 128], strides = [1, 1]} : vector<8x256xf32> to vector<8x128xf32>
    %1090 = vector.extract_strided_slice %1088 {offsets = [0, 0], sizes = [8, 128], strides = [1, 1]} : vector<8x256xf32> to vector<8x128xf32>
    %1091 = arith.addf %1089, %1090 : vector<8x128xf32>
    %1092 = vector.extract_strided_slice %1088 {offsets = [0, 128], sizes = [8, 128], strides = [1, 1]} : vector<8x256xf32> to vector<8x128xf32>
    %1093 = arith.addf %1092, %968 : vector<8x128xf32>
    %1094 = arith.negf %1091 : vector<8x128xf32>
    %1095 = math.exp %1094 : vector<8x128xf32>
    %cst_535 = arith.constant 1.000000e+00 : f32
    %1096 = vector.broadcast %cst_535 : f32 to vector<8x128xf32>
    %1097 = arith.addf %1096, %1095 : vector<8x128xf32>
    %1098 = arith.divf %1096, %1097 : vector<8x128xf32>
    %c96_i32_536 = arith.constant 96 : i32
    %1099 = tpu.dynamic_rotate %1098 by %c96_i32_536 dim 1 : vector<8x128xf32>, i32 -> vector<8x128xf32>
    %1100 = vector.extract_strided_slice %1085 {offsets = [0, 128], sizes = [8, 128], strides = [1, 1]} : vector<8x256xf32> to vector<8x128xf32>
    %1101 = arith.mulf %1098, %1093 : vector<8x128xf32>
    %1102 = arith.addf %1100, %1101 : vector<8x128xf32>
    %1103 = math.tanh %1102 : vector<8x128xf32>
    %cst_537 = arith.constant 1.000000e+00 : f32
    %1104 = vector.broadcast %cst_537 : f32 to vector<8x128xf32>
    %1105 = arith.subf %1104, %1099 : vector<8x128xf32>
    %1106 = arith.mulf %1105, %1103 : vector<8x128xf32>
    %1107 = arith.mulf %1099, %1083 : vector<8x128xf32>
    %1108 = arith.addf %1106, %1107 : vector<8x128xf32>
    %1109 = arith.truncf %1108 : vector<8x128xf32> to vector<8x128xbf16>
    %c48_538 = arith.constant 48 : index
    %c0_539 = arith.constant 0 : index
    %1110 = vector.load %arg8[%c48_538, %c0_539] : memref<64x256xf32, #tpu.memory_space<vmem>>, vector<8x256xf32>
    %c4_540 = arith.constant 4 : index
    %c0_541 = arith.constant 0 : index
    %c0_542 = arith.constant 0 : index
    %1111 = vector.load %arg2[%c4_540, %c0_541, %c0_542] : memref<5x128x256xbf16, #tpu.memory_space<vmem>>, vector<1x128x256xbf16>
    %1112 = vector.shape_cast %1111 : vector<1x128x256xbf16> to vector<128x256xbf16>
    %cst_543 = arith.constant dense<0.000000e+00> : vector<8x256xf32>
    %1113 = tpu.matmul %1109, %1112, %cst_543 {dimension_numbers = #tpu.dot_dimension_numbers<[1], [0], [0], [1], [0, 0, 1, 1], [], []>} : vector<8x128xbf16>, vector<128x256xbf16>, vector<8x256xf32> -> vector<8x256xf32>
    %1114 = vector.extract_strided_slice %1110 {offsets = [0, 0], sizes = [8, 128], strides = [1, 1]} : vector<8x256xf32> to vector<8x128xf32>
    %1115 = vector.extract_strided_slice %1113 {offsets = [0, 0], sizes = [8, 128], strides = [1, 1]} : vector<8x256xf32> to vector<8x128xf32>
    %1116 = arith.addf %1114, %1115 : vector<8x128xf32>
    %1117 = vector.extract_strided_slice %1113 {offsets = [0, 128], sizes = [8, 128], strides = [1, 1]} : vector<8x256xf32> to vector<8x128xf32>
    %1118 = arith.addf %1117, %968 : vector<8x128xf32>
    %1119 = arith.negf %1116 : vector<8x128xf32>
    %1120 = math.exp %1119 : vector<8x128xf32>
    %cst_544 = arith.constant 1.000000e+00 : f32
    %1121 = vector.broadcast %cst_544 : f32 to vector<8x128xf32>
    %1122 = arith.addf %1121, %1120 : vector<8x128xf32>
    %1123 = arith.divf %1121, %1122 : vector<8x128xf32>
    %c96_i32_545 = arith.constant 96 : i32
    %1124 = tpu.dynamic_rotate %1123 by %c96_i32_545 dim 1 : vector<8x128xf32>, i32 -> vector<8x128xf32>
    %1125 = vector.extract_strided_slice %1110 {offsets = [0, 128], sizes = [8, 128], strides = [1, 1]} : vector<8x256xf32> to vector<8x128xf32>
    %1126 = arith.mulf %1123, %1118 : vector<8x128xf32>
    %1127 = arith.addf %1125, %1126 : vector<8x128xf32>
    %1128 = math.tanh %1127 : vector<8x128xf32>
    %cst_546 = arith.constant 1.000000e+00 : f32
    %1129 = vector.broadcast %cst_546 : f32 to vector<8x128xf32>
    %1130 = arith.subf %1129, %1124 : vector<8x128xf32>
    %1131 = arith.mulf %1130, %1128 : vector<8x128xf32>
    %1132 = arith.mulf %1124, %1108 : vector<8x128xf32>
    %1133 = arith.addf %1131, %1132 : vector<8x128xf32>
    %1134 = arith.truncf %1133 : vector<8x128xf32> to vector<8x128xbf16>
    %c56_547 = arith.constant 56 : index
    %c0_548 = arith.constant 0 : index
    %1135 = vector.load %arg8[%c56_547, %c0_548] : memref<64x256xf32, #tpu.memory_space<vmem>>, vector<8x256xf32>
    %c4_549 = arith.constant 4 : index
    %c0_550 = arith.constant 0 : index
    %c0_551 = arith.constant 0 : index
    %1136 = vector.load %arg2[%c4_549, %c0_550, %c0_551] : memref<5x128x256xbf16, #tpu.memory_space<vmem>>, vector<1x128x256xbf16>
    %1137 = vector.shape_cast %1136 : vector<1x128x256xbf16> to vector<128x256xbf16>
    %cst_552 = arith.constant dense<0.000000e+00> : vector<8x256xf32>
    %1138 = tpu.matmul %1134, %1137, %cst_552 {dimension_numbers = #tpu.dot_dimension_numbers<[1], [0], [0], [1], [0, 0, 1, 1], [], []>} : vector<8x128xbf16>, vector<128x256xbf16>, vector<8x256xf32> -> vector<8x256xf32>
    %1139 = vector.extract_strided_slice %1135 {offsets = [0, 0], sizes = [8, 128], strides = [1, 1]} : vector<8x256xf32> to vector<8x128xf32>
    %1140 = vector.extract_strided_slice %1138 {offsets = [0, 0], sizes = [8, 128], strides = [1, 1]} : vector<8x256xf32> to vector<8x128xf32>
    %1141 = arith.addf %1139, %1140 : vector<8x128xf32>
    %1142 = vector.extract_strided_slice %1138 {offsets = [0, 128], sizes = [8, 128], strides = [1, 1]} : vector<8x256xf32> to vector<8x128xf32>
    %1143 = arith.addf %1142, %968 : vector<8x128xf32>
    %1144 = arith.negf %1141 : vector<8x128xf32>
    %1145 = math.exp %1144 : vector<8x128xf32>
    %cst_553 = arith.constant 1.000000e+00 : f32
    %1146 = vector.broadcast %cst_553 : f32 to vector<8x128xf32>
    %1147 = arith.addf %1146, %1145 : vector<8x128xf32>
    %1148 = arith.divf %1146, %1147 : vector<8x128xf32>
    %c96_i32_554 = arith.constant 96 : i32
    %1149 = tpu.dynamic_rotate %1148 by %c96_i32_554 dim 1 : vector<8x128xf32>, i32 -> vector<8x128xf32>
    %1150 = vector.extract_strided_slice %1135 {offsets = [0, 128], sizes = [8, 128], strides = [1, 1]} : vector<8x256xf32> to vector<8x128xf32>
    %1151 = arith.mulf %1148, %1143 : vector<8x128xf32>
    %1152 = arith.addf %1150, %1151 : vector<8x128xf32>
    %1153 = math.tanh %1152 : vector<8x128xf32>
    %cst_555 = arith.constant 1.000000e+00 : f32
    %1154 = vector.broadcast %cst_555 : f32 to vector<8x128xf32>
    %1155 = arith.subf %1154, %1149 : vector<8x128xf32>
    %1156 = arith.mulf %1155, %1153 : vector<8x128xf32>
    %1157 = arith.mulf %1149, %1133 : vector<8x128xf32>
    %1158 = arith.addf %1156, %1157 : vector<8x128xf32>
    %1159 = arith.truncf %1158 : vector<8x128xf32> to vector<8x128xbf16>
    %c0_556 = arith.constant 0 : index
    %c0_557 = arith.constant 0 : index
    %1160 = vector.load %arg5[%c0_556, %c0_557] : memref<128x128xbf16, #tpu.memory_space<vmem>>, vector<128x128xbf16>
    %cst_558 = arith.constant dense<0.000000e+00> : vector<8x128xf32>
    %1161 = tpu.matmul %1159, %1160, %cst_558 {dimension_numbers = #tpu.dot_dimension_numbers<[1], [0], [0], [1], [0, 0, 1, 1], [], []>} : vector<8x128xbf16>, vector<128x128xbf16>, vector<8x128xf32> -> vector<8x128xf32>
    %c0_559 = arith.constant 0 : index
    %c0_560 = arith.constant 0 : index
    %1162 = vector.load %arg6[%c0_559, %c0_560] : memref<1x128xf32, #tpu.memory_space<vmem>>, vector<1x128xf32>
    %1163 = vector.broadcast %1162 : vector<1x128xf32> to vector<8x128xf32>
    %1164 = arith.addf %1161, %1163 : vector<8x128xf32>
    %c0_561 = arith.constant 0 : index
    %c0_562 = arith.constant 0 : index
    %1165 = vector.load %arg7[%c0_561, %c0_562] : memref<8x128xf32, #tpu.memory_space<vmem>>, vector<8x128xf32>
    tpu.vector_store %arg7[%c0_561, %c0_562], %1164 {strides = array<i32>} : memref<8x128xf32, #tpu.memory_space<vmem>>, vector<8x128xf32>,
    return
  }
}

</mosaic_0001>

<bundles_post_ra>
// kernel: gru_model_forward.1
= control target key start
LH: loop header
LB: loop body
LE: loop exit
PB: predicated region body
PF: predicated region fallthrough
CT: control target
= control target key end

     0   :  { %12 = vsyncpa [#allocation5], 0  ;;  %s14219_s0 = inlined_call_operand.vmem [shape: bf16[64,128], index: 0, kind: input, shape index: {}]   ;;  %s14220_s1 = inlined_call_operand.hbm [shape: bf16[5,128,256], index: 1, kind: input, shape index: {}]   ;;  %s14221_s2 = inlined_call_operand.hbm [shape: bf16[5,128,256], index: 2, kind: input, shape index: {}]   ;;  %s14222_s3 = inlined_call_operand.vmem [shape: f32[5,1,256], index: 3, kind: input, shape index: {}]   ;;  %s14223_s4 = inlined_call_operand.vmem [shape: f32[5,1,128], index: 4, kind: input, shape index: {}]   ;;  %s14224_s5 = inlined_call_operand.vmem [shape: bf16[128,128], index: 5, kind: input, shape index: {}]   ;;  %s14225_s6 = inlined_call_operand.hbm [shape: f32[1,128], index: 6, kind: input, shape index: {}]   ;;  %s14226_s7 = inlined_call_operand.vmem [shape: f32[8,128], index: 7, kind: output, shape index: {}]  }
   0x1   :  { %13 = vsyncpa [#allocation7], 0  ;;  %s11822_s24 = smov [#allocation6]   ;;  %s11823_s26 = smov [#allocation4]  }
   0x2   :  { %s33_s25 = sshll.u32 %s11822_s24, 4  ;;  %s21_s27 = sshll.u32 %s11823_s26, 4  ;;  %s34_s25 = int_to_ptr.vmem [resolvable:$true] %s33_s25  ;;  %s11871_s27 = int_to_ptr.vmem [resolvable:$true] %s21_s27 }
   0x3   :  { %s11752_s30 = scalar_lea.hbm %s14221_s2, 10240 }
   0x4   :  { %p11753_p0 = scmp.ne.s32.totalorder %s14221_s2, %s11752_s30  ;;  %p11756_p1 = scmp.lt.u32.totalorder %s11752_s30, %s14221_s2 }
   0x6   :  { %p11758_p2 = pnand %p11756_p1, %p11753_p0 }
   0x8   :  { %11761 = shalt.err (!%p11758_p2)
}
   0x9   :  { %s11762_s12 = scalar_lea.vmem %s34_s25, 10240  ;;  %p11767_p4 = scmp.lt.s32.totalorder %s34_s25, %s34_s25 }
   0xa   :  { %p11763_p3 = scmp.ne.s32.totalorder %s34_s25, %s11762_s12  ;;  %p11768_p5 = scmp.lt.s32.totalorder %s11762_s12, %s11762_s12 }
   0xc   :  { %p11769_p6 = por %p11768_p5, %p11767_p4 }
   0xe   :  { %p11770_p7 = pnand %p11769_p6, %p11763_p3 }
  0x10   :  { %11773 = shalt.err (!%p11770_p7)
}
  0x11   :  { %s11824_s13 = smov 128   ;;  %s11825_s14 = smov 8  }
  0x12   :  { %39 = dma.hbm_to_vmem [thread:$0]  %s14221_s2, 10240, %s34_s25, [#allocation7], %s11824_s13, %s11824_s13, %s11825_s14  }
  0x13   :  { %s11774_s19 = scalar_lea.hbm %s14220_s1, 10240 }
  0x14   :  { %p11775_p8 = scmp.ne.s32.totalorder %s14220_s1, %s11774_s19  ;;  %p11778_p9 = scmp.lt.u32.totalorder %s11774_s19, %s14220_s1 }
  0x16   :  { %p11780_p10 = pnand %p11778_p9, %p11775_p8 }
  0x18   :  { %11783 = shalt.err (!%p11780_p10)
}
  0x19   :  { %s11784_s24 = scalar_lea.vmem %s11871_s27, 10240  ;;  %p11789_p12 = scmp.lt.s32.totalorder %s11871_s27, %s11871_s27 }
  0x1a   :  { %p11785_p11 = scmp.ne.s32.totalorder %s11871_s27, %s11784_s24  ;;  %p11790_p13 = scmp.lt.s32.totalorder %s11784_s24, %s11784_s24 }
  0x1c   :  { %p11791_p0 = por %p11790_p13, %p11789_p12 }
  0x1e   :  { %p11792_p1 = pnand %p11791_p0, %p11785_p11 }
  0x20   :  { %11795 = shalt.err (!%p11792_p1)
}
  0x21   :  { %27 = dma.hbm_to_vmem [thread:$0]  %s14220_s1, 10240, %s11871_s27, [#allocation5], %s11824_s13, %s11824_s13, %s11825_s14  }
  0x22   :  { %s11826_s26 = smov [#allocation8]   ;;  %s11796_s8 = scalar_lea.hbm %s14225_s6, 16 }
  0x23   :  { %s52_s28 = sshll.u32 %s11826_s26, 4  ;;  %p11797_p2 = scmp.ne.s32.totalorder %s14225_s6, %s11796_s8  ;;  %s53_s28 = int_to_ptr.vmem [resolvable:$true] %s52_s28 }
  0x24   :  { %p11800_p3 = scmp.lt.u32.totalorder %s11796_s8, %s14225_s6 }
  0x26   :  { %p11802_p4 = pnand %p11800_p3, %p11797_p2 }
  0x28   :  { %11805 = shalt.err (!%p11802_p4)
}
  0x29   :  { %s11806_s15 = scalar_lea.vmem %s53_s28, 16  ;;  %s11810_s1 = scalar_lea.vmem %s53_s28, 32 }
  0x2a   :  { %p11807_p5 = scmp.ne.s32.totalorder %s53_s28, %s11806_s15  ;;  %p11811_p6 = scmp.lt.s32.totalorder %s53_s28, %s53_s28 }
  0x2b   :  { %p11812_p7 = scmp.lt.s32.totalorder %s11810_s1, %s11806_s15 }
  0x2d   :  { %p11813_p8 = por %p11812_p7, %p11811_p6 }
  0x2f   :  { %p11814_p9 = pnand %p11813_p8, %p11807_p5 }
  0x31   :  { %11817 = shalt.err (!%p11814_p9)
}
  0x32   :  { %55 = dma.hbm_to_vmem [thread:$0]  %s14225_s6, 16, %s53_s28, [#allocation7]  }
  0x33   :  { %11818 = dma.done.wait [#allocation5], 10240  }
  0x34   :  { %11819 = vsyncadd [#allocation5], 4294957056 }
  0x35   :  { %11820 = dma.done.wait [#allocation7], 10256  }
  0x36   :  { %11821 = vsyncadd [#allocation7], 4294957040  ;;  %v14227_v0 = vmov 0   ;;  %v11055_v1 = vld [vmem:[#allocation4 + $0x4] ss:$8 sps:$4 sm:$0xff]   ;;  %v11104_v33 = vld [vmem:[%s14219_s0 + $0x10] sm:$0xff]   ;;  %v92_v49 = vlaneseq }
  0x37   :  { %238 = vmatprep.mubr.bf16.mxu0 %v14227_v0  ;;  %460 = vmatprep.mubr.bf16.mxu1 %v14227_v0  ;;  %v11057_v2 = vld [vmem:[#allocation4] ss:$8 sps:$4 sm:$0xff]   ;;  %v11058_v3 = vld [vmem:[#allocation4 + $0x14] ss:$8 sps:$4 sm:$0xff]   ;;  %v11060_v4 = vld [vmem:[#allocation4 + $0x10] ss:$8 sps:$4 sm:$0xff]  }
  0x38   :  { %206 = vmatprep.subr.bf16.mxu0 %v11055_v1  ;;  %v11061_v5 = vld [vmem:[#allocation4 + $0x24] ss:$8 sps:$4 sm:$0xff]   ;;  %v11063_v6 = vld [vmem:[#allocation4 + $0x20] ss:$8 sps:$4 sm:$0xff]   ;;  %v11064_v7 = vld [vmem:[#allocation4 + $0x34] ss:$8 sps:$4 sm:$0xff]  }
  0x39   :  { %207 = vmatpush1.bf16.msra.mxu0 %v11057_v2  ;;  %v11066_v8 = vld [vmem:[#allocation4 + $0x30] ss:$8 sps:$4 sm:$0xff]   ;;  %v11067_v9 = vld [vmem:[#allocation4 + $0x44] ss:$8 sps:$4 sm:$0xff]   ;;  %v11069_v10 = vld [vmem:[#allocation4 + $0x40] ss:$8 sps:$4 sm:$0xff]  }
  0x3a   :  { %208 = vmatprep.subr.bf16.mxu0 %v11058_v3  ;;  %v11070_v11 = vld [vmem:[#allocation4 + $0x54] ss:$8 sps:$4 sm:$0xff]   ;;  %v11072_v12 = vld [vmem:[#allocation4 + $0x50] ss:$8 sps:$4 sm:$0xff]   ;;  %v11073_v13 = vld [vmem:[#allocation4 + $0x64] ss:$8 sps:$4 sm:$0xff]  }
  0x3b   :  { %v11075_v14 = vld [vmem:[#allocation4 + $0x60] ss:$8 sps:$4 sm:$0xff]   ;;  %v11076_v15 = vld [vmem:[#allocation4 + $0x74] ss:$8 sps:$4 sm:$0xff]   ;;  %v11078_v16 = vld [vmem:[#allocation4 + $0x70] ss:$8 sps:$4 sm:$0xff]  }
  0x3c   :  { %v11079_v17 = vld [vmem:[%s14219_s0] sm:$0xff]   ;;  %v11928_v22 = vld [vmem:[#allocation6 + $0x14] ss:$8 sps:$4 sm:$0xff]   ;;  %v11091_v24 = vld [vmem:[%s14219_s0 + $0x8] sm:$0xff]   ;;  %v93_v50 = vshrl.u32 %v92_v49, 7  ;;  %s11828_s2 = smov 96  }
  0x3d   :  { %209 = vmatpush1.bf16.msra.mxu0 %v11060_v4  ;;  %v11920_v18 = vld [vmem:[#allocation6] ss:$8 sps:$4 sm:$0xff]   ;;  %v11922_v19 = vld [vmem:[#allocation6 + $0x4] ss:$8 sps:$4 sm:$0xff]   ;;  %v11932_v23 = vld [vmem:[#allocation4 + $0x94] ss:$8 sps:$4 sm:$0xff]  }
  0x3e   :  { %210 = vmatprep.subr.bf16.mxu0 %v11061_v5  ;;  %v11924_v20 = vld [vmem:[#allocation4 + $0x84] ss:$8 sps:$4 sm:$0xff]   ;;  %v11926_v21 = vld [vmem:[#allocation4 + $0x80] ss:$8 sps:$4 sm:$0xff]   ;;  %v11939_v25 = vld [vmem:[#allocation6 + $0x10] ss:$8 sps:$4 sm:$0xff]  }
  0x3f   :  { %428 = vmatprep.subr.bf16.mxu1 %v11924_v20  ;;  %v11941_v26 = vld [vmem:[#allocation4 + $0x90] ss:$8 sps:$4 sm:$0xff]   ;;  %v11945_v27 = vld [vmem:[#allocation6 + $0x24] ss:$8 sps:$4 sm:$0xff]   ;;  %v11952_v29 = vld [vmem:[#allocation6 + $0x20] ss:$8 sps:$4 sm:$0xff]  }
  0x40   :  { %429 = vmatpush1.bf16.msra.mxu1 %v11926_v21  ;;  %v11947_v28 = vld [vmem:[#allocation4 + $0xa4] ss:$8 sps:$4 sm:$0xff]   ;;  %v11954_v30 = vld [vmem:[#allocation4 + $0xa0] ss:$8 sps:$4 sm:$0xff]   ;;  %v11958_v31 = vld [vmem:[#allocation6 + $0x34] ss:$8 sps:$4 sm:$0xff]  }
  0x41   :  { %211 = vmatpush1.bf16.msra.mxu0 %v11063_v6  ;;  %430 = vmatprep.subr.bf16.mxu1 %v11932_v23  ;;  %v11960_v32 = vld [vmem:[#allocation4 + $0xb4] ss:$8 sps:$4 sm:$0xff]   ;;  %v11967_v34 = vld [vmem:[#allocation6 + $0x30] ss:$8 sps:$4 sm:$0xff]   ;;  %v11973_v36 = vld [vmem:[#allocation6 + $0x44] ss:$8 sps:$4 sm:$0xff]  }
  0x42   :  { %212 = vmatprep.subr.bf16.mxu0 %v11064_v7  ;;  %v11969_v35 = vld [vmem:[#allocation4 + $0xb0] ss:$8 sps:$4 sm:$0xff]   ;;  %v11975_v37 = vld [vmem:[#allocation4 + $0xc4] ss:$8 sps:$4 sm:$0xff]   ;;  %v11980_v38 = vld [vmem:[#allocation6 + $0x40] ss:$8 sps:$4 sm:$0xff]  }
  0x43   :  { %v11982_v39 = vld [vmem:[#allocation4 + $0xc0] ss:$8 sps:$4 sm:$0xff]   ;;  %v11986_v40 = vld [vmem:[#allocation6 + $0x54] ss:$8 sps:$4 sm:$0xff]   ;;  %v11995_v43 = vld [vmem:[#allocation6 + $0x50] ss:$8 sps:$4 sm:$0xff]  }
  0x44   :  { %431 = vmatpush1.bf16.msra.mxu1 %v11941_v26  ;;  %v11988_v41 = vld [vmem:[#allocation4 + $0xd4] ss:$8 sps:$4 sm:$0xff]   ;;  %v11997_v44 = vld [vmem:[#allocation4 + $0xd0] ss:$8 sps:$4 sm:$0xff]   ;;  %v12001_v45 = vld [vmem:[#allocation6 + $0x64] ss:$8 sps:$4 sm:$0xff]  }
  0x45   :  { %213 = vmatpush1.bf16.msra.mxu0 %v11066_v8  ;;  %432 = vmatprep.subr.bf16.mxu1 %v11947_v28  ;;  %v11117_v42 = vld [vmem:[%s14219_s0 + $0x18] sm:$0xff]   ;;  %v12003_v46 = vld [vmem:[#allocation4 + $0xe4] ss:$8 sps:$4 sm:$0xff]   ;;  %v12008_v47 = vld [vmem:[#allocation6 + $0x60] ss:$8 sps:$4 sm:$0xff]   ;;  %v12016_v51 = vsub.s32 0, %v93_v50 }
  0x46   :  { %214 = vmatprep.subr.bf16.mxu0 %v11067_v9  ;;  %v12010_v48 = vld [vmem:[#allocation4 + $0xe0] ss:$8 sps:$4 sm:$0xff]   ;;  %v12029_v62 = vld [vmem:[#allocation6 + $0x74] ss:$8 sps:$4 sm:$0xff]   ;;  %v12033_v1 = vld [vmem:[#allocation6 + $0x70] ss:$8 sps:$4 sm:$0xff]  }
  0x47   :  { %v90_v52 = vld [vmem:[%s14222_s3] sm:$0x3]  ;;  %v12031_v63 = vld [vmem:[#allocation4 + $0xf4] ss:$8 sps:$4 sm:$0xff]   ;;  %v12035_v2 = vld [vmem:[#allocation4 + $0xf0] ss:$8 sps:$4 sm:$0xff]  }
  0x48   :  { %433 = vmatpush1.bf16.msra.mxu1 %v11954_v30  ;;  %v12022_v53 = vrot.slane %v90_v52, %v12016_v51  ;;  %v12043_v3 = vsub.s32 1, %v93_v50  ;;  %v12051_v5 = vld [vmem:[%s14223_s4] ss:$0 sm:$0xff]  ;;  %vm11830_vm0 = vmmov 0  }
  0x49   :  { %215 = vmatpush1.bf16.msra.mxu0 %v11069_v10  ;;  %434 = vmatprep.subr.bf16.mxu1 %v11960_v32 }
  0x4a   :  { %216 = vmatprep.subr.bf16.mxu0 %v11070_v11  ;;  %14231 = vst [vmem:[#allocation11_spill] sm:$0xff] %v12043_v3  ;;  %v12046_v4 = vrot.slane %v90_v52, %v12043_v3 }
  0x4c   :  { %435 = vmatpush1.bf16.msra.mxu1 %v11969_v35 }
  0x4d   :  { %217 = vmatpush1.bf16.msra.mxu0 %v11072_v12  ;;  %436 = vmatprep.subr.bf16.mxu1 %v11975_v37 }
  0x4e   :  { %218 = vmatprep.subr.bf16.mxu0 %v11073_v13 }
  0x50   :  { %437 = vmatpush1.bf16.msra.mxu1 %v11982_v39 }
  0x51   :  { %219 = vmatpush1.bf16.msra.mxu0 %v11075_v14  ;;  %438 = vmatprep.subr.bf16.mxu1 %v11988_v41 }
  0x52   :  { %220 = vmatprep.subr.bf16.mxu0 %v11076_v15 }
  0x54   :  { %439 = vmatpush1.bf16.msra.mxu1 %v11997_v44 }
  0x55   :  { %221 = vmatpush1.bf16.msra.mxu0 %v11078_v16  ;;  %440 = vmatprep.subr.bf16.mxu1 %v12003_v46 }
  0x56   :  { %569 = vmatprep.subr.bf16.mxu0 %v11922_v19 }
  0x58   :  { %239 = vmatmul.mubr.bf16.vlgmr.msra.gmra.mrb[0].mxu0 %v11079_v17  ;;  %441 = vmatpush1.bf16.msra.mxu1 %v12010_v48 }
  0x59   :  { %248 = vmatprep.mubr.bf16.mxu0 %v14227_v0  ;;  %570 = vmatpush1.bf16.msra.mxu0 %v11920_v18 }
  0x5a   :  { %571 = vmatprep.subr.bf16.mxu0 %v11928_v22  ;;  %442 = vmatprep.subr.bf16.mxu1 %v12031_v63 }
  0x5c   :  { %443 = vmatpush1.bf16.msra.mxu1 %v12035_v2 }
  0x5d   :  { %572 = vmatpush1.bf16.msra.mxu0 %v11939_v25  ;;  %724 = vmatprep.subr.bf16.mxu1 %v11924_v20 }
  0x5e   :  { %573 = vmatprep.subr.bf16.mxu0 %v11945_v27 }
  0x60   :  { %249 = vmatmul.mubr.bf16.gmra.mrb[4].mxu0 %v11091_v24 }
  0x61   :  { %258 = vmatprep.mubr.bf16.mxu0 %v14227_v0  ;;  %574 = vmatpush1.bf16.msra.mxu0 %v11952_v29 }
  0x62   :  { %575 = vmatprep.subr.bf16.mxu0 %v11958_v31 }
  0x65   :  { %576 = vmatpush1.bf16.msra.mxu0 %v11967_v34 }
  0x66   :  { %577 = vmatprep.subr.bf16.mxu0 %v11973_v36 }
  0x68   :  { %259 = vmatmul.mubr.bf16.gmra.mrb[8].mxu0 %v11104_v33 }
  0x69   :  { %268 = vmatprep.mubr.bf16.mxu0 %v14227_v0  ;;  %578 = vmatpush1.bf16.msra.mxu0 %v11980_v38 }
  0x6a   :  { %579 = vmatprep.subr.bf16.mxu0 %v11986_v40 }
  0x6d   :  { %580 = vmatpush1.bf16.msra.mxu0 %v11995_v43 }
  0x6e   :  { %581 = vmatprep.subr.bf16.mxu0 %v12001_v45 }
  0x70   :  { %269 = vmatmul.mubr.bf16.gmra.mrb[12].mxu0 %v11117_v42 }
  0x71   :  { %601 = vmatprep.mubr.bf16.mxu0 %v14227_v0  ;;  %582 = vmatpush1.bf16.msra.mxu0 %v12008_v47 }
  0x72   :  { %583 = vmatprep.subr.bf16.mxu0 %v12029_v62 }
  0x75   :  { %584 = vmatpush1.bf16.msra.mxu0 %v12033_v1 }
  0x76   :  { %865 = vmatprep.subr.bf16.mxu0 %v11922_v19 }
 0x12b   :  { %v240_v54 = vpop.f32.mrb[0].mxu0 }
 0x12c   :  { %v241_v55 = vadd.f32 %v240_v54, %v12022_v53  ;;  %v242_v56 = vpop.f32.mrb[1].mxu0 }
 0x12d   :  { %v12025_v57 = vpop.f32.mrb[2].mxu0  ;;  %v243_v7 = vadd.f32 %v242_v56, %v12046_v4 }
 0x12e   :  { %v9981_v58 = vmul.f32 -1.442695, %v241_v55  ;;  %v12027_v59 = vpop.f32.mrb[3].mxu0 }
 0x130   :  { %11508 = vpow2.f32 %v9981_v58  ;;  %v245_v58 = vadd.f32 %v12025_v57, %v12022_v53  ;;  %v247_v57 = vadd.f32 %v12027_v59, %v12046_v4  ;;  %v14235_v59 = vmov 0  }
 0x133   :  { %v12056_v10 = vpop.f32.mrb[4].mxu0 }
 0x134   :  { %v12058_v11 = vpop.f32.mrb[5].mxu0 }
 0x135   :  { %v12060_v12 = vpop.f32.mrb[6].mxu0 }
 0x136   :  { %v12062_v13 = vpop.f32.mrb[7].mxu0 }
 0x13a   :  { %v11509_v60 = vpop.eup %11508 }
 0x13b   :  { %v320_v61 = vadd.f32 1.0, %v11509_v60  ;;  %v12064_v14 = vpop.f32.mrb[8].mxu0 }
 0x13c   :  { %v12066_v15 = vpop.f32.mrb[9].mxu0 }
 0x13d   :  { %11510 = vrcp.f32 %v320_v61  ;;  %v12068_v16 = vpop.f32.mrb[10].mxu0 }
 0x13e   :  { %v12070_v17 = vpop.f32.mrb[11].mxu0 }
 0x143   :  { %v12072_v24 = vpop.f32.mrb[12].mxu0 }
 0x144   :  { %v12074_v33 = vpop.f32.mrb[13].mxu0 }
 0x145   :  { %14232 = vst [vmem:[#allocation12_spill] sm:$0xff] %v12074_v33  ;;  %v12076_v42 = vpop.f32.mrb[14].mxu0 }
 0x146   :  { %14233 = vst [vmem:[#allocation13_spill] sm:$0xff] %v12076_v42  ;;  %v12078_v49 = vpop.f32.mrb[15].mxu0 }
 0x147   :  { %v11511_v6 = vpop.eup %11510  ;;  %14234 = vst [vmem:[#allocation14_spill] sm:$0xff] %v12078_v49 }
 0x148   :  { %v325_v8 = vmul.f32 %v11511_v6, %v12051_v5  ;;  %323 = vrot.lane.b32.xlu0 %v11511_v6, %s11828_s2 }
 0x14a   :  { %v326_v9 = vadd.f32 %v325_v8, %v243_v7 }
 0x14c   :  { %11512 = vtanh.f32 %v326_v9 }
 0x156   :  { %v11513_v54 = vpop.eup %11512 }
 0x1ba   :  { %v324_v50 = vpop.permute.xlu0 %323 }
 0x1bb   :  { %v328_v52 = vsub.f32 1.0, %v324_v50 }
 0x1bd   :  { %v12080_v55 = vmul.f32 %v11513_v54, %v328_v52 }
 0x1bf   :  { %v330_v56 = vpack.c.bf16 %v12080_v55, %v12080_v55 }
 0x1c1   :  { %461 = vmatmul.mubr.bf16.vlgmr.msra.gmra.mrb[0].mxu1 %v330_v56  ;;  %602 = vmatmul.mubr.bf16.vlgmr.msra.gmra.mrb[16].mxu0 %v330_v56 }
 0x1c2   :  { %725 = vmatpush1.bf16.msra.mxu1 %v11926_v21  ;;  %866 = vmatpush1.bf16.msra.mxu0 %v11920_v18 }
 0x1c3   :  { %726 = vmatprep.subr.bf16.mxu1 %v11932_v23  ;;  %867 = vmatprep.subr.bf16.mxu0 %v11928_v22 }
 0x1c4   :  { %756 = vmatprep.mubr.bf16.mxu1 %v14227_v0  ;;  %897 = vmatprep.mubr.bf16.mxu0 %v14227_v0 }
 0x1c6   :  { %727 = vmatpush1.bf16.msra.mxu1 %v11941_v26  ;;  %868 = vmatpush1.bf16.msra.mxu0 %v11939_v25 }
 0x1c7   :  { %728 = vmatprep.subr.bf16.mxu1 %v11947_v28  ;;  %869 = vmatprep.subr.bf16.mxu0 %v11945_v27 }
 0x1ca   :  { %729 = vmatpush1.bf16.msra.mxu1 %v11954_v30  ;;  %870 = vmatpush1.bf16.msra.mxu0 %v11952_v29 }
 0x1cb   :  { %730 = vmatprep.subr.bf16.mxu1 %v11960_v32  ;;  %871 = vmatprep.subr.bf16.mxu0 %v11958_v31 }
 0x1ce   :  { %731 = vmatpush1.bf16.msra.mxu1 %v11969_v35  ;;  %872 = vmatpush1.bf16.msra.mxu0 %v11967_v34 }
 0x1cf   :  { %732 = vmatprep.subr.bf16.mxu1 %v11975_v37  ;;  %873 = vmatprep.subr.bf16.mxu0 %v11973_v36 }
 0x1d2   :  { %733 = vmatpush1.bf16.msra.mxu1 %v11982_v39  ;;  %874 = vmatpush1.bf16.msra.mxu0 %v11980_v38 }
 0x1d3   :  { %734 = vmatprep.subr.bf16.mxu1 %v11988_v41  ;;  %875 = vmatprep.subr.bf16.mxu0 %v11986_v40 }
 0x1d6   :  { %735 = vmatpush1.bf16.msra.mxu1 %v11997_v44  ;;  %876 = vmatpush1.bf16.msra.mxu0 %v11995_v43 }
 0x1d7   :  { %736 = vmatprep.subr.bf16.mxu1 %v12003_v46  ;;  %877 = vmatprep.subr.bf16.mxu0 %v12001_v45 }
 0x1da   :  { %737 = vmatpush1.bf16.msra.mxu1 %v12010_v48  ;;  %878 = vmatpush1.bf16.msra.mxu0 %v12008_v47 }
 0x1db   :  { %738 = vmatprep.subr.bf16.mxu1 %v12031_v63  ;;  %879 = vmatprep.subr.bf16.mxu0 %v12029_v62 }
 0x1de   :  { %739 = vmatpush1.bf16.msra.mxu1 %v12035_v2  ;;  %880 = vmatpush1.bf16.msra.mxu0 %v12033_v1 }
 0x1df   :  { %1020 = vmatprep.subr.bf16.mxu1 %v11924_v20  ;;  %1161 = vmatprep.subr.bf16.mxu0 %v11922_v19 }
 0x294   :  { %v12120_v60 = vpop.f32.mrb[0].mxu1  ;;  %v603_v61 = vpop.f32.mrb[16].mxu0 }
 0x295   :  { %v610_v6 = vadd.f32 %v603_v61, %v245_v58  ;;  %v12122_v7 = vpop.f32.mrb[1].mxu1  ;;  %v605_v8 = vpop.f32.mrb[17].mxu0 }
 0x296   :  { %v466_v9 = vpop.f32.mrb[2].mxu1  ;;  %v607_v50 = vpop.f32.mrb[18].mxu0  ;;  %v611_v42 = vadd.f32 %v12051_v5, %v605_v8 }
 0x297   :  { %v10014_v52 = vmul.f32 -1.442695, %v610_v6  ;;  %v467_v54 = vpop.f32.mrb[3].mxu1  ;;  %v608_v56 = vpop.f32.mrb[19].mxu0 }
 0x299   :  { %11514 = vpow2.f32 %v10014_v52 }
 0x2a3   :  { %v11515_v0 = vpop.eup %11514 }
 0x2a4   :  { %v615_v49 = vadd.f32 1.0, %v11515_v0 }
 0x2a6   :  { %11516 = vrcp.f32 %v615_v49 }
 0x2b0   :  { %v11517_v3 = vpop.eup %11516 }
 0x2b1   :  { %v620_v33 = vmul.f32 %v11517_v3, %v611_v42  ;;  %618 = vrot.lane.b32.xlu0 %v11517_v3, %s11828_s2  ;;  %v251_v3 = vadd.f32 %v12056_v10, %v12022_v53  ;;  %v253_v10 = vadd.f32 %v12058_v11, %v12046_v4  ;;  %v12237_v11 = vld [vmem:[#allocation6 + $0x14] ss:$8 sps:$4 sm:$0xff]  }
 0x2b3   :  { %v621_v58 = vadd.f32 %v620_v33, %v247_v57 }
 0x2b5   :  { %11518 = vtanh.f32 %v621_v58 }
 0x2bf   :  { %v11519_v6 = vpop.eup %11518 }
 0x323   :  { %v619_v61 = vpop.permute.xlu0 %618 }
 0x324   :  { %v623_v9 = vsub.f32 1.0, %v619_v61  ;;  %v625_v52 = vmul.f32 %v619_v61, %v12080_v55 }
 0x326   :  { %v624_v50 = vmul.f32 %v11519_v6, %v623_v9 }
 0x328   :  { %v12129_v54 = vadd.f32 %v625_v52, %v624_v50 }
 0x32a   :  { %v627_v0 = vpack.c.bf16 %v12129_v54, %v12129_v54 }
 0x32c   :  { %757 = vmatmul.mubr.bf16.vlgmr.msra.gmra.mrb[4].mxu1 %v627_v0  ;;  %898 = vmatmul.mubr.bf16.vlgmr.msra.gmra.mrb[20].mxu0 %v627_v0 }
 0x32d   :  { %1021 = vmatpush1.bf16.msra.mxu1 %v11926_v21  ;;  %1162 = vmatpush1.bf16.msra.mxu0 %v11920_v18 }
 0x32e   :  { %1022 = vmatprep.subr.bf16.mxu1 %v11932_v23  ;;  %1163 = vmatprep.subr.bf16.mxu0 %v11928_v22 }
 0x32f   :  { %1052 = vmatprep.mubr.bf16.mxu1 %v14235_v59  ;;  %1193 = vmatprep.mubr.bf16.mxu0 %v14235_v59 }
 0x331   :  { %1023 = vmatpush1.bf16.msra.mxu1 %v11941_v26  ;;  %1164 = vmatpush1.bf16.msra.mxu0 %v11939_v25 }
 0x332   :  { %1024 = vmatprep.subr.bf16.mxu1 %v11947_v28  ;;  %1165 = vmatprep.subr.bf16.mxu0 %v11945_v27 }
 0x335   :  { %1025 = vmatpush1.bf16.msra.mxu1 %v11954_v30  ;;  %1166 = vmatpush1.bf16.msra.mxu0 %v11952_v29 }
 0x336   :  { %1026 = vmatprep.subr.bf16.mxu1 %v11960_v32  ;;  %1167 = vmatprep.subr.bf16.mxu0 %v11958_v31 }
 0x339   :  { %1027 = vmatpush1.bf16.msra.mxu1 %v11969_v35  ;;  %1168 = vmatpush1.bf16.msra.mxu0 %v11967_v34 }
 0x33a   :  { %1028 = vmatprep.subr.bf16.mxu1 %v11975_v37  ;;  %1169 = vmatprep.subr.bf16.mxu0 %v11973_v36 }
 0x33d   :  { %1029 = vmatpush1.bf16.msra.mxu1 %v11982_v39  ;;  %1170 = vmatpush1.bf16.msra.mxu0 %v11980_v38 }
 0x33e   :  { %1030 = vmatprep.subr.bf16.mxu1 %v11988_v41  ;;  %1171 = vmatprep.subr.bf16.mxu0 %v11986_v40 }
 0x341   :  { %1031 = vmatpush1.bf16.msra.mxu1 %v11997_v44  ;;  %1172 = vmatpush1.bf16.msra.mxu0 %v11995_v43 }
 0x342   :  { %1032 = vmatprep.subr.bf16.mxu1 %v12003_v46  ;;  %1173 = vmatprep.subr.bf16.mxu0 %v12001_v45 }
 0x345   :  { %1033 = vmatpush1.bf16.msra.mxu1 %v12010_v48  ;;  %1174 = vmatpush1.bf16.msra.mxu0 %v12008_v47 }
 0x346   :  { %1034 = vmatprep.subr.bf16.mxu1 %v12031_v63  ;;  %1175 = vmatprep.subr.bf16.mxu0 %v12029_v62 }
 0x349   :  { %1035 = vmatpush1.bf16.msra.mxu1 %v12035_v2  ;;  %1176 = vmatpush1.bf16.msra.mxu0 %v12033_v1 }
 0x34a   :  { %1316 = vmatprep.subr.bf16.mxu1 %v11924_v20  ;;  %1457 = vmatprep.subr.bf16.mxu0 %v11922_v19 }
 0x3ff   :  { %v12169_v33 = vpop.f32.mrb[4].mxu1  ;;  %v899_v42 = vpop.f32.mrb[20].mxu0 }
 0x400   :  { %v906_v49 = vadd.f32 %v899_v42, %v251_v3  ;;  %v12171_v55 = vpop.f32.mrb[5].mxu1  ;;  %v901_v8 = vpop.f32.mrb[21].mxu0 }
 0x401   :  { %v762_v56 = vpop.f32.mrb[6].mxu1  ;;  %v903_v57 = vpop.f32.mrb[22].mxu0  ;;  %v907_v19 = vadd.f32 %v12051_v5, %v901_v8  ;;  %v12250_v8 = vld [vmem:[#allocation6 + $0x24] ss:$8 sps:$4 sm:$0xff]  }
 0x402   :  { %v10047_v58 = vmul.f32 -1.442695, %v906_v49  ;;  %v763_v61 = vpop.f32.mrb[7].mxu1  ;;  %v904_v9 = vpop.f32.mrb[23].mxu0 }
 0x403   :  { %v12253_v9 = vld [vmem:[#allocation4 + $0xa0] ss:$8 sps:$4 sm:$0xff]  }
 0x404   :  { %11520 = vpow2.f32 %v10047_v58 }
 0x40e   :  { %v11521_v6 = vpop.eup %11520 }
 0x40f   :  { %v911_v20 = vadd.f32 1.0, %v11521_v6  ;;  %v12257_v6 = vld [vmem:[#allocation6 + $0x20] ss:$8 sps:$4 sm:$0xff]  }
 0x411   :  { %11522 = vrcp.f32 %v911_v20  ;;  %v12259_v20 = vld [vmem:[#allocation4 + $0xb4] ss:$8 sps:$4 sm:$0xff]  }
 0x41b   :  { %v11523_v50 = vpop.eup %11522 }
 0x41c   :  { %v916_v52 = vmul.f32 %v11523_v50, %v907_v19  ;;  %914 = vrot.lane.b32.xlu1 %v11523_v50, %s11828_s2  ;;  %v12262_v19 = vld [vmem:[#allocation6 + $0x34] ss:$8 sps:$4 sm:$0xff]   ;;  %v12265_v50 = vld [vmem:[#allocation4 + $0xb0] ss:$8 sps:$4 sm:$0xff]  }
 0x41e   :  { %v917_v0 = vadd.f32 %v916_v52, %v253_v10  ;;  %v12269_v10 = vld [vmem:[#allocation6 + $0x30] ss:$8 sps:$4 sm:$0xff]   ;;  %v12271_v52 = vld [vmem:[#allocation4 + $0xc4] ss:$8 sps:$4 sm:$0xff]  }
 0x420   :  { %11524 = vtanh.f32 %v917_v0  ;;  %v12274_v0 = vld [vmem:[#allocation6 + $0x44] ss:$8 sps:$4 sm:$0xff]  }
 0x42a   :  { %v11525_v49 = vpop.eup %11524 }
 0x48e   :  { %v915_v3 = vpop.permute.xlu1 %914 }
 0x48f   :  { %v919_v42 = vsub.f32 1.0, %v915_v3  ;;  %v921_v57 = vmul.f32 %v915_v3, %v12129_v54  ;;  %v12247_v54 = vld [vmem:[#allocation4 + $0xa4] ss:$8 sps:$4 sm:$0xff]   ;;  %v12277_v3 = vld [vmem:[#allocation4 + $0xc0] ss:$8 sps:$4 sm:$0xff]  }
 0x491   :  { %v920_v56 = vmul.f32 %v11525_v49, %v919_v42  ;;  %v12281_v42 = vld [vmem:[#allocation6 + $0x40] ss:$8 sps:$4 sm:$0xff]   ;;  %v12283_v49 = vld [vmem:[#allocation4 + $0xd4] ss:$8 sps:$4 sm:$0xff]  }
 0x493   :  { %v922_v58 = vadd.f32 %v921_v57, %v920_v56  ;;  %v12286_v56 = vld [vmem:[#allocation6 + $0x54] ss:$8 sps:$4 sm:$0xff]   ;;  %v12289_v57 = vld [vmem:[#allocation4 + $0xd0] ss:$8 sps:$4 sm:$0xff]  }
 0x495   :  { %v923_v61 = vpack.c.bf16 %v922_v58, %v922_v58 }
 0x497   :  { %1053 = vmatmul.mubr.bf16.vlgmr.msra.gmra.mrb[8].mxu1 %v923_v61  ;;  %1194 = vmatmul.mubr.bf16.vlgmr.msra.gmra.mrb[24].mxu0 %v923_v61  ;;  %v261_v61 = vadd.f32 %v12064_v14, %v12022_v53  ;;  %v12310_v14 = vld [vmem:[#allocation6 + $0x60] ss:$8 sps:$4 sm:$0xff]  }
 0x498   :  { %1317 = vmatpush1.bf16.msra.mxu1 %v11926_v21  ;;  %1458 = vmatpush1.bf16.msra.mxu0 %v11920_v18  ;;  %v255_v18 = vadd.f32 %v12060_v12, %v12022_v53  ;;  %v12241_v12 = vld [vmem:[#allocation4 + $0x90] ss:$8 sps:$4 sm:$0xff]  }
 0x499   :  { %1318 = vmatprep.subr.bf16.mxu1 %v11932_v23  ;;  %1459 = vmatprep.subr.bf16.mxu0 %v11928_v22 }
 0x49a   :  { %1348 = vmatprep.mubr.bf16.mxu1 %v14235_v59  ;;  %1489 = vmatprep.mubr.bf16.mxu0 %v14235_v59 }
 0x49c   :  { %1319 = vmatpush1.bf16.msra.mxu1 %v11941_v26  ;;  %1460 = vmatpush1.bf16.msra.mxu0 %v11939_v25 }
 0x49d   :  { %1320 = vmatprep.subr.bf16.mxu1 %v11947_v28  ;;  %1461 = vmatprep.subr.bf16.mxu0 %v11945_v27 }
 0x4a0   :  { %1321 = vmatpush1.bf16.msra.mxu1 %v11954_v30  ;;  %1462 = vmatpush1.bf16.msra.mxu0 %v11952_v29 }
 0x4a1   :  { %1322 = vmatprep.subr.bf16.mxu1 %v11960_v32  ;;  %1463 = vmatprep.subr.bf16.mxu0 %v11958_v31 }
 0x4a4   :  { %1323 = vmatpush1.bf16.msra.mxu1 %v11969_v35  ;;  %1464 = vmatpush1.bf16.msra.mxu0 %v11967_v34 }
 0x4a5   :  { %1324 = vmatprep.subr.bf16.mxu1 %v11975_v37  ;;  %1465 = vmatprep.subr.bf16.mxu0 %v11973_v36  ;;  %v257_v37 = vadd.f32 %v12062_v13, %v12046_v4  ;;  %v12245_v13 = vld [vmem:[#allocation6 + $0x10] ss:$8 sps:$4 sm:$0xff]  }
 0x4a8   :  { %1325 = vmatpush1.bf16.msra.mxu1 %v11982_v39  ;;  %1466 = vmatpush1.bf16.msra.mxu0 %v11980_v38 }
 0x4a9   :  { %1326 = vmatprep.subr.bf16.mxu1 %v11988_v41  ;;  %1467 = vmatprep.subr.bf16.mxu0 %v11986_v40 }
 0x4ac   :  { %1327 = vmatpush1.bf16.msra.mxu1 %v11997_v44  ;;  %1468 = vmatpush1.bf16.msra.mxu0 %v11995_v43 }
 0x4ad   :  { %1328 = vmatprep.subr.bf16.mxu1 %v12003_v46  ;;  %1469 = vmatprep.subr.bf16.mxu0 %v12001_v45 }
 0x4b0   :  { %1329 = vmatpush1.bf16.msra.mxu1 %v12010_v48  ;;  %1470 = vmatpush1.bf16.msra.mxu0 %v12008_v47  ;;  %v12226_v48 = vld [vmem:[#allocation4 + $0x80] ss:$8 sps:$4 sm:$0xff]  }
 0x4b1   :  { %1330 = vmatprep.subr.bf16.mxu1 %v12031_v63  ;;  %1471 = vmatprep.subr.bf16.mxu0 %v12029_v62  ;;  %v12228_v62 = vld [vmem:[#allocation4 + $0x84] ss:$8 sps:$4 sm:$0xff]   ;;  %v12230_v63 = vld [vmem:[#allocation6] ss:$8 sps:$4 sm:$0xff]  }
 0x4b4   :  { %1331 = vmatpush1.bf16.msra.mxu1 %v12035_v2  ;;  %1472 = vmatpush1.bf16.msra.mxu0 %v12033_v1  ;;  %v12232_v1 = vld [vmem:[#allocation6 + $0x4] ss:$8 sps:$4 sm:$0xff]   ;;  %v12234_v2 = vld [vmem:[#allocation4 + $0x94] ss:$8 sps:$4 sm:$0xff]  }
 0x4b5   :  { %1612 = vmatprep.subr.bf16.mxu1 %v12228_v62  ;;  %1753 = vmatprep.subr.bf16.mxu0 %v12232_v1 }
 0x56a   :  { %v12212_v21 = vpop.f32.mrb[8].mxu1  ;;  %v1195_v22 = vpop.f32.mrb[24].mxu0 }
 0x56b   :  { %v1202_v23 = vadd.f32 %v1195_v22, %v255_v18  ;;  %v12214_v25 = vpop.f32.mrb[9].mxu1  ;;  %v1197_v26 = vpop.f32.mrb[25].mxu0 }
 0x56c   :  { %v1058_v27 = vpop.f32.mrb[10].mxu1  ;;  %v1199_v28 = vpop.f32.mrb[26].mxu0  ;;  %v1203_v35 = vadd.f32 %v12051_v5, %v1197_v26 }
 0x56d   :  { %v10080_v29 = vmul.f32 -1.442695, %v1202_v23  ;;  %v1059_v30 = vpop.f32.mrb[11].mxu1  ;;  %v1200_v31 = vpop.f32.mrb[27].mxu0 }
 0x56f   :  { %11526 = vpow2.f32 %v10080_v29 }
 0x579   :  { %v11527_v32 = vpop.eup %11526 }
 0x57a   :  { %v1207_v34 = vadd.f32 1.0, %v11527_v32 }
 0x57c   :  { %11528 = vrcp.f32 %v1207_v34  ;;  %v12304_v34 = vld [vmem:[#allocation4 + $0xe4] ss:$8 sps:$4 sm:$0xff]  }
 0x586   :  { %v11529_v36 = vpop.eup %11528 }
 0x587   :  { %v1212_v38 = vmul.f32 %v11529_v36, %v1203_v35  ;;  %1210 = vrot.lane.b32.xlu1 %v11529_v36, %s11828_s2  ;;  %v12306_v35 = vld [vmem:[#allocation6 + $0x64] ss:$8 sps:$4 sm:$0xff]  }
 0x589   :  { %v1213_v39 = vadd.f32 %v1212_v38, %v257_v37  ;;  %v12308_v37 = vld [vmem:[#allocation4 + $0xe0] ss:$8 sps:$4 sm:$0xff]  }
 0x58b   :  { %11530 = vtanh.f32 %v1213_v39  ;;  %v12316_v39 = vld [vmem:[#allocation4 + $0xf4] ss:$8 sps:$4 sm:$0xff]  }
 0x595   :  { %v11531_v43 = vpop.eup %11530 }
 0x5f9   :  { %v1211_v40 = vpop.permute.xlu1 %1210 }
 0x5fa   :  { %v1215_v41 = vsub.f32 1.0, %v1211_v40  ;;  %v1217_v45 = vmul.f32 %v1211_v40, %v922_v58  ;;  %v12293_v58 = vld [vmem:[#allocation6 + $0x50] ss:$8 sps:$4 sm:$0xff]   ;;  %v12318_v40 = vld [vmem:[#allocation6 + $0x74] ss:$8 sps:$4 sm:$0xff]  }
 0x5fc   :  { %v1216_v44 = vmul.f32 %v11531_v43, %v1215_v41  ;;  %v12320_v41 = vld [vmem:[#allocation4 + $0xf0] ss:$8 sps:$4 sm:$0xff]  }
 0x5fd   :  { %v12322_v43 = vld [vmem:[#allocation6 + $0x70] ss:$8 sps:$4 sm:$0xff]  }
 0x5fe   :  { %v12220_v46 = vadd.f32 %v1217_v45, %v1216_v44 }
 0x600   :  { %v1219_v47 = vpack.c.bf16 %v12220_v46, %v12220_v46 }
 0x602   :  { %1349 = vmatmul.mubr.bf16.vlgmr.msra.gmra.mrb[12].mxu1 %v1219_v47  ;;  %1490 = vmatmul.mubr.bf16.vlgmr.msra.gmra.mrb[28].mxu0 %v1219_v47  ;;  %v263_v47 = vadd.f32 %v12066_v15, %v12046_v4  ;;  %v265_v15 = vadd.f32 %v12068_v16, %v12022_v53  ;;  %v267_v16 = vadd.f32 %v12070_v17, %v12046_v4  ;;  %v9980_v17 = vld [vmem:[%s14222_s3 + $0x2] sm:$0x3] }
 0x603   :  { %1644 = vmatprep.mubr.bf16.mxu1 %v14235_v59  ;;  %1785 = vmatprep.mubr.bf16.mxu0 %v14235_v59 }
 0x604   :  { %1613 = vmatpush1.bf16.msra.mxu1 %v12226_v48  ;;  %1754 = vmatpush1.bf16.msra.mxu0 %v12230_v63 }
 0x605   :  { %1614 = vmatprep.subr.bf16.mxu1 %v12234_v2  ;;  %1755 = vmatprep.subr.bf16.mxu0 %v12237_v11 }
 0x608   :  { %1615 = vmatpush1.bf16.msra.mxu1 %v12241_v12  ;;  %1756 = vmatpush1.bf16.msra.mxu0 %v12245_v13 }
 0x609   :  { %1616 = vmatprep.subr.bf16.mxu1 %v12247_v54  ;;  %1757 = vmatprep.subr.bf16.mxu0 %v12250_v8 }
 0x60c   :  { %1617 = vmatpush1.bf16.msra.mxu1 %v12253_v9  ;;  %1758 = vmatpush1.bf16.msra.mxu0 %v12257_v6 }
 0x60d   :  { %1618 = vmatprep.subr.bf16.mxu1 %v12259_v20  ;;  %1759 = vmatprep.subr.bf16.mxu0 %v12262_v19 }
 0x610   :  { %1619 = vmatpush1.bf16.msra.mxu1 %v12265_v50  ;;  %1760 = vmatpush1.bf16.msra.mxu0 %v12269_v10 }
 0x611   :  { %1620 = vmatprep.subr.bf16.mxu1 %v12271_v52  ;;  %1761 = vmatprep.subr.bf16.mxu0 %v12274_v0 }
 0x614   :  { %1621 = vmatpush1.bf16.msra.mxu1 %v12277_v3  ;;  %1762 = vmatpush1.bf16.msra.mxu0 %v12281_v42 }
 0x615   :  { %1622 = vmatprep.subr.bf16.mxu1 %v12283_v49  ;;  %1763 = vmatprep.subr.bf16.mxu0 %v12286_v56 }
 0x618   :  { %1623 = vmatpush1.bf16.msra.mxu1 %v12289_v57  ;;  %1764 = vmatpush1.bf16.msra.mxu0 %v12293_v58 }
 0x619   :  { %1624 = vmatprep.subr.bf16.mxu1 %v12304_v34  ;;  %1765 = vmatprep.subr.bf16.mxu0 %v12306_v35 }
 0x61c   :  { %1625 = vmatpush1.bf16.msra.mxu1 %v12308_v37  ;;  %1766 = vmatpush1.bf16.msra.mxu0 %v12310_v14 }
 0x61d   :  { %1626 = vmatprep.subr.bf16.mxu1 %v12316_v39  ;;  %1767 = vmatprep.subr.bf16.mxu0 %v12318_v40 }
 0x620   :  { %1627 = vmatpush1.bf16.msra.mxu1 %v12320_v41  ;;  %1768 = vmatpush1.bf16.msra.mxu0 %v12322_v43 }
 0x621   :  { %1908 = vmatprep.subr.bf16.mxu1 %v12228_v62  ;;  %2049 = vmatprep.subr.bf16.mxu0 %v12232_v1 }
 0x6d5   :  { %v12300_v18 = vpop.f32.mrb[12].mxu1  ;;  %v1491_v22 = vpop.f32.mrb[28].mxu0 }
 0x6d6   :  { %v1498_v23 = vadd.f32 %v1491_v22, %v261_v61  ;;  %v12302_v26 = vpop.f32.mrb[13].mxu1  ;;  %v1493_v27 = vpop.f32.mrb[29].mxu0 }
 0x6d7   :  { %v1354_v28 = vpop.f32.mrb[14].mxu1  ;;  %v1495_v29 = vpop.f32.mrb[30].mxu0  ;;  %v1499_v44 = vadd.f32 %v12051_v5, %v1493_v27 }
 0x6d8   :  { %v10113_v30 = vmul.f32 -1.442695, %v1498_v23  ;;  %v1355_v31 = vpop.f32.mrb[15].mxu1  ;;  %v1496_v32 = vpop.f32.mrb[31].mxu0 }
 0x6da   :  { %11532 = vpow2.f32 %v10113_v30 }
 0x6e4   :  { %v11533_v36 = vpop.eup %11532 }
 0x6e5   :  { %v1503_v38 = vadd.f32 1.0, %v11533_v36 }
 0x6e7   :  { %11534 = vrcp.f32 %v1503_v38 }
 0x6f1   :  { %v11535_v45 = vpop.eup %11534 }
 0x6f2   :  { %v1508_v61 = vmul.f32 %v11535_v45, %v1499_v44  ;;  %1506 = vrot.lane.b32.xlu0 %v11535_v45, %s11828_s2 }
 0x6f4   :  { %v1509_v22 = vadd.f32 %v1508_v61, %v263_v47 }
 0x6f6   :  { %11536 = vtanh.f32 %v1509_v22 }
 0x700   :  { %v11537_v29 = vpop.eup %11536 }
 0x764   :  { %v1507_v23 = vpop.permute.xlu0 %1506 }
 0x765   :  { %v1511_v28 = vsub.f32 1.0, %v1507_v23  ;;  %v1513_v31 = vmul.f32 %v1507_v23, %v12220_v46 }
 0x767   :  { %v1512_v30 = vmul.f32 %v11537_v29, %v1511_v28 }
 0x769   :  { %v12335_v32 = vadd.f32 %v1513_v31, %v1512_v30 }
 0x76b   :  { %v1515_v27 = vpack.c.bf16 %v12335_v32, %v12335_v32 }
 0x76d   :  { %1645 = vmatmul.mubr.bf16.vlgmr.msra.gmra.mrb[16].mxu1 %v1515_v27  ;;  %1786 = vmatmul.mubr.bf16.vlgmr.msra.gmra.mrb[32].mxu0 %v1515_v27 }
 0x76e   :  { %1909 = vmatpush1.bf16.msra.mxu1 %v12226_v48  ;;  %2050 = vmatpush1.bf16.msra.mxu0 %v12230_v63 }
 0x76f   :  { %1910 = vmatprep.subr.bf16.mxu1 %v12234_v2  ;;  %2051 = vmatprep.subr.bf16.mxu0 %v12237_v11 }
 0x770   :  { %1940 = vmatprep.mubr.bf16.mxu1 %v14235_v59  ;;  %2081 = vmatprep.mubr.bf16.mxu0 %v14235_v59 }
 0x772   :  { %1911 = vmatpush1.bf16.msra.mxu1 %v12241_v12  ;;  %2052 = vmatpush1.bf16.msra.mxu0 %v12245_v13 }
 0x773   :  { %1912 = vmatprep.subr.bf16.mxu1 %v12247_v54  ;;  %2053 = vmatprep.subr.bf16.mxu0 %v12250_v8 }
 0x776   :  { %1913 = vmatpush1.bf16.msra.mxu1 %v12253_v9  ;;  %2054 = vmatpush1.bf16.msra.mxu0 %v12257_v6 }
 0x777   :  { %1914 = vmatprep.subr.bf16.mxu1 %v12259_v20  ;;  %2055 = vmatprep.subr.bf16.mxu0 %v12262_v19 }
 0x77a   :  { %1915 = vmatpush1.bf16.msra.mxu1 %v12265_v50  ;;  %2056 = vmatpush1.bf16.msra.mxu0 %v12269_v10 }
 0x77b   :  { %1916 = vmatprep.subr.bf16.mxu1 %v12271_v52  ;;  %2057 = vmatprep.subr.bf16.mxu0 %v12274_v0 }
 0x77e   :  { %1917 = vmatpush1.bf16.msra.mxu1 %v12277_v3  ;;  %2058 = vmatpush1.bf16.msra.mxu0 %v12281_v42 }
 0x77f   :  { %1918 = vmatprep.subr.bf16.mxu1 %v12283_v49  ;;  %2059 = vmatprep.subr.bf16.mxu0 %v12286_v56 }
 0x782   :  { %1919 = vmatpush1.bf16.msra.mxu1 %v12289_v57  ;;  %2060 = vmatpush1.bf16.msra.mxu0 %v12293_v58 }
 0x783   :  { %1920 = vmatprep.subr.bf16.mxu1 %v12304_v34  ;;  %2061 = vmatprep.subr.bf16.mxu0 %v12306_v35 }
 0x786   :  { %1921 = vmatpush1.bf16.msra.mxu1 %v12308_v37  ;;  %2062 = vmatpush1.bf16.msra.mxu0 %v12310_v14 }
 0x787   :  { %1922 = vmatprep.subr.bf16.mxu1 %v12316_v39  ;;  %2063 = vmatprep.subr.bf16.mxu0 %v12318_v40 }
 0x78a   :  { %1923 = vmatpush1.bf16.msra.mxu1 %v12320_v41  ;;  %2064 = vmatpush1.bf16.msra.mxu0 %v12322_v43 }
 0x78b   :  { %2345 = vmatprep.subr.bf16.mxu0 %v12232_v1  ;;  %2204 = vmatprep.subr.bf16.mxu1 %v12228_v62 }
 0x840   :  { %v12375_v46 = vpop.f32.mrb[16].mxu1  ;;  %v1787_v36 = vpop.f32.mrb[32].mxu0 }
 0x841   :  { %v1794_v38 = vadd.f32 %v1787_v36, %v265_v15  ;;  %v12377_v44 = vpop.f32.mrb[17].mxu1  ;;  %v1789_v45 = vpop.f32.mrb[33].mxu0 }
 0x842   :  { %v1650_v47 = vpop.f32.mrb[18].mxu1  ;;  %v1791_v61 = vpop.f32.mrb[34].mxu0  ;;  %v1795_v30 = vadd.f32 %v12051_v5, %v1789_v45 }
 0x843   :  { %v10146_v22 = vmul.f32 -1.442695, %v1794_v38  ;;  %v1651_v23 = vpop.f32.mrb[19].mxu1  ;;  %v1792_v28 = vpop.f32.mrb[35].mxu0 }
 0x845   :  { %11538 = vpow2.f32 %v10146_v22 }
 0x84f   :  { %v11539_v29 = vpop.eup %11538 }
 0x850   :  { %v1799_v1 = vadd.f32 1.0, %v11539_v29 }
 0x852   :  { %11540 = vrcp.f32 %v1799_v1  ;;  %v14236_v1 = vld [vmem:[#allocation12_spill] sm:$0xff] }
 0x85c   :  { %v11541_v31 = vpop.eup %11540 }
 0x85d   :  { %v1804_v27 = vmul.f32 %v11541_v31, %v1795_v30  ;;  %1802 = vrot.lane.b32.xlu1 %v11541_v31, %s11828_s2  ;;  %v273_v30 = vadd.f32 %v14236_v1, %v12046_v4 }
 0x85f   :  { %v1805_v15 = vadd.f32 %v1804_v27, %v267_v16 }
 0x861   :  { %11542 = vtanh.f32 %v1805_v15 }
 0x86b   :  { %v11543_v38 = vpop.eup %11542 }
 0x8cf   :  { %v1803_v36 = vpop.permute.xlu1 %1802 }
 0x8d0   :  { %v1807_v47 = vsub.f32 1.0, %v1803_v36  ;;  %v1809_v22 = vmul.f32 %v1803_v36, %v12335_v32 }
 0x8d2   :  { %v1808_v61 = vmul.f32 %v11543_v38, %v1807_v47 }
 0x8d4   :  { %v12384_v23 = vadd.f32 %v1809_v22, %v1808_v61 }
 0x8d6   :  { %v1811_v45 = vpack.c.bf16 %v12384_v23, %v12384_v23 }
 0x8d8   :  { %1941 = vmatmul.mubr.bf16.vlgmr.msra.gmra.mrb[20].mxu1 %v1811_v45  ;;  %2082 = vmatmul.mubr.bf16.vlgmr.msra.gmra.mrb[36].mxu0 %v1811_v45 }
 0x8d9   :  { %2346 = vmatpush1.bf16.msra.mxu0 %v12230_v63  ;;  %2205 = vmatpush1.bf16.msra.mxu1 %v12226_v48  ;;  %v12425_v63 = vrot.slane %v9980_v17, %v12016_v51 }
 0x8da   :  { %2347 = vmatprep.subr.bf16.mxu0 %v12237_v11  ;;  %2206 = vmatprep.subr.bf16.mxu1 %v12234_v2 }
 0x8db   :  { %2236 = vmatprep.mubr.bf16.mxu1 %v14235_v59  ;;  %2377 = vmatprep.mubr.bf16.mxu0 %v14235_v59  ;;  %v463_v11 = vadd.f32 %v12120_v60, %v12425_v63 }
 0x8dd   :  { %2348 = vmatpush1.bf16.msra.mxu0 %v12245_v13  ;;  %2207 = vmatpush1.bf16.msra.mxu1 %v12241_v12  ;;  %v271_v13 = vadd.f32 %v12072_v24, %v12022_v53  ;;  %v12435_v24 = vld [vmem:[#allocation4 + $0x104] ss:$8 sps:$4 sm:$0xff]  }
 0x8de   :  { %2349 = vmatprep.subr.bf16.mxu0 %v12250_v8  ;;  %2208 = vmatprep.subr.bf16.mxu1 %v12247_v54  ;;  %v10232_v8 = vmul.f32 -1.442695, %v463_v11  ;;  %v12450_v11 = vld [vmem:[#allocation4 + $0x114] ss:$8 sps:$4 sm:$0xff]  }
 0x8e0   :  { %11544 = vpow2.f32 %v10232_v8  ;;  %v12465_v8 = vld [vmem:[%s14223_s4 + $0x1] ss:$0 sm:$0xff] }
 0x8e1   :  { %2350 = vmatpush1.bf16.msra.mxu0 %v12257_v6  ;;  %2209 = vmatpush1.bf16.msra.mxu1 %v12253_v9 }
 0x8e2   :  { %2351 = vmatprep.subr.bf16.mxu0 %v12262_v19  ;;  %2210 = vmatprep.subr.bf16.mxu1 %v12259_v20 }
 0x8e5   :  { %2352 = vmatpush1.bf16.msra.mxu0 %v12269_v10  ;;  %2211 = vmatpush1.bf16.msra.mxu1 %v12265_v50 }
 0x8e6   :  { %2353 = vmatprep.subr.bf16.mxu0 %v12274_v0  ;;  %2212 = vmatprep.subr.bf16.mxu1 %v12271_v52 }
 0x8e9   :  { %2354 = vmatpush1.bf16.msra.mxu0 %v12281_v42  ;;  %2213 = vmatpush1.bf16.msra.mxu1 %v12277_v3 }
 0x8ea   :  { %2355 = vmatprep.subr.bf16.mxu0 %v12286_v56  ;;  %2214 = vmatprep.subr.bf16.mxu1 %v12283_v49 }
 0x8ed   :  { %2356 = vmatpush1.bf16.msra.mxu0 %v12293_v58  ;;  %2215 = vmatpush1.bf16.msra.mxu1 %v12289_v57 }
 0x8ee   :  { %2357 = vmatprep.subr.bf16.mxu0 %v12306_v35  ;;  %2216 = vmatprep.subr.bf16.mxu1 %v12304_v34 }
 0x8f1   :  { %2358 = vmatpush1.bf16.msra.mxu0 %v12310_v14  ;;  %2217 = vmatpush1.bf16.msra.mxu1 %v12308_v37 }
 0x8f2   :  { %2359 = vmatprep.subr.bf16.mxu0 %v12318_v40  ;;  %2218 = vmatprep.subr.bf16.mxu1 %v12316_v39  ;;  %v11545_v40 = vpop.eup %11544 }
 0x8f3   :  { %v2569_v32 = vadd.f32 1.0, %v11545_v40 }
 0x8f5   :  { %2360 = vmatpush1.bf16.msra.mxu0 %v12322_v43  ;;  %2219 = vmatpush1.bf16.msra.mxu1 %v12320_v41 }
 0x8f6   :  { %2500 = vmatprep.subr.bf16.mxu1 %v12228_v62  ;;  %2677 = vmatprep.subr.bf16.mxu0 %v12435_v24 }
 0x9ab   :  { %v12431_v6 = vpop.f32.mrb[20].mxu1  ;;  %v2083_v19 = vpop.f32.mrb[36].mxu0 }
 0x9ac   :  { %v2090_v10 = vadd.f32 %v2083_v19, %v271_v13  ;;  %v12433_v0 = vpop.f32.mrb[21].mxu1  ;;  %v2085_v62 = vpop.f32.mrb[37].mxu0  ;;  %v12453_v13 = vld [vmem:[#allocation4 + $0x110] ss:$8 sps:$4 sm:$0xff]   ;;  %v14237_v19 = vld [vmem:[#allocation11_spill] sm:$0xff] }
 0x9ad   :  { %v1946_v42 = vpop.f32.mrb[22].mxu1  ;;  %v2087_v56 = vpop.f32.mrb[38].mxu0  ;;  %v2091_v28 = vadd.f32 %v12051_v5, %v2085_v62  ;;  %v12446_v5 = vld [vmem:[#allocation4 + $0x100] ss:$8 sps:$4 sm:$0xff]  }
 0x9ae   :  { %v10179_v58 = vmul.f32 -1.442695, %v2090_v10  ;;  %v1947_v35 = vpop.f32.mrb[23].mxu1  ;;  %v2088_v14 = vpop.f32.mrb[39].mxu0  ;;  %v12468_v10 = vrot.slane %v9980_v17, %v14237_v19  ;;  %v12471_v62 = vld [vmem:[#allocation4 + $0x120] ss:$8 sps:$4 sm:$0xff]  }
 0x9af   :  { %v12474_v42 = vld [vmem:[#allocation4 + $0x134] ss:$8 sps:$4 sm:$0xff]   ;;  %v12482_v17 = vld [vmem:[#allocation4 + $0x130] ss:$8 sps:$4 sm:$0xff]   ;;  %v12485_v56 = vld [vmem:[#allocation4 + $0x144] ss:$8 sps:$4 sm:$0xff]  }
 0x9b0   :  { %11546 = vpow2.f32 %v10179_v58  ;;  %v12506_v35 = vld [vmem:[#allocation4 + $0x160] ss:$8 sps:$4 sm:$0xff]  }
 0x9ba   :  { %v11547_v60 = vpop.eup %11546 }
 0x9bb   :  { %v2095_v43 = vadd.f32 1.0, %v11547_v60 }
 0x9bd   :  { %11548 = vrcp.f32 %v2095_v43 }
 0x9be   :  { %11550 = vrcp.f32 %v2569_v32 }
 0x9c7   :  { %v11549_v29 = vpop.eup %11548 }
 0x9c8   :  { %v2100_v31 = vmul.f32 %v11549_v29, %v2091_v28  ;;  %2098 = vrot.lane.b32.xlu0 %v11549_v29, %s11828_s2  ;;  %v11551_v27 = vpop.eup %11550 }
 0x9ca   :  { %v2101_v16 = vadd.f32 %v2100_v31, %v273_v30 }
 0x9cc   :  { %2572 = vrot.lane.b32.xlu0 %v11551_v27, %s11828_s2  ;;  %11552 = vtanh.f32 %v2101_v16 }
 0x9d6   :  { %v11553_v47 = vpop.eup %11552 }
 0xa3a   :  { %v2099_v15 = vpop.permute.xlu0 %2098 }
 0xa3b   :  { %v2103_v36 = vsub.f32 1.0, %v2099_v15  ;;  %v2105_v61 = vmul.f32 %v2099_v15, %v12384_v23  ;;  %v12457_v23 = vld [vmem:[#allocation4 + $0x124] ss:$8 sps:$4 sm:$0xff]  }
 0xa3d   :  { %v2104_v38 = vmul.f32 %v11553_v47, %v2103_v36  ;;  %v14240_v47 = vld [vmem:[#allocation14_spill] sm:$0xff] }
 0xa3f   :  { %v12444_v22 = vadd.f32 %v2105_v61, %v2104_v38  ;;  %v277_v38 = vadd.f32 %v14240_v47, %v12046_v4  ;;  %v12602_v47 = vld [vmem:[#allocation6 + $0xe0] ss:$8 sps:$4 sm:$0xff]  }
 0xa41   :  { %v2107_v45 = vpack.c.bf16 %v12444_v22, %v12444_v22 }
 0xa43   :  { %2237 = vmatmul.mubr.bf16.vlgmr.msra.gmra.mrb[24].mxu1 %v2107_v45  ;;  %2378 = vmatmul.mubr.bf16.vlgmr.msra.gmra.mrb[40].mxu0 %v2107_v45 }
 0xa44   :  { %2678 = vmatpush1.bf16.msra.mxu0 %v12446_v5  ;;  %2709 = vmatprep.mubr.bf16.mxu0 %v14235_v59 }
 0xa45   :  { %2679 = vmatprep.subr.bf16.mxu0 %v12450_v11  ;;  %2501 = vmatpush1.bf16.msra.mxu1 %v12226_v48  ;;  %v2574_v48 = vmul.f32 %v11551_v27, %v12465_v8  ;;  %v12552_v27 = vld [vmem:[#allocation6 + $0x84] ss:$8 sps:$4 sm:$0xff]  }
 0xa46   :  { %2502 = vmatprep.subr.bf16.mxu1 %v12234_v2  ;;  %2532 = vmatprep.mubr.bf16.mxu1 %v14235_v59  ;;  %v465_v2 = vadd.f32 %v12122_v7, %v12468_v10  ;;  %v12493_v7 = vld [vmem:[#allocation4 + $0x154] ss:$8 sps:$4 sm:$0xff]  }
 0xa48   :  { %2680 = vmatpush1.bf16.msra.mxu0 %v12453_v13  ;;  %v2575_v58 = vadd.f32 %v2574_v48, %v465_v2 }
 0xa49   :  { %2681 = vmatprep.subr.bf16.mxu0 %v12457_v23  ;;  %2503 = vmatpush1.bf16.msra.mxu1 %v12241_v12  ;;  %v12490_v12 = vld [vmem:[#allocation4 + $0x140] ss:$8 sps:$4 sm:$0xff]  }
 0xa4a   :  { %2504 = vmatprep.subr.bf16.mxu1 %v12247_v54  ;;  %11554 = vtanh.f32 %v2575_v58  ;;  %v12498_v54 = vld [vmem:[#allocation4 + $0x150] ss:$8 sps:$4 sm:$0xff]  }
 0xa4c   :  { %2682 = vmatpush1.bf16.msra.mxu0 %v12471_v62 }
 0xa4d   :  { %2683 = vmatprep.subr.bf16.mxu0 %v12474_v42  ;;  %2505 = vmatpush1.bf16.msra.mxu1 %v12253_v9  ;;  %v12501_v9 = vld [vmem:[#allocation4 + $0x164] ss:$8 sps:$4 sm:$0xff]  }
 0xa4e   :  { %2506 = vmatprep.subr.bf16.mxu1 %v12259_v20  ;;  %v2573_v20 = vpop.permute.xlu0 %2572 }
 0xa50   :  { %2684 = vmatpush1.bf16.msra.mxu0 %v12482_v17 }
 0xa51   :  { %2685 = vmatprep.subr.bf16.mxu0 %v12485_v56  ;;  %2507 = vmatpush1.bf16.msra.mxu1 %v12265_v50  ;;  %v2577_v50 = vsub.f32 1.0, %v2573_v20 }
 0xa52   :  { %2508 = vmatprep.subr.bf16.mxu1 %v12271_v52  ;;  %v12509_v52 = vld [vmem:[#allocation4 + $0x174] ss:$8 sps:$4 sm:$0xff]  }
 0xa54   :  { %2686 = vmatpush1.bf16.msra.mxu0 %v12490_v12  ;;  %v11555_v14 = vpop.eup %11554 }
 0xa55   :  { %2687 = vmatprep.subr.bf16.mxu0 %v12493_v7  ;;  %2509 = vmatpush1.bf16.msra.mxu1 %v12277_v3  ;;  %v12514_v3 = vld [vmem:[#allocation4 + $0x170] ss:$8 sps:$4 sm:$0xff]   ;;  %v12516_v40 = vmul.f32 %v11555_v14, %v2577_v50 }
 0xa56   :  { %2510 = vmatprep.subr.bf16.mxu1 %v12283_v49 }
 0xa57   :  { %v12524_v49 = vpack.c.bf16 %v12516_v40, %v12516_v40 }
 0xa58   :  { %2688 = vmatpush1.bf16.msra.mxu0 %v12498_v54 }
 0xa59   :  { %2689 = vmatprep.subr.bf16.mxu0 %v12501_v9  ;;  %2511 = vmatpush1.bf16.msra.mxu1 %v12289_v57  ;;  %v14238_v57 = vld [vmem:[#allocation13_spill] sm:$0xff] }
 0xa5a   :  { %2512 = vmatprep.subr.bf16.mxu1 %v12304_v34  ;;  %v275_v34 = vadd.f32 %v14238_v57, %v12022_v53  ;;  %v11748_v53 = vld [vmem:[%s14223_s4] ss:$0 sm:$0xff] }
 0xa5c   :  { %2690 = vmatpush1.bf16.msra.mxu0 %v12506_v35 }
 0xa5d   :  { %2691 = vmatprep.subr.bf16.mxu0 %v12509_v52  ;;  %2513 = vmatpush1.bf16.msra.mxu1 %v12308_v37 }
 0xa5e   :  { %2514 = vmatprep.subr.bf16.mxu1 %v12316_v39 }
 0xa60   :  { %2692 = vmatpush1.bf16.msra.mxu0 %v12514_v3 }
 0xa61   :  { %2515 = vmatpush1.bf16.msra.mxu1 %v12320_v41  ;;  %2974 = vmatprep.subr.bf16.mxu0 %v12435_v24 }
 0xa62   :  { %2819 = vmatprep.subr.bf16.mxu1 %v12552_v27 }
 0xa63   :  { %2710 = vmatmul.mubr.bf16.vlgmr.msra.gmra.mrb[44].mxu0 %v12524_v49 }
 0xa64   :  { %2975 = vmatpush1.bf16.msra.mxu0 %v12446_v5  ;;  %3006 = vmatprep.mubr.bf16.mxu0 %v14235_v59 }
 0xa65   :  { %2976 = vmatprep.subr.bf16.mxu0 %v12450_v11 }
 0xa68   :  { %2977 = vmatpush1.bf16.msra.mxu0 %v12453_v13 }
 0xa69   :  { %2978 = vmatprep.subr.bf16.mxu0 %v12457_v23 }
 0xa6c   :  { %2979 = vmatpush1.bf16.msra.mxu0 %v12471_v62 }
 0xa6d   :  { %2980 = vmatprep.subr.bf16.mxu0 %v12474_v42 }
 0xa70   :  { %2981 = vmatpush1.bf16.msra.mxu0 %v12482_v17 }
 0xa71   :  { %2982 = vmatprep.subr.bf16.mxu0 %v12485_v56 }
 0xa74   :  { %2983 = vmatpush1.bf16.msra.mxu0 %v12490_v12 }
 0xa75   :  { %2984 = vmatprep.subr.bf16.mxu0 %v12493_v7 }
 0xa78   :  { %2985 = vmatpush1.bf16.msra.mxu0 %v12498_v54 }
 0xa79   :  { %2986 = vmatprep.subr.bf16.mxu0 %v12501_v9 }
 0xa7c   :  { %2987 = vmatpush1.bf16.msra.mxu0 %v12506_v35 }
 0xa7d   :  { %2988 = vmatprep.subr.bf16.mxu0 %v12509_v52 }
 0xa80   :  { %2989 = vmatpush1.bf16.msra.mxu0 %v12514_v3 }
 0xa81   :  { %3270 = vmatprep.subr.bf16.mxu0 %v12435_v24 }
 0xb16   :  { %v12548_v37 = vpop.f32.mrb[24].mxu1  ;;  %v2379_v39 = vpop.f32.mrb[40].mxu0 }
 0xb17   :  { %v2386_v41 = vadd.f32 %v2379_v39, %v275_v34  ;;  %v12550_v60 = vpop.f32.mrb[25].mxu1  ;;  %v2381_v43 = vpop.f32.mrb[41].mxu0 }
 0xb18   :  { %14239 = vst [vmem:[#allocation12_spill] sm:$0xff] %v12550_v60  ;;  %v2242_v32 = vpop.f32.mrb[26].mxu1  ;;  %v2383_v28 = vpop.f32.mrb[42].mxu0  ;;  %v2387_v15 = vadd.f32 %v11748_v53, %v2381_v43  ;;  %v12566_v43 = vld [vmem:[#allocation6 + $0x80] ss:$8 sps:$4 sm:$0xff]  }
 0xb19   :  { %v10212_v29 = vmul.f32 -1.442695, %v2386_v41  ;;  %v2243_v1 = vpop.f32.mrb[27].mxu1  ;;  %v2384_v30 = vpop.f32.mrb[43].mxu0  ;;  %v12568_v32 = vld [vmem:[#allocation6 + $0x94] ss:$8 sps:$4 sm:$0xff]  }
 0xb1a   :  { %v12571_v28 = vld [vmem:[#allocation6 + $0x90] ss:$8 sps:$4 sm:$0xff]   ;;  %v12581_v1 = vld [vmem:[#allocation6 + $0xb4] ss:$8 sps:$4 sm:$0xff]  }
 0xb1b   :  { %11556 = vpow2.f32 %v10212_v29  ;;  %v12575_v29 = vld [vmem:[#allocation6 + $0xa4] ss:$8 sps:$4 sm:$0xff]   ;;  %v12584_v30 = vld [vmem:[#allocation6 + $0xb0] ss:$8 sps:$4 sm:$0xff]   ;;  %v12593_v53 = vld [vmem:[#allocation6 + $0xd4] ss:$8 sps:$4 sm:$0xff]  }
 0xb25   :  { %v11557_v31 = vpop.eup %11556 }
 0xb26   :  { %v2391_v16 = vadd.f32 1.0, %v11557_v31  ;;  %v12587_v31 = vld [vmem:[#allocation6 + $0xc4] ss:$8 sps:$4 sm:$0xff]  }
 0xb28   :  { %11558 = vrcp.f32 %v2391_v16  ;;  %v12590_v16 = vld [vmem:[#allocation6 + $0xc0] ss:$8 sps:$4 sm:$0xff]  }
 0xb32   :  { %v11559_v36 = vpop.eup %11558 }
 0xb33   :  { %v2396_v61 = vmul.f32 %v11559_v36, %v2387_v15  ;;  %2394 = vrot.lane.b32.xlu1 %v11559_v36, %s11828_s2  ;;  %v12596_v15 = vld [vmem:[#allocation6 + $0xd0] ss:$8 sps:$4 sm:$0xff]   ;;  %v12599_v36 = vld [vmem:[#allocation6 + $0xe4] ss:$8 sps:$4 sm:$0xff]  }
 0xb35   :  { %v2397_v45 = vadd.f32 %v2396_v61, %v277_v38  ;;  %v12605_v38 = vld [vmem:[#allocation6 + $0xf4] ss:$8 sps:$4 sm:$0xff]   ;;  %v12608_v61 = vld [vmem:[#allocation6 + $0xf0] ss:$8 sps:$4 sm:$0xff]  }
 0xb36   :  { %v12561_v48 = vpop.f32.mrb[44].mxu0 }
 0xb37   :  { %v12563_v2 = vpop.f32.mrb[45].mxu0  ;;  %11560 = vtanh.f32 %v2397_v45 }
 0xb38   :  { %14241 = vst [vmem:[#allocation13_spill] sm:$0xff] %v12563_v2  ;;  %v2715_v58 = vpop.f32.mrb[46].mxu0 }
 0xb39   :  { %v2716_v20 = vpop.f32.mrb[47].mxu0 }
 0xb41   :  { %v11561_v57 = vpop.eup %11560 }
 0xba5   :  { %v2395_v50 = vpop.permute.xlu1 %2394 }
 0xba6   :  { %v2399_v14 = vsub.f32 1.0, %v2395_v50  ;;  %v2401_v39 = vmul.f32 %v2395_v50, %v12444_v22  ;;  %v12578_v22 = vld [vmem:[#allocation6 + $0xa0] ss:$8 sps:$4 sm:$0xff]   ;;  %v759_v50 = vadd.f32 %v12169_v33, %v12425_v63 }
 0xba8   :  { %v2400_v34 = vmul.f32 %v11561_v57, %v2399_v14 }
 0xbaa   :  { %v2402_v41 = vadd.f32 %v2401_v39, %v2400_v34 }
 0xbac   :  { %v2403_v4 = vpack.c.bf16 %v2402_v41, %v2402_v41 }
 0xbae   :  { %2533 = vmatmul.mubr.bf16.vlgmr.msra.gmra.mrb[28].mxu1 %v2403_v4 }
 0xbaf   :  { %2820 = vmatpush1.bf16.msra.mxu1 %v12566_v43  ;;  %2851 = vmatprep.mubr.bf16.mxu1 %v14235_v59 }
 0xbb0   :  { %2821 = vmatprep.subr.bf16.mxu1 %v12568_v32 }
 0xbb3   :  { %2822 = vmatpush1.bf16.msra.mxu1 %v12571_v28 }
 0xbb4   :  { %2823 = vmatprep.subr.bf16.mxu1 %v12575_v29 }
 0xbb7   :  { %2824 = vmatpush1.bf16.msra.mxu1 %v12578_v22 }
 0xbb8   :  { %2825 = vmatprep.subr.bf16.mxu1 %v12581_v1 }
 0xbbb   :  { %2826 = vmatpush1.bf16.msra.mxu1 %v12584_v30 }
 0xbbc   :  { %2827 = vmatprep.subr.bf16.mxu1 %v12587_v31 }
 0xbbf   :  { %2828 = vmatpush1.bf16.msra.mxu1 %v12590_v16 }
 0xbc0   :  { %2829 = vmatprep.subr.bf16.mxu1 %v12593_v53 }
 0xbc3   :  { %2830 = vmatpush1.bf16.msra.mxu1 %v12596_v15 }
 0xbc4   :  { %2831 = vmatprep.subr.bf16.mxu1 %v12599_v36 }
 0xbc7   :  { %2832 = vmatpush1.bf16.msra.mxu1 %v12602_v47 }
 0xbc8   :  { %2833 = vmatprep.subr.bf16.mxu1 %v12605_v38 }
 0xbcb   :  { %2834 = vmatpush1.bf16.msra.mxu1 %v12608_v61 }
 0xbcc   :  { %3115 = vmatprep.subr.bf16.mxu1 %v12552_v27 }
 0xbce   :  { %2852 = vmatmul.mubr.bf16.vlgmr.msra.gmra.mrb[32].mxu1 %v12524_v49 }
 0xbcf   :  { %3116 = vmatpush1.bf16.msra.mxu1 %v12566_v43  ;;  %3147 = vmatprep.mubr.bf16.mxu1 %v14235_v59 }
 0xbd0   :  { %3117 = vmatprep.subr.bf16.mxu1 %v12568_v32 }
 0xbd3   :  { %3118 = vmatpush1.bf16.msra.mxu1 %v12571_v28 }
 0xbd4   :  { %3119 = vmatprep.subr.bf16.mxu1 %v12575_v29 }
 0xbd7   :  { %3120 = vmatpush1.bf16.msra.mxu1 %v12578_v22 }
 0xbd8   :  { %3121 = vmatprep.subr.bf16.mxu1 %v12581_v1 }
 0xbdb   :  { %3122 = vmatpush1.bf16.msra.mxu1 %v12584_v30 }
 0xbdc   :  { %3123 = vmatprep.subr.bf16.mxu1 %v12587_v31 }
 0xbdf   :  { %3124 = vmatpush1.bf16.msra.mxu1 %v12590_v16 }
 0xbe0   :  { %3125 = vmatprep.subr.bf16.mxu1 %v12593_v53 }
 0xbe3   :  { %3126 = vmatpush1.bf16.msra.mxu1 %v12596_v15 }
 0xbe4   :  { %3127 = vmatprep.subr.bf16.mxu1 %v12599_v36 }
 0xbe7   :  { %3128 = vmatpush1.bf16.msra.mxu1 %v12602_v47 }
 0xbe8   :  { %3129 = vmatprep.subr.bf16.mxu1 %v12605_v38 }
 0xbeb   :  { %3130 = vmatpush1.bf16.msra.mxu1 %v12608_v61 }
 0xbec   :  { %3411 = vmatprep.subr.bf16.mxu1 %v12552_v27 }
 0xc81   :  { %v12631_v49 = vpop.f32.mrb[28].mxu1 }
 0xc82   :  { %14242 = vst [vmem:[#allocation14_spill] sm:$0xff] %v12631_v49  ;;  %v12633_v45 = vpop.f32.mrb[29].mxu1 }
 0xc83   :  { %v2538_v58 = vpop.f32.mrb[30].mxu1 }
 0xc84   :  { %v2539_v20 = vpop.f32.mrb[31].mxu1  ;;  %v761_v58 = vadd.f32 %v12171_v55, %v12468_v10  ;;  %v1055_v55 = vadd.f32 %v12212_v21, %v12425_v63  ;;  %v1057_v21 = vadd.f32 %v12214_v25, %v12468_v10  ;;  %v1351_v25 = vadd.f32 %v12300_v18, %v12425_v63 }
 0xca1   :  { %v2853_v14 = vpop.f32.mrb[32].mxu1 }
 0xca2   :  { %v2860_v57 = vadd.f32 %v2853_v14, %v759_v50  ;;  %v2855_v34 = vpop.f32.mrb[33].mxu1 }
 0xca3   :  { %v2857_v39 = vpop.f32.mrb[34].mxu1  ;;  %v2861_v60 = vadd.f32 %v12465_v8, %v2855_v34 }
 0xca4   :  { %v10265_v41 = vmul.f32 -1.442695, %v2860_v57  ;;  %v2858_v4 = vpop.f32.mrb[35].mxu1 }
 0xca6   :  { %11562 = vpow2.f32 %v10265_v41 }
 0xcb0   :  { %v11563_v2 = vpop.eup %11562 }
 0xcb1   :  { %v2865_v19 = vadd.f32 1.0, %v11563_v2 }
 0xcb3   :  { %11564 = vrcp.f32 %v2865_v19 }
 0xcbd   :  { %v11565_v49 = vpop.eup %11564 }
 0xcbe   :  { %v2870_v20 = vmul.f32 %v11565_v49, %v2861_v60  ;;  %2868 = vrot.lane.b32.xlu1 %v11565_v49, %s11828_s2 }
 0xcc0   :  { %v2871_v33 = vadd.f32 %v2870_v20, %v761_v58 }
 0xcc2   :  { %11566 = vtanh.f32 %v2871_v33 }
 0xccc   :  { %v11567_v39 = vpop.eup %11566 }
 0xd30   :  { %v2869_v50 = vpop.permute.xlu1 %2868 }
 0xd31   :  { %v2873_v14 = vsub.f32 1.0, %v2869_v50  ;;  %v2875_v41 = vmul.f32 %v2869_v50, %v12516_v40 }
 0xd33   :  { %v2874_v57 = vmul.f32 %v11567_v39, %v2873_v14 }
 0xd35   :  { %v12642_v4 = vadd.f32 %v2875_v41, %v2874_v57 }
 0xd37   :  { %v2877_v19 = vpack.c.bf16 %v12642_v4, %v12642_v4 }
 0xd39   :  { %3007 = vmatmul.mubr.bf16.vlgmr.msra.gmra.mrb[48].mxu0 %v2877_v19  ;;  %3148 = vmatmul.mubr.bf16.vlgmr.msra.gmra.mrb[36].mxu1 %v2877_v19 }
 0xd3a   :  { %3271 = vmatpush1.bf16.msra.mxu0 %v12446_v5  ;;  %3412 = vmatpush1.bf16.msra.mxu1 %v12566_v43 }
 0xd3b   :  { %3272 = vmatprep.subr.bf16.mxu0 %v12450_v11  ;;  %3413 = vmatprep.subr.bf16.mxu1 %v12568_v32 }
 0xd3c   :  { %3302 = vmatprep.mubr.bf16.mxu0 %v14235_v59  ;;  %3443 = vmatprep.mubr.bf16.mxu1 %v14235_v59 }
 0xd3e   :  { %3273 = vmatpush1.bf16.msra.mxu0 %v12453_v13  ;;  %3414 = vmatpush1.bf16.msra.mxu1 %v12571_v28 }
 0xd3f   :  { %3274 = vmatprep.subr.bf16.mxu0 %v12457_v23  ;;  %3415 = vmatprep.subr.bf16.mxu1 %v12575_v29 }
 0xd42   :  { %3275 = vmatpush1.bf16.msra.mxu0 %v12471_v62  ;;  %3416 = vmatpush1.bf16.msra.mxu1 %v12578_v22 }
 0xd43   :  { %3276 = vmatprep.subr.bf16.mxu0 %v12474_v42  ;;  %3417 = vmatprep.subr.bf16.mxu1 %v12581_v1 }
 0xd46   :  { %3277 = vmatpush1.bf16.msra.mxu0 %v12482_v17  ;;  %3418 = vmatpush1.bf16.msra.mxu1 %v12584_v30 }
 0xd47   :  { %3278 = vmatprep.subr.bf16.mxu0 %v12485_v56  ;;  %3419 = vmatprep.subr.bf16.mxu1 %v12587_v31 }
 0xd4a   :  { %3279 = vmatpush1.bf16.msra.mxu0 %v12490_v12  ;;  %3420 = vmatpush1.bf16.msra.mxu1 %v12590_v16 }
 0xd4b   :  { %3280 = vmatprep.subr.bf16.mxu0 %v12493_v7  ;;  %3421 = vmatprep.subr.bf16.mxu1 %v12593_v53 }
 0xd4e   :  { %3281 = vmatpush1.bf16.msra.mxu0 %v12498_v54  ;;  %3422 = vmatpush1.bf16.msra.mxu1 %v12596_v15 }
 0xd4f   :  { %3282 = vmatprep.subr.bf16.mxu0 %v12501_v9  ;;  %3423 = vmatprep.subr.bf16.mxu1 %v12599_v36 }
 0xd52   :  { %3283 = vmatpush1.bf16.msra.mxu0 %v12506_v35  ;;  %3424 = vmatpush1.bf16.msra.mxu1 %v12602_v47 }
 0xd53   :  { %3284 = vmatprep.subr.bf16.mxu0 %v12509_v52  ;;  %3425 = vmatprep.subr.bf16.mxu1 %v12605_v38 }
 0xd56   :  { %3285 = vmatpush1.bf16.msra.mxu0 %v12514_v3  ;;  %3426 = vmatpush1.bf16.msra.mxu1 %v12608_v61 }
 0xd57   :  { %3566 = vmatprep.subr.bf16.mxu0 %v12435_v24  ;;  %3707 = vmatprep.subr.bf16.mxu1 %v12552_v27 }
 0xe0c   :  { %v12682_v40 = vpop.f32.mrb[48].mxu0  ;;  %v3149_v60 = vpop.f32.mrb[36].mxu1 }
 0xe0d   :  { %v3156_v2 = vadd.f32 %v3149_v60, %v1055_v55  ;;  %v12684_v49 = vpop.f32.mrb[49].mxu0  ;;  %v3151_v52 = vpop.f32.mrb[37].mxu1 }
 0xe0e   :  { %v3012_v34 = vpop.f32.mrb[50].mxu0  ;;  %v3153_v58 = vpop.f32.mrb[38].mxu1  ;;  %v3157_v14 = vadd.f32 %v12465_v8, %v3151_v52 }
 0xe0f   :  { %v10298_v20 = vmul.f32 -1.442695, %v3156_v2  ;;  %v3013_v3 = vpop.f32.mrb[51].mxu0  ;;  %v3154_v33 = vpop.f32.mrb[39].mxu1 }
 0xe11   :  { %11568 = vpow2.f32 %v10298_v20  ;;  %v1353_v20 = vadd.f32 %v12302_v26, %v12468_v10  ;;  %v12764_v26 = vld [vmem:[#allocation4 + $0x100] ss:$8 sps:$4 sm:$0xff]  }
 0xe1b   :  { %v11569_v50 = vpop.eup %11568 }
 0xe1c   :  { %v3161_v24 = vadd.f32 1.0, %v11569_v50 }
 0xe1e   :  { %11570 = vrcp.f32 %v3161_v24 }
 0xe28   :  { %v11571_v39 = vpop.eup %11570 }
 0xe29   :  { %v3166_v57 = vmul.f32 %v11571_v39, %v3157_v14  ;;  %3164 = vrot.lane.b32.xlu0 %v11571_v39, %s11828_s2 }
 0xe2b   :  { %v3167_v41 = vadd.f32 %v3166_v57, %v1057_v21 }
 0xe2d   :  { %11572 = vtanh.f32 %v3167_v41 }
 0xe37   :  { %v11573_v60 = vpop.eup %11572 }
 0xe9b   :  { %v3165_v19 = vpop.permute.xlu0 %3164 }
 0xe9c   :  { %v3169_v55 = vsub.f32 1.0, %v3165_v19  ;;  %v3171_v34 = vmul.f32 %v3165_v19, %v12642_v4 }
 0xe9e   :  { %v3170_v2 = vmul.f32 %v11573_v60, %v3169_v55 }
 0xea0   :  { %v12691_v58 = vadd.f32 %v3171_v34, %v3170_v2 }
 0xea2   :  { %v3173_v52 = vpack.c.bf16 %v12691_v58, %v12691_v58 }
 0xea4   :  { %3303 = vmatmul.mubr.bf16.vlgmr.msra.gmra.mrb[52].mxu0 %v3173_v52  ;;  %3444 = vmatmul.mubr.bf16.vlgmr.msra.gmra.mrb[40].mxu1 %v3173_v52 }
 0xea5   :  { %3567 = vmatpush1.bf16.msra.mxu0 %v12446_v5  ;;  %3708 = vmatpush1.bf16.msra.mxu1 %v12566_v43 }
 0xea6   :  { %3568 = vmatprep.subr.bf16.mxu0 %v12450_v11  ;;  %3709 = vmatprep.subr.bf16.mxu1 %v12568_v32 }
 0xea7   :  { %3598 = vmatprep.mubr.bf16.mxu0 %v14235_v59  ;;  %3739 = vmatprep.mubr.bf16.mxu1 %v14235_v59 }
 0xea9   :  { %3569 = vmatpush1.bf16.msra.mxu0 %v12453_v13  ;;  %3710 = vmatpush1.bf16.msra.mxu1 %v12571_v28 }
 0xeaa   :  { %3570 = vmatprep.subr.bf16.mxu0 %v12457_v23  ;;  %3711 = vmatprep.subr.bf16.mxu1 %v12575_v29 }
 0xead   :  { %3571 = vmatpush1.bf16.msra.mxu0 %v12471_v62  ;;  %3712 = vmatpush1.bf16.msra.mxu1 %v12578_v22 }
 0xeae   :  { %3572 = vmatprep.subr.bf16.mxu0 %v12474_v42  ;;  %3713 = vmatprep.subr.bf16.mxu1 %v12581_v1 }
 0xeb1   :  { %3573 = vmatpush1.bf16.msra.mxu0 %v12482_v17  ;;  %3714 = vmatpush1.bf16.msra.mxu1 %v12584_v30 }
 0xeb2   :  { %3574 = vmatprep.subr.bf16.mxu0 %v12485_v56  ;;  %3715 = vmatprep.subr.bf16.mxu1 %v12587_v31 }
 0xeb5   :  { %3575 = vmatpush1.bf16.msra.mxu0 %v12490_v12  ;;  %3716 = vmatpush1.bf16.msra.mxu1 %v12590_v16 }
 0xeb6   :  { %3576 = vmatprep.subr.bf16.mxu0 %v12493_v7  ;;  %3717 = vmatprep.subr.bf16.mxu1 %v12593_v53 }
 0xeb9   :  { %3577 = vmatpush1.bf16.msra.mxu0 %v12498_v54  ;;  %3718 = vmatpush1.bf16.msra.mxu1 %v12596_v15 }
 0xeba   :  { %3578 = vmatprep.subr.bf16.mxu0 %v12501_v9  ;;  %3719 = vmatprep.subr.bf16.mxu1 %v12599_v36 }
 0xebd   :  { %3579 = vmatpush1.bf16.msra.mxu0 %v12506_v35  ;;  %3720 = vmatpush1.bf16.msra.mxu1 %v12602_v47  ;;  %v12732_v35 = vld [vmem:[#allocation4 + $0x174] ss:$8 sps:$4 sm:$0xff]  }
 0xebe   :  { %3721 = vmatprep.subr.bf16.mxu1 %v12605_v38  ;;  %3580 = vmatprep.subr.bf16.mxu0 %v12732_v35 }
 0xec1   :  { %3722 = vmatpush1.bf16.msra.mxu1 %v12608_v61 }
 0xec2   :  { %4003 = vmatprep.subr.bf16.mxu1 %v12552_v27  ;;  %v12734_v27 = vld [vmem:[#allocation4 + $0x170] ss:$8 sps:$4 sm:$0xff]  }
 0xec3   :  { %3581 = vmatpush1.bf16.msra.mxu0 %v12734_v27 }
 0xf77   :  { %v12728_v5 = vpop.f32.mrb[52].mxu0  ;;  %v3445_v11 = vpop.f32.mrb[40].mxu1 }
 0xf78   :  { %v3452_v13 = vadd.f32 %v3445_v11, %v1351_v25  ;;  %v12730_v23 = vpop.f32.mrb[53].mxu0  ;;  %v3447_v62 = vpop.f32.mrb[41].mxu1  ;;  %v12806_v25 = vld [vmem:[#allocation4 + $0x164] ss:$8 sps:$4 sm:$0xff]  }
 0xf79   :  { %v3308_v42 = vpop.f32.mrb[54].mxu0  ;;  %v3449_v17 = vpop.f32.mrb[42].mxu1  ;;  %v3453_v18 = vadd.f32 %v12465_v8, %v3447_v62 }
 0xf7a   :  { %v10331_v56 = vmul.f32 -1.442695, %v3452_v13  ;;  %v3309_v12 = vpop.f32.mrb[55].mxu0  ;;  %v3450_v7 = vpop.f32.mrb[43].mxu1  ;;  %v12808_v13 = vld [vmem:[#allocation4 + $0x160] ss:$8 sps:$4 sm:$0xff]   ;;  %v1649_v17 = vadd.f32 %v12377_v44, %v12468_v10 }
 0xf7b   :  { %v12842_v44 = vld [vmem:[#allocation6 + $0x80] ss:$8 sps:$4 sm:$0xff]  }
 0xf7c   :  { %11574 = vpow2.f32 %v10331_v56 }
 0xf86   :  { %v11575_v54 = vpop.eup %11574 }
 0xf87   :  { %v3457_v9 = vadd.f32 1.0, %v11575_v54 }
 0xf89   :  { %11576 = vrcp.f32 %v3457_v9 }
 0xf93   :  { %v11577_v4 = vpop.eup %11576 }
 0xf94   :  { %v3462_v3 = vmul.f32 %v11577_v4, %v3453_v18  ;;  %3460 = vrot.lane.b32.xlu1 %v11577_v4, %s11828_s2 }
 0xf96   :  { %v3463_v33 = vadd.f32 %v3462_v3, %v1353_v20 }
 0xf98   :  { %11578 = vtanh.f32 %v3463_v33  ;;  %v11253_v33 = vld [vmem:[#allocation6 + $0x84] ss:$8 sps:$4 sm:$0xff]  }
 0xfa2   :  { %v11579_v14 = vpop.eup %11578 }
0x1006   :  { %v3461_v50 = vpop.permute.xlu1 %3460 }
0x1007   :  { %v3465_v24 = vsub.f32 1.0, %v3461_v50  ;;  %v3467_v21 = vmul.f32 %v3461_v50, %v12691_v58  ;;  %v12844_v50 = vld [vmem:[#allocation6 + $0x94] ss:$8 sps:$4 sm:$0xff]  }
0x1009   :  { %v3466_v39 = vmul.f32 %v11579_v14, %v3465_v24  ;;  %v12847_v24 = vld [vmem:[#allocation6 + $0x90] ss:$8 sps:$4 sm:$0xff]   ;;  %v12850_v14 = vld [vmem:[#allocation6 + $0xa4] ss:$8 sps:$4 sm:$0xff]  }
0x100b   :  { %v12743_v57 = vadd.f32 %v3467_v21, %v3466_v39  ;;  %v12853_v39 = vld [vmem:[#allocation6 + $0xa0] ss:$8 sps:$4 sm:$0xff]   ;;  %v12856_v21 = vld [vmem:[#allocation6 + $0xb4] ss:$8 sps:$4 sm:$0xff]  }
0x100d   :  { %v3469_v41 = vpack.c.bf16 %v12743_v57, %v12743_v57 }
0x100f   :  { %3599 = vmatmul.mubr.bf16.vlgmr.msra.gmra.mrb[56].mxu0 %v3469_v41  ;;  %3740 = vmatmul.mubr.bf16.vlgmr.msra.gmra.mrb[44].mxu1 %v3469_v41  ;;  %v12862_v41 = vld [vmem:[#allocation6 + $0xc4] ss:$8 sps:$4 sm:$0xff]  }
0x1010   :  { %4004 = vmatpush1.bf16.msra.mxu1 %v12566_v43  ;;  %3894 = vmatprep.mubr.bf16.mxu0 %v14235_v59  ;;  %v12766_v43 = vld [vmem:[#allocation4 + $0x104] ss:$8 sps:$4 sm:$0xff]  }
0x1011   :  { %4005 = vmatprep.subr.bf16.mxu1 %v12568_v32  ;;  %4035 = vmatprep.mubr.bf16.mxu1 %v14235_v59  ;;  %v12768_v32 = vld [vmem:[#allocation4 + $0x114] ss:$8 sps:$4 sm:$0xff]  }
0x1012   :  { %3862 = vmatprep.subr.bf16.mxu0 %v12766_v43 }
0x1013   :  { %3863 = vmatpush1.bf16.msra.mxu0 %v12764_v26 }
0x1014   :  { %4006 = vmatpush1.bf16.msra.mxu1 %v12571_v28  ;;  %v12772_v28 = vld [vmem:[#allocation4 + $0x110] ss:$8 sps:$4 sm:$0xff]   ;;  %3864 = vmatprep.subr.bf16.mxu0 %v12768_v32 }
0x1015   :  { %4007 = vmatprep.subr.bf16.mxu1 %v12575_v29  ;;  %v12775_v29 = vld [vmem:[#allocation4 + $0x124] ss:$8 sps:$4 sm:$0xff]  }
0x1017   :  { %3865 = vmatpush1.bf16.msra.mxu0 %v12772_v28 }
0x1018   :  { %4008 = vmatpush1.bf16.msra.mxu1 %v12578_v22  ;;  %v12778_v22 = vld [vmem:[#allocation4 + $0x120] ss:$8 sps:$4 sm:$0xff]   ;;  %3866 = vmatprep.subr.bf16.mxu0 %v12775_v29 }
0x1019   :  { %4009 = vmatprep.subr.bf16.mxu1 %v12581_v1  ;;  %v12781_v1 = vld [vmem:[#allocation4 + $0x134] ss:$8 sps:$4 sm:$0xff]  }
0x101b   :  { %3867 = vmatpush1.bf16.msra.mxu0 %v12778_v22 }
0x101c   :  { %4010 = vmatpush1.bf16.msra.mxu1 %v12584_v30  ;;  %v12784_v30 = vld [vmem:[#allocation4 + $0x130] ss:$8 sps:$4 sm:$0xff]   ;;  %3868 = vmatprep.subr.bf16.mxu0 %v12781_v1 }
0x101d   :  { %4011 = vmatprep.subr.bf16.mxu1 %v12587_v31  ;;  %v12787_v31 = vld [vmem:[#allocation4 + $0x144] ss:$8 sps:$4 sm:$0xff]  }
0x101f   :  { %3869 = vmatpush1.bf16.msra.mxu0 %v12784_v30 }
0x1020   :  { %4012 = vmatpush1.bf16.msra.mxu1 %v12590_v16  ;;  %v12790_v16 = vld [vmem:[#allocation4 + $0x140] ss:$8 sps:$4 sm:$0xff]   ;;  %3870 = vmatprep.subr.bf16.mxu0 %v12787_v31 }
0x1021   :  { %4013 = vmatprep.subr.bf16.mxu1 %v12593_v53  ;;  %v12793_v53 = vld [vmem:[#allocation4 + $0x154] ss:$8 sps:$4 sm:$0xff]  }
0x1023   :  { %3871 = vmatpush1.bf16.msra.mxu0 %v12790_v16 }
0x1024   :  { %4014 = vmatpush1.bf16.msra.mxu1 %v12596_v15  ;;  %v12796_v15 = vld [vmem:[#allocation4 + $0x150] ss:$8 sps:$4 sm:$0xff]   ;;  %3872 = vmatprep.subr.bf16.mxu0 %v12793_v53 }
0x1025   :  { %4015 = vmatprep.subr.bf16.mxu1 %v12599_v36  ;;  %v1647_v36 = vadd.f32 %v12375_v46, %v12425_v63 }
0x1027   :  { %3873 = vmatpush1.bf16.msra.mxu0 %v12796_v15 }
0x1028   :  { %4016 = vmatpush1.bf16.msra.mxu1 %v12602_v47  ;;  %3874 = vmatprep.subr.bf16.mxu0 %v12806_v25 }
0x1029   :  { %4017 = vmatprep.subr.bf16.mxu1 %v12605_v38 }
0x102b   :  { %3875 = vmatpush1.bf16.msra.mxu0 %v12808_v13 }
0x102c   :  { %4018 = vmatpush1.bf16.msra.mxu1 %v12608_v61  ;;  %3876 = vmatprep.subr.bf16.mxu0 %v12732_v35 }
0x102d   :  { %4299 = vmatprep.subr.bf16.mxu1 %v11253_v33 }
0x102f   :  { %3877 = vmatpush1.bf16.msra.mxu0 %v12734_v27 }
0x1030   :  { %4158 = vmatprep.subr.bf16.mxu0 %v12766_v43 }
0x10e2   :  { %v12802_v47 = vpop.f32.mrb[56].mxu0  ;;  %v3741_v38 = vpop.f32.mrb[44].mxu1 }
0x10e3   :  { %v3748_v61 = vadd.f32 %v3741_v38, %v1647_v36  ;;  %v12804_v19 = vpop.f32.mrb[57].mxu0  ;;  %v3743_v55 = vpop.f32.mrb[45].mxu1  ;;  %v12865_v36 = vld [vmem:[#allocation6 + $0xc0] ss:$8 sps:$4 sm:$0xff]   ;;  %v12868_v38 = vld [vmem:[#allocation6 + $0xd4] ss:$8 sps:$4 sm:$0xff]  }
0x10e4   :  { %v3604_v60 = vpop.f32.mrb[58].mxu0  ;;  %v3745_v2 = vpop.f32.mrb[46].mxu1  ;;  %v3749_v46 = vadd.f32 %v12465_v8, %v3743_v55  ;;  %v1943_v55 = vadd.f32 %v12431_v6, %v12425_v63  ;;  %v11274_v6 = vld [vmem:[#allocation6 + $0xf4] ss:$8 sps:$4 sm:$0xff]  }
0x10e5   :  { %v10364_v34 = vmul.f32 -1.442695, %v3748_v61  ;;  %v3605_v58 = vpop.f32.mrb[59].mxu0  ;;  %v3746_v52 = vpop.f32.mrb[47].mxu1  ;;  %v12871_v61 = vld [vmem:[#allocation6 + $0xd0] ss:$8 sps:$4 sm:$0xff]  }
0x10e7   :  { %11580 = vpow2.f32 %v10364_v34 }
0x10f1   :  { %v11581_v11 = vpop.eup %11580 }
0x10f2   :  { %v3753_v62 = vadd.f32 1.0, %v11581_v11 }
0x10f4   :  { %11582 = vrcp.f32 %v3753_v62 }
0x10fe   :  { %v11583_v42 = vpop.eup %11582 }
0x10ff   :  { %v3758_v56 = vmul.f32 %v11583_v42, %v3749_v46  ;;  %3756 = vrot.lane.b32.xlu0 %v11583_v42, %s11828_s2 }
0x1101   :  { %v3759_v12 = vadd.f32 %v3758_v56, %v1649_v17  ;;  %v11271_v56 = vld [vmem:[#allocation6 + $0xe4] ss:$8 sps:$4 sm:$0xff]  }
0x1103   :  { %11584 = vtanh.f32 %v3759_v12 }
0x110d   :  { %v11585_v9 = vpop.eup %11584 }
0x1171   :  { %v3757_v7 = vpop.permute.xlu0 %3756 }
0x1172   :  { %v3761_v54 = vsub.f32 1.0, %v3757_v7  ;;  %v3763_v4 = vmul.f32 %v3757_v7, %v12743_v57  ;;  %v12859_v57 = vld [vmem:[#allocation6 + $0xb0] ss:$8 sps:$4 sm:$0xff]   ;;  %v11269_v7 = vld [vmem:[#allocation6 + $0xe0] ss:$8 sps:$4 sm:$0xff]  }
0x1174   :  { %v3762_v18 = vmul.f32 %v11585_v9, %v3761_v54  ;;  %v11272_v9 = vld [vmem:[#allocation6 + $0xf0] ss:$8 sps:$4 sm:$0xff]  }
0x1176   :  { %v12820_v20 = vadd.f32 %v3763_v4, %v3762_v18 }
0x1178   :  { %v3765_v3 = vpack.c.bf16 %v12820_v20, %v12820_v20 }
0x117a   :  { %3895 = vmatmul.mubr.bf16.vlgmr.msra.gmra.mrb[60].mxu0 %v3765_v3  ;;  %4036 = vmatmul.mubr.bf16.vlgmr.msra.gmra.mrb[48].mxu1 %v3765_v3  ;;  %v1945_v3 = vadd.f32 %v12433_v0, %v12468_v10  ;;  %v10231_v0 = vld [vmem:[%s14222_s3 + $0x4] sm:$0x3] }
0x117b   :  { %4159 = vmatpush1.bf16.msra.mxu0 %v12764_v26  ;;  %4190 = vmatprep.mubr.bf16.mxu0 %v14235_v59 }
0x117c   :  { %4160 = vmatprep.subr.bf16.mxu0 %v12768_v32  ;;  %4331 = vmatprep.mubr.bf16.mxu1 %v14235_v59 }
0x117d   :  { %4300 = vmatpush1.bf16.msra.mxu1 %v12842_v44 }
0x117e   :  { %4301 = vmatprep.subr.bf16.mxu1 %v12844_v50 }
0x117f   :  { %4161 = vmatpush1.bf16.msra.mxu0 %v12772_v28 }
0x1180   :  { %4162 = vmatprep.subr.bf16.mxu0 %v12775_v29 }
0x1181   :  { %4302 = vmatpush1.bf16.msra.mxu1 %v12847_v24 }
0x1182   :  { %4303 = vmatprep.subr.bf16.mxu1 %v12850_v14 }
0x1183   :  { %4163 = vmatpush1.bf16.msra.mxu0 %v12778_v22 }
0x1184   :  { %4164 = vmatprep.subr.bf16.mxu0 %v12781_v1 }
0x1185   :  { %4304 = vmatpush1.bf16.msra.mxu1 %v12853_v39 }
0x1186   :  { %4305 = vmatprep.subr.bf16.mxu1 %v12856_v21 }
0x1187   :  { %4165 = vmatpush1.bf16.msra.mxu0 %v12784_v30 }
0x1188   :  { %4166 = vmatprep.subr.bf16.mxu0 %v12787_v31 }
0x1189   :  { %4306 = vmatpush1.bf16.msra.mxu1 %v12859_v57 }
0x118a   :  { %4307 = vmatprep.subr.bf16.mxu1 %v12862_v41 }
0x118b   :  { %4167 = vmatpush1.bf16.msra.mxu0 %v12790_v16 }
0x118c   :  { %4168 = vmatprep.subr.bf16.mxu0 %v12793_v53 }
0x118d   :  { %4308 = vmatpush1.bf16.msra.mxu1 %v12865_v36 }
0x118e   :  { %4309 = vmatprep.subr.bf16.mxu1 %v12868_v38 }
0x118f   :  { %4169 = vmatpush1.bf16.msra.mxu0 %v12796_v15 }
0x1190   :  { %4170 = vmatprep.subr.bf16.mxu0 %v12806_v25 }
0x1191   :  { %4310 = vmatpush1.bf16.msra.mxu1 %v12871_v61 }
0x1192   :  { %4311 = vmatprep.subr.bf16.mxu1 %v11271_v56 }
0x1193   :  { %4171 = vmatpush1.bf16.msra.mxu0 %v12808_v13 }
0x1194   :  { %4172 = vmatprep.subr.bf16.mxu0 %v12732_v35 }
0x1195   :  { %4312 = vmatpush1.bf16.msra.mxu1 %v11269_v7 }
0x1196   :  { %4313 = vmatprep.subr.bf16.mxu1 %v11274_v6 }
0x1197   :  { %4173 = vmatpush1.bf16.msra.mxu0 %v12734_v27 }
0x1198   :  { %4454 = vmatprep.subr.bf16.mxu0 %v12766_v43 }
0x1199   :  { %4314 = vmatpush1.bf16.msra.mxu1 %v11272_v9 }
0x119a   :  { %4595 = vmatprep.subr.bf16.mxu1 %v11253_v33  ;;  %v2239_v33 = vadd.f32 %v12548_v37, %v12425_v63  ;;  %v12933_v37 = vld [vmem:[#allocation4 + $0x184] ss:$8 sps:$4 sm:$0xff]  }
0x124d   :  { %v12877_v60 = vpop.f32.mrb[60].mxu0  ;;  %v4037_v2 = vpop.f32.mrb[48].mxu1 }
0x124e   :  { %v4044_v34 = vadd.f32 %v4037_v2, %v1943_v55  ;;  %v12879_v58 = vpop.f32.mrb[61].mxu0  ;;  %v4039_v52 = vpop.f32.mrb[49].mxu1 }
0x124f   :  { %v3900_v11 = vpop.f32.mrb[62].mxu0  ;;  %v4041_v62 = vpop.f32.mrb[50].mxu1  ;;  %v4045_v18 = vadd.f32 %v12465_v8, %v4039_v52 }
0x1250   :  { %v10397_v46 = vmul.f32 -1.442695, %v4044_v34  ;;  %v3901_v42 = vpop.f32.mrb[63].mxu0  ;;  %v4042_v17 = vpop.f32.mrb[51].mxu1 }
0x1252   :  { %11586 = vpow2.f32 %v10397_v46 }
0x125c   :  { %v11587_v12 = vpop.eup %11586 }
0x125d   :  { %v4049_v54 = vadd.f32 1.0, %v11587_v12 }
0x125f   :  { %11588 = vrcp.f32 %v4049_v54  ;;  %v14243_v54 = vld [vmem:[#allocation12_spill] sm:$0xff] }
0x1269   :  { %v11589_v4 = vpop.eup %11588 }
0x126a   :  { %v4054_v55 = vmul.f32 %v11589_v4, %v4045_v18  ;;  %4052 = vrot.lane.b32.xlu1 %v11589_v4, %s11828_s2 }
0x126c   :  { %v4055_v2 = vadd.f32 %v4054_v55, %v1945_v3 }
0x126e   :  { %11590 = vtanh.f32 %v4055_v2 }
0x1278   :  { %v11591_v62 = vpop.eup %11590 }
0x12dc   :  { %v4053_v34 = vpop.permute.xlu1 %4052 }
0x12dd   :  { %v4057_v11 = vsub.f32 1.0, %v4053_v34  ;;  %v4059_v42 = vmul.f32 %v4053_v34, %v12820_v20  ;;  %v12923_v20 = vrot.slane %v10231_v0, %v12016_v51 }
0x12df   :  { %v4058_v46 = vmul.f32 %v11591_v62, %v4057_v11 }
0x12e1   :  { %v12886_v17 = vadd.f32 %v4059_v42, %v4058_v46  ;;  %v12949_v46 = vld [vmem:[#allocation4 + $0x180] ss:$8 sps:$4 sm:$0xff]  }
0x12e3   :  { %v4061_v8 = vpack.c.bf16 %v12886_v17, %v12886_v17 }
0x12e5   :  { %4191 = vmatmul.mubr.bf16.vlgmr.msra.gmra.mrb[64].mxu0 %v4061_v8  ;;  %4332 = vmatmul.mubr.bf16.vlgmr.msra.gmra.mrb[52].mxu1 %v4061_v8  ;;  %v12953_v8 = vld [vmem:[#allocation4 + $0x194] ss:$8 sps:$4 sm:$0xff]  }
0x12e6   :  { %4596 = vmatpush1.bf16.msra.mxu1 %v12842_v44  ;;  %4455 = vmatpush1.bf16.msra.mxu0 %v12764_v26  ;;  %v2712_v44 = vadd.f32 %v12561_v48, %v12923_v20 }
0x12e7   :  { %4597 = vmatprep.subr.bf16.mxu1 %v12844_v50  ;;  %4456 = vmatprep.subr.bf16.mxu0 %v12768_v32 }
0x12e8   :  { %4486 = vmatprep.mubr.bf16.mxu0 %v14235_v59  ;;  %4627 = vmatprep.mubr.bf16.mxu1 %v14235_v59  ;;  %v10483_v50 = vmul.f32 -1.442695, %v2712_v44  ;;  %v12956_v44 = vld [vmem:[#allocation4 + $0x190] ss:$8 sps:$4 sm:$0xff]  }
0x12ea   :  { %4598 = vmatpush1.bf16.msra.mxu1 %v12847_v24  ;;  %4457 = vmatpush1.bf16.msra.mxu0 %v12772_v28  ;;  %11592 = vpow2.f32 %v10483_v50  ;;  %v14244_v50 = vld [vmem:[#allocation11_spill] sm:$0xff] }
0x12eb   :  { %4599 = vmatprep.subr.bf16.mxu1 %v12850_v14  ;;  %4458 = vmatprep.subr.bf16.mxu0 %v12775_v29 }
0x12ee   :  { %4600 = vmatpush1.bf16.msra.mxu1 %v12853_v39  ;;  %4459 = vmatpush1.bf16.msra.mxu0 %v12778_v22 }
0x12ef   :  { %4601 = vmatprep.subr.bf16.mxu1 %v12856_v21  ;;  %4460 = vmatprep.subr.bf16.mxu0 %v12781_v1 }
0x12f2   :  { %4602 = vmatpush1.bf16.msra.mxu1 %v12859_v57  ;;  %4461 = vmatpush1.bf16.msra.mxu0 %v12784_v30 }
0x12f3   :  { %4603 = vmatprep.subr.bf16.mxu1 %v12862_v41  ;;  %4462 = vmatprep.subr.bf16.mxu0 %v12787_v31 }
0x12f6   :  { %4604 = vmatpush1.bf16.msra.mxu1 %v12865_v36  ;;  %4463 = vmatpush1.bf16.msra.mxu0 %v12790_v16 }
0x12f7   :  { %4605 = vmatprep.subr.bf16.mxu1 %v12868_v38  ;;  %4464 = vmatprep.subr.bf16.mxu0 %v12793_v53  ;;  %v11593_v38 = vpop.eup %11592 }
0x12f8   :  { %v4819_v52 = vadd.f32 1.0, %v11593_v38 }
0x12fa   :  { %4606 = vmatpush1.bf16.msra.mxu1 %v12871_v61  ;;  %4465 = vmatpush1.bf16.msra.mxu0 %v12796_v15 }
0x12fb   :  { %4607 = vmatprep.subr.bf16.mxu1 %v11271_v56  ;;  %4466 = vmatprep.subr.bf16.mxu0 %v12806_v25  ;;  %v12939_v56 = vld [vmem:[%s14223_s4 + $0x1] ss:$0 sm:$0xff] }
0x12fe   :  { %4608 = vmatpush1.bf16.msra.mxu1 %v11269_v7  ;;  %4467 = vmatpush1.bf16.msra.mxu0 %v12808_v13 }
0x12ff   :  { %4609 = vmatprep.subr.bf16.mxu1 %v11274_v6  ;;  %4468 = vmatprep.subr.bf16.mxu0 %v12732_v35  ;;  %v2241_v6 = vadd.f32 %v14243_v54, %v12468_v10 }
0x1302   :  { %4610 = vmatpush1.bf16.msra.mxu1 %v11272_v9  ;;  %4469 = vmatpush1.bf16.msra.mxu0 %v12734_v27 }
0x1303   :  { %4750 = vmatprep.subr.bf16.mxu0 %v12766_v43  ;;  %4927 = vmatprep.subr.bf16.mxu1 %v12933_v37 }
0x13b8   :  { %v12929_v35 = vpop.f32.mrb[64].mxu0  ;;  %v4333_v24 = vpop.f32.mrb[52].mxu1 }
0x13b9   :  { %v4340_v27 = vadd.f32 %v4333_v24, %v2239_v33  ;;  %v12931_v14 = vpop.f32.mrb[65].mxu0  ;;  %v4335_v43 = vpop.f32.mrb[53].mxu1  ;;  %v12968_v33 = vld [vmem:[%s14223_s4 + $0x2] ss:$0 sm:$0xff]  ;;  %v12971_v24 = vrot.slane %v10231_v0, %v14244_v50  ;;  %v12985_v0 = vld [vmem:[#allocation4 + $0x1b0] ss:$8 sps:$4 sm:$0xff]  }
0x13ba   :  { %v4196_v39 = vpop.f32.mrb[66].mxu0  ;;  %v4337_v21 = vpop.f32.mrb[54].mxu1  ;;  %v4341_v12 = vadd.f32 %v12939_v56, %v4335_v43  ;;  %v12977_v43 = vld [vmem:[#allocation4 + $0x1b4] ss:$8 sps:$4 sm:$0xff]  }
0x13bb   :  { %v10430_v57 = vmul.f32 -1.442695, %v4340_v27  ;;  %v4197_v41 = vpop.f32.mrb[67].mxu0  ;;  %v4338_v36 = vpop.f32.mrb[55].mxu1  ;;  %v12974_v27 = vld [vmem:[#allocation4 + $0x1a0] ss:$8 sps:$4 sm:$0xff]  }
0x13bc   :  { %v12988_v21 = vld [vmem:[#allocation4 + $0x1c4] ss:$8 sps:$4 sm:$0xff]   ;;  %v13001_v41 = vld [vmem:[#allocation4 + $0x1d0] ss:$8 sps:$4 sm:$0xff]   ;;  %v13009_v36 = vld [vmem:[#allocation4 + $0x1e0] ss:$8 sps:$4 sm:$0xff]  }
0x13bd   :  { %11594 = vpow2.f32 %v10430_v57 }
0x13c7   :  { %v11595_v48 = vpop.eup %11594 }
0x13c8   :  { %v4345_v61 = vadd.f32 1.0, %v11595_v48 }
0x13ca   :  { %11596 = vrcp.f32 %v4345_v61 }
0x13cb   :  { %11598 = vrcp.f32 %v4819_v52 }
0x13d4   :  { %v11597_v7 = vpop.eup %11596 }
0x13d5   :  { %v4350_v9 = vmul.f32 %v11597_v7, %v4341_v12  ;;  %4348 = vrot.lane.b32.xlu0 %v11597_v7, %s11828_s2  ;;  %v11599_v4 = vpop.eup %11598 }
0x13d7   :  { %v4351_v18 = vadd.f32 %v4350_v9, %v2241_v6 }
0x13d9   :  { %4822 = vrot.lane.b32.xlu0 %v11599_v4, %s11828_s2  ;;  %11600 = vtanh.f32 %v4351_v18 }
0x13e3   :  { %v11601_v2 = vpop.eup %11600 }
0x1447   :  { %v4349_v3 = vpop.permute.xlu0 %4348 }
0x1448   :  { %v4353_v55 = vsub.f32 1.0, %v4349_v3  ;;  %v4355_v11 = vmul.f32 %v4349_v3, %v12886_v17  ;;  %v12960_v17 = vld [vmem:[#allocation4 + $0x1a4] ss:$8 sps:$4 sm:$0xff]  }
0x144a   :  { %v4354_v34 = vmul.f32 %v11601_v2, %v4353_v55  ;;  %v11301_v2 = vld [vmem:[#allocation4 + $0x174] ss:$8 sps:$4 sm:$0xff]  }
0x144c   :  { %v12947_v62 = vadd.f32 %v4355_v11, %v4354_v34  ;;  %v11299_v34 = vld [vmem:[#allocation4 + $0x170] ss:$8 sps:$4 sm:$0xff]  }
0x144e   :  { %v4357_v42 = vpack.c.bf16 %v12947_v62, %v12947_v62 }
0x1450   :  { %4487 = vmatmul.mubr.bf16.vlgmr.msra.gmra.mrb[68].mxu0 %v4357_v42  ;;  %4628 = vmatmul.mubr.bf16.vlgmr.msra.gmra.mrb[56].mxu1 %v4357_v42 }
0x1451   :  { %4928 = vmatpush1.bf16.msra.mxu1 %v12949_v46  ;;  %4959 = vmatprep.mubr.bf16.mxu1 %v14235_v59 }
0x1452   :  { %4929 = vmatprep.subr.bf16.mxu1 %v12953_v8  ;;  %4751 = vmatpush1.bf16.msra.mxu0 %v12764_v26  ;;  %v4824_v26 = vmul.f32 %v11599_v4, %v12968_v33 }
0x1453   :  { %4752 = vmatprep.subr.bf16.mxu0 %v12768_v32  ;;  %4782 = vmatprep.mubr.bf16.mxu0 %v14235_v59  ;;  %v14245_v32 = vld [vmem:[#allocation13_spill] sm:$0xff] }
0x1454   :  { %v2714_v39 = vadd.f32 %v14245_v32, %v12971_v24 }
0x1455   :  { %4930 = vmatpush1.bf16.msra.mxu1 %v12956_v44 }
0x1456   :  { %4931 = vmatprep.subr.bf16.mxu1 %v12960_v17  ;;  %4753 = vmatpush1.bf16.msra.mxu0 %v12772_v28  ;;  %v4825_v57 = vadd.f32 %v4824_v26, %v2714_v39  ;;  %v12993_v28 = vld [vmem:[#allocation4 + $0x1c0] ss:$8 sps:$4 sm:$0xff]   ;;  %v2537_v26 = vadd.f32 %v12633_v45, %v12468_v10  ;;  %v13067_v45 = vld [vmem:[#allocation6 + $0x114] ss:$8 sps:$4 sm:$0xff]  }
0x1457   :  { %4754 = vmatprep.subr.bf16.mxu0 %v12775_v29  ;;  %v12996_v29 = vld [vmem:[#allocation4 + $0x1d4] ss:$8 sps:$4 sm:$0xff]  }
0x1458   :  { %11602 = vtanh.f32 %v4825_v57 }
0x1459   :  { %4932 = vmatpush1.bf16.msra.mxu1 %v12974_v27 }
0x145a   :  { %4933 = vmatprep.subr.bf16.mxu1 %v12977_v43  ;;  %4755 = vmatpush1.bf16.msra.mxu0 %v12778_v22  ;;  %v13004_v22 = vld [vmem:[#allocation4 + $0x1e4] ss:$8 sps:$4 sm:$0xff]  }
0x145b   :  { %4756 = vmatprep.subr.bf16.mxu0 %v12781_v1  ;;  %v4823_v1 = vpop.permute.xlu0 %4822 }
0x145d   :  { %4934 = vmatpush1.bf16.msra.mxu1 %v12985_v0 }
0x145e   :  { %4935 = vmatprep.subr.bf16.mxu1 %v12988_v21  ;;  %4757 = vmatpush1.bf16.msra.mxu0 %v12784_v30  ;;  %v4827_v30 = vsub.f32 1.0, %v4823_v1 }
0x145f   :  { %4758 = vmatprep.subr.bf16.mxu0 %v12787_v31  ;;  %v13012_v31 = vld [vmem:[#allocation4 + $0x1f4] ss:$8 sps:$4 sm:$0xff]  }
0x1461   :  { %4936 = vmatpush1.bf16.msra.mxu1 %v12993_v28 }
0x1462   :  { %4937 = vmatprep.subr.bf16.mxu1 %v12996_v29  ;;  %4759 = vmatpush1.bf16.msra.mxu0 %v12790_v16  ;;  %v11603_v38 = vpop.eup %11602  ;;  %v13017_v16 = vld [vmem:[#allocation4 + $0x1f0] ss:$8 sps:$4 sm:$0xff]  }
0x1463   :  { %4760 = vmatprep.subr.bf16.mxu0 %v12793_v53  ;;  %v13019_v48 = vmul.f32 %v11603_v38, %v4827_v30 }
0x1465   :  { %4938 = vmatpush1.bf16.msra.mxu1 %v13001_v41  ;;  %v13026_v53 = vpack.c.bf16 %v13019_v48, %v13019_v48 }
0x1466   :  { %4939 = vmatprep.subr.bf16.mxu1 %v13004_v22  ;;  %4761 = vmatpush1.bf16.msra.mxu0 %v12796_v15  ;;  %v14246_v15 = vld [vmem:[#allocation14_spill] sm:$0xff] }
0x1467   :  { %4762 = vmatprep.subr.bf16.mxu0 %v12806_v25  ;;  %v2535_v25 = vadd.f32 %v14246_v15, %v12425_v63  ;;  %v13053_v63 = vld [vmem:[#allocation6 + $0x104] ss:$8 sps:$4 sm:$0xff]  }
0x1469   :  { %4940 = vmatpush1.bf16.msra.mxu1 %v13009_v36 }
0x146a   :  { %4941 = vmatprep.subr.bf16.mxu1 %v13012_v31  ;;  %4763 = vmatpush1.bf16.msra.mxu0 %v12808_v13 }
0x146b   :  { %4764 = vmatprep.subr.bf16.mxu0 %v11301_v2  ;;  %v13092_v2 = vld [vmem:[#allocation6 + $0x154] ss:$8 sps:$4 sm:$0xff]  }
0x146d   :  { %4942 = vmatpush1.bf16.msra.mxu1 %v13017_v16 }
0x146e   :  { %5224 = vmatprep.subr.bf16.mxu1 %v12933_v37  ;;  %4765 = vmatpush1.bf16.msra.mxu0 %v11299_v34  ;;  %v13095_v34 = vld [vmem:[#allocation6 + $0x150] ss:$8 sps:$4 sm:$0xff]  }
0x146f   :  { %5069 = vmatprep.subr.bf16.mxu0 %v13053_v63 }
0x1470   :  { %4960 = vmatmul.mubr.bf16.vlgmr.msra.gmra.mrb[60].mxu1 %v13026_v53 }
0x1471   :  { %5225 = vmatpush1.bf16.msra.mxu1 %v12949_v46  ;;  %5256 = vmatprep.mubr.bf16.mxu1 %v14235_v59 }
0x1472   :  { %5226 = vmatprep.subr.bf16.mxu1 %v12953_v8 }
0x1475   :  { %5227 = vmatpush1.bf16.msra.mxu1 %v12956_v44 }
0x1476   :  { %5228 = vmatprep.subr.bf16.mxu1 %v12960_v17 }
0x1479   :  { %5229 = vmatpush1.bf16.msra.mxu1 %v12974_v27 }
0x147a   :  { %5230 = vmatprep.subr.bf16.mxu1 %v12977_v43 }
0x147d   :  { %5231 = vmatpush1.bf16.msra.mxu1 %v12985_v0 }
0x147e   :  { %5232 = vmatprep.subr.bf16.mxu1 %v12988_v21 }
0x1481   :  { %5233 = vmatpush1.bf16.msra.mxu1 %v12993_v28 }
0x1482   :  { %5234 = vmatprep.subr.bf16.mxu1 %v12996_v29 }
0x1485   :  { %5235 = vmatpush1.bf16.msra.mxu1 %v13001_v41 }
0x1486   :  { %5236 = vmatprep.subr.bf16.mxu1 %v13004_v22 }
0x1489   :  { %5237 = vmatpush1.bf16.msra.mxu1 %v13009_v36 }
0x148a   :  { %5238 = vmatprep.subr.bf16.mxu1 %v13012_v31 }
0x148d   :  { %5239 = vmatpush1.bf16.msra.mxu1 %v13017_v16 }
0x148e   :  { %5520 = vmatprep.subr.bf16.mxu1 %v12933_v37 }
0x1523   :  { %v13049_v13 = vpop.f32.mrb[68].mxu0  ;;  %v4629_v61 = vpop.f32.mrb[56].mxu1 }
0x1524   :  { %v4636_v52 = vadd.f32 %v4629_v61, %v2535_v25  ;;  %v13051_v12 = vpop.f32.mrb[69].mxu0  ;;  %v4631_v7 = vpop.f32.mrb[57].mxu1 }
0x1525   :  { %14247 = vst [vmem:[#allocation12_spill] sm:$0xff] %v13051_v12  ;;  %v4492_v54 = vpop.f32.mrb[70].mxu0  ;;  %v4633_v6 = vpop.f32.mrb[58].mxu1  ;;  %v4637_v11 = vadd.f32 %v12939_v56, %v4631_v7 }
0x1526   :  { %v10463_v9 = vmul.f32 -1.442695, %v4636_v52  ;;  %v4493_v18 = vpop.f32.mrb[71].mxu0  ;;  %v4634_v4 = vpop.f32.mrb[59].mxu1  ;;  %v13065_v54 = vld [vmem:[#allocation6 + $0x100] ss:$8 sps:$4 sm:$0xff]  }
0x1527   :  { %v13070_v6 = vld [vmem:[#allocation6 + $0x110] ss:$8 sps:$4 sm:$0xff]   ;;  %v13080_v18 = vld [vmem:[#allocation6 + $0x134] ss:$8 sps:$4 sm:$0xff]  }
0x1528   :  { %11604 = vpow2.f32 %v10463_v9  ;;  %v13074_v9 = vld [vmem:[#allocation6 + $0x124] ss:$8 sps:$4 sm:$0xff]   ;;  %v13083_v4 = vld [vmem:[#allocation6 + $0x130] ss:$8 sps:$4 sm:$0xff]  }
0x1532   :  { %v11605_v3 = vpop.eup %11604 }
0x1533   :  { %v4641_v55 = vadd.f32 1.0, %v11605_v3  ;;  %v13086_v3 = vld [vmem:[#allocation6 + $0x144] ss:$8 sps:$4 sm:$0xff]  }
0x1535   :  { %11606 = vrcp.f32 %v4641_v55  ;;  %v13089_v55 = vld [vmem:[#allocation6 + $0x140] ss:$8 sps:$4 sm:$0xff]  }
0x153f   :  { %v11607_v42 = vpop.eup %11606 }
0x1540   :  { %v4646_v32 = vmul.f32 %v11607_v42, %v4637_v11  ;;  %4644 = vrot.lane.b32.xlu1 %v11607_v42, %s11828_s2  ;;  %v13098_v11 = vld [vmem:[#allocation6 + $0x164] ss:$8 sps:$4 sm:$0xff]   ;;  %v13101_v42 = vld [vmem:[#allocation6 + $0x160] ss:$8 sps:$4 sm:$0xff]  }
0x1542   :  { %v4647_v39 = vadd.f32 %v4646_v32, %v2537_v26  ;;  %v13104_v26 = vld [vmem:[#allocation6 + $0x174] ss:$8 sps:$4 sm:$0xff]   ;;  %v13107_v32 = vld [vmem:[#allocation6 + $0x170] ss:$8 sps:$4 sm:$0xff]  }
0x1543   :  { %v13060_v57 = vpop.f32.mrb[60].mxu1 }
0x1544   :  { %v13062_v1 = vpop.f32.mrb[61].mxu1  ;;  %11608 = vtanh.f32 %v4647_v39 }
0x1545   :  { %14248 = vst [vmem:[#allocation13_spill] sm:$0xff] %v13062_v1  ;;  %v4965_v30 = vpop.f32.mrb[62].mxu1 }
0x1546   :  { %v4966_v38 = vpop.f32.mrb[63].mxu1 }
0x154e   :  { %v11609_v61 = vpop.eup %11608 }
0x15b2   :  { %v4645_v15 = vpop.permute.xlu1 %4644 }
0x15b3   :  { %v4649_v25 = vsub.f32 1.0, %v4645_v15  ;;  %v4651_v56 = vmul.f32 %v4645_v15, %v12947_v62  ;;  %v13077_v62 = vld [vmem:[#allocation6 + $0x120] ss:$8 sps:$4 sm:$0xff]   ;;  %v3009_v15 = vadd.f32 %v12682_v40, %v12923_v20 }
0x15b5   :  { %v4650_v52 = vmul.f32 %v11609_v61, %v4649_v25 }
0x15b7   :  { %v4652_v7 = vadd.f32 %v4651_v56, %v4650_v52 }
0x15b9   :  { %v4653_v10 = vpack.c.bf16 %v4652_v7, %v4652_v7 }
0x15bb   :  { %4783 = vmatmul.mubr.bf16.vlgmr.msra.gmra.mrb[72].mxu0 %v4653_v10 }
0x15bc   :  { %5070 = vmatpush1.bf16.msra.mxu0 %v13065_v54  ;;  %5101 = vmatprep.mubr.bf16.mxu0 %v14235_v59 }
0x15bd   :  { %5071 = vmatprep.subr.bf16.mxu0 %v13067_v45 }
0x15c0   :  { %5072 = vmatpush1.bf16.msra.mxu0 %v13070_v6 }
0x15c1   :  { %5073 = vmatprep.subr.bf16.mxu0 %v13074_v9 }
0x15c4   :  { %5074 = vmatpush1.bf16.msra.mxu0 %v13077_v62 }
0x15c5   :  { %5075 = vmatprep.subr.bf16.mxu0 %v13080_v18 }
0x15c8   :  { %5076 = vmatpush1.bf16.msra.mxu0 %v13083_v4 }
0x15c9   :  { %5077 = vmatprep.subr.bf16.mxu0 %v13086_v3 }
0x15cc   :  { %5078 = vmatpush1.bf16.msra.mxu0 %v13089_v55 }
0x15cd   :  { %5079 = vmatprep.subr.bf16.mxu0 %v13092_v2 }
0x15d0   :  { %5080 = vmatpush1.bf16.msra.mxu0 %v13095_v34 }
0x15d1   :  { %5081 = vmatprep.subr.bf16.mxu0 %v13098_v11 }
0x15d4   :  { %5082 = vmatpush1.bf16.msra.mxu0 %v13101_v42 }
0x15d5   :  { %5083 = vmatprep.subr.bf16.mxu0 %v13104_v26 }
0x15d8   :  { %5084 = vmatpush1.bf16.msra.mxu0 %v13107_v32 }
0x15d9   :  { %5365 = vmatprep.subr.bf16.mxu0 %v13053_v63 }
0x15db   :  { %5102 = vmatmul.mubr.bf16.vlgmr.msra.gmra.mrb[76].mxu0 %v13026_v53 }
0x15dc   :  { %5366 = vmatpush1.bf16.msra.mxu0 %v13065_v54  ;;  %5397 = vmatprep.mubr.bf16.mxu0 %v14235_v59 }
0x15dd   :  { %5367 = vmatprep.subr.bf16.mxu0 %v13067_v45 }
0x15e0   :  { %5368 = vmatpush1.bf16.msra.mxu0 %v13070_v6 }
0x15e1   :  { %5369 = vmatprep.subr.bf16.mxu0 %v13074_v9 }
0x15e4   :  { %5370 = vmatpush1.bf16.msra.mxu0 %v13077_v62 }
0x15e5   :  { %5371 = vmatprep.subr.bf16.mxu0 %v13080_v18 }
0x15e8   :  { %5372 = vmatpush1.bf16.msra.mxu0 %v13083_v4 }
0x15e9   :  { %5373 = vmatprep.subr.bf16.mxu0 %v13086_v3 }
0x15ec   :  { %5374 = vmatpush1.bf16.msra.mxu0 %v13089_v55 }
0x15ed   :  { %5375 = vmatprep.subr.bf16.mxu0 %v13092_v2 }
0x15f0   :  { %5376 = vmatpush1.bf16.msra.mxu0 %v13095_v34 }
0x15f1   :  { %5377 = vmatprep.subr.bf16.mxu0 %v13098_v11 }
0x15f4   :  { %5378 = vmatpush1.bf16.msra.mxu0 %v13101_v42 }
0x15f5   :  { %5379 = vmatprep.subr.bf16.mxu0 %v13104_v26 }
0x15f8   :  { %5380 = vmatpush1.bf16.msra.mxu0 %v13107_v32 }
0x15f9   :  { %5661 = vmatprep.subr.bf16.mxu0 %v13053_v63 }
0x168e   :  { %v13130_v53 = vpop.f32.mrb[72].mxu0 }
0x168f   :  { %14249 = vst [vmem:[#allocation14_spill] sm:$0xff] %v13130_v53  ;;  %v13132_v39 = vpop.f32.mrb[73].mxu0 }
0x1690   :  { %v4788_v30 = vpop.f32.mrb[74].mxu0 }
0x1691   :  { %v4789_v38 = vpop.f32.mrb[75].mxu0  ;;  %v3011_v30 = vadd.f32 %v12684_v49, %v12971_v24  ;;  %v3305_v49 = vadd.f32 %v12728_v5, %v12923_v20  ;;  %v3307_v5 = vadd.f32 %v12730_v23, %v12971_v24  ;;  %v3601_v23 = vadd.f32 %v12802_v47, %v12923_v20 }
0x16ae   :  { %v5103_v25 = vpop.f32.mrb[76].mxu0 }
0x16af   :  { %v5110_v61 = vadd.f32 %v5103_v25, %v3009_v15  ;;  %v5105_v52 = vpop.f32.mrb[77].mxu0 }
0x16b0   :  { %v5107_v56 = vpop.f32.mrb[78].mxu0  ;;  %v5111_v12 = vadd.f32 %v12968_v33, %v5105_v52 }
0x16b1   :  { %v10516_v7 = vmul.f32 -1.442695, %v5110_v61  ;;  %v5108_v10 = vpop.f32.mrb[79].mxu0 }
0x16b3   :  { %11610 = vpow2.f32 %v10516_v7 }
0x16bd   :  { %v11611_v1 = vpop.eup %11610 }
0x16be   :  { %v5115_v50 = vadd.f32 1.0, %v11611_v1 }
0x16c0   :  { %11612 = vrcp.f32 %v5115_v50 }
0x16ca   :  { %v11613_v53 = vpop.eup %11612 }
0x16cb   :  { %v5120_v38 = vmul.f32 %v11613_v53, %v5111_v12  ;;  %5118 = vrot.lane.b32.xlu1 %v11613_v53, %s11828_s2 }
0x16cd   :  { %v5121_v40 = vadd.f32 %v5120_v38, %v3011_v30 }
0x16cf   :  { %11614 = vtanh.f32 %v5121_v40 }
0x16d9   :  { %v11615_v56 = vpop.eup %11614 }
0x173d   :  { %v5119_v15 = vpop.permute.xlu1 %5118 }
0x173e   :  { %v5123_v25 = vsub.f32 1.0, %v5119_v15  ;;  %v5125_v7 = vmul.f32 %v5119_v15, %v13019_v48 }
0x1740   :  { %v5124_v61 = vmul.f32 %v11615_v56, %v5123_v25 }
0x1742   :  { %v13141_v10 = vadd.f32 %v5125_v7, %v5124_v61 }
0x1744   :  { %v5127_v50 = vpack.c.bf16 %v13141_v10, %v13141_v10 }
0x1746   :  { %5257 = vmatmul.mubr.bf16.vlgmr.msra.gmra.mrb[64].mxu1 %v5127_v50  ;;  %5398 = vmatmul.mubr.bf16.vlgmr.msra.gmra.mrb[80].mxu0 %v5127_v50 }
0x1747   :  { %5521 = vmatpush1.bf16.msra.mxu1 %v12949_v46  ;;  %5662 = vmatpush1.bf16.msra.mxu0 %v13065_v54 }
0x1748   :  { %5522 = vmatprep.subr.bf16.mxu1 %v12953_v8  ;;  %5663 = vmatprep.subr.bf16.mxu0 %v13067_v45 }
0x1749   :  { %5552 = vmatprep.mubr.bf16.mxu1 %v14235_v59  ;;  %5693 = vmatprep.mubr.bf16.mxu0 %v14235_v59 }
0x174b   :  { %5523 = vmatpush1.bf16.msra.mxu1 %v12956_v44  ;;  %5664 = vmatpush1.bf16.msra.mxu0 %v13070_v6 }
0x174c   :  { %5524 = vmatprep.subr.bf16.mxu1 %v12960_v17  ;;  %5665 = vmatprep.subr.bf16.mxu0 %v13074_v9 }
0x174f   :  { %5525 = vmatpush1.bf16.msra.mxu1 %v12974_v27  ;;  %5666 = vmatpush1.bf16.msra.mxu0 %v13077_v62 }
0x1750   :  { %5526 = vmatprep.subr.bf16.mxu1 %v12977_v43  ;;  %5667 = vmatprep.subr.bf16.mxu0 %v13080_v18 }
0x1753   :  { %5527 = vmatpush1.bf16.msra.mxu1 %v12985_v0  ;;  %5668 = vmatpush1.bf16.msra.mxu0 %v13083_v4 }
0x1754   :  { %5528 = vmatprep.subr.bf16.mxu1 %v12988_v21  ;;  %5669 = vmatprep.subr.bf16.mxu0 %v13086_v3 }
0x1757   :  { %5529 = vmatpush1.bf16.msra.mxu1 %v12993_v28  ;;  %5670 = vmatpush1.bf16.msra.mxu0 %v13089_v55 }
0x1758   :  { %5530 = vmatprep.subr.bf16.mxu1 %v12996_v29  ;;  %5671 = vmatprep.subr.bf16.mxu0 %v13092_v2 }
0x175b   :  { %5531 = vmatpush1.bf16.msra.mxu1 %v13001_v41  ;;  %5672 = vmatpush1.bf16.msra.mxu0 %v13095_v34 }
0x175c   :  { %5532 = vmatprep.subr.bf16.mxu1 %v13004_v22  ;;  %5673 = vmatprep.subr.bf16.mxu0 %v13098_v11 }
0x175f   :  { %5533 = vmatpush1.bf16.msra.mxu1 %v13009_v36  ;;  %5674 = vmatpush1.bf16.msra.mxu0 %v13101_v42 }
0x1760   :  { %5534 = vmatprep.subr.bf16.mxu1 %v13012_v31  ;;  %5675 = vmatprep.subr.bf16.mxu0 %v13104_v26 }
0x1763   :  { %5535 = vmatpush1.bf16.msra.mxu1 %v13017_v16  ;;  %5676 = vmatpush1.bf16.msra.mxu0 %v13107_v32 }
0x1764   :  { %5816 = vmatprep.subr.bf16.mxu1 %v12933_v37  ;;  %5957 = vmatprep.subr.bf16.mxu0 %v13053_v63 }
0x1819   :  { %v13181_v48 = vpop.f32.mrb[64].mxu1  ;;  %v5399_v12 = vpop.f32.mrb[80].mxu0 }
0x181a   :  { %v5406_v1 = vadd.f32 %v5399_v12, %v3305_v49  ;;  %v13183_v53 = vpop.f32.mrb[65].mxu1  ;;  %v5401_v31 = vpop.f32.mrb[81].mxu0 }
0x181b   :  { %v5262_v52 = vpop.f32.mrb[66].mxu1  ;;  %v5403_v30 = vpop.f32.mrb[82].mxu0  ;;  %v5407_v25 = vadd.f32 %v12968_v33, %v5401_v31 }
0x181c   :  { %v10549_v38 = vmul.f32 -1.442695, %v5406_v1  ;;  %v5263_v16 = vpop.f32.mrb[67].mxu1  ;;  %v5404_v40 = vpop.f32.mrb[83].mxu0 }
0x181e   :  { %11616 = vpow2.f32 %v10549_v38  ;;  %v3603_v38 = vadd.f32 %v12804_v19, %v12971_v24  ;;  %v13263_v19 = vld [vmem:[#allocation4 + $0x180] ss:$8 sps:$4 sm:$0xff]  }
0x1828   :  { %v11617_v15 = vpop.eup %11616 }
0x1829   :  { %v5411_v37 = vadd.f32 1.0, %v11617_v15 }
0x182b   :  { %11618 = vrcp.f32 %v5411_v37 }
0x1835   :  { %v11619_v56 = vpop.eup %11618 }
0x1836   :  { %v5416_v61 = vmul.f32 %v11619_v56, %v5407_v25  ;;  %5414 = vrot.lane.b32.xlu0 %v11619_v56, %s11828_s2 }
0x1838   :  { %v5417_v7 = vadd.f32 %v5416_v61, %v3307_v5 }
0x183a   :  { %11620 = vtanh.f32 %v5417_v7 }
0x1844   :  { %v11621_v12 = vpop.eup %11620 }
0x18a8   :  { %v5415_v50 = vpop.permute.xlu0 %5414 }
0x18a9   :  { %v5419_v49 = vsub.f32 1.0, %v5415_v50  ;;  %v5421_v52 = vmul.f32 %v5415_v50, %v13141_v10 }
0x18ab   :  { %v5420_v1 = vmul.f32 %v11621_v12, %v5419_v49 }
0x18ad   :  { %v13190_v30 = vadd.f32 %v5421_v52, %v5420_v1 }
0x18af   :  { %v5423_v31 = vpack.c.bf16 %v13190_v30, %v13190_v30 }
0x18b1   :  { %5553 = vmatmul.mubr.bf16.vlgmr.msra.gmra.mrb[68].mxu1 %v5423_v31  ;;  %5694 = vmatmul.mubr.bf16.vlgmr.msra.gmra.mrb[84].mxu0 %v5423_v31 }
0x18b2   :  { %5817 = vmatpush1.bf16.msra.mxu1 %v12949_v46  ;;  %5958 = vmatpush1.bf16.msra.mxu0 %v13065_v54 }
0x18b3   :  { %5818 = vmatprep.subr.bf16.mxu1 %v12953_v8  ;;  %5959 = vmatprep.subr.bf16.mxu0 %v13067_v45 }
0x18b4   :  { %5848 = vmatprep.mubr.bf16.mxu1 %v14235_v59  ;;  %5989 = vmatprep.mubr.bf16.mxu0 %v14235_v59 }
0x18b6   :  { %5819 = vmatpush1.bf16.msra.mxu1 %v12956_v44  ;;  %5960 = vmatpush1.bf16.msra.mxu0 %v13070_v6 }
0x18b7   :  { %5820 = vmatprep.subr.bf16.mxu1 %v12960_v17  ;;  %5961 = vmatprep.subr.bf16.mxu0 %v13074_v9 }
0x18ba   :  { %5821 = vmatpush1.bf16.msra.mxu1 %v12974_v27  ;;  %5962 = vmatpush1.bf16.msra.mxu0 %v13077_v62 }
0x18bb   :  { %5822 = vmatprep.subr.bf16.mxu1 %v12977_v43  ;;  %5963 = vmatprep.subr.bf16.mxu0 %v13080_v18 }
0x18be   :  { %5823 = vmatpush1.bf16.msra.mxu1 %v12985_v0  ;;  %5964 = vmatpush1.bf16.msra.mxu0 %v13083_v4 }
0x18bf   :  { %5824 = vmatprep.subr.bf16.mxu1 %v12988_v21  ;;  %5965 = vmatprep.subr.bf16.mxu0 %v13086_v3 }
0x18c2   :  { %5825 = vmatpush1.bf16.msra.mxu1 %v12993_v28  ;;  %5966 = vmatpush1.bf16.msra.mxu0 %v13089_v55 }
0x18c3   :  { %5826 = vmatprep.subr.bf16.mxu1 %v12996_v29  ;;  %5967 = vmatprep.subr.bf16.mxu0 %v13092_v2 }
0x18c6   :  { %5827 = vmatpush1.bf16.msra.mxu1 %v13001_v41  ;;  %5968 = vmatpush1.bf16.msra.mxu0 %v13095_v34 }
0x18c7   :  { %5828 = vmatprep.subr.bf16.mxu1 %v13004_v22  ;;  %5969 = vmatprep.subr.bf16.mxu0 %v13098_v11 }
0x18ca   :  { %5829 = vmatpush1.bf16.msra.mxu1 %v13009_v36  ;;  %5970 = vmatpush1.bf16.msra.mxu0 %v13101_v42  ;;  %v13231_v36 = vld [vmem:[#allocation4 + $0x1f4] ss:$8 sps:$4 sm:$0xff]  }
0x18cb   :  { %5971 = vmatprep.subr.bf16.mxu0 %v13104_v26  ;;  %5830 = vmatprep.subr.bf16.mxu1 %v13231_v36 }
0x18ce   :  { %5972 = vmatpush1.bf16.msra.mxu0 %v13107_v32 }
0x18cf   :  { %6253 = vmatprep.subr.bf16.mxu0 %v13053_v63  ;;  %v13233_v63 = vld [vmem:[#allocation4 + $0x1f0] ss:$8 sps:$4 sm:$0xff]  }
0x18d0   :  { %5831 = vmatpush1.bf16.msra.mxu1 %v13233_v63 }
0x1984   :  { %v13227_v46 = vpop.f32.mrb[68].mxu1  ;;  %v5695_v8 = vpop.f32.mrb[84].mxu0 }
0x1985   :  { %v5702_v44 = vadd.f32 %v5695_v8, %v3601_v23  ;;  %v13229_v17 = vpop.f32.mrb[69].mxu1  ;;  %v5697_v27 = vpop.f32.mrb[85].mxu0  ;;  %v13305_v23 = vld [vmem:[#allocation4 + $0x1e4] ss:$8 sps:$4 sm:$0xff]  }
0x1986   :  { %v5558_v43 = vpop.f32.mrb[70].mxu1  ;;  %v5699_v0 = vpop.f32.mrb[86].mxu0  ;;  %v5703_v47 = vadd.f32 %v12968_v33, %v5697_v27 }
0x1987   :  { %v10582_v21 = vmul.f32 -1.442695, %v5702_v44  ;;  %v5559_v28 = vpop.f32.mrb[71].mxu1  ;;  %v5700_v29 = vpop.f32.mrb[87].mxu0  ;;  %v13307_v44 = vld [vmem:[#allocation4 + $0x1e0] ss:$8 sps:$4 sm:$0xff]   ;;  %v3899_v0 = vadd.f32 %v12879_v58, %v12971_v24 }
0x1988   :  { %v13341_v58 = vld [vmem:[#allocation6 + $0x100] ss:$8 sps:$4 sm:$0xff]  }
0x1989   :  { %11622 = vpow2.f32 %v10582_v21 }
0x1993   :  { %v11623_v41 = vpop.eup %11622 }
0x1994   :  { %v5707_v22 = vadd.f32 1.0, %v11623_v41 }
0x1996   :  { %11624 = vrcp.f32 %v5707_v22 }
0x19a0   :  { %v11625_v10 = vpop.eup %11624 }
0x19a1   :  { %v5712_v16 = vmul.f32 %v11625_v10, %v5703_v47  ;;  %5710 = vrot.lane.b32.xlu1 %v11625_v10, %s11828_s2 }
0x19a3   :  { %v5713_v40 = vadd.f32 %v5712_v16, %v3603_v38 }
0x19a5   :  { %11626 = vtanh.f32 %v5713_v40  ;;  %v11352_v40 = vld [vmem:[#allocation6 + $0x104] ss:$8 sps:$4 sm:$0xff]  }
0x19af   :  { %v11627_v25 = vpop.eup %11626 }
0x1a13   :  { %v5711_v15 = vpop.permute.xlu1 %5710 }
0x1a14   :  { %v5715_v37 = vsub.f32 1.0, %v5711_v15  ;;  %v5717_v5 = vmul.f32 %v5711_v15, %v13190_v30  ;;  %v13343_v15 = vld [vmem:[#allocation6 + $0x114] ss:$8 sps:$4 sm:$0xff]  }
0x1a16   :  { %v5716_v56 = vmul.f32 %v11627_v25, %v5715_v37  ;;  %v13346_v37 = vld [vmem:[#allocation6 + $0x110] ss:$8 sps:$4 sm:$0xff]   ;;  %v13349_v25 = vld [vmem:[#allocation6 + $0x124] ss:$8 sps:$4 sm:$0xff]  }
0x1a18   :  { %v13242_v61 = vadd.f32 %v5717_v5, %v5716_v56  ;;  %v13352_v56 = vld [vmem:[#allocation6 + $0x120] ss:$8 sps:$4 sm:$0xff]   ;;  %v13355_v5 = vld [vmem:[#allocation6 + $0x134] ss:$8 sps:$4 sm:$0xff]  }
0x1a1a   :  { %v5719_v7 = vpack.c.bf16 %v13242_v61, %v13242_v61 }
0x1a1c   :  { %5849 = vmatmul.mubr.bf16.vlgmr.msra.gmra.mrb[72].mxu1 %v5719_v7  ;;  %5990 = vmatmul.mubr.bf16.vlgmr.msra.gmra.mrb[88].mxu0 %v5719_v7  ;;  %v13361_v7 = vld [vmem:[#allocation6 + $0x144] ss:$8 sps:$4 sm:$0xff]  }
0x1a1d   :  { %6254 = vmatpush1.bf16.msra.mxu0 %v13065_v54  ;;  %6144 = vmatprep.mubr.bf16.mxu1 %v14235_v59  ;;  %v13265_v54 = vld [vmem:[#allocation4 + $0x184] ss:$8 sps:$4 sm:$0xff]  }
0x1a1e   :  { %6255 = vmatprep.subr.bf16.mxu0 %v13067_v45  ;;  %6285 = vmatprep.mubr.bf16.mxu0 %v14235_v59  ;;  %v13267_v45 = vld [vmem:[#allocation4 + $0x194] ss:$8 sps:$4 sm:$0xff]  }
0x1a1f   :  { %6112 = vmatprep.subr.bf16.mxu1 %v13265_v54 }
0x1a20   :  { %6113 = vmatpush1.bf16.msra.mxu1 %v13263_v19 }
0x1a21   :  { %6256 = vmatpush1.bf16.msra.mxu0 %v13070_v6  ;;  %v13271_v6 = vld [vmem:[#allocation4 + $0x190] ss:$8 sps:$4 sm:$0xff]   ;;  %6114 = vmatprep.subr.bf16.mxu1 %v13267_v45 }
0x1a22   :  { %6257 = vmatprep.subr.bf16.mxu0 %v13074_v9  ;;  %v13274_v9 = vld [vmem:[#allocation4 + $0x1a4] ss:$8 sps:$4 sm:$0xff]  }
0x1a24   :  { %6115 = vmatpush1.bf16.msra.mxu1 %v13271_v6 }
0x1a25   :  { %6258 = vmatpush1.bf16.msra.mxu0 %v13077_v62  ;;  %v13277_v62 = vld [vmem:[#allocation4 + $0x1a0] ss:$8 sps:$4 sm:$0xff]   ;;  %6116 = vmatprep.subr.bf16.mxu1 %v13274_v9 }
0x1a26   :  { %6259 = vmatprep.subr.bf16.mxu0 %v13080_v18  ;;  %v13280_v18 = vld [vmem:[#allocation4 + $0x1b4] ss:$8 sps:$4 sm:$0xff]  }
0x1a28   :  { %6117 = vmatpush1.bf16.msra.mxu1 %v13277_v62 }
0x1a29   :  { %6260 = vmatpush1.bf16.msra.mxu0 %v13083_v4  ;;  %v13283_v4 = vld [vmem:[#allocation4 + $0x1b0] ss:$8 sps:$4 sm:$0xff]   ;;  %6118 = vmatprep.subr.bf16.mxu1 %v13280_v18 }
0x1a2a   :  { %6261 = vmatprep.subr.bf16.mxu0 %v13086_v3  ;;  %v13286_v3 = vld [vmem:[#allocation4 + $0x1c4] ss:$8 sps:$4 sm:$0xff]  }
0x1a2c   :  { %6119 = vmatpush1.bf16.msra.mxu1 %v13283_v4 }
0x1a2d   :  { %6262 = vmatpush1.bf16.msra.mxu0 %v13089_v55  ;;  %v13289_v55 = vld [vmem:[#allocation4 + $0x1c0] ss:$8 sps:$4 sm:$0xff]   ;;  %6120 = vmatprep.subr.bf16.mxu1 %v13286_v3 }
0x1a2e   :  { %6263 = vmatprep.subr.bf16.mxu0 %v13092_v2  ;;  %v13292_v2 = vld [vmem:[#allocation4 + $0x1d4] ss:$8 sps:$4 sm:$0xff]  }
0x1a30   :  { %6121 = vmatpush1.bf16.msra.mxu1 %v13289_v55 }
0x1a31   :  { %6264 = vmatpush1.bf16.msra.mxu0 %v13095_v34  ;;  %v13295_v34 = vld [vmem:[#allocation4 + $0x1d0] ss:$8 sps:$4 sm:$0xff]   ;;  %6122 = vmatprep.subr.bf16.mxu1 %v13292_v2 }
0x1a32   :  { %6265 = vmatprep.subr.bf16.mxu0 %v13098_v11  ;;  %v3897_v11 = vadd.f32 %v12877_v60, %v12923_v20 }
0x1a34   :  { %6123 = vmatpush1.bf16.msra.mxu1 %v13295_v34 }
0x1a35   :  { %6266 = vmatpush1.bf16.msra.mxu0 %v13101_v42  ;;  %6124 = vmatprep.subr.bf16.mxu1 %v13305_v23 }
0x1a36   :  { %6267 = vmatprep.subr.bf16.mxu0 %v13104_v26 }
0x1a38   :  { %6125 = vmatpush1.bf16.msra.mxu1 %v13307_v44 }
0x1a39   :  { %6268 = vmatpush1.bf16.msra.mxu0 %v13107_v32  ;;  %6126 = vmatprep.subr.bf16.mxu1 %v13231_v36 }
0x1a3a   :  { %6549 = vmatprep.subr.bf16.mxu0 %v11352_v40 }
0x1a3c   :  { %6127 = vmatpush1.bf16.msra.mxu1 %v13233_v63 }
0x1a3d   :  { %6408 = vmatprep.subr.bf16.mxu1 %v13265_v54 }
0x1aef   :  { %v13301_v42 = vpop.f32.mrb[72].mxu1  ;;  %v5991_v26 = vpop.f32.mrb[88].mxu0 }
0x1af0   :  { %v5998_v32 = vadd.f32 %v5991_v26, %v3897_v11  ;;  %v13303_v50 = vpop.f32.mrb[73].mxu1  ;;  %v5993_v49 = vpop.f32.mrb[89].mxu0  ;;  %v13364_v11 = vld [vmem:[#allocation6 + $0x140] ss:$8 sps:$4 sm:$0xff]   ;;  %v13367_v26 = vld [vmem:[#allocation6 + $0x154] ss:$8 sps:$4 sm:$0xff]  }
0x1af1   :  { %v5854_v12 = vpop.f32.mrb[74].mxu1  ;;  %v5995_v1 = vpop.f32.mrb[90].mxu0  ;;  %v5999_v60 = vadd.f32 %v12968_v33, %v5993_v49  ;;  %v4193_v49 = vadd.f32 %v12929_v35, %v12923_v20  ;;  %v11373_v35 = vld [vmem:[#allocation6 + $0x174] ss:$8 sps:$4 sm:$0xff]  }
0x1af2   :  { %v10615_v52 = vmul.f32 -1.442695, %v5998_v32  ;;  %v5855_v30 = vpop.f32.mrb[75].mxu1  ;;  %v5996_v31 = vpop.f32.mrb[91].mxu0  ;;  %v13370_v32 = vld [vmem:[#allocation6 + $0x150] ss:$8 sps:$4 sm:$0xff]  }
0x1af4   :  { %11628 = vpow2.f32 %v10615_v52 }
0x1afe   :  { %v11629_v8 = vpop.eup %11628 }
0x1aff   :  { %v6003_v27 = vadd.f32 1.0, %v11629_v8 }
0x1b01   :  { %11630 = vrcp.f32 %v6003_v27 }
0x1b0b   :  { %v11631_v43 = vpop.eup %11630 }
0x1b0c   :  { %v6008_v21 = vmul.f32 %v11631_v43, %v5999_v60  ;;  %6006 = vrot.lane.b32.xlu0 %v11631_v43, %s11828_s2 }
0x1b0e   :  { %v6009_v28 = vadd.f32 %v6008_v21, %v3899_v0  ;;  %v11370_v21 = vld [vmem:[#allocation6 + $0x164] ss:$8 sps:$4 sm:$0xff]  }
0x1b10   :  { %11632 = vtanh.f32 %v6009_v28 }
0x1b1a   :  { %v11633_v22 = vpop.eup %11632 }
0x1b7e   :  { %v6007_v29 = vpop.permute.xlu0 %6006 }
0x1b7f   :  { %v6011_v41 = vsub.f32 1.0, %v6007_v29  ;;  %v6013_v10 = vmul.f32 %v6007_v29, %v13242_v61  ;;  %v13358_v61 = vld [vmem:[#allocation6 + $0x130] ss:$8 sps:$4 sm:$0xff]   ;;  %v11368_v29 = vld [vmem:[#allocation6 + $0x160] ss:$8 sps:$4 sm:$0xff]  }
0x1b81   :  { %v6012_v47 = vmul.f32 %v11633_v22, %v6011_v41  ;;  %v11371_v22 = vld [vmem:[#allocation6 + $0x170] ss:$8 sps:$4 sm:$0xff]  }
0x1b83   :  { %v13319_v38 = vadd.f32 %v6013_v10, %v6012_v47 }
0x1b85   :  { %v6015_v16 = vpack.c.bf16 %v13319_v38, %v13319_v38 }
0x1b87   :  { %6145 = vmatmul.mubr.bf16.vlgmr.msra.gmra.mrb[76].mxu1 %v6015_v16  ;;  %6286 = vmatmul.mubr.bf16.vlgmr.msra.gmra.mrb[92].mxu0 %v6015_v16  ;;  %v4195_v16 = vadd.f32 %v12931_v14, %v12971_v24  ;;  %v10482_v14 = vld [vmem:[%s14222_s3 + $0x6] sm:$0x3] }
0x1b88   :  { %6409 = vmatpush1.bf16.msra.mxu1 %v13263_v19  ;;  %6440 = vmatprep.mubr.bf16.mxu1 %v14235_v59 }
0x1b89   :  { %6410 = vmatprep.subr.bf16.mxu1 %v13267_v45  ;;  %6581 = vmatprep.mubr.bf16.mxu0 %v14235_v59 }
0x1b8a   :  { %6550 = vmatpush1.bf16.msra.mxu0 %v13341_v58 }
0x1b8b   :  { %6551 = vmatprep.subr.bf16.mxu0 %v13343_v15 }
0x1b8c   :  { %6411 = vmatpush1.bf16.msra.mxu1 %v13271_v6 }
0x1b8d   :  { %6412 = vmatprep.subr.bf16.mxu1 %v13274_v9 }
0x1b8e   :  { %6552 = vmatpush1.bf16.msra.mxu0 %v13346_v37 }
0x1b8f   :  { %6553 = vmatprep.subr.bf16.mxu0 %v13349_v25 }
0x1b90   :  { %6413 = vmatpush1.bf16.msra.mxu1 %v13277_v62 }
0x1b91   :  { %6414 = vmatprep.subr.bf16.mxu1 %v13280_v18 }
0x1b92   :  { %6554 = vmatpush1.bf16.msra.mxu0 %v13352_v56 }
0x1b93   :  { %6555 = vmatprep.subr.bf16.mxu0 %v13355_v5 }
0x1b94   :  { %6415 = vmatpush1.bf16.msra.mxu1 %v13283_v4 }
0x1b95   :  { %6416 = vmatprep.subr.bf16.mxu1 %v13286_v3 }
0x1b96   :  { %6556 = vmatpush1.bf16.msra.mxu0 %v13358_v61 }
0x1b97   :  { %6557 = vmatprep.subr.bf16.mxu0 %v13361_v7 }
0x1b98   :  { %6417 = vmatpush1.bf16.msra.mxu1 %v13289_v55 }
0x1b99   :  { %6418 = vmatprep.subr.bf16.mxu1 %v13292_v2 }
0x1b9a   :  { %6558 = vmatpush1.bf16.msra.mxu0 %v13364_v11 }
0x1b9b   :  { %6559 = vmatprep.subr.bf16.mxu0 %v13367_v26 }
0x1b9c   :  { %6419 = vmatpush1.bf16.msra.mxu1 %v13295_v34 }
0x1b9d   :  { %6420 = vmatprep.subr.bf16.mxu1 %v13305_v23 }
0x1b9e   :  { %6560 = vmatpush1.bf16.msra.mxu0 %v13370_v32 }
0x1b9f   :  { %6561 = vmatprep.subr.bf16.mxu0 %v11370_v21 }
0x1ba0   :  { %6421 = vmatpush1.bf16.msra.mxu1 %v13307_v44 }
0x1ba1   :  { %6422 = vmatprep.subr.bf16.mxu1 %v13231_v36 }
0x1ba2   :  { %6562 = vmatpush1.bf16.msra.mxu0 %v11368_v29 }
0x1ba3   :  { %6563 = vmatprep.subr.bf16.mxu0 %v11373_v35 }
0x1ba4   :  { %6423 = vmatpush1.bf16.msra.mxu1 %v13233_v63 }
0x1ba5   :  { %6704 = vmatprep.subr.bf16.mxu1 %v13265_v54 }
0x1ba6   :  { %6564 = vmatpush1.bf16.msra.mxu0 %v11371_v22 }
0x1ba7   :  { %6845 = vmatprep.subr.bf16.mxu0 %v11352_v40  ;;  %v4489_v40 = vadd.f32 %v13049_v13, %v12923_v20  ;;  %v13432_v13 = vld [vmem:[#allocation4 + $0x204] ss:$8 sps:$4 sm:$0xff]  }
0x1c5a   :  { %v13376_v12 = vpop.f32.mrb[76].mxu1  ;;  %v6287_v1 = vpop.f32.mrb[92].mxu0 }
0x1c5b   :  { %v6294_v52 = vadd.f32 %v6287_v1, %v4193_v49  ;;  %v13378_v30 = vpop.f32.mrb[77].mxu1  ;;  %v6289_v31 = vpop.f32.mrb[93].mxu0 }
0x1c5c   :  { %v6150_v8 = vpop.f32.mrb[78].mxu1  ;;  %v6291_v27 = vpop.f32.mrb[94].mxu0  ;;  %v6295_v47 = vadd.f32 %v12968_v33, %v6289_v31 }
0x1c5d   :  { %v10648_v60 = vmul.f32 -1.442695, %v6294_v52  ;;  %v6151_v43 = vpop.f32.mrb[79].mxu1  ;;  %v6292_v0 = vpop.f32.mrb[95].mxu0 }
0x1c5f   :  { %11634 = vpow2.f32 %v10648_v60 }
0x1c69   :  { %v11635_v28 = vpop.eup %11634 }
0x1c6a   :  { %v6299_v41 = vadd.f32 1.0, %v11635_v28 }
0x1c6c   :  { %11636 = vrcp.f32 %v6299_v41  ;;  %v14250_v41 = vld [vmem:[#allocation12_spill] sm:$0xff] }
0x1c76   :  { %v11637_v10 = vpop.eup %11636 }
0x1c77   :  { %v6304_v49 = vmul.f32 %v11637_v10, %v6295_v47  ;;  %6302 = vrot.lane.b32.xlu1 %v11637_v10, %s11828_s2 }
0x1c79   :  { %v6305_v1 = vadd.f32 %v6304_v49, %v4195_v16 }
0x1c7b   :  { %11638 = vtanh.f32 %v6305_v1 }
0x1c85   :  { %v11639_v27 = vpop.eup %11638 }
0x1ce9   :  { %v6303_v52 = vpop.permute.xlu1 %6302 }
0x1cea   :  { %v6307_v8 = vsub.f32 1.0, %v6303_v52  ;;  %v6309_v43 = vmul.f32 %v6303_v52, %v13319_v38  ;;  %v13422_v38 = vrot.slane %v10482_v14, %v12016_v51 }
0x1cec   :  { %v6308_v60 = vmul.f32 %v11639_v27, %v6307_v8 }
0x1cee   :  { %v13385_v0 = vadd.f32 %v6309_v43, %v6308_v60  ;;  %v13448_v60 = vld [vmem:[#allocation4 + $0x200] ss:$8 sps:$4 sm:$0xff]  }
0x1cf0   :  { %v6311_v33 = vpack.c.bf16 %v13385_v0, %v13385_v0 }
0x1cf2   :  { %6441 = vmatmul.mubr.bf16.vlgmr.msra.gmra.mrb[80].mxu1 %v6311_v33  ;;  %6582 = vmatmul.mubr.bf16.vlgmr.msra.gmra.mrb[96].mxu0 %v6311_v33  ;;  %v13452_v33 = vld [vmem:[#allocation4 + $0x214] ss:$8 sps:$4 sm:$0xff]  }
0x1cf3   :  { %6846 = vmatpush1.bf16.msra.mxu0 %v13341_v58  ;;  %6705 = vmatpush1.bf16.msra.mxu1 %v13263_v19  ;;  %v4962_v58 = vadd.f32 %v13060_v57, %v13422_v38 }
0x1cf4   :  { %6847 = vmatprep.subr.bf16.mxu0 %v13343_v15  ;;  %6706 = vmatprep.subr.bf16.mxu1 %v13267_v45 }
0x1cf5   :  { %6736 = vmatprep.mubr.bf16.mxu1 %v14235_v59  ;;  %6877 = vmatprep.mubr.bf16.mxu0 %v14235_v59  ;;  %v10734_v15 = vmul.f32 -1.442695, %v4962_v58  ;;  %v13455_v58 = vld [vmem:[#allocation4 + $0x210] ss:$8 sps:$4 sm:$0xff]  }
0x1cf7   :  { %6848 = vmatpush1.bf16.msra.mxu0 %v13346_v37  ;;  %6707 = vmatpush1.bf16.msra.mxu1 %v13271_v6  ;;  %11640 = vpow2.f32 %v10734_v15  ;;  %v14251_v15 = vld [vmem:[#allocation11_spill] sm:$0xff] }
0x1cf8   :  { %6849 = vmatprep.subr.bf16.mxu0 %v13349_v25  ;;  %6708 = vmatprep.subr.bf16.mxu1 %v13274_v9 }
0x1cfb   :  { %6850 = vmatpush1.bf16.msra.mxu0 %v13352_v56  ;;  %6709 = vmatpush1.bf16.msra.mxu1 %v13277_v62 }
0x1cfc   :  { %6851 = vmatprep.subr.bf16.mxu0 %v13355_v5  ;;  %6710 = vmatprep.subr.bf16.mxu1 %v13280_v18 }
0x1cff   :  { %6852 = vmatpush1.bf16.msra.mxu0 %v13358_v61  ;;  %6711 = vmatpush1.bf16.msra.mxu1 %v13283_v4 }
0x1d00   :  { %6853 = vmatprep.subr.bf16.mxu0 %v13361_v7  ;;  %6712 = vmatprep.subr.bf16.mxu1 %v13286_v3 }
0x1d03   :  { %6854 = vmatpush1.bf16.msra.mxu0 %v13364_v11  ;;  %6713 = vmatpush1.bf16.msra.mxu1 %v13289_v55 }
0x1d04   :  { %6855 = vmatprep.subr.bf16.mxu0 %v13367_v26  ;;  %6714 = vmatprep.subr.bf16.mxu1 %v13292_v2  ;;  %v11641_v26 = vpop.eup %11640 }
0x1d05   :  { %v7069_v31 = vadd.f32 1.0, %v11641_v26 }
0x1d07   :  { %6856 = vmatpush1.bf16.msra.mxu0 %v13370_v32  ;;  %6715 = vmatpush1.bf16.msra.mxu1 %v13295_v34 }
0x1d08   :  { %6857 = vmatprep.subr.bf16.mxu0 %v11370_v21  ;;  %6716 = vmatprep.subr.bf16.mxu1 %v13305_v23  ;;  %v13438_v21 = vld [vmem:[%s14223_s4 + $0x2] ss:$0 sm:$0xff] }
0x1d0b   :  { %6858 = vmatpush1.bf16.msra.mxu0 %v11368_v29  ;;  %6717 = vmatpush1.bf16.msra.mxu1 %v13307_v44 }
0x1d0c   :  { %6859 = vmatprep.subr.bf16.mxu0 %v11373_v35  ;;  %6718 = vmatprep.subr.bf16.mxu1 %v13231_v36  ;;  %v4491_v35 = vadd.f32 %v14250_v41, %v12971_v24 }
0x1d0f   :  { %6860 = vmatpush1.bf16.msra.mxu0 %v11371_v22  ;;  %6719 = vmatpush1.bf16.msra.mxu1 %v13233_v63 }
0x1d10   :  { %7000 = vmatprep.subr.bf16.mxu1 %v13265_v54  ;;  %7177 = vmatprep.subr.bf16.mxu0 %v13432_v13 }
0x1dc5   :  { %v13428_v36 = vpop.f32.mrb[80].mxu1  ;;  %v6583_v37 = vpop.f32.mrb[96].mxu0 }
0x1dc6   :  { %v6590_v63 = vadd.f32 %v6583_v37, %v4489_v40  ;;  %v13430_v25 = vpop.f32.mrb[81].mxu1  ;;  %v6585_v54 = vpop.f32.mrb[97].mxu0  ;;  %v13467_v40 = vld [vmem:[%s14223_s4 + $0x3] ss:$0 sm:$0xff]  ;;  %v13470_v37 = vrot.slane %v10482_v14, %v14251_v15  ;;  %v13484_v14 = vld [vmem:[#allocation4 + $0x230] ss:$8 sps:$4 sm:$0xff]  }
0x1dc7   :  { %v6446_v56 = vpop.f32.mrb[82].mxu1  ;;  %v6587_v5 = vpop.f32.mrb[98].mxu0  ;;  %v6591_v28 = vadd.f32 %v13438_v21, %v6585_v54  ;;  %v13476_v54 = vld [vmem:[#allocation4 + $0x234] ss:$8 sps:$4 sm:$0xff]  }
0x1dc8   :  { %v10681_v61 = vmul.f32 -1.442695, %v6590_v63  ;;  %v6447_v7 = vpop.f32.mrb[83].mxu1  ;;  %v6588_v11 = vpop.f32.mrb[99].mxu0  ;;  %v13473_v63 = vld [vmem:[#allocation4 + $0x220] ss:$8 sps:$4 sm:$0xff]  }
0x1dc9   :  { %v13487_v5 = vld [vmem:[#allocation4 + $0x244] ss:$8 sps:$4 sm:$0xff]   ;;  %v13500_v7 = vld [vmem:[#allocation4 + $0x250] ss:$8 sps:$4 sm:$0xff]   ;;  %v13508_v11 = vld [vmem:[#allocation4 + $0x260] ss:$8 sps:$4 sm:$0xff]  }
0x1dca   :  { %11642 = vpow2.f32 %v10681_v61 }
0x1dd4   :  { %v11643_v57 = vpop.eup %11642 }
0x1dd5   :  { %v6595_v32 = vadd.f32 1.0, %v11643_v57 }
0x1dd7   :  { %11644 = vrcp.f32 %v6595_v32 }
0x1dd8   :  { %11646 = vrcp.f32 %v7069_v31 }
0x1de1   :  { %v11645_v29 = vpop.eup %11644 }
0x1de2   :  { %v6600_v22 = vmul.f32 %v11645_v29, %v6591_v28  ;;  %6598 = vrot.lane.b32.xlu0 %v11645_v29, %s11828_s2  ;;  %v11647_v10 = vpop.eup %11646 }
0x1de4   :  { %v6601_v47 = vadd.f32 %v6600_v22, %v4491_v35 }
0x1de6   :  { %7072 = vrot.lane.b32.xlu0 %v11647_v10, %s11828_s2  ;;  %11648 = vtanh.f32 %v6601_v47 }
0x1df0   :  { %v11649_v1 = vpop.eup %11648 }
0x1e54   :  { %v6599_v16 = vpop.permute.xlu0 %6598 }
0x1e55   :  { %v6603_v49 = vsub.f32 1.0, %v6599_v16  ;;  %v6605_v8 = vmul.f32 %v6599_v16, %v13385_v0  ;;  %v13459_v0 = vld [vmem:[#allocation4 + $0x224] ss:$8 sps:$4 sm:$0xff]  }
0x1e57   :  { %v6604_v52 = vmul.f32 %v11649_v1, %v6603_v49  ;;  %v11400_v1 = vld [vmem:[#allocation4 + $0x1f4] ss:$8 sps:$4 sm:$0xff]  }
0x1e59   :  { %v13446_v27 = vadd.f32 %v6605_v8, %v6604_v52  ;;  %v11398_v52 = vld [vmem:[#allocation4 + $0x1f0] ss:$8 sps:$4 sm:$0xff]  }
0x1e5b   :  { %v6607_v43 = vpack.c.bf16 %v13446_v27, %v13446_v27 }
0x1e5d   :  { %6737 = vmatmul.mubr.bf16.vlgmr.msra.gmra.mrb[84].mxu1 %v6607_v43  ;;  %6878 = vmatmul.mubr.bf16.vlgmr.msra.gmra.mrb[100].mxu0 %v6607_v43 }
0x1e5e   :  { %7178 = vmatpush1.bf16.msra.mxu0 %v13448_v60  ;;  %7209 = vmatprep.mubr.bf16.mxu0 %v14235_v59 }
0x1e5f   :  { %7179 = vmatprep.subr.bf16.mxu0 %v13452_v33  ;;  %7001 = vmatpush1.bf16.msra.mxu1 %v13263_v19  ;;  %v7074_v19 = vmul.f32 %v11647_v10, %v13467_v40 }
0x1e60   :  { %7002 = vmatprep.subr.bf16.mxu1 %v13267_v45  ;;  %7032 = vmatprep.mubr.bf16.mxu1 %v14235_v59  ;;  %v14252_v45 = vld [vmem:[#allocation13_spill] sm:$0xff] }
0x1e61   :  { %v4964_v56 = vadd.f32 %v14252_v45, %v13470_v37 }
0x1e62   :  { %7180 = vmatpush1.bf16.msra.mxu0 %v13455_v58 }
0x1e63   :  { %7181 = vmatprep.subr.bf16.mxu0 %v13459_v0  ;;  %7003 = vmatpush1.bf16.msra.mxu1 %v13271_v6  ;;  %v7075_v61 = vadd.f32 %v7074_v19, %v4964_v56  ;;  %v13492_v6 = vld [vmem:[#allocation4 + $0x240] ss:$8 sps:$4 sm:$0xff]   ;;  %v4787_v19 = vadd.f32 %v13132_v39, %v12971_v24  ;;  %v13566_v39 = vld [vmem:[#allocation6 + $0x194] ss:$8 sps:$4 sm:$0xff]  }
0x1e64   :  { %7004 = vmatprep.subr.bf16.mxu1 %v13274_v9  ;;  %v13495_v9 = vld [vmem:[#allocation4 + $0x254] ss:$8 sps:$4 sm:$0xff]  }
0x1e65   :  { %11650 = vtanh.f32 %v7075_v61 }
0x1e66   :  { %7182 = vmatpush1.bf16.msra.mxu0 %v13473_v63 }
0x1e67   :  { %7183 = vmatprep.subr.bf16.mxu0 %v13476_v54  ;;  %7005 = vmatpush1.bf16.msra.mxu1 %v13277_v62  ;;  %v13503_v62 = vld [vmem:[#allocation4 + $0x264] ss:$8 sps:$4 sm:$0xff]  }
0x1e68   :  { %7006 = vmatprep.subr.bf16.mxu1 %v13280_v18  ;;  %v7073_v18 = vpop.permute.xlu0 %7072 }
0x1e6a   :  { %7184 = vmatpush1.bf16.msra.mxu0 %v13484_v14 }
0x1e6b   :  { %7185 = vmatprep.subr.bf16.mxu0 %v13487_v5  ;;  %7007 = vmatpush1.bf16.msra.mxu1 %v13283_v4  ;;  %v7077_v4 = vsub.f32 1.0, %v7073_v18 }
0x1e6c   :  { %7008 = vmatprep.subr.bf16.mxu1 %v13286_v3  ;;  %v13511_v3 = vld [vmem:[#allocation4 + $0x274] ss:$8 sps:$4 sm:$0xff]  }
0x1e6e   :  { %7186 = vmatpush1.bf16.msra.mxu0 %v13492_v6 }
0x1e6f   :  { %7187 = vmatprep.subr.bf16.mxu0 %v13495_v9  ;;  %7009 = vmatpush1.bf16.msra.mxu1 %v13289_v55  ;;  %v11651_v26 = vpop.eup %11650  ;;  %v13516_v55 = vld [vmem:[#allocation4 + $0x270] ss:$8 sps:$4 sm:$0xff]  }
0x1e70   :  { %7010 = vmatprep.subr.bf16.mxu1 %v13292_v2  ;;  %v13518_v57 = vmul.f32 %v11651_v26, %v7077_v4 }
0x1e72   :  { %7188 = vmatpush1.bf16.msra.mxu0 %v13500_v7  ;;  %v13525_v2 = vpack.c.bf16 %v13518_v57, %v13518_v57 }
0x1e73   :  { %7189 = vmatprep.subr.bf16.mxu0 %v13503_v62  ;;  %7011 = vmatpush1.bf16.msra.mxu1 %v13295_v34  ;;  %v14253_v34 = vld [vmem:[#allocation14_spill] sm:$0xff] }
0x1e74   :  { %7012 = vmatprep.subr.bf16.mxu1 %v13305_v23  ;;  %v4785_v23 = vadd.f32 %v14253_v34, %v12923_v20  ;;  %v13552_v20 = vld [vmem:[#allocation6 + $0x184] ss:$8 sps:$4 sm:$0xff]  }
0x1e76   :  { %7190 = vmatpush1.bf16.msra.mxu0 %v13508_v11 }
0x1e77   :  { %7191 = vmatprep.subr.bf16.mxu0 %v13511_v3  ;;  %7013 = vmatpush1.bf16.msra.mxu1 %v13307_v44 }
0x1e78   :  { %7014 = vmatprep.subr.bf16.mxu1 %v11400_v1  ;;  %v13591_v1 = vld [vmem:[#allocation6 + $0x1d4] ss:$8 sps:$4 sm:$0xff]  }
0x1e7a   :  { %7192 = vmatpush1.bf16.msra.mxu0 %v13516_v55 }
0x1e7b   :  { %7474 = vmatprep.subr.bf16.mxu0 %v13432_v13  ;;  %7015 = vmatpush1.bf16.msra.mxu1 %v11398_v52  ;;  %v13594_v52 = vld [vmem:[#allocation6 + $0x1d0] ss:$8 sps:$4 sm:$0xff]  }
0x1e7c   :  { %7319 = vmatprep.subr.bf16.mxu1 %v13552_v20 }
0x1e7d   :  { %7210 = vmatmul.mubr.bf16.vlgmr.msra.gmra.mrb[104].mxu0 %v13525_v2 }
0x1e7e   :  { %7475 = vmatpush1.bf16.msra.mxu0 %v13448_v60  ;;  %7506 = vmatprep.mubr.bf16.mxu0 %v14235_v59 }
0x1e7f   :  { %7476 = vmatprep.subr.bf16.mxu0 %v13452_v33 }
0x1e82   :  { %7477 = vmatpush1.bf16.msra.mxu0 %v13455_v58 }
0x1e83   :  { %7478 = vmatprep.subr.bf16.mxu0 %v13459_v0 }
0x1e86   :  { %7479 = vmatpush1.bf16.msra.mxu0 %v13473_v63 }
0x1e87   :  { %7480 = vmatprep.subr.bf16.mxu0 %v13476_v54 }
0x1e8a   :  { %7481 = vmatpush1.bf16.msra.mxu0 %v13484_v14 }
0x1e8b   :  { %7482 = vmatprep.subr.bf16.mxu0 %v13487_v5 }
0x1e8e   :  { %7483 = vmatpush1.bf16.msra.mxu0 %v13492_v6 }
0x1e8f   :  { %7484 = vmatprep.subr.bf16.mxu0 %v13495_v9 }
0x1e92   :  { %7485 = vmatpush1.bf16.msra.mxu0 %v13500_v7 }
0x1e93   :  { %7486 = vmatprep.subr.bf16.mxu0 %v13503_v62 }
0x1e96   :  { %7487 = vmatpush1.bf16.msra.mxu0 %v13508_v11 }
0x1e97   :  { %7488 = vmatprep.subr.bf16.mxu0 %v13511_v3 }
0x1e9a   :  { %7489 = vmatpush1.bf16.msra.mxu0 %v13516_v55 }
0x1e9b   :  { %7770 = vmatprep.subr.bf16.mxu0 %v13432_v13 }
0x1f30   :  { %v13548_v44 = vpop.f32.mrb[84].mxu1  ;;  %v6879_v32 = vpop.f32.mrb[100].mxu0 }
0x1f31   :  { %v6886_v31 = vadd.f32 %v6879_v32, %v4785_v23  ;;  %v13550_v28 = vpop.f32.mrb[85].mxu1  ;;  %v6881_v29 = vpop.f32.mrb[101].mxu0 }
0x1f32   :  { %14254 = vst [vmem:[#allocation12_spill] sm:$0xff] %v13550_v28  ;;  %v6742_v41 = vpop.f32.mrb[86].mxu1  ;;  %v6883_v35 = vpop.f32.mrb[102].mxu0  ;;  %v6887_v8 = vadd.f32 %v13438_v21, %v6881_v29 }
0x1f33   :  { %v10714_v22 = vmul.f32 -1.442695, %v6886_v31  ;;  %v6743_v47 = vpop.f32.mrb[87].mxu1  ;;  %v6884_v10 = vpop.f32.mrb[103].mxu0  ;;  %v13564_v41 = vld [vmem:[#allocation6 + $0x180] ss:$8 sps:$4 sm:$0xff]  }
0x1f34   :  { %v13569_v35 = vld [vmem:[#allocation6 + $0x190] ss:$8 sps:$4 sm:$0xff]   ;;  %v13579_v47 = vld [vmem:[#allocation6 + $0x1b4] ss:$8 sps:$4 sm:$0xff]  }
0x1f35   :  { %11652 = vpow2.f32 %v10714_v22  ;;  %v13573_v22 = vld [vmem:[#allocation6 + $0x1a4] ss:$8 sps:$4 sm:$0xff]   ;;  %v13582_v10 = vld [vmem:[#allocation6 + $0x1b0] ss:$8 sps:$4 sm:$0xff]  }
0x1f3f   :  { %v11653_v16 = vpop.eup %11652 }
0x1f40   :  { %v6891_v49 = vadd.f32 1.0, %v11653_v16  ;;  %v13585_v16 = vld [vmem:[#allocation6 + $0x1c4] ss:$8 sps:$4 sm:$0xff]  }
0x1f42   :  { %11654 = vrcp.f32 %v6891_v49  ;;  %v13588_v49 = vld [vmem:[#allocation6 + $0x1c0] ss:$8 sps:$4 sm:$0xff]  }
0x1f4c   :  { %v11655_v43 = vpop.eup %11654 }
0x1f4d   :  { %v6896_v45 = vmul.f32 %v11655_v43, %v6887_v8  ;;  %6894 = vrot.lane.b32.xlu1 %v11655_v43, %s11828_s2  ;;  %v13597_v8 = vld [vmem:[#allocation6 + $0x1e4] ss:$8 sps:$4 sm:$0xff]   ;;  %v13600_v43 = vld [vmem:[#allocation6 + $0x1e0] ss:$8 sps:$4 sm:$0xff]  }
0x1f4f   :  { %v6897_v56 = vadd.f32 %v6896_v45, %v4787_v19  ;;  %v13603_v19 = vld [vmem:[#allocation6 + $0x1f4] ss:$8 sps:$4 sm:$0xff]   ;;  %v13606_v45 = vld [vmem:[#allocation6 + $0x1f0] ss:$8 sps:$4 sm:$0xff]  }
0x1f50   :  { %v13559_v61 = vpop.f32.mrb[104].mxu0 }
0x1f51   :  { %v13561_v18 = vpop.f32.mrb[105].mxu0  ;;  %11656 = vtanh.f32 %v6897_v56 }
0x1f52   :  { %14255 = vst [vmem:[#allocation13_spill] sm:$0xff] %v13561_v18  ;;  %v7215_v4 = vpop.f32.mrb[106].mxu0 }
0x1f53   :  { %v7216_v26 = vpop.f32.mrb[107].mxu0 }
0x1f5b   :  { %v11657_v32 = vpop.eup %11656 }
0x1fbf   :  { %v6895_v34 = vpop.permute.xlu1 %6894 }
0x1fc0   :  { %v6899_v23 = vsub.f32 1.0, %v6895_v34  ;;  %v6901_v21 = vmul.f32 %v6895_v34, %v13446_v27  ;;  %v13576_v27 = vld [vmem:[#allocation6 + $0x1a0] ss:$8 sps:$4 sm:$0xff]   ;;  %v5259_v34 = vadd.f32 %v13181_v48, %v13422_v38 }
0x1fc2   :  { %v6900_v31 = vmul.f32 %v11657_v32, %v6899_v23 }
0x1fc4   :  { %v6902_v29 = vadd.f32 %v6901_v21, %v6900_v31 }
0x1fc6   :  { %v6903_v24 = vpack.c.bf16 %v6902_v29, %v6902_v29 }
0x1fc8   :  { %7033 = vmatmul.mubr.bf16.vlgmr.msra.gmra.mrb[88].mxu1 %v6903_v24 }
0x1fc9   :  { %7320 = vmatpush1.bf16.msra.mxu1 %v13564_v41  ;;  %7351 = vmatprep.mubr.bf16.mxu1 %v14235_v59 }
0x1fca   :  { %7321 = vmatprep.subr.bf16.mxu1 %v13566_v39 }
0x1fcd   :  { %7322 = vmatpush1.bf16.msra.mxu1 %v13569_v35 }
0x1fce   :  { %7323 = vmatprep.subr.bf16.mxu1 %v13573_v22 }
0x1fd1   :  { %7324 = vmatpush1.bf16.msra.mxu1 %v13576_v27 }
0x1fd2   :  { %7325 = vmatprep.subr.bf16.mxu1 %v13579_v47 }
0x1fd5   :  { %7326 = vmatpush1.bf16.msra.mxu1 %v13582_v10 }
0x1fd6   :  { %7327 = vmatprep.subr.bf16.mxu1 %v13585_v16 }
0x1fd9   :  { %7328 = vmatpush1.bf16.msra.mxu1 %v13588_v49 }
0x1fda   :  { %7329 = vmatprep.subr.bf16.mxu1 %v13591_v1 }
0x1fdd   :  { %7330 = vmatpush1.bf16.msra.mxu1 %v13594_v52 }
0x1fde   :  { %7331 = vmatprep.subr.bf16.mxu1 %v13597_v8 }
0x1fe1   :  { %7332 = vmatpush1.bf16.msra.mxu1 %v13600_v43 }
0x1fe2   :  { %7333 = vmatprep.subr.bf16.mxu1 %v13603_v19 }
0x1fe5   :  { %7334 = vmatpush1.bf16.msra.mxu1 %v13606_v45 }
0x1fe6   :  { %7615 = vmatprep.subr.bf16.mxu1 %v13552_v20 }
0x1fe8   :  { %7352 = vmatmul.mubr.bf16.vlgmr.msra.gmra.mrb[92].mxu1 %v13525_v2 }
0x1fe9   :  { %7616 = vmatpush1.bf16.msra.mxu1 %v13564_v41  ;;  %7647 = vmatprep.mubr.bf16.mxu1 %v14235_v59 }
0x1fea   :  { %7617 = vmatprep.subr.bf16.mxu1 %v13566_v39 }
0x1fed   :  { %7618 = vmatpush1.bf16.msra.mxu1 %v13569_v35 }
0x1fee   :  { %7619 = vmatprep.subr.bf16.mxu1 %v13573_v22 }
0x1ff1   :  { %7620 = vmatpush1.bf16.msra.mxu1 %v13576_v27 }
0x1ff2   :  { %7621 = vmatprep.subr.bf16.mxu1 %v13579_v47 }
0x1ff5   :  { %7622 = vmatpush1.bf16.msra.mxu1 %v13582_v10 }
0x1ff6   :  { %7623 = vmatprep.subr.bf16.mxu1 %v13585_v16 }
0x1ff9   :  { %7624 = vmatpush1.bf16.msra.mxu1 %v13588_v49 }
0x1ffa   :  { %7625 = vmatprep.subr.bf16.mxu1 %v13591_v1 }
0x1ffd   :  { %7626 = vmatpush1.bf16.msra.mxu1 %v13594_v52 }
0x1ffe   :  { %7627 = vmatprep.subr.bf16.mxu1 %v13597_v8 }
0x2001   :  { %7628 = vmatpush1.bf16.msra.mxu1 %v13600_v43 }
0x2002   :  { %7629 = vmatprep.subr.bf16.mxu1 %v13603_v19 }
0x2005   :  { %7630 = vmatpush1.bf16.msra.mxu1 %v13606_v45 }
0x2006   :  { %7911 = vmatprep.subr.bf16.mxu1 %v13552_v20 }
0x209b   :  { %v13629_v2 = vpop.f32.mrb[88].mxu1 }
0x209c   :  { %14256 = vst [vmem:[#allocation14_spill] sm:$0xff] %v13629_v2  ;;  %v13631_v56 = vpop.f32.mrb[89].mxu1 }
0x209d   :  { %v7038_v4 = vpop.f32.mrb[90].mxu1 }
0x209e   :  { %v7039_v26 = vpop.f32.mrb[91].mxu1  ;;  %v5261_v4 = vadd.f32 %v13183_v53, %v13470_v37  ;;  %v5555_v53 = vadd.f32 %v13227_v46, %v13422_v38  ;;  %v5557_v46 = vadd.f32 %v13229_v17, %v13470_v37  ;;  %v5851_v17 = vadd.f32 %v13301_v42, %v13422_v38 }
0x20bb   :  { %v7353_v23 = vpop.f32.mrb[92].mxu1 }
0x20bc   :  { %v7360_v32 = vadd.f32 %v7353_v23, %v5259_v34  ;;  %v7355_v31 = vpop.f32.mrb[93].mxu1 }
0x20bd   :  { %v7357_v21 = vpop.f32.mrb[94].mxu1  ;;  %v7361_v28 = vadd.f32 %v13467_v40, %v7355_v31 }
0x20be   :  { %v10767_v29 = vmul.f32 -1.442695, %v7360_v32  ;;  %v7358_v24 = vpop.f32.mrb[95].mxu1 }
0x20c0   :  { %11658 = vpow2.f32 %v10767_v29 }
0x20ca   :  { %v11659_v18 = vpop.eup %11658 }
0x20cb   :  { %v7365_v15 = vadd.f32 1.0, %v11659_v18 }
0x20cd   :  { %11660 = vrcp.f32 %v7365_v15 }
0x20d7   :  { %v11661_v2 = vpop.eup %11660 }
0x20d8   :  { %v7370_v26 = vmul.f32 %v11661_v2, %v7361_v28  ;;  %7368 = vrot.lane.b32.xlu1 %v11661_v2, %s11828_s2 }
0x20da   :  { %v7371_v48 = vadd.f32 %v7370_v26, %v5261_v4 }
0x20dc   :  { %11662 = vtanh.f32 %v7371_v48 }
0x20e6   :  { %v11663_v21 = vpop.eup %11662 }
0x214a   :  { %v7369_v34 = vpop.permute.xlu1 %7368 }
0x214b   :  { %v7373_v23 = vsub.f32 1.0, %v7369_v34  ;;  %v7375_v29 = vmul.f32 %v7369_v34, %v13518_v57 }
0x214d   :  { %v7374_v32 = vmul.f32 %v11663_v21, %v7373_v23 }
0x214f   :  { %v13640_v24 = vadd.f32 %v7375_v29, %v7374_v32 }
0x2151   :  { %v7377_v15 = vpack.c.bf16 %v13640_v24, %v13640_v24 }
0x2153   :  { %7507 = vmatmul.mubr.bf16.vlgmr.msra.gmra.mrb[108].mxu0 %v7377_v15  ;;  %7648 = vmatmul.mubr.bf16.vlgmr.msra.gmra.mrb[96].mxu1 %v7377_v15 }
0x2154   :  { %7771 = vmatpush1.bf16.msra.mxu0 %v13448_v60  ;;  %7912 = vmatpush1.bf16.msra.mxu1 %v13564_v41 }
0x2155   :  { %7772 = vmatprep.subr.bf16.mxu0 %v13452_v33  ;;  %7913 = vmatprep.subr.bf16.mxu1 %v13566_v39 }
0x2156   :  { %7802 = vmatprep.mubr.bf16.mxu0 %v14235_v59  ;;  %7943 = vmatprep.mubr.bf16.mxu1 %v14235_v59 }
0x2158   :  { %7773 = vmatpush1.bf16.msra.mxu0 %v13455_v58  ;;  %7914 = vmatpush1.bf16.msra.mxu1 %v13569_v35 }
0x2159   :  { %7774 = vmatprep.subr.bf16.mxu0 %v13459_v0  ;;  %7915 = vmatprep.subr.bf16.mxu1 %v13573_v22 }
0x215c   :  { %7775 = vmatpush1.bf16.msra.mxu0 %v13473_v63  ;;  %7916 = vmatpush1.bf16.msra.mxu1 %v13576_v27 }
0x215d   :  { %7776 = vmatprep.subr.bf16.mxu0 %v13476_v54  ;;  %7917 = vmatprep.subr.bf16.mxu1 %v13579_v47 }
0x2160   :  { %7777 = vmatpush1.bf16.msra.mxu0 %v13484_v14  ;;  %7918 = vmatpush1.bf16.msra.mxu1 %v13582_v10 }
0x2161   :  { %7778 = vmatprep.subr.bf16.mxu0 %v13487_v5  ;;  %7919 = vmatprep.subr.bf16.mxu1 %v13585_v16 }
0x2164   :  { %7779 = vmatpush1.bf16.msra.mxu0 %v13492_v6  ;;  %7920 = vmatpush1.bf16.msra.mxu1 %v13588_v49 }
0x2165   :  { %7780 = vmatprep.subr.bf16.mxu0 %v13495_v9  ;;  %7921 = vmatprep.subr.bf16.mxu1 %v13591_v1 }
0x2168   :  { %7781 = vmatpush1.bf16.msra.mxu0 %v13500_v7  ;;  %7922 = vmatpush1.bf16.msra.mxu1 %v13594_v52 }
0x2169   :  { %7782 = vmatprep.subr.bf16.mxu0 %v13503_v62  ;;  %7923 = vmatprep.subr.bf16.mxu1 %v13597_v8 }
0x216c   :  { %7783 = vmatpush1.bf16.msra.mxu0 %v13508_v11  ;;  %7924 = vmatpush1.bf16.msra.mxu1 %v13600_v43 }
0x216d   :  { %7784 = vmatprep.subr.bf16.mxu0 %v13511_v3  ;;  %7925 = vmatprep.subr.bf16.mxu1 %v13603_v19 }
0x2170   :  { %7785 = vmatpush1.bf16.msra.mxu0 %v13516_v55  ;;  %7926 = vmatpush1.bf16.msra.mxu1 %v13606_v45 }
0x2171   :  { %8066 = vmatprep.subr.bf16.mxu0 %v13432_v13  ;;  %8207 = vmatprep.subr.bf16.mxu1 %v13552_v20 }
0x2226   :  { %v13680_v57 = vpop.f32.mrb[108].mxu0  ;;  %v7649_v28 = vpop.f32.mrb[96].mxu1 }
0x2227   :  { %v7656_v18 = vadd.f32 %v7649_v28, %v5555_v53  ;;  %v13682_v2 = vpop.f32.mrb[109].mxu0  ;;  %v7651_v3 = vpop.f32.mrb[97].mxu1 }
0x2228   :  { %v7512_v31 = vpop.f32.mrb[110].mxu0  ;;  %v7653_v4 = vpop.f32.mrb[98].mxu1  ;;  %v7657_v23 = vadd.f32 %v13467_v40, %v7651_v3 }
0x2229   :  { %v10800_v26 = vmul.f32 -1.442695, %v7656_v18  ;;  %v7513_v55 = vpop.f32.mrb[111].mxu0  ;;  %v7654_v48 = vpop.f32.mrb[99].mxu1 }
0x222b   :  { %11664 = vpow2.f32 %v10800_v26  ;;  %v5853_v26 = vadd.f32 %v13303_v50, %v13470_v37  ;;  %v13762_v50 = vld [vmem:[#allocation4 + $0x200] ss:$8 sps:$4 sm:$0xff]  }
0x2235   :  { %v11665_v34 = vpop.eup %11664 }
0x2236   :  { %v7661_v13 = vadd.f32 1.0, %v11665_v34 }
0x2238   :  { %11666 = vrcp.f32 %v7661_v13 }
0x2242   :  { %v11667_v21 = vpop.eup %11666 }
0x2243   :  { %v7666_v32 = vmul.f32 %v11667_v21, %v7657_v23  ;;  %7664 = vrot.lane.b32.xlu0 %v11667_v21, %s11828_s2 }
0x2245   :  { %v7667_v29 = vadd.f32 %v7666_v32, %v5557_v46 }
0x2247   :  { %11668 = vtanh.f32 %v7667_v29 }
0x2251   :  { %v11669_v28 = vpop.eup %11668 }
0x22b5   :  { %v7665_v15 = vpop.permute.xlu0 %7664 }
0x22b6   :  { %v7669_v53 = vsub.f32 1.0, %v7665_v15  ;;  %v7671_v31 = vmul.f32 %v7665_v15, %v13640_v24 }
0x22b8   :  { %v7670_v18 = vmul.f32 %v11669_v28, %v7669_v53 }
0x22ba   :  { %v13689_v4 = vadd.f32 %v7671_v31, %v7670_v18 }
0x22bc   :  { %v7673_v3 = vpack.c.bf16 %v13689_v4, %v13689_v4 }
0x22be   :  { %7803 = vmatmul.mubr.bf16.vlgmr.msra.gmra.mrb[112].mxu0 %v7673_v3  ;;  %7944 = vmatmul.mubr.bf16.vlgmr.msra.gmra.mrb[100].mxu1 %v7673_v3 }
0x22bf   :  { %8067 = vmatpush1.bf16.msra.mxu0 %v13448_v60  ;;  %8208 = vmatpush1.bf16.msra.mxu1 %v13564_v41 }
0x22c0   :  { %8068 = vmatprep.subr.bf16.mxu0 %v13452_v33  ;;  %8209 = vmatprep.subr.bf16.mxu1 %v13566_v39 }
0x22c1   :  { %8098 = vmatprep.mubr.bf16.mxu0 %v14235_v59  ;;  %8239 = vmatprep.mubr.bf16.mxu1 %v14235_v59 }
0x22c3   :  { %8069 = vmatpush1.bf16.msra.mxu0 %v13455_v58  ;;  %8210 = vmatpush1.bf16.msra.mxu1 %v13569_v35 }
0x22c4   :  { %8070 = vmatprep.subr.bf16.mxu0 %v13459_v0  ;;  %8211 = vmatprep.subr.bf16.mxu1 %v13573_v22 }
0x22c7   :  { %8071 = vmatpush1.bf16.msra.mxu0 %v13473_v63  ;;  %8212 = vmatpush1.bf16.msra.mxu1 %v13576_v27 }
0x22c8   :  { %8072 = vmatprep.subr.bf16.mxu0 %v13476_v54  ;;  %8213 = vmatprep.subr.bf16.mxu1 %v13579_v47 }
0x22cb   :  { %8073 = vmatpush1.bf16.msra.mxu0 %v13484_v14  ;;  %8214 = vmatpush1.bf16.msra.mxu1 %v13582_v10 }
0x22cc   :  { %8074 = vmatprep.subr.bf16.mxu0 %v13487_v5  ;;  %8215 = vmatprep.subr.bf16.mxu1 %v13585_v16 }
0x22cf   :  { %8075 = vmatpush1.bf16.msra.mxu0 %v13492_v6  ;;  %8216 = vmatpush1.bf16.msra.mxu1 %v13588_v49 }
0x22d0   :  { %8076 = vmatprep.subr.bf16.mxu0 %v13495_v9  ;;  %8217 = vmatprep.subr.bf16.mxu1 %v13591_v1 }
0x22d3   :  { %8077 = vmatpush1.bf16.msra.mxu0 %v13500_v7  ;;  %8218 = vmatpush1.bf16.msra.mxu1 %v13594_v52 }
0x22d4   :  { %8078 = vmatprep.subr.bf16.mxu0 %v13503_v62  ;;  %8219 = vmatprep.subr.bf16.mxu1 %v13597_v8 }
0x22d7   :  { %8079 = vmatpush1.bf16.msra.mxu0 %v13508_v11  ;;  %8220 = vmatpush1.bf16.msra.mxu1 %v13600_v43  ;;  %v13730_v11 = vld [vmem:[#allocation4 + $0x274] ss:$8 sps:$4 sm:$0xff]  }
0x22d8   :  { %8221 = vmatprep.subr.bf16.mxu1 %v13603_v19  ;;  %8080 = vmatprep.subr.bf16.mxu0 %v13730_v11 }
0x22db   :  { %8222 = vmatpush1.bf16.msra.mxu1 %v13606_v45 }
0x22dc   :  { %8503 = vmatprep.subr.bf16.mxu1 %v13552_v20  ;;  %v13732_v20 = vld [vmem:[#allocation4 + $0x270] ss:$8 sps:$4 sm:$0xff]  }
0x22dd   :  { %8081 = vmatpush1.bf16.msra.mxu0 %v13732_v20 }
0x2391   :  { %v13726_v60 = vpop.f32.mrb[112].mxu0  ;;  %v7945_v33 = vpop.f32.mrb[100].mxu1 }
0x2392   :  { %v7952_v58 = vadd.f32 %v7945_v33, %v5851_v17  ;;  %v13728_v0 = vpop.f32.mrb[113].mxu0  ;;  %v7947_v63 = vpop.f32.mrb[101].mxu1  ;;  %v13804_v17 = vld [vmem:[#allocation4 + $0x264] ss:$8 sps:$4 sm:$0xff]  }
0x2393   :  { %v7808_v54 = vpop.f32.mrb[114].mxu0  ;;  %v7949_v14 = vpop.f32.mrb[102].mxu1  ;;  %v7953_v42 = vadd.f32 %v13467_v40, %v7947_v63 }
0x2394   :  { %v10833_v5 = vmul.f32 -1.442695, %v7952_v58  ;;  %v7809_v6 = vpop.f32.mrb[115].mxu0  ;;  %v7950_v9 = vpop.f32.mrb[103].mxu1  ;;  %v13806_v58 = vld [vmem:[#allocation4 + $0x260] ss:$8 sps:$4 sm:$0xff]   ;;  %v6149_v14 = vadd.f32 %v13378_v30, %v13470_v37 }
0x2395   :  { %v13840_v30 = vld [vmem:[#allocation6 + $0x180] ss:$8 sps:$4 sm:$0xff]  }
0x2396   :  { %11670 = vpow2.f32 %v10833_v5 }
0x23a0   :  { %v11671_v7 = vpop.eup %11670 }
0x23a1   :  { %v7957_v62 = vadd.f32 1.0, %v11671_v7 }
0x23a3   :  { %11672 = vrcp.f32 %v7957_v62 }
0x23ad   :  { %v11673_v24 = vpop.eup %11672 }
0x23ae   :  { %v7962_v55 = vmul.f32 %v11673_v24, %v7953_v42  ;;  %7960 = vrot.lane.b32.xlu1 %v11673_v24, %s11828_s2 }
0x23b0   :  { %v7963_v48 = vadd.f32 %v7962_v55, %v5853_v26 }
0x23b2   :  { %11674 = vtanh.f32 %v7963_v48  ;;  %v11451_v48 = vld [vmem:[#allocation6 + $0x184] ss:$8 sps:$4 sm:$0xff]  }
0x23bc   :  { %v11675_v23 = vpop.eup %11674 }
0x2420   :  { %v7961_v34 = vpop.permute.xlu1 %7960 }
0x2421   :  { %v7965_v13 = vsub.f32 1.0, %v7961_v34  ;;  %v7967_v46 = vmul.f32 %v7961_v34, %v13689_v4  ;;  %v13842_v34 = vld [vmem:[#allocation6 + $0x194] ss:$8 sps:$4 sm:$0xff]  }
0x2423   :  { %v7966_v21 = vmul.f32 %v11675_v23, %v7965_v13  ;;  %v13845_v13 = vld [vmem:[#allocation6 + $0x190] ss:$8 sps:$4 sm:$0xff]   ;;  %v13848_v23 = vld [vmem:[#allocation6 + $0x1a4] ss:$8 sps:$4 sm:$0xff]  }
0x2425   :  { %v13741_v32 = vadd.f32 %v7967_v46, %v7966_v21  ;;  %v13851_v21 = vld [vmem:[#allocation6 + $0x1a0] ss:$8 sps:$4 sm:$0xff]   ;;  %v13854_v46 = vld [vmem:[#allocation6 + $0x1b4] ss:$8 sps:$4 sm:$0xff]  }
0x2427   :  { %v7969_v29 = vpack.c.bf16 %v13741_v32, %v13741_v32 }
0x2429   :  { %8099 = vmatmul.mubr.bf16.vlgmr.msra.gmra.mrb[116].mxu0 %v7969_v29  ;;  %8240 = vmatmul.mubr.bf16.vlgmr.msra.gmra.mrb[104].mxu1 %v7969_v29  ;;  %v13860_v29 = vld [vmem:[#allocation6 + $0x1c4] ss:$8 sps:$4 sm:$0xff]  }
0x242a   :  { %8504 = vmatpush1.bf16.msra.mxu1 %v13564_v41  ;;  %8394 = vmatprep.mubr.bf16.mxu0 %v14235_v59  ;;  %v13764_v41 = vld [vmem:[#allocation4 + $0x204] ss:$8 sps:$4 sm:$0xff]  }
0x242b   :  { %8505 = vmatprep.subr.bf16.mxu1 %v13566_v39  ;;  %8535 = vmatprep.mubr.bf16.mxu1 %v14235_v59  ;;  %v13766_v39 = vld [vmem:[#allocation4 + $0x214] ss:$8 sps:$4 sm:$0xff]  }
0x242c   :  { %8362 = vmatprep.subr.bf16.mxu0 %v13764_v41 }
0x242d   :  { %8363 = vmatpush1.bf16.msra.mxu0 %v13762_v50 }
0x242e   :  { %8506 = vmatpush1.bf16.msra.mxu1 %v13569_v35  ;;  %v13770_v35 = vld [vmem:[#allocation4 + $0x210] ss:$8 sps:$4 sm:$0xff]   ;;  %8364 = vmatprep.subr.bf16.mxu0 %v13766_v39 }
0x242f   :  { %8507 = vmatprep.subr.bf16.mxu1 %v13573_v22  ;;  %v13773_v22 = vld [vmem:[#allocation4 + $0x224] ss:$8 sps:$4 sm:$0xff]  }
0x2431   :  { %8365 = vmatpush1.bf16.msra.mxu0 %v13770_v35 }
0x2432   :  { %8508 = vmatpush1.bf16.msra.mxu1 %v13576_v27  ;;  %v13776_v27 = vld [vmem:[#allocation4 + $0x220] ss:$8 sps:$4 sm:$0xff]   ;;  %8366 = vmatprep.subr.bf16.mxu0 %v13773_v22 }
0x2433   :  { %8509 = vmatprep.subr.bf16.mxu1 %v13579_v47  ;;  %v13779_v47 = vld [vmem:[#allocation4 + $0x234] ss:$8 sps:$4 sm:$0xff]  }
0x2435   :  { %8367 = vmatpush1.bf16.msra.mxu0 %v13776_v27 }
0x2436   :  { %8510 = vmatpush1.bf16.msra.mxu1 %v13582_v10  ;;  %v13782_v10 = vld [vmem:[#allocation4 + $0x230] ss:$8 sps:$4 sm:$0xff]   ;;  %8368 = vmatprep.subr.bf16.mxu0 %v13779_v47 }
0x2437   :  { %8511 = vmatprep.subr.bf16.mxu1 %v13585_v16  ;;  %v13785_v16 = vld [vmem:[#allocation4 + $0x244] ss:$8 sps:$4 sm:$0xff]  }
0x2439   :  { %8369 = vmatpush1.bf16.msra.mxu0 %v13782_v10 }
0x243a   :  { %8512 = vmatpush1.bf16.msra.mxu1 %v13588_v49  ;;  %v13788_v49 = vld [vmem:[#allocation4 + $0x240] ss:$8 sps:$4 sm:$0xff]   ;;  %8370 = vmatprep.subr.bf16.mxu0 %v13785_v16 }
0x243b   :  { %8513 = vmatprep.subr.bf16.mxu1 %v13591_v1  ;;  %v13791_v1 = vld [vmem:[#allocation4 + $0x254] ss:$8 sps:$4 sm:$0xff]  }
0x243d   :  { %8371 = vmatpush1.bf16.msra.mxu0 %v13788_v49 }
0x243e   :  { %8514 = vmatpush1.bf16.msra.mxu1 %v13594_v52  ;;  %v13794_v52 = vld [vmem:[#allocation4 + $0x250] ss:$8 sps:$4 sm:$0xff]   ;;  %8372 = vmatprep.subr.bf16.mxu0 %v13791_v1 }
0x243f   :  { %8515 = vmatprep.subr.bf16.mxu1 %v13597_v8  ;;  %v6147_v8 = vadd.f32 %v13376_v12, %v13422_v38 }
0x2441   :  { %8373 = vmatpush1.bf16.msra.mxu0 %v13794_v52 }
0x2442   :  { %8516 = vmatpush1.bf16.msra.mxu1 %v13600_v43  ;;  %8374 = vmatprep.subr.bf16.mxu0 %v13804_v17 }
0x2443   :  { %8517 = vmatprep.subr.bf16.mxu1 %v13603_v19 }
0x2445   :  { %8375 = vmatpush1.bf16.msra.mxu0 %v13806_v58 }
0x2446   :  { %8518 = vmatpush1.bf16.msra.mxu1 %v13606_v45  ;;  %8376 = vmatprep.subr.bf16.mxu0 %v13730_v11 }
0x2447   :  { %8799 = vmatprep.subr.bf16.mxu1 %v11451_v48 }
0x2449   :  { %8377 = vmatpush1.bf16.msra.mxu0 %v13732_v20 }
0x244a   :  { %8658 = vmatprep.subr.bf16.mxu0 %v13764_v41 }
0x24fc   :  { %v13800_v43 = vpop.f32.mrb[116].mxu0  ;;  %v8241_v19 = vpop.f32.mrb[104].mxu1 }
0x24fd   :  { %v8248_v45 = vadd.f32 %v8241_v19, %v6147_v8  ;;  %v13802_v15 = vpop.f32.mrb[117].mxu0  ;;  %v8243_v53 = vpop.f32.mrb[105].mxu1  ;;  %v13863_v8 = vld [vmem:[#allocation6 + $0x1c0] ss:$8 sps:$4 sm:$0xff]   ;;  %v13866_v19 = vld [vmem:[#allocation6 + $0x1d4] ss:$8 sps:$4 sm:$0xff]  }
0x24fe   :  { %v8104_v28 = vpop.f32.mrb[118].mxu0  ;;  %v8245_v18 = vpop.f32.mrb[106].mxu1  ;;  %v8249_v12 = vadd.f32 %v13467_v40, %v8243_v53  ;;  %v13876_v53 = vld [vmem:[%s14222_s3 + $0x8] sm:$0x3] }
0x24ff   :  { %v10866_v31 = vmul.f32 -1.442695, %v8248_v45  ;;  %v8105_v4 = vpop.f32.mrb[119].mxu0  ;;  %v8246_v3 = vpop.f32.mrb[107].mxu1  ;;  %v13869_v45 = vld [vmem:[#allocation6 + $0x1d0] ss:$8 sps:$4 sm:$0xff]   ;;  %v13880_v28 = vrot.slane %v13876_v53, %v12016_v51 }
0x2501   :  { %11676 = vpow2.f32 %v10866_v31  ;;  %v7212_v18 = vadd.f32 %v13559_v61, %v13880_v28  ;;  %v6443_v31 = vadd.f32 %v13428_v36, %v13422_v38  ;;  %v11469_v61 = vld [vmem:[#allocation6 + $0x1e4] ss:$8 sps:$4 sm:$0xff]  }
0x2503   :  { %v10984_v4 = vmul.f32 -1.442695, %v7212_v18  ;;  %v11470_v18 = vld [vmem:[#allocation6 + $0x1f0] ss:$8 sps:$4 sm:$0xff]  }
0x250b   :  { %v11677_v33 = vpop.eup %11676 }
0x250c   :  { %v8253_v63 = vadd.f32 1.0, %v11677_v33 }
0x250e   :  { %11678 = vrcp.f32 %v8253_v63 }
0x2518   :  { %v11679_v54 = vpop.eup %11678 }
0x2519   :  { %v8258_v5 = vmul.f32 %v11679_v54, %v8249_v12  ;;  %8256 = vrot.lane.b32.xlu0 %v11679_v54, %s11828_s2 }
0x251b   :  { %v8259_v6 = vadd.f32 %v8258_v5, %v6149_v14 }
0x251d   :  { %11680 = vtanh.f32 %v8259_v6 }
0x251e   :  { %11682 = vpow2.f32 %v10984_v4  ;;  %v6445_v4 = vadd.f32 %v13430_v25, %v13470_v37 }
0x2527   :  { %v11681_v62 = vpop.eup %11680 }
0x258b   :  { %v8257_v9 = vpop.permute.xlu0 %8256 }
0x258c   :  { %v8261_v7 = vsub.f32 1.0, %v8257_v9  ;;  %v8263_v24 = vmul.f32 %v8257_v9, %v13741_v32  ;;  %v13857_v32 = vld [vmem:[#allocation6 + $0x1b0] ss:$8 sps:$4 sm:$0xff]  }
0x258e   :  { %v8262_v42 = vmul.f32 %v11681_v62, %v8261_v7  ;;  %v11683_v7 = vpop.eup %11682 }
0x2590   :  { %v13818_v26 = vadd.f32 %v8263_v24, %v8262_v42  ;;  %v11467_v42 = vld [vmem:[#allocation6 + $0x1e0] ss:$8 sps:$4 sm:$0xff]   ;;  %v9306_v24 = vadd.f32 1.0, %v11683_v7 }
0x2592   :  { %v8265_v55 = vpack.c.bf16 %v13818_v26, %v13818_v26 }
0x2594   :  { %8395 = vmatmul.mubr.bf16.vlgmr.msra.gmra.mrb[120].mxu0 %v8265_v55  ;;  %8536 = vmatmul.mubr.bf16.vlgmr.msra.gmra.mrb[108].mxu1 %v8265_v55  ;;  %v11472_v55 = vld [vmem:[#allocation6 + $0x1f4] ss:$8 sps:$4 sm:$0xff]  }
0x2595   :  { %8659 = vmatpush1.bf16.msra.mxu0 %v13762_v50  ;;  %8690 = vmatprep.mubr.bf16.mxu0 %v14235_v59 }
0x2596   :  { %8660 = vmatprep.subr.bf16.mxu0 %v13766_v39  ;;  %8831 = vmatprep.mubr.bf16.mxu1 %v14235_v59 }
0x2597   :  { %8800 = vmatpush1.bf16.msra.mxu1 %v13840_v30 }
0x2598   :  { %8801 = vmatprep.subr.bf16.mxu1 %v13842_v34 }
0x2599   :  { %8661 = vmatpush1.bf16.msra.mxu0 %v13770_v35 }
0x259a   :  { %8662 = vmatprep.subr.bf16.mxu0 %v13773_v22 }
0x259b   :  { %8802 = vmatpush1.bf16.msra.mxu1 %v13845_v13 }
0x259c   :  { %8803 = vmatprep.subr.bf16.mxu1 %v13848_v23 }
0x259d   :  { %8663 = vmatpush1.bf16.msra.mxu0 %v13776_v27 }
0x259e   :  { %8664 = vmatprep.subr.bf16.mxu0 %v13779_v47 }
0x259f   :  { %8804 = vmatpush1.bf16.msra.mxu1 %v13851_v21 }
0x25a0   :  { %8805 = vmatprep.subr.bf16.mxu1 %v13854_v46 }
0x25a1   :  { %8665 = vmatpush1.bf16.msra.mxu0 %v13782_v10 }
0x25a2   :  { %8666 = vmatprep.subr.bf16.mxu0 %v13785_v16 }
0x25a3   :  { %8806 = vmatpush1.bf16.msra.mxu1 %v13857_v32 }
0x25a4   :  { %8807 = vmatprep.subr.bf16.mxu1 %v13860_v29 }
0x25a5   :  { %8667 = vmatpush1.bf16.msra.mxu0 %v13788_v49 }
0x25a6   :  { %8668 = vmatprep.subr.bf16.mxu0 %v13791_v1 }
0x25a7   :  { %8808 = vmatpush1.bf16.msra.mxu1 %v13863_v8 }
0x25a8   :  { %8809 = vmatprep.subr.bf16.mxu1 %v13866_v19 }
0x25a9   :  { %8669 = vmatpush1.bf16.msra.mxu0 %v13794_v52 }
0x25aa   :  { %8670 = vmatprep.subr.bf16.mxu0 %v13804_v17 }
0x25ab   :  { %8810 = vmatpush1.bf16.msra.mxu1 %v13869_v45 }
0x25ac   :  { %8811 = vmatprep.subr.bf16.mxu1 %v11469_v61 }
0x25ad   :  { %8671 = vmatpush1.bf16.msra.mxu0 %v13806_v58 }
0x25ae   :  { %8672 = vmatprep.subr.bf16.mxu0 %v13730_v11 }
0x25af   :  { %8812 = vmatpush1.bf16.msra.mxu1 %v11467_v42 }
0x25b0   :  { %8813 = vmatprep.subr.bf16.mxu1 %v11472_v55 }
0x25b1   :  { %8673 = vmatpush1.bf16.msra.mxu0 %v13732_v20 }
0x25b2   :  { %8954 = vmatprep.subr.bf16.mxu0 %v13764_v41 }
0x25b3   :  { %8814 = vmatpush1.bf16.msra.mxu1 %v11470_v18 }
0x25b4   :  { %9095 = vmatprep.subr.bf16.mxu1 %v11451_v48 }
0x2667   :  { %v13886_v3 = vpop.f32.mrb[120].mxu0  ;;  %v8537_v33 = vpop.f32.mrb[108].mxu1 }
0x2668   :  { %v8544_v63 = vadd.f32 %v8537_v33, %v6443_v31  ;;  %v13888_v12 = vpop.f32.mrb[121].mxu0  ;;  %v8539_v54 = vpop.f32.mrb[109].mxu1 }
0x2669   :  { %v8400_v14 = vpop.f32.mrb[122].mxu0  ;;  %v8541_v5 = vpop.f32.mrb[110].mxu1  ;;  %v8545_v31 = vadd.f32 %v13467_v40, %v8539_v54 }
0x266a   :  { %v10899_v6 = vmul.f32 -1.442695, %v8544_v63  ;;  %v8401_v9 = vpop.f32.mrb[123].mxu0  ;;  %v8542_v51 = vpop.f32.mrb[111].mxu1 }
0x266c   :  { %11684 = vpow2.f32 %v10899_v6 }
0x2676   :  { %v11685_v62 = vpop.eup %11684 }
0x2677   :  { %v8549_v36 = vadd.f32 1.0, %v11685_v62 }
0x2679   :  { %11686 = vrcp.f32 %v8549_v36 }
0x267a   :  { %11688 = vrcp.f32 %v9306_v24 }
0x2683   :  { %v11687_v33 = vpop.eup %11686 }
0x2684   :  { %v8554_v63 = vmul.f32 %v11687_v33, %v8545_v31  ;;  %8552 = vrot.lane.b32.xlu1 %v11687_v33, %s11828_s2  ;;  %v13894_v5 = vpop.eup %11688 }
0x2686   :  { %v8555_v14 = vadd.f32 %v8554_v63, %v6445_v4  ;;  %v13953_v63 = vld [vmem:[#allocation6 + $0x200] ss:$8 sps:$4 sm:$0xff]  }
0x2688   :  { %9309 = vrot.lane.b32.xlu1 %v13894_v5, %s11828_s2  ;;  %11690 = vtanh.f32 %v8555_v14 }
0x2692   :  { %v11691_v51 = vpop.eup %11690 }
0x26f6   :  { %v8553_v6 = vpop.permute.xlu1 %8552 }
0x26f7   :  { %v8557_v9 = vsub.f32 1.0, %v8553_v6  ;;  %v8559_v40 = vmul.f32 %v8553_v6, %v13818_v26  ;;  %v6739_v26 = vadd.f32 %v13548_v44, %v13422_v38  ;;  %v13944_v44 = vld [vmem:[%s14223_s4 + $0x3] ss:$0 sm:$0xff]  ;;  %v13957_v6 = vld [vmem:[#allocation6 + $0x214] ss:$8 sps:$4 sm:$0xff]  }
0x26f9   :  { %v8558_v48 = vmul.f32 %v11691_v51, %v8557_v9  ;;  %v13960_v9 = vld [vmem:[#allocation6 + $0x210] ss:$8 sps:$4 sm:$0xff]   ;;  %v13964_v51 = vld [vmem:[#allocation6 + $0x224] ss:$8 sps:$4 sm:$0xff]  }
0x26fb   :  { %v13899_v54 = vadd.f32 %v8559_v40, %v8558_v48  ;;  %v13972_v48 = vld [vmem:[%s14223_s4 + $0x4] ss:$0 sm:$0xff] }
0x26fc   :  { %v14258_v40 = vld [vmem:[#allocation11_spill] sm:$0xff] }
0x26fd   :  { %v8561_v25 = vpack.c.bf16 %v13899_v54, %v13899_v54 }
0x26ff   :  { %8691 = vmatmul.mubr.bf16.vlgmr.msra.gmra.mrb[124].mxu0 %v8561_v25  ;;  %8832 = vmatmul.mubr.bf16.vlgmr.msra.gmra.mrb[112].mxu1 %v8561_v25  ;;  %v13979_v25 = vld [vmem:[#allocation6 + $0x220] ss:$8 sps:$4 sm:$0xff]  }
0x2700   :  { %9096 = vmatpush1.bf16.msra.mxu1 %v13840_v30  ;;  %8955 = vmatpush1.bf16.msra.mxu0 %v13762_v50 }
0x2701   :  { %9097 = vmatprep.subr.bf16.mxu1 %v13842_v34  ;;  %8956 = vmatprep.subr.bf16.mxu0 %v13766_v39 }
0x2702   :  { %8986 = vmatprep.mubr.bf16.mxu0 %v14235_v59  ;;  %9127 = vmatprep.mubr.bf16.mxu1 %v14235_v59 }
0x2704   :  { %9098 = vmatpush1.bf16.msra.mxu1 %v13845_v13  ;;  %8957 = vmatpush1.bf16.msra.mxu0 %v13770_v35 }
0x2705   :  { %9099 = vmatprep.subr.bf16.mxu1 %v13848_v23  ;;  %8958 = vmatprep.subr.bf16.mxu0 %v13773_v22 }
0x2708   :  { %9100 = vmatpush1.bf16.msra.mxu1 %v13851_v21  ;;  %8959 = vmatpush1.bf16.msra.mxu0 %v13776_v27 }
0x2709   :  { %9101 = vmatprep.subr.bf16.mxu1 %v13854_v46  ;;  %8960 = vmatprep.subr.bf16.mxu0 %v13779_v47 }
0x270c   :  { %9102 = vmatpush1.bf16.msra.mxu1 %v13857_v32  ;;  %8961 = vmatpush1.bf16.msra.mxu0 %v13782_v10 }
0x270d   :  { %9103 = vmatprep.subr.bf16.mxu1 %v13860_v29  ;;  %8962 = vmatprep.subr.bf16.mxu0 %v13785_v16 }
0x2710   :  { %9104 = vmatpush1.bf16.msra.mxu1 %v13863_v8  ;;  %8963 = vmatpush1.bf16.msra.mxu0 %v13788_v49 }
0x2711   :  { %9105 = vmatprep.subr.bf16.mxu1 %v13866_v19  ;;  %8964 = vmatprep.subr.bf16.mxu0 %v13791_v1 }
0x2714   :  { %9106 = vmatpush1.bf16.msra.mxu1 %v13869_v45  ;;  %8965 = vmatpush1.bf16.msra.mxu0 %v13794_v52 }
0x2715   :  { %9107 = vmatprep.subr.bf16.mxu1 %v11469_v61  ;;  %8966 = vmatprep.subr.bf16.mxu0 %v13804_v17  ;;  %v14257_v61 = vld [vmem:[#allocation12_spill] sm:$0xff] }
0x2716   :  { %v6741_v62 = vadd.f32 %v14257_v61, %v13470_v37 }
0x2718   :  { %9108 = vmatpush1.bf16.msra.mxu1 %v11467_v42  ;;  %8967 = vmatpush1.bf16.msra.mxu0 %v13806_v58 }
0x2719   :  { %9109 = vmatprep.subr.bf16.mxu1 %v11472_v55  ;;  %8968 = vmatprep.subr.bf16.mxu0 %v13730_v11 }
0x271c   :  { %9110 = vmatpush1.bf16.msra.mxu1 %v11470_v18  ;;  %8969 = vmatpush1.bf16.msra.mxu0 %v13732_v20 }
0x271d   :  { %9250 = vmatprep.subr.bf16.mxu0 %v13764_v41  ;;  %v13938_v41 = vld [vmem:[#allocation6 + $0x204] ss:$8 sps:$4 sm:$0xff]  }
0x271e   :  { %9416 = vmatprep.subr.bf16.mxu1 %v13938_v41 }
0x27d2   :  { %v13934_v30 = vpop.f32.mrb[124].mxu0  ;;  %v8833_v34 = vpop.f32.mrb[112].mxu1 }
0x27d3   :  { %v8840_v13 = vadd.f32 %v8833_v34, %v6739_v26  ;;  %v13936_v23 = vpop.f32.mrb[125].mxu0  ;;  %v8835_v21 = vpop.f32.mrb[113].mxu1  ;;  %v14259_v26 = vld [vmem:[#allocation13_spill] sm:$0xff] }
0x27d4   :  { %v8696_v46 = vpop.f32.mrb[126].mxu0  ;;  %v8837_v32 = vpop.f32.mrb[114].mxu1  ;;  %v8841_v45 = vadd.f32 %v13944_v44, %v8835_v21 }
0x27d5   :  { %v10932_v29 = vmul.f32 -1.442695, %v8840_v13  ;;  %v8697_v8 = vpop.f32.mrb[127].mxu0  ;;  %v8838_v11 = vpop.f32.mrb[115].mxu1  ;;  %v13994_v13 = vld [vmem:[#allocation6 + $0x244] ss:$8 sps:$4 sm:$0xff]  }
0x27d6   :  { %v14015_v46 = vld [vmem:[#allocation6 + $0x260] ss:$8 sps:$4 sm:$0xff]  }
0x27d7   :  { %11692 = vpow2.f32 %v10932_v29 }
0x27e1   :  { %v11693_v19 = vpop.eup %11692 }
0x27e2   :  { %v8845_v20 = vadd.f32 1.0, %v11693_v19 }
0x27e4   :  { %11694 = vrcp.f32 %v8845_v20 }
0x27ee   :  { %v11695_v7 = vpop.eup %11694 }
0x27ef   :  { %v8850_v42 = vmul.f32 %v11695_v7, %v8841_v45  ;;  %8848 = vrot.lane.b32.xlu0 %v11695_v7, %s11828_s2 }
0x27f1   :  { %v8851_v36 = vadd.f32 %v8850_v42, %v6741_v62 }
0x27f3   :  { %11696 = vtanh.f32 %v8851_v36 }
0x27fd   :  { %v11697_v18 = vpop.eup %11696 }
0x2861   :  { %v8849_v24 = vpop.permute.xlu0 %8848 }
0x2862   :  { %v8853_v55 = vsub.f32 1.0, %v8849_v24  ;;  %v8855_v33 = vmul.f32 %v8849_v24, %v13899_v54  ;;  %v13976_v54 = vrot.slane %v13876_v53, %v14258_v40  ;;  %v13991_v53 = vld [vmem:[#allocation6 + $0x230] ss:$8 sps:$4 sm:$0xff]   ;;  %v7509_v40 = vadd.f32 %v13680_v57, %v13880_v28 }
0x2864   :  { %v8854_v31 = vmul.f32 %v11697_v18, %v8853_v55  ;;  %v7214_v34 = vadd.f32 %v14259_v26, %v13976_v54  ;;  %v11499_v55 = vld [vmem:[#allocation4 + $0x274] ss:$8 sps:$4 sm:$0xff]   ;;  %v11497_v18 = vld [vmem:[#allocation4 + $0x270] ss:$8 sps:$4 sm:$0xff]  }
0x2866   :  { %v13951_v4 = vadd.f32 %v8855_v33, %v8854_v31  ;;  %v7037_v33 = vadd.f32 %v13631_v56, %v13470_v37  ;;  %v7511_v56 = vadd.f32 %v13682_v2, %v13976_v54 }
0x2868   :  { %v8857_v14 = vpack.c.bf16 %v13951_v4, %v13951_v4 }
0x286a   :  { %8987 = vmatmul.mubr.bf16.vlgmr.msra.gmra.mrb[128].mxu0 %v8857_v14  ;;  %9128 = vmatmul.mubr.bf16.vlgmr.msra.gmra.mrb[116].mxu1 %v8857_v14 }
0x286b   :  { %9417 = vmatpush1.bf16.msra.mxu1 %v13953_v63  ;;  %9448 = vmatprep.mubr.bf16.mxu1 %v14235_v59 }
0x286c   :  { %9418 = vmatprep.subr.bf16.mxu1 %v13957_v6  ;;  %9251 = vmatpush1.bf16.msra.mxu0 %v13762_v50  ;;  %v13982_v50 = vld [vmem:[#allocation6 + $0x234] ss:$8 sps:$4 sm:$0xff]  }
0x286d   :  { %9252 = vmatprep.subr.bf16.mxu0 %v13766_v39  ;;  %9282 = vmatprep.mubr.bf16.mxu0 %v14235_v59  ;;  %v9311_v39 = vmul.f32 %v13894_v5, %v13972_v48  ;;  %v14007_v5 = vld [vmem:[#allocation6 + $0x250] ss:$8 sps:$4 sm:$0xff]  }
0x286f   :  { %9419 = vmatpush1.bf16.msra.mxu1 %v13960_v9  ;;  %v9312_v21 = vadd.f32 %v9311_v39, %v7214_v34 }
0x2870   :  { %9420 = vmatprep.subr.bf16.mxu1 %v13964_v51  ;;  %9253 = vmatpush1.bf16.msra.mxu0 %v13770_v35  ;;  %v13999_v35 = vld [vmem:[#allocation6 + $0x240] ss:$8 sps:$4 sm:$0xff]  }
0x2871   :  { %9254 = vmatprep.subr.bf16.mxu0 %v13773_v22  ;;  %v14002_v22 = vld [vmem:[#allocation6 + $0x254] ss:$8 sps:$4 sm:$0xff]   ;;  %11698 = vtanh.f32 %v9312_v21 }
0x2873   :  { %9421 = vmatpush1.bf16.msra.mxu1 %v13979_v25 }
0x2874   :  { %9422 = vmatprep.subr.bf16.mxu1 %v13982_v50  ;;  %9255 = vmatpush1.bf16.msra.mxu0 %v13776_v27  ;;  %v14010_v27 = vld [vmem:[#allocation6 + $0x264] ss:$8 sps:$4 sm:$0xff]  }
0x2875   :  { %9256 = vmatprep.subr.bf16.mxu0 %v13779_v47  ;;  %v9310_v47 = vpop.permute.xlu1 %9309 }
0x2877   :  { %9423 = vmatpush1.bf16.msra.mxu1 %v13991_v53 }
0x2878   :  { %9424 = vmatprep.subr.bf16.mxu1 %v13994_v13  ;;  %9257 = vmatpush1.bf16.msra.mxu0 %v13782_v10  ;;  %v9314_v10 = vsub.f32 1.0, %v9310_v47 }
0x2879   :  { %9258 = vmatprep.subr.bf16.mxu0 %v13785_v16  ;;  %v14018_v16 = vld [vmem:[#allocation6 + $0x274] ss:$8 sps:$4 sm:$0xff]  }
0x287b   :  { %9425 = vmatpush1.bf16.msra.mxu1 %v13999_v35  ;;  %v11699_v32 = vpop.eup %11698 }
0x287c   :  { %9426 = vmatprep.subr.bf16.mxu1 %v14002_v22  ;;  %9259 = vmatpush1.bf16.msra.mxu0 %v13788_v49  ;;  %v14023_v49 = vld [vmem:[#allocation6 + $0x270] ss:$8 sps:$4 sm:$0xff]   ;;  %v14025_v29 = vmul.f32 %v11699_v32, %v9314_v10 }
0x287d   :  { %9260 = vmatprep.subr.bf16.mxu0 %v13791_v1 }
0x287e   :  { %v9316_v1 = vpack.c.bf16 %v14025_v29, %v14025_v29 }
0x287f   :  { %9427 = vmatpush1.bf16.msra.mxu1 %v14007_v5 }
0x2880   :  { %9428 = vmatprep.subr.bf16.mxu1 %v14010_v27  ;;  %9261 = vmatpush1.bf16.msra.mxu0 %v13794_v52  ;;  %v14260_v52 = vld [vmem:[#allocation14_spill] sm:$0xff] }
0x2881   :  { %9262 = vmatprep.subr.bf16.mxu0 %v13804_v17  ;;  %v7035_v17 = vadd.f32 %v14260_v52, %v13422_v38 }
0x2883   :  { %9429 = vmatpush1.bf16.msra.mxu1 %v14015_v46 }
0x2884   :  { %9430 = vmatprep.subr.bf16.mxu1 %v14018_v16  ;;  %9263 = vmatpush1.bf16.msra.mxu0 %v13806_v58 }
0x2885   :  { %9264 = vmatprep.subr.bf16.mxu0 %v11499_v55 }
0x2887   :  { %9431 = vmatpush1.bf16.msra.mxu1 %v14023_v49 }
0x2888   :  { %9538 = vmatprep.subr.bf16.mxu1 %v13938_v41  ;;  %9265 = vmatpush1.bf16.msra.mxu0 %v11497_v18 }
0x2889   :  { %9477 = vmatprep.subr.bf16.mxu0 %v13938_v41 }
0x288a   :  { %9449 = vmatmul.mubr.bf16.vlgmr.msra.gmra.mrb[120].mxu1 %v9316_v1 }
0x288b   :  { %9539 = vmatpush1.bf16.msra.mxu1 %v13953_v63  ;;  %9570 = vmatprep.mubr.bf16.mxu1 %v14235_v59 }
0x288c   :  { %9540 = vmatprep.subr.bf16.mxu1 %v13957_v6 }
0x288f   :  { %9541 = vmatpush1.bf16.msra.mxu1 %v13960_v9 }
0x2890   :  { %9542 = vmatprep.subr.bf16.mxu1 %v13964_v51 }
0x2893   :  { %9543 = vmatpush1.bf16.msra.mxu1 %v13979_v25 }
0x2894   :  { %9544 = vmatprep.subr.bf16.mxu1 %v13982_v50 }
0x2897   :  { %9545 = vmatpush1.bf16.msra.mxu1 %v13991_v53 }
0x2898   :  { %9546 = vmatprep.subr.bf16.mxu1 %v13994_v13 }
0x289b   :  { %9547 = vmatpush1.bf16.msra.mxu1 %v13999_v35 }
0x289c   :  { %9548 = vmatprep.subr.bf16.mxu1 %v14002_v22 }
0x289f   :  { %9549 = vmatpush1.bf16.msra.mxu1 %v14007_v5 }
0x28a0   :  { %9550 = vmatprep.subr.bf16.mxu1 %v14010_v27 }
0x28a3   :  { %9551 = vmatpush1.bf16.msra.mxu1 %v14015_v46 }
0x28a4   :  { %9552 = vmatprep.subr.bf16.mxu1 %v14018_v16 }
0x28a7   :  { %9553 = vmatpush1.bf16.msra.mxu1 %v14023_v49 }
0x28a8   :  { %9660 = vmatprep.subr.bf16.mxu1 %v13938_v41 }
0x293d   :  { %v14052_v58 = vpop.f32.mrb[128].mxu0  ;;  %v9129_v8 = vpop.f32.mrb[116].mxu1 }
0x293e   :  { %v9136_v11 = vadd.f32 %v9129_v8, %v7035_v17  ;;  %v14054_v19 = vpop.f32.mrb[129].mxu0  ;;  %v9131_v20 = vpop.f32.mrb[117].mxu1 }
0x293f   :  { %v8992_v45 = vpop.f32.mrb[130].mxu0  ;;  %v9133_v7 = vpop.f32.mrb[118].mxu1  ;;  %v9137_v38 = vadd.f32 %v13944_v44, %v9131_v20 }
0x2940   :  { %v10965_v61 = vmul.f32 -1.442695, %v9136_v11  ;;  %v8993_v62 = vpop.f32.mrb[131].mxu0  ;;  %v9134_v42 = vpop.f32.mrb[119].mxu1 }
0x2942   :  { %11700 = vpow2.f32 %v10965_v61 }
0x294c   :  { %v11701_v36 = vpop.eup %11700 }
0x294d   :  { %v9141_v24 = vadd.f32 1.0, %v11701_v36 }
0x294f   :  { %11702 = vrcp.f32 %v9141_v24 }
0x2959   :  { %v11703_v31 = vpop.eup %11702 }
0x295a   :  { %v9146_v14 = vmul.f32 %v11703_v31, %v9137_v38  ;;  %9144 = vrot.lane.b32.xlu0 %v11703_v31, %s11828_s2 }
0x295c   :  { %v9147_v39 = vadd.f32 %v9146_v14, %v7037_v33  ;;  %v7805_v14 = vadd.f32 %v13726_v60, %v13880_v28 }
0x295d   :  { %v9450_v26 = vpop.f32.mrb[120].mxu1 }
0x295e   :  { %v9457_v34 = vadd.f32 %v9450_v26, %v7509_v40  ;;  %v9452_v21 = vpop.f32.mrb[121].mxu1 }
0x295f   :  { %v9454_v47 = vpop.f32.mrb[122].mxu1  ;;  %v9458_v52 = vadd.f32 %v13972_v48, %v9452_v21 }
0x2960   :  { %v11001_v10 = vmul.f32 -1.442695, %v9457_v34  ;;  %v9455_v32 = vpop.f32.mrb[123].mxu1 }
0x2962   :  { %11704 = vpow2.f32 %v11001_v10 }
0x296c   :  { %v11705_v1 = vpop.eup %11704 }
0x296d   :  { %v9462_v44 = vadd.f32 1.0, %v11705_v1 }
0x296f   :  { %11706 = vrcp.f32 %v9462_v44 }
0x2970   :  { %11708 = vtanh.f32 %v9147_v39 }
0x2979   :  { %v11707_v37 = vpop.eup %11706 }
0x297a   :  { %v9467_v17 = vmul.f32 %v11707_v37, %v9458_v52  ;;  %9465 = vrot.lane.b32.xlu1 %v11707_v37, %s11828_s2  ;;  %v11709_v20 = vpop.eup %11708  ;;  %v7807_v52 = vadd.f32 %v13728_v0, %v13976_v54  ;;  %v8101_v0 = vadd.f32 %v13800_v43, %v13880_v28 }
0x297c   :  { %v9468_v57 = vadd.f32 %v9467_v17, %v7511_v56 }
0x297e   :  { %11710 = vtanh.f32 %v9468_v57 }
0x2988   :  { %v11711_v42 = vpop.eup %11710 }
0x29cc   :  { %v9145_v8 = vpop.permute.xlu0 %9144 }
0x29cd   :  { %v9149_v11 = vsub.f32 1.0, %v9145_v8  ;;  %v9151_v7 = vmul.f32 %v9145_v8, %v13951_v4 }
0x29cf   :  { %v9150_v45 = vmul.f32 %v11709_v20, %v9149_v11 }
0x29d1   :  { %v9152_v61 = vadd.f32 %v9151_v7, %v9150_v45 }
0x29d3   :  { %v9153_v62 = vpack.c.bf16 %v9152_v61, %v9152_v61 }
0x29d5   :  { %9283 = vmatmul.mubr.bf16.vlgmr.msra.gmra.mrb[132].mxu0 %v9153_v62 }
0x29d6   :  { %9478 = vmatpush1.bf16.msra.mxu0 %v13953_v63  ;;  %9509 = vmatprep.mubr.bf16.mxu0 %v14235_v59 }
0x29d7   :  { %9479 = vmatprep.subr.bf16.mxu0 %v13957_v6 }
0x29da   :  { %9480 = vmatpush1.bf16.msra.mxu0 %v13960_v9 }
0x29db   :  { %9481 = vmatprep.subr.bf16.mxu0 %v13964_v51 }
0x29de   :  { %9482 = vmatpush1.bf16.msra.mxu0 %v13979_v25 }
0x29df   :  { %9483 = vmatprep.subr.bf16.mxu0 %v13982_v50 }
0x29e2   :  { %9484 = vmatpush1.bf16.msra.mxu0 %v13991_v53 }
0x29e3   :  { %9485 = vmatprep.subr.bf16.mxu0 %v13994_v13 }
0x29e6   :  { %9486 = vmatpush1.bf16.msra.mxu0 %v13999_v35 }
0x29e7   :  { %9487 = vmatprep.subr.bf16.mxu0 %v14002_v22 }
0x29ea   :  { %9488 = vmatpush1.bf16.msra.mxu0 %v14007_v5 }
0x29eb   :  { %9489 = vmatprep.subr.bf16.mxu0 %v14010_v27 }
0x29ec   :  { %v9466_v2 = vpop.permute.xlu1 %9465 }
0x29ed   :  { %v9470_v4 = vsub.f32 1.0, %v9466_v2  ;;  %v9472_v24 = vmul.f32 %v9466_v2, %v14025_v29 }
0x29ee   :  { %9490 = vmatpush1.bf16.msra.mxu0 %v14015_v46 }
0x29ef   :  { %v9471_v36 = vmul.f32 %v11711_v42, %v9470_v4  ;;  %9491 = vmatprep.subr.bf16.mxu0 %v14018_v16 }
0x29f1   :  { %v9473_v55 = vadd.f32 %v9472_v24, %v9471_v36 }
0x29f2   :  { %9492 = vmatpush1.bf16.msra.mxu0 %v14023_v49 }
0x29f3   :  { %v9474_v18 = vpack.c.bf16 %v9473_v55, %v9473_v55  ;;  %9599 = vmatprep.subr.bf16.mxu0 %v13938_v41 }
0x29f5   :  { %9510 = vmatmul.mubr.bf16.vlgmr.msra.gmra.mrb[136].mxu0 %v9474_v18 }
0x29f6   :  { %9600 = vmatpush1.bf16.msra.mxu0 %v13953_v63  ;;  %9631 = vmatprep.mubr.bf16.mxu0 %v14235_v59 }
0x29f7   :  { %9601 = vmatprep.subr.bf16.mxu0 %v13957_v6 }
0x29fa   :  { %9602 = vmatpush1.bf16.msra.mxu0 %v13960_v9 }
0x29fb   :  { %9603 = vmatprep.subr.bf16.mxu0 %v13964_v51 }
0x29fe   :  { %9604 = vmatpush1.bf16.msra.mxu0 %v13979_v25 }
0x29ff   :  { %9605 = vmatprep.subr.bf16.mxu0 %v13982_v50 }
0x2a02   :  { %9606 = vmatpush1.bf16.msra.mxu0 %v13991_v53 }
0x2a03   :  { %9607 = vmatprep.subr.bf16.mxu0 %v13994_v13 }
0x2a06   :  { %9608 = vmatpush1.bf16.msra.mxu0 %v13999_v35 }
0x2a07   :  { %9609 = vmatprep.subr.bf16.mxu0 %v14002_v22 }
0x2a0a   :  { %9610 = vmatpush1.bf16.msra.mxu0 %v14007_v5 }
0x2a0b   :  { %9611 = vmatprep.subr.bf16.mxu0 %v14010_v27 }
0x2a0e   :  { %9612 = vmatpush1.bf16.msra.mxu0 %v14015_v46 }
0x2a0f   :  { %9613 = vmatprep.subr.bf16.mxu0 %v14018_v16 }
0x2a12   :  { %9614 = vmatpush1.bf16.msra.mxu0 %v14023_v49 }
0x2a13   :  { %9721 = vmatprep.subr.bf16.mxu0 %v13938_v41 }
0x2aa8   :  { %v14103_v29 = vpop.f32.mrb[132].mxu0 }
0x2aa9   :  { %v14105_v38 = vpop.f32.mrb[133].mxu0 }
0x2aaa   :  { %v9288_v31 = vpop.f32.mrb[134].mxu0 }
0x2aab   :  { %v9289_v33 = vpop.f32.mrb[135].mxu0  ;;  %v8103_v31 = vadd.f32 %v13802_v15, %v13976_v54  ;;  %v8397_v15 = vadd.f32 %v13886_v3, %v13880_v28 }
0x2ac8   :  { %v9511_v40 = vpop.f32.mrb[136].mxu0 }
0x2ac9   :  { %v9518_v39 = vadd.f32 %v9511_v40, %v7805_v14  ;;  %v9513_v26 = vpop.f32.mrb[137].mxu0 }
0x2aca   :  { %v9515_v34 = vpop.f32.mrb[138].mxu0  ;;  %v9519_v1 = vadd.f32 %v13972_v48, %v9513_v26 }
0x2acb   :  { %v11002_v21 = vmul.f32 -1.442695, %v9518_v39  ;;  %v9516_v47 = vpop.f32.mrb[139].mxu0 }
0x2acd   :  { %11712 = vpow2.f32 %v11002_v21 }
0x2ad7   :  { %v11713_v10 = vpop.eup %11712 }
0x2ad8   :  { %v9523_v32 = vadd.f32 1.0, %v11713_v10 }
0x2ada   :  { %11714 = vrcp.f32 %v9523_v32 }
0x2ae4   :  { %v11715_v44 = vpop.eup %11714 }
0x2ae5   :  { %v9528_v37 = vmul.f32 %v11715_v44, %v9519_v1  ;;  %9526 = vrot.lane.b32.xlu0 %v11715_v44, %s11828_s2 }
0x2ae7   :  { %v9529_v60 = vadd.f32 %v9528_v37, %v7807_v52 }
0x2ae9   :  { %11716 = vtanh.f32 %v9529_v60 }
0x2af3   :  { %v11717_v57 = vpop.eup %11716 }
0x2b57   :  { %v9527_v56 = vpop.permute.xlu0 %9526 }
0x2b58   :  { %v9531_v17 = vsub.f32 1.0, %v9527_v56  ;;  %v9533_v11 = vmul.f32 %v9527_v56, %v9473_v55 }
0x2b5a   :  { %v9532_v8 = vmul.f32 %v11717_v57, %v9531_v17  ;;  %v8399_v57 = vadd.f32 %v13888_v12, %v13976_v54 }
0x2b5c   :  { %v9534_v20 = vadd.f32 %v9533_v11, %v9532_v8 }
0x2b5e   :  { %v9535_v45 = vpack.c.bf16 %v9534_v20, %v9534_v20 }
0x2b60   :  { %9571 = vmatmul.mubr.bf16.vlgmr.msra.gmra.mrb[124].mxu1 %v9535_v45 }
0x2b61   :  { %9661 = vmatpush1.bf16.msra.mxu1 %v13953_v63  ;;  %9692 = vmatprep.mubr.bf16.mxu1 %v14235_v59 }
0x2b62   :  { %9662 = vmatprep.subr.bf16.mxu1 %v13957_v6 }
0x2b65   :  { %9663 = vmatpush1.bf16.msra.mxu1 %v13960_v9 }
0x2b66   :  { %9664 = vmatprep.subr.bf16.mxu1 %v13964_v51 }
0x2b69   :  { %9665 = vmatpush1.bf16.msra.mxu1 %v13979_v25 }
0x2b6a   :  { %9666 = vmatprep.subr.bf16.mxu1 %v13982_v50 }
0x2b6d   :  { %9667 = vmatpush1.bf16.msra.mxu1 %v13991_v53 }
0x2b6e   :  { %9668 = vmatprep.subr.bf16.mxu1 %v13994_v13 }
0x2b71   :  { %9669 = vmatpush1.bf16.msra.mxu1 %v13999_v35 }
0x2b72   :  { %9670 = vmatprep.subr.bf16.mxu1 %v14002_v22 }
0x2b75   :  { %9671 = vmatpush1.bf16.msra.mxu1 %v14007_v5 }
0x2b76   :  { %9672 = vmatprep.subr.bf16.mxu1 %v14010_v27 }
0x2b79   :  { %9673 = vmatpush1.bf16.msra.mxu1 %v14015_v46 }
0x2b7a   :  { %9674 = vmatprep.subr.bf16.mxu1 %v14018_v16 }
0x2b7d   :  { %9675 = vmatpush1.bf16.msra.mxu1 %v14023_v49 }
0x2b7e   :  { %9782 = vmatprep.subr.bf16.mxu1 %v13938_v41 }
0x2c33   :  { %v9572_v7 = vpop.f32.mrb[124].mxu1 }
0x2c34   :  { %v9579_v61 = vadd.f32 %v9572_v7, %v8101_v0  ;;  %v9574_v62 = vpop.f32.mrb[125].mxu1 }
0x2c35   :  { %v9576_v2 = vpop.f32.mrb[126].mxu1  ;;  %v9580_v55 = vadd.f32 %v13972_v48, %v9574_v62 }
0x2c36   :  { %v11003_v4 = vmul.f32 -1.442695, %v9579_v61  ;;  %v9577_v42 = vpop.f32.mrb[127].mxu1 }
0x2c38   :  { %11718 = vpow2.f32 %v11003_v4 }
0x2c42   :  { %v11719_v36 = vpop.eup %11718 }
0x2c43   :  { %v9584_v24 = vadd.f32 1.0, %v11719_v36  ;;  %v8989_v36 = vadd.f32 %v14052_v58, %v13880_v28 }
0x2c45   :  { %11720 = vrcp.f32 %v9584_v24 }
0x2c4f   :  { %v11721_v18 = vpop.eup %11720 }
0x2c50   :  { %v9589_v41 = vmul.f32 %v11721_v18, %v9580_v55  ;;  %9587 = vrot.lane.b32.xlu1 %v11721_v18, %s11828_s2 }
0x2c52   :  { %v9590_v43 = vadd.f32 %v9589_v41, %v8103_v31 }
0x2c54   :  { %11722 = vtanh.f32 %v9590_v43 }
0x2c5e   :  { %v11723_v40 = vpop.eup %11722 }
0x2cc2   :  { %v9588_v33 = vpop.permute.xlu1 %9587 }
0x2cc3   :  { %v9592_v14 = vsub.f32 1.0, %v9588_v33  ;;  %v9594_v26 = vmul.f32 %v9588_v33, %v9534_v20 }
0x2cc5   :  { %v9593_v39 = vmul.f32 %v11723_v40, %v9592_v14 }
0x2cc7   :  { %v9595_v34 = vadd.f32 %v9594_v26, %v9593_v39  ;;  %v8991_v39 = vadd.f32 %v14054_v19, %v13976_v54  ;;  %v11501_v19 = vld [vmem:[%s14224_s5 + $0x8] sm:$0xff]  }
0x2cc9   :  { %v9596_v21 = vpack.c.bf16 %v9595_v34, %v9595_v34 }
0x2ccb   :  { %9632 = vmatmul.mubr.bf16.vlgmr.msra.gmra.mrb[140].mxu0 %v9596_v21 }
0x2ccc   :  { %9722 = vmatpush1.bf16.msra.mxu0 %v13953_v63  ;;  %9753 = vmatprep.mubr.bf16.mxu0 %v14235_v59 }
0x2ccd   :  { %9723 = vmatprep.subr.bf16.mxu0 %v13957_v6 }
0x2cd0   :  { %9724 = vmatpush1.bf16.msra.mxu0 %v13960_v9 }
0x2cd1   :  { %9725 = vmatprep.subr.bf16.mxu0 %v13964_v51 }
0x2cd4   :  { %9726 = vmatpush1.bf16.msra.mxu0 %v13979_v25 }
0x2cd5   :  { %9727 = vmatprep.subr.bf16.mxu0 %v13982_v50 }
0x2cd8   :  { %9728 = vmatpush1.bf16.msra.mxu0 %v13991_v53 }
0x2cd9   :  { %9729 = vmatprep.subr.bf16.mxu0 %v13994_v13 }
0x2cdc   :  { %9730 = vmatpush1.bf16.msra.mxu0 %v13999_v35 }
0x2cdd   :  { %9731 = vmatprep.subr.bf16.mxu0 %v14002_v22 }
0x2ce0   :  { %9732 = vmatpush1.bf16.msra.mxu0 %v14007_v5 }
0x2ce1   :  { %9733 = vmatprep.subr.bf16.mxu0 %v14010_v27 }
0x2ce4   :  { %9734 = vmatpush1.bf16.msra.mxu0 %v14015_v46 }
0x2ce5   :  { %9735 = vmatprep.subr.bf16.mxu0 %v14018_v16 }
0x2ce8   :  { %9736 = vmatpush1.bf16.msra.mxu0 %v14023_v49 }
0x2d9e   :  { %v9633_v47 = vpop.f32.mrb[140].mxu0 }
0x2d9f   :  { %v9640_v10 = vadd.f32 %v9633_v47, %v8397_v15  ;;  %v9635_v32 = vpop.f32.mrb[141].mxu0 }
0x2da0   :  { %v9637_v1 = vpop.f32.mrb[142].mxu0  ;;  %v9641_v56 = vadd.f32 %v13972_v48, %v9635_v32 }
0x2da1   :  { %v11004_v44 = vmul.f32 -1.442695, %v9640_v10  ;;  %v9638_v52 = vpop.f32.mrb[143].mxu0 }
0x2da2   :  { %v11829_v52 = vmov 0.0  }
0x2da3   :  { %11724 = vpow2.f32 %v11004_v44  ;;  %v11500_v44 = vld [vmem:[%s14224_s5] sm:$0xff]   ;;  %11026 = vmatprep.subr.bf16.mxu0 %v11829_v52 }
0x2dad   :  { %v11725_v37 = vpop.eup %11724 }
0x2dae   :  { %v9645_v60 = vadd.f32 1.0, %v11725_v37  ;;  %v11502_v37 = vld [vmem:[%s14224_s5 + $0x10] sm:$0xff]  }
0x2db0   :  { %11726 = vrcp.f32 %v9645_v60  ;;  %v11503_v60 = vld [vmem:[%s14224_s5 + $0x18] sm:$0xff]  }
0x2dba   :  { %v11727_v17 = vpop.eup %11726 }
0x2dbb   :  { %v9650_v8 = vmul.f32 %v11727_v17, %v9641_v56  ;;  %9648 = vrot.lane.b32.xlu0 %v11727_v17, %s11828_s2  ;;  %v11504_v56 = vld [vmem:[%s14224_s5 + $0x20] sm:$0xff]   ;;  %v11505_v17 = vld [vmem:[%s14224_s5 + $0x28] sm:$0xff]  }
0x2dbd   :  { %v9651_v3 = vadd.f32 %v9650_v8, %v8399_v57  ;;  %v9285_v57 = vadd.f32 %v14103_v29, %v13880_v28 }
0x2dbf   :  { %11728 = vtanh.f32 %v9651_v3 }
0x2dc9   :  { %v11729_v45 = vpop.eup %11728 }
0x2e2d   :  { %v9649_v11 = vpop.permute.xlu0 %9648 }
0x2e2e   :  { %v9653_v20 = vsub.f32 1.0, %v9649_v11  ;;  %v9655_v7 = vmul.f32 %v9649_v11, %v9595_v34 }
0x2e30   :  { %v9654_v0 = vmul.f32 %v11729_v45, %v9653_v20 }
0x2e32   :  { %v9656_v61 = vadd.f32 %v9655_v7, %v9654_v0 }
0x2e34   :  { %v9657_v62 = vpack.c.bf16 %v9656_v61, %v9656_v61 }
0x2e36   :  { %9693 = vmatmul.mubr.bf16.vlgmr.msra.gmra.mrb[128].mxu1 %v9657_v62 }
0x2e37   :  { %9783 = vmatpush1.bf16.msra.mxu1 %v13953_v63  ;;  %9814 = vmatprep.mubr.bf16.mxu1 %v14235_v59  ;;  %v8693_v59 = vadd.f32 %v13934_v30, %v13880_v28  ;;  %v11507_v28 = vld [vmem:[%s14224_s5 + $0x38] sm:$0xff]  }
0x2e38   :  { %9784 = vmatprep.subr.bf16.mxu1 %v13957_v6 }
0x2e3b   :  { %9785 = vmatpush1.bf16.msra.mxu1 %v13960_v9 }
0x2e3c   :  { %9786 = vmatprep.subr.bf16.mxu1 %v13964_v51 }
0x2e3f   :  { %9787 = vmatpush1.bf16.msra.mxu1 %v13979_v25 }
0x2e40   :  { %9788 = vmatprep.subr.bf16.mxu1 %v13982_v50 }
0x2e43   :  { %9789 = vmatpush1.bf16.msra.mxu1 %v13991_v53 }
0x2e44   :  { %9790 = vmatprep.subr.bf16.mxu1 %v13994_v13 }
0x2e47   :  { %9791 = vmatpush1.bf16.msra.mxu1 %v13999_v35 }
0x2e48   :  { %9792 = vmatprep.subr.bf16.mxu1 %v14002_v22  ;;  %v8695_v22 = vadd.f32 %v13936_v23, %v13976_v54 }
0x2e4b   :  { %9793 = vmatpush1.bf16.msra.mxu1 %v14007_v5 }
0x2e4c   :  { %9794 = vmatprep.subr.bf16.mxu1 %v14010_v27 }
0x2e4f   :  { %9795 = vmatpush1.bf16.msra.mxu1 %v14015_v46 }
0x2e50   :  { %9796 = vmatprep.subr.bf16.mxu1 %v14018_v16 }
0x2e53   :  { %9797 = vmatpush1.bf16.msra.mxu1 %v14023_v49 }
0x2f09   :  { %v9694_v12 = vpop.f32.mrb[128].mxu1 }
0x2f0a   :  { %v9701_v63 = vadd.f32 %v9694_v12, %v8693_v59  ;;  %v9696_v6 = vpop.f32.mrb[129].mxu1  ;;  %v9287_v12 = vadd.f32 %v14105_v38, %v13976_v54 }
0x2f0b   :  { %v9698_v9 = vpop.f32.mrb[130].mxu1  ;;  %v9702_v13 = vadd.f32 %v13972_v48, %v9696_v6 }
0x2f0c   :  { %v11005_v51 = vmul.f32 -1.442695, %v9701_v63  ;;  %v9699_v25 = vpop.f32.mrb[131].mxu1 }
0x2f0e   :  { %11730 = vpow2.f32 %v11005_v51 }
0x2f18   :  { %v11731_v50 = vpop.eup %11730 }
0x2f19   :  { %v9706_v53 = vadd.f32 1.0, %v11731_v50 }
0x2f1b   :  { %11732 = vrcp.f32 %v9706_v53 }
0x2f25   :  { %v11733_v35 = vpop.eup %11732 }
0x2f26   :  { %v9711_v5 = vmul.f32 %v11733_v35, %v9702_v13  ;;  %9709 = vrot.lane.b32.xlu1 %v11733_v35, %s11828_s2 }
0x2f28   :  { %v9712_v30 = vadd.f32 %v9711_v5, %v8695_v22  ;;  %v11008_v22 = vld [vmem:[#allocation8] ss:$0 sm:$0xff] }
0x2f2a   :  { %11734 = vtanh.f32 %v9712_v30 }
0x2f34   :  { %v11735_v16 = vpop.eup %11734 }
0x2f98   :  { %v9710_v27 = vpop.permute.xlu1 %9709 }
0x2f99   :  { %v9714_v46 = vsub.f32 1.0, %v9710_v27  ;;  %v9716_v2 = vmul.f32 %v9710_v27, %v9656_v61  ;;  %v11506_v61 = vld [vmem:[%s14224_s5 + $0x30] sm:$0xff]  }
0x2f9b   :  { %v9715_v49 = vmul.f32 %v11735_v16, %v9714_v46 }
0x2f9d   :  { %v9717_v4 = vadd.f32 %v9716_v2, %v9715_v49 }
0x2f9f   :  { %v9718_v42 = vpack.c.bf16 %v9717_v4, %v9717_v4 }
0x2fa1   :  { %9754 = vmatmul.mubr.bf16.vlgmr.msra.gmra.mrb[144].mxu0 %v9718_v42 }
0x2fa2   :  { %11027 = vmatpush3.bf16.msra.mxu0 %v11500_v44  ;;  %11042 = vmatprep.mubr.msk.bf16.mxu0 %vm11830_vm0, %v11829_v52 }
0x2fa3   :  { %11028 = vmatprep.subr.bf16.mxu0 %v11829_v52 }
0x2fa6   :  { %11029 = vmatpush3.bf16.msra.mxu0 %v11501_v19 }
0x2fa7   :  { %11030 = vmatprep.subr.bf16.mxu0 %v11829_v52 }
0x2faa   :  { %11031 = vmatpush3.bf16.msra.mxu0 %v11502_v37 }
0x2fab   :  { %11032 = vmatprep.subr.bf16.mxu0 %v11829_v52 }
0x2fae   :  { %11033 = vmatpush3.bf16.msra.mxu0 %v11503_v60 }
0x2faf   :  { %11034 = vmatprep.subr.bf16.mxu0 %v11829_v52 }
0x2fb2   :  { %11035 = vmatpush3.bf16.msra.mxu0 %v11504_v56 }
0x2fb3   :  { %11036 = vmatprep.subr.bf16.mxu0 %v11829_v52 }
0x2fb6   :  { %11037 = vmatpush3.bf16.msra.mxu0 %v11505_v17 }
0x2fb7   :  { %11038 = vmatprep.subr.bf16.mxu0 %v11829_v52 }
0x2fba   :  { %11039 = vmatpush3.bf16.msra.mxu0 %v11506_v61 }
0x2fbb   :  { %11040 = vmatprep.subr.bf16.mxu0 %v11829_v52 }
0x2fbe   :  { %11041 = vmatpush3.bf16.msra.mxu0 %v11507_v28 }
0x3074   :  { %v9755_v24 = vpop.f32.mrb[144].mxu0 }
0x3075   :  { %v9762_v55 = vadd.f32 %v9755_v24, %v8989_v36  ;;  %v9757_v18 = vpop.f32.mrb[145].mxu0 }
0x3076   :  { %v9759_v23 = vpop.f32.mrb[146].mxu0  ;;  %v9763_v14 = vadd.f32 %v13972_v48, %v9757_v18 }
0x3077   :  { %v11006_v31 = vmul.f32 -1.442695, %v9762_v55  ;;  %v9760_v41 = vpop.f32.mrb[147].mxu0 }
0x3079   :  { %11736 = vpow2.f32 %v11006_v31 }
0x3083   :  { %v11737_v43 = vpop.eup %11736 }
0x3084   :  { %v9767_v33 = vadd.f32 1.0, %v11737_v43 }
0x3086   :  { %11738 = vrcp.f32 %v9767_v33 }
0x3090   :  { %v11739_v40 = vpop.eup %11738 }
0x3091   :  { %v9772_v26 = vmul.f32 %v11739_v40, %v9763_v14  ;;  %9770 = vrot.lane.b32.xlu0 %v11739_v40, %s11828_s2 }
0x3093   :  { %v9773_v58 = vadd.f32 %v9772_v26, %v8991_v39 }
0x3095   :  { %11740 = vtanh.f32 %v9773_v58 }
0x309f   :  { %v11741_v15 = vpop.eup %11740 }
0x3103   :  { %v9771_v34 = vpop.permute.xlu0 %9770 }
0x3104   :  { %v9775_v21 = vsub.f32 1.0, %v9771_v34  ;;  %v9777_v10 = vmul.f32 %v9771_v34, %v9717_v4 }
0x3106   :  { %v9776_v47 = vmul.f32 %v11741_v15, %v9775_v21 }
0x3108   :  { %v9778_v32 = vadd.f32 %v9777_v10, %v9776_v47 }
0x310a   :  { %v9779_v1 = vpack.c.bf16 %v9778_v32, %v9778_v32 }
0x310c   :  { %9815 = vmatmul.mubr.bf16.vlgmr.msra.gmra.mrb[132].mxu1 %v9779_v1 }
0x31df   :  { %v9816_v8 = vpop.f32.mrb[132].mxu1 }
0x31e0   :  { %v9823_v3 = vadd.f32 %v9816_v8, %v9285_v57  ;;  %v9818_v11 = vpop.f32.mrb[133].mxu1 }
0x31e1   :  { %v9820_v20 = vpop.f32.mrb[134].mxu1  ;;  %v9824_v29 = vadd.f32 %v13972_v48, %v9818_v11 }
0x31e2   :  { %v11007_v45 = vmul.f32 -1.442695, %v9823_v3  ;;  %v9821_v0 = vpop.f32.mrb[135].mxu1 }
0x31e4   :  { %11742 = vpow2.f32 %v11007_v45 }
0x31ee   :  { %v11743_v7 = vpop.eup %11742 }
0x31ef   :  { %v9828_v62 = vadd.f32 1.0, %v11743_v7 }
0x31f1   :  { %11744 = vrcp.f32 %v9828_v62 }
0x31fb   :  { %v11745_v59 = vpop.eup %11744 }
0x31fc   :  { %v9833_v63 = vmul.f32 %v11745_v59, %v9824_v29  ;;  %9831 = vrot.lane.b32.xlu1 %v11745_v59, %s11828_s2 }
0x31fe   :  { %v9834_v6 = vadd.f32 %v9833_v63, %v9287_v12 }
0x3200   :  { %11746 = vtanh.f32 %v9834_v6 }
0x320a   :  { %v11747_v25 = vpop.eup %11746 }
0x326e   :  { %v9832_v9 = vpop.permute.xlu1 %9831 }
0x326f   :  { %v9836_v51 = vsub.f32 1.0, %v9832_v9  ;;  %v9838_v53 = vmul.f32 %v9832_v9, %v9778_v32 }
0x3271   :  { %v9837_v50 = vmul.f32 %v11747_v25, %v9836_v51 }
0x3273   :  { %v9839_v13 = vadd.f32 %v9838_v53, %v9837_v50 }
0x3275   :  { %v9840_v35 = vpack.c.bf16 %v9839_v13, %v9839_v13 }
0x3277   :  { %11043 = vmatmul.mubr.bf16.vlgmr.msra.gmra.mrb[148].mxu0 %v9840_v35 }
0x334a   :  { %v9946_v5 = vpop.f32.mrb[148].mxu0 }
0x334b   :  { %v9947_v48 = vadd.f32 %v11008_v22, %v9946_v5  ;;  %v11044_v30 = vpop.f32.mrb[149].mxu0 }
0x334c   :  { %v9949_v27 = vpop.f32.mrb[150].mxu0 }
0x334d   :  { %9952 = vst [vmem:[%s14226_s7] sm:$0xff] %v9947_v48  ;;  %v11045_v54 = vpop.f32.mrb[151].mxu0 }
0x334e   :  { %9957 = vsyncpa [#allocation5], 1 }
0x334f   :  { %9958 = vsyncpa [#allocation7], 1 }

</bundles_post_ra>
